<compile_context>
chip_gen: v7x
topology: tpu7x:2x2x1
jax: 0.10.0
libtpu: 0.0.40
codegen_flags: <defaults>
</compile_context>

<pallas_src>
import numpy as np
import jax
import jax.numpy as jnp
from jax.experimental import pallas as pl
from jax.experimental.pallas import tpu as pltpu

# ----------------------------------------------------------------------------------
# Model configuration (constructor args of DepthUNet, scaled down / small)
# ----------------------------------------------------------------------------------
INPUT_CHANNELS = 1
ENCODER_FILTERS = [8, 16, 32, 64]
EMBEDDING_DIM = 32
TEMPERATURE = 0.07
H_IN = 32
W_IN = 32

assert H_IN == W_IN and H_IN % (2 ** len(ENCODER_FILTERS)) == 0
assert INPUT_CHANNELS == 1  # first conv uses the cheap VPU path (spec default)


def _make_cfg():
    enc = []
    res = H_IN
    cin = INPUT_CHANNELS
    for f in ENCODER_FILTERS:
        enc.append(dict(in_res=res, out_res=res // 2, cin=cin, cout=f))
        res //= 2
        cin = f
    dec = []
    cu = ENCODER_FILTERS[-1]
    for j, f in enumerate(ENCODER_FILTERS[-1:0:-1]):
        idx = len(ENCODER_FILTERS) - 2 - j
        dec.append(dict(res=enc[idx]["out_res"], cu=cu, cs=ENCODER_FILTERS[idx], cout=f))
        cu = f
    return enc, dec


_ENC_CFG, _DEC_CFG = _make_cfg()


def _acc_len(res):   # lanes of a stride-1 "slab conv" output at resolution `res`
    return res * (res + 2) - 2


def _slab_len(res):  # lanes of a zero-padded flattened slab at resolution `res`
    return (res + 2) * (res + 2)


# ----------------------------------------------------------------------------------
# Static conv schedule + activation-slab table (derived from the filter config)
# ----------------------------------------------------------------------------------
def _build_schedule():
    ops = []
    n_enc = len(_ENC_CFG)
    for i, c in enumerate(_ENC_CFG):
        src_in = "x" if i == 0 else "e%d" % (i - 1)
        # stride-2 3x3 conv: stride-1 slab conv + fused subsample scatter
        ops.append(dict(res=c["in_res"], srcs=[(src_in, c["cin"])], cout=c["cout"],
                        scatter=("down", c["in_res"]), dst="d%d" % i))
        # stride-1 3x3 conv; the deepest one scatters straight into the 2x-upsampled
        # slab the decoder consumes (upsample fused into the producer layer)
        if i == n_enc - 1:
            scat, dst = ("up", c["out_res"]), "u0"
        else:
            scat, dst = ("keep", c["out_res"]), "e%d" % i
        ops.append(dict(res=c["out_res"], srcs=[("d%d" % i, c["cout"])], cout=c["cout"],
                        scatter=scat, dst=dst))
    for j, c in enumerate(_DEC_CFG):
        skip = "e%d" % (n_enc - 2 - j)
        if j == len(_DEC_CFG) - 1:
            scat, dst = ("compact", c["res"]), "c"
        else:
            scat, dst = ("up", c["res"]), "u%d" % (j + 1)
        ops.append(dict(res=c["res"], srcs=[("u%d" % j, c["cu"]), (skip, c["cs"])],
                        cout=c["cout"], scatter=scat, dst=dst))
    return ops


_SCHEDULE = _build_schedule()


def _build_slabs():
    slabs = {"x": (INPUT_CHANNELS, _slab_len(H_IN))}
    n_enc = len(_ENC_CFG)
    for i, c in enumerate(_ENC_CFG):
        slabs["d%d" % i] = (c["cout"], _slab_len(c["out_res"]))
        if i < n_enc - 1:
            slabs["e%d" % i] = (c["cout"], _slab_len(c["out_res"]))
    for j, c in enumerate(_DEC_CFG):
        slabs["u%d" % j] = (c["cu"], _slab_len(c["res"]))
    slabs["c"] = (_DEC_CFG[-1]["cout"], _DEC_CFG[-1]["res"] ** 2)
    return slabs


_SLABS = _build_slabs()
_SLAB_ORDER = list(_SLABS.keys())
_N_MM = len(_SCHEDULE) - 1                 # convs that use the im2col + single matmul path
_N_W = 2 + 2 * _N_MM + 2                   # flat weight/bias operands
_N_S = len(_SCHEDULE) + 1                  # scatter matrices (+ final upsample)
_COL_ROWS = max(sum(9 * cin for _, cin in op["srcs"]) for op in _SCHEDULE[1:])
_COL_LANES = max(_acc_len(op["res"]) for op in _SCHEDULE[1:])


# ----------------------------------------------------------------------------------
# Exact 0/1 selection matrices (host-side numpy; exact in bf16)
# ----------------------------------------------------------------------------------
def _scatter_matrix(kind, res):
    """(L, P): fuses junk-lane masking, stride-2 / nearest-2x resampling and the
    scatter into the destination slab layout (padding ring columns are zero)."""
    wp = res + 2
    L = _acc_len(res)
    p = np.arange(L)
    y, x = p // wp, p % wp
    valid = x < res
    if kind == "keep":
        owp = wp
        S = np.zeros((L, owp * owp), np.float32)
        q = (y + 1) * owp + (x + 1)
        S[p[valid], q[valid]] = 1.0
    elif kind == "down":
        owp = res // 2 + 2
        S = np.zeros((L, owp * owp), np.float32)
        keep = valid & (y % 2 == 0) & (x % 2 == 0)
        q = (y // 2 + 1) * owp + (x // 2 + 1)
        S[p[keep], q[keep]] = 1.0
    elif kind == "up":
        owp = 2 * res + 2
        S = np.zeros((L, owp * owp), np.float32)
        for ry in (0, 1):
            for rx in (0, 1):
                q = (2 * y + ry + 1) * owp + (2 * x + rx + 1)
                S[p[valid], q[valid]] = 1.0
    elif kind == "compact":
        S = np.zeros((L, res * res), np.float32)
        q = y * res + x
        S[p[valid], q[valid]] = 1.0
    else:
        raise ValueError(kind)
    return S


def _upsample_compact_matrix(res):
    out = 2 * res
    q = np.arange(out * out)
    yq, xq = q // out, q % out
    S = np.zeros((res * res, out * out), np.float32)
    S[(yq // 2) * res + (xq // 2), q] = 1.0
    return S


_SCATTER_NP = [_scatter_matrix(*op["scatter"]) for op in _SCHEDULE] + \
              [_upsample_compact_matrix(_DEC_CFG[-1]["res"])]


# ----------------------------------------------------------------------------------
# The fused kernel: one grid step == `images_per_step` images of the batch
# ----------------------------------------------------------------------------------
def _depth_unet_kernel(*refs):
    x_ref = refs[0]
    w_refs = refs[1:1 + _N_W]
    s_refs = refs[1 + _N_W:1 + _N_W + _N_S]
    out_ref = refs[1 + _N_W + _N_S]
    scratch = refs[2 + _N_W + _N_S:]
    slab = {name: scratch[i] for i, name in enumerate(_SLAB_ORDER)}
    col = scratch[len(_SLAB_ORDER)]

    n_img = x_ref.shape[0]   # images per grid step (static)
    for ib in range(n_img):
        # input image -> padded bf16 input slab (zero ring provided by host-side pad)
        slab["x"][...] = x_ref[ib]

        # ---- first conv (Cin == 1): 9 VPU broadcast-MACs with a tap-major weight,
        #      then ONE selection matmul fusing junk-lane masking + stride-2
        #      subsample + scatter into the half-res padded slab (single wide store).
        op = _SCHEDULE[0]
        wp, ln = op["res"] + 2, _acc_len(op["res"])
        src = slab[op["srcs"][0][0]]
        acc = jnp.zeros((op["cout"], ln), jnp.float32)
        for t in range(9):
            a = (t // 3) * wp + (t % 3)
            acc = acc + w_refs[0][t] * src[:, a:a + ln].astype(jnp.float32)
        r = jnp.maximum(acc + w_refs[1][...], 0.0).astype(jnp.bfloat16)
        slab[op["dst"]][...] = jnp.dot(
            r, s_refs[0][...], preferred_element_type=jnp.float32).astype(jnp.bfloat16)

        # ---- remaining 3x3 convs: im2col once (K = 9*Cin_total, concat fused as a
        #      K-split), ONE MXU matmul, bias + ReLU (bf16 cast once), then ONE
        #      scatter matmul (keep / stride-2 / nearest-2x / de-pad) writing the
        #      whole destination slab (ring zeros included) in a single store.
        for k, op in enumerate(_SCHEDULE[1:]):
            wp, ln = op["res"] + 2, _acc_len(op["res"])
            w_ref, b_ref = w_refs[2 + 2 * k], w_refs[3 + 2 * k]
            r0 = 0
            for name, cin in op["srcs"]:
                src = slab[name]
                for t in range(9):
                    a = (t // 3) * wp + (t % 3)
                    col[r0 + t * cin:r0 + (t + 1) * cin, :ln] = src[:, a:a + ln]
                r0 += 9 * cin
            acc = jnp.dot(w_ref[...], col[:r0, :ln],
                          preferred_element_type=jnp.float32) + b_ref[...]
            r = jnp.maximum(acc, 0.0).astype(jnp.bfloat16)
            slab[op["dst"]][...] = jnp.dot(
                r, s_refs[1 + k][...], preferred_element_type=jnp.float32).astype(jnp.bfloat16)

        # ---- final: nearest 2x upsample (exact 0/1 selection matmul) + 1x1 projection
        up = jnp.dot(slab["c"][...], s_refs[_N_S - 1][...],
                     preferred_element_type=jnp.float32).astype(jnp.bfloat16)
        out_ref[ib] = jnp.dot(w_refs[_N_W - 2][...], up,
                              preferred_element_type=jnp.float32) + w_refs[_N_W - 1][...]


# ----------------------------------------------------------------------------------
# Parameters (deterministic kaiming-uniform; conv weights stored as (Cout, 9*Cin),
# column order = tap*Cin + cin, identical to the reference's im2col ordering)
# ----------------------------------------------------------------------------------
def init_depth_unet_params(key):
    def conv_init(k, cout, cols, fan_in):
        kw, kb = jax.random.split(k)
        bw = (6.0 / fan_in) ** 0.5
        bb = 1.0 / fan_in ** 0.5
        w = jax.random.uniform(kw, (cout, cols), jnp.float32, -bw, bw)
        b = jax.random.uniform(kb, (cout, 1), jnp.float32, -bb, bb)
        return w, b

    params = {"encoder": [], "decoder": []}
    for c in _ENC_CFG:
        key, k1, k2 = jax.random.split(key, 3)
        wd, bd = conv_init(k1, c["cout"], 9 * c["cin"], 9 * c["cin"])
        wc, bc = conv_init(k2, c["cout"], 9 * c["cout"], 9 * c["cout"])
        params["encoder"].append({"w_down": wd, "b_down": bd, "w_conv": wc, "b_conv": bc})
    for c in _DEC_CFG:
        key, k1, k2 = jax.random.split(key, 3)
        fan_in = 9 * (c["cu"] + c["cs"])
        wu, b = conv_init(k1, c["cout"], 9 * c["cu"], fan_in)
        ws, _ = conv_init(k2, c["cout"], 9 * c["cs"], fan_in)
        params["decoder"].append({"w_up": wu, "w_skip": ws, "b": b})
    key, k = jax.random.split(key)
    cin = _DEC_CFG[-1]["cout"]
    wp_, bp_ = conv_init(k, EMBEDDING_DIM, cin, cin)
    params["out_proj"] = {"w": wp_, "b": bp_}
    params["log_temperature"] = jnp.log(jnp.asarray(TEMPERATURE, jnp.float32))  # unused by forward()
    return params


def _flatten_params(params):
    """bf16 weights (amp), f32 biases; order matches the kernel's schedule unpacking."""
    enc, dec = params["encoder"], params["decoder"]
    c0 = _ENC_CFG[0]
    # first conv: tap-major (9, Cout, Cin), bf16-rounded but stored f32 (VPU path)
    w0 = enc[0]["w_down"].reshape(c0["cout"], 9, c0["cin"]).transpose(1, 0, 2)
    flat = [w0.astype(jnp.bfloat16).astype(jnp.float32), enc[0]["b_down"]]
    for i, blk in enumerate(enc):
        if i > 0:
            flat += [blk["w_down"].astype(jnp.bfloat16), blk["b_down"]]
        flat += [blk["w_conv"].astype(jnp.bfloat16), blk["b_conv"]]
    for blk in dec:   # concat-along-K weight (up part first, then skip part)
        flat += [jnp.concatenate([blk["w_up"], blk["w_skip"]], axis=1).astype(jnp.bfloat16),
                 blk["b"]]
    flat += [params["out_proj"]["w"].astype(jnp.bfloat16), params["out_proj"]["b"]]
    return flat


def _scratch_shapes():
    shapes = [pltpu.VMEM(_SLABS[name], jnp.bfloat16) for name in _SLAB_ORDER]
    shapes.append(pltpu.VMEM((_COL_ROWS, _COL_LANES), jnp.bfloat16))  # shared im2col buffer
    return shapes


def _const_index_map(ndim):
    return lambda b: (0,) * ndim


# ----------------------------------------------------------------------------------
# Public forward (NCHW in -> NCHW out), single fused pallas_call
# ----------------------------------------------------------------------------------
def depth_unet_forward(params, depth_map, *, images_per_step=1):
    B = depth_map.shape[0]
    assert depth_map.shape[1:] == (INPUT_CHANNELS, H_IN, W_IN)
    bb = images_per_step
    assert B % bb == 0, "batch must be divisible by images_per_step"
    p0 = _slab_len(H_IN)

    # host-side layout plumbing only: autocast bf16 cast + zero padding ring
    x = depth_map.astype(jnp.bfloat16)
    x = jnp.pad(x, ((0, 0), (0, 0), (1, 1), (1, 1)))
    x = x.reshape(B, INPUT_CHANNELS, p0)

    flat_w = _flatten_params(params)
    scatters = [jnp.asarray(m, jnp.bfloat16) for m in _SCATTER_NP]
    consts = flat_w + scatters

    in_specs = [pl.BlockSpec((bb, INPUT_CHANNELS, p0), lambda b: (b, 0, 0))]
    in_specs += [pl.BlockSpec(c.shape, _const_index_map(c.ndim)) for c in consts]

    out = pl.pallas_call(
        _depth_unet_kernel,
        out_shape=jax.ShapeDtypeStruct((B, EMBEDDING_DIM, H_IN * W_IN), jnp.float32),
        grid=(B // bb,),
        in_specs=in_specs,
        out_specs=pl.BlockSpec((bb, EMBEDDING_DIM, H_IN * W_IN), lambda b: (b, 0, 0)),
        scratch_shapes=_scratch_shapes(),
        compiler_params=pltpu.CompilerParams(dimension_semantics=("parallel",)),
    )(x, *consts)
    return out.reshape(B, EMBEDDING_DIM, H_IN, W_IN)


# ----------------------------------------------------------------------------------
# Plain-JAX reference (same math, same bf16 rounding points) for validation
# ----------------------------------------------------------------------------------
def _ref_conv3x3(x, w_t, b, stride, relu):
    Bn, Hh, Ww, cin = x.shape
    cout = w_t.shape[0]
    Ho = (Hh - 1) // stride + 1
    Wo = (Ww - 1) // stride + 1
    xp = jnp.pad(x, ((0, 0), (1, 1), (1, 1), (0, 0)))
    cols = [xp[:, dy:dy + stride * (Ho - 1) + 1:stride, dx:dx + stride * (Wo - 1) + 1:stride, :]
            for dy in range(3) for dx in range(3)]
    patches = jnp.concatenate(cols, axis=-1).reshape(Bn * Ho * Wo, 9 * cin)
    y = jnp.dot(patches.astype(jnp.bfloat16), w_t.astype(jnp.bfloat16).T,
                preferred_element_type=jnp.float32).reshape(Bn, Ho, Wo, cout)
    if b is not None:
        y = y + b.reshape(1, 1, 1, cout)
    return jnp.maximum(y, 0.0) if relu else y


def depth_unet_forward_reference(params, depth_map):
    x = jnp.transpose(depth_map, (0, 2, 3, 1)).astype(jnp.float32)
    skips = []
    for blk in params["encoder"]:
        x = _ref_conv3x3(x, blk["w_down"], blk["b_down"], 2, True)
        x = _ref_conv3x3(x, blk["w_conv"], blk["b_conv"], 1, True)
        skips.append(x)
    for j, blk in enumerate(params["decoder"]):
        x = jnp.repeat(jnp.repeat(x, 2, axis=1), 2, axis=2)
        skip = skips[len(skips) - 2 - j]
        y = (_ref_conv3x3(x, blk["w_up"], None, 1, False)
             + _ref_conv3x3(skip, blk["w_skip"], None, 1, False))
        x = jnp.maximum(y + blk["b"].reshape(1, 1, 1, -1), 0.0)
    x = jnp.repeat(jnp.repeat(x, 2, axis=1), 2, axis=2)
    Bn, Hh, Ww, c = x.shape
    y = jnp.dot(x.reshape(-1, c).astype(jnp.bfloat16),
                params["out_proj"]["w"].astype(jnp.bfloat16).T,
                preferred_element_type=jnp.float32) + params["out_proj"]["b"].reshape(1, -1)
    return jnp.transpose(y.reshape(Bn, Hh, Ww, EMBEDDING_DIM), (0, 3, 1, 2))


# ----------------------------------------------------------------------------------
# Main
# ----------------------------------------------------------------------------------
if __name__ == "__main__":
    key = jax.random.PRNGKey(0)
    pkey, xkey = jax.random.split(key)
    params = init_depth_unet_params(pkey)

    depth_map = jax.random.uniform(xkey, (2, INPUT_CHANNELS, H_IN, W_IN), jnp.float32)

    fwd = jax.jit(depth_unet_forward)
    out = jax.block_until_ready(fwd(params, depth_map))

    assert out.shape == (2, EMBEDDING_DIM, H_IN, W_IN), out.shape
    assert out.dtype == jnp.float32
    assert bool(jnp.all(jnp.isfinite(out)))

    ref = jax.block_until_ready(jax.jit(depth_unet_forward_reference)(params, depth_map))
    max_err = float(jnp.max(jnp.abs(out - ref)))
    assert max_err < 3e-2, f"kernel/reference mismatch: max_abs_err={max_err}"

    print("KERNEL_OK")
</pallas_src>

<mosaic_0001>
module attributes {stable_mosaic.version = 11 : i64} {
  func.func @_depth_unet_kernel(%arg0: i32, %arg1: memref<1x1x1156xbf16, #tpu.memory_space<vmem>>, %arg2: memref<9x8x1xf32, #tpu.memory_space<vmem>>, %arg3: memref<8x1xf32, #tpu.memory_space<vmem>>, %arg4: memref<8x72xbf16, #tpu.memory_space<vmem>>, %arg5: memref<8x1xf32, #tpu.memory_space<vmem>>, %arg6: memref<16x72xbf16, #tpu.memory_space<vmem>>, %arg7: memref<16x1xf32, #tpu.memory_space<vmem>>, %arg8: memref<16x144xbf16, #tpu.memory_space<vmem>>, %arg9: memref<16x1xf32, #tpu.memory_space<vmem>>, %arg10: memref<32x144xbf16, #tpu.memory_space<vmem>>, %arg11: memref<32x1xf32, #tpu.memory_space<vmem>>, %arg12: memref<32x288xbf16, #tpu.memory_space<vmem>>, %arg13: memref<32x1xf32, #tpu.memory_space<vmem>>, %arg14: memref<64x288xbf16, #tpu.memory_space<vmem>>, %arg15: memref<64x1xf32, #tpu.memory_space<vmem>>, %arg16: memref<64x576xbf16, #tpu.memory_space<vmem>>, %arg17: memref<64x1xf32, #tpu.memory_space<vmem>>, %arg18: memref<64x864xbf16, #tpu.memory_space<vmem>>, %arg19: memref<64x1xf32, #tpu.memory_space<vmem>>, %arg20: memref<32x720xbf16, #tpu.memory_space<vmem>>, %arg21: memref<32x1xf32, #tpu.memory_space<vmem>>, %arg22: memref<16x360xbf16, #tpu.memory_space<vmem>>, %arg23: memref<16x1xf32, #tpu.memory_space<vmem>>, %arg24: memref<32x16xbf16, #tpu.memory_space<vmem>>, %arg25: memref<32x1xf32, #tpu.memory_space<vmem>>, %arg26: memref<1086x324xbf16, #tpu.memory_space<vmem>>, %arg27: memref<286x324xbf16, #tpu.memory_space<vmem>>, %arg28: memref<286x100xbf16, #tpu.memory_space<vmem>>, %arg29: memref<78x100xbf16, #tpu.memory_space<vmem>>, %arg30: memref<78x36xbf16, #tpu.memory_space<vmem>>, %arg31: memref<22x36xbf16, #tpu.memory_space<vmem>>, %arg32: memref<22x16xbf16, #tpu.memory_space<vmem>>, %arg33: memref<6x36xbf16, #tpu.memory_space<vmem>>, %arg34: memref<22x100xbf16, #tpu.memory_space<vmem>>, %arg35: memref<78x324xbf16, #tpu.memory_space<vmem>>, %arg36: memref<286x256xbf16, #tpu.memory_space<vmem>>, %arg37: memref<256x1024xbf16, #tpu.memory_space<vmem>>, %arg38: memref<1x32x1024xf32, #tpu.memory_space<vmem>>, %arg39: memref<1x1156xbf16, #tpu.memory_space<vmem>>, %arg40: memref<8x324xbf16, #tpu.memory_space<vmem>>, %arg41: memref<8x324xbf16, #tpu.memory_space<vmem>>, %arg42: memref<16x100xbf16, #tpu.memory_space<vmem>>, %arg43: memref<16x100xbf16, #tpu.memory_space<vmem>>, %arg44: memref<32x36xbf16, #tpu.memory_space<vmem>>, %arg45: memref<32x36xbf16, #tpu.memory_space<vmem>>, %arg46: memref<64x16xbf16, #tpu.memory_space<vmem>>, %arg47: memref<64x36xbf16, #tpu.memory_space<vmem>>, %arg48: memref<64x100xbf16, #tpu.memory_space<vmem>>, %arg49: memref<32x324xbf16, #tpu.memory_space<vmem>>, %arg50: memref<16x256xbf16, #tpu.memory_space<vmem>>, %arg51: memref<864x286xbf16, #tpu.memory_space<vmem>>) attributes {dimension_semantics = [#tpu.dimension_semantics<parallel>], iteration_bounds = array<i64: 2>, scalar_prefetch = 0 : i64, scratch_operands = 13 : i64, tpu.core_type = #tpu.core_type<tc>, window_params = [{transform_indices = @transform_0, window_bounds = array<i64: 1, 1, 1156>}, {pipeline_mode = #tpu.pipeline_mode<synchronous>, transform_indices = @transform_1, window_bounds = array<i64: 9, 8, 1>}, {pipeline_mode = #tpu.pipeline_mode<synchronous>, transform_indices = @transform_2, window_bounds = array<i64: 8, 1>}, {pipeline_mode = #tpu.pipeline_mode<synchronous>, transform_indices = @transform_3, window_bounds = array<i64: 8, 72>}, {pipeline_mode = #tpu.pipeline_mode<synchronous>, transform_indices = @transform_4, window_bounds = array<i64: 8, 1>}, {pipeline_mode = #tpu.pipeline_mode<synchronous>, transform_indices = @transform_5, window_bounds = array<i64: 16, 72>}, {pipeline_mode = #tpu.pipeline_mode<synchronous>, transform_indices = @transform_6, window_bounds = array<i64: 16, 1>}, {pipeline_mode = #tpu.pipeline_mode<synchronous>, transform_indices = @transform_7, window_bounds = array<i64: 16, 144>}, {pipeline_mode = #tpu.pipeline_mode<synchronous>, transform_indices = @transform_8, window_bounds = array<i64: 16, 1>}, {pipeline_mode = #tpu.pipeline_mode<synchronous>, transform_indices = @transform_9, window_bounds = array<i64: 32, 144>}, {pipeline_mode = #tpu.pipeline_mode<synchronous>, transform_indices = @transform_10, window_bounds = array<i64: 32, 1>}, {pipeline_mode = #tpu.pipeline_mode<synchronous>, transform_indices = @transform_11, window_bounds = array<i64: 32, 288>}, {pipeline_mode = #tpu.pipeline_mode<synchronous>, transform_indices = @transform_12, window_bounds = array<i64: 32, 1>}, {pipeline_mode = #tpu.pipeline_mode<synchronous>, transform_indices = @transform_13, window_bounds = array<i64: 64, 288>}, {pipeline_mode = #tpu.pipeline_mode<synchronous>, transform_indices = @transform_14, window_bounds = array<i64: 64, 1>}, {pipeline_mode = #tpu.pipeline_mode<synchronous>, transform_indices = @transform_15, window_bounds = array<i64: 64, 576>}, {pipeline_mode = #tpu.pipeline_mode<synchronous>, transform_indices = @transform_16, window_bounds = array<i64: 64, 1>}, {pipeline_mode = #tpu.pipeline_mode<synchronous>, transform_indices = @transform_17, window_bounds = array<i64: 64, 864>}, {pipeline_mode = #tpu.pipeline_mode<synchronous>, transform_indices = @transform_18, window_bounds = array<i64: 64, 1>}, {pipeline_mode = #tpu.pipeline_mode<synchronous>, transform_indices = @transform_19, window_bounds = array<i64: 32, 720>}, {pipeline_mode = #tpu.pipeline_mode<synchronous>, transform_indices = @transform_20, window_bounds = array<i64: 32, 1>}, {pipeline_mode = #tpu.pipeline_mode<synchronous>, transform_indices = @transform_21, window_bounds = array<i64: 16, 360>}, {pipeline_mode = #tpu.pipeline_mode<synchronous>, transform_indices = @transform_22, window_bounds = array<i64: 16, 1>}, {pipeline_mode = #tpu.pipeline_mode<synchronous>, transform_indices = @transform_23, window_bounds = array<i64: 32, 16>}, {pipeline_mode = #tpu.pipeline_mode<synchronous>, transform_indices = @transform_24, window_bounds = array<i64: 32, 1>}, {pipeline_mode = #tpu.pipeline_mode<synchronous>, transform_indices = @transform_25, window_bounds = array<i64: 1086, 324>}, {pipeline_mode = #tpu.pipeline_mode<synchronous>, transform_indices = @transform_26, window_bounds = array<i64: 286, 324>}, {pipeline_mode = #tpu.pipeline_mode<synchronous>, transform_indices = @transform_27, window_bounds = array<i64: 286, 100>}, {pipeline_mode = #tpu.pipeline_mode<synchronous>, transform_indices = @transform_28, window_bounds = array<i64: 78, 100>}, {pipeline_mode = #tpu.pipeline_mode<synchronous>, transform_indices = @transform_29, window_bounds = array<i64: 78, 36>}, {pipeline_mode = #tpu.pipeline_mode<synchronous>, transform_indices = @transform_30, window_bounds = array<i64: 22, 36>}, {pipeline_mode = #tpu.pipeline_mode<synchronous>, transform_indices = @transform_31, window_bounds = array<i64: 22, 16>}, {pipeline_mode = #tpu.pipeline_mode<synchronous>, transform_indices = @transform_32, window_bounds = array<i64: 6, 36>}, {pipeline_mode = #tpu.pipeline_mode<synchronous>, transform_indices = @transform_33, window_bounds = array<i64: 22, 100>}, {pipeline_mode = #tpu.pipeline_mode<synchronous>, transform_indices = @transform_34, window_bounds = array<i64: 78, 324>}, {pipeline_mode = #tpu.pipeline_mode<synchronous>, transform_indices = @transform_35, window_bounds = array<i64: 286, 256>}, {pipeline_mode = #tpu.pipeline_mode<synchronous>, transform_indices = @transform_36, window_bounds = array<i64: 256, 1024>}, {transform_indices = @transform_37, window_bounds = array<i64: 1, 32, 1024>}]} {
    %c0 = arith.constant 0 : index
    %c0_0 = arith.constant 0 : index
    %c0_1 = arith.constant 0 : index
    %0 = vector.load %arg1[%c0, %c0_0, %c0_1] : memref<1x1x1156xbf16, #tpu.memory_space<vmem>>, vector<1x1x1156xbf16>
    %1 = vector.shape_cast %0 : vector<1x1x1156xbf16> to vector<1x1156xbf16>
    %c0_2 = arith.constant 0 : index
    %c0_3 = arith.constant 0 : index
    %2 = vector.load %arg39[%c0_2, %c0_3] : memref<1x1156xbf16, #tpu.memory_space<vmem>>, vector<1x1156xbf16>
    tpu.vector_store %arg39[%c0_2, %c0_3], %1 {strides = array<i32>} : memref<1x1156xbf16, #tpu.memory_space<vmem>>, vector<1x1156xbf16>,
    %cst = arith.constant 0.000000e+00 : f32
    %3 = vector.broadcast %cst : f32 to vector<8x1086xf32>
    %c0_4 = arith.constant 0 : index
    %c0_5 = arith.constant 0 : index
    %c0_6 = arith.constant 0 : index
    %4 = vector.load %arg2[%c0_4, %c0_5, %c0_6] : memref<9x8x1xf32, #tpu.memory_space<vmem>>, vector<1x8x1xf32>
    %5 = vector.shape_cast %4 : vector<1x8x1xf32> to vector<8x1xf32>
    %c0_7 = arith.constant 0 : index
    %c0_8 = arith.constant 0 : index
    %6 = vector.load %arg39[%c0_7, %c0_8] : memref<1x1156xbf16, #tpu.memory_space<vmem>>, vector<1x1086xbf16>
    %7 = arith.extf %6 : vector<1x1086xbf16> to vector<1x1086xf32>
    %8 = vector.broadcast %5 : vector<8x1xf32> to vector<8x1086xf32>
    %9 = vector.broadcast %7 : vector<1x1086xf32> to vector<8x1086xf32>
    %10 = arith.mulf %8, %9 : vector<8x1086xf32>
    %11 = arith.addf %3, %10 : vector<8x1086xf32>
    %c1 = arith.constant 1 : index
    %c0_9 = arith.constant 0 : index
    %c0_10 = arith.constant 0 : index
    %12 = vector.load %arg2[%c1, %c0_9, %c0_10] : memref<9x8x1xf32, #tpu.memory_space<vmem>>, vector<1x8x1xf32>
    %13 = vector.shape_cast %12 : vector<1x8x1xf32> to vector<8x1xf32>
    %c0_11 = arith.constant 0 : index
    %c1_12 = arith.constant 1 : index
    %14 = vector.load %arg39[%c0_11, %c1_12] : memref<1x1156xbf16, #tpu.memory_space<vmem>>, vector<1x1086xbf16>
    %15 = arith.extf %14 : vector<1x1086xbf16> to vector<1x1086xf32>
    %16 = vector.broadcast %13 : vector<8x1xf32> to vector<8x1086xf32>
    %17 = vector.broadcast %15 : vector<1x1086xf32> to vector<8x1086xf32>
    %18 = arith.mulf %16, %17 : vector<8x1086xf32>
    %19 = arith.addf %11, %18 : vector<8x1086xf32>
    %c2 = arith.constant 2 : index
    %c0_13 = arith.constant 0 : index
    %c0_14 = arith.constant 0 : index
    %20 = vector.load %arg2[%c2, %c0_13, %c0_14] : memref<9x8x1xf32, #tpu.memory_space<vmem>>, vector<1x8x1xf32>
    %21 = vector.shape_cast %20 : vector<1x8x1xf32> to vector<8x1xf32>
    %c0_15 = arith.constant 0 : index
    %c2_16 = arith.constant 2 : index
    %22 = vector.load %arg39[%c0_15, %c2_16] : memref<1x1156xbf16, #tpu.memory_space<vmem>>, vector<1x1086xbf16>
    %23 = arith.extf %22 : vector<1x1086xbf16> to vector<1x1086xf32>
    %24 = vector.broadcast %21 : vector<8x1xf32> to vector<8x1086xf32>
    %25 = vector.broadcast %23 : vector<1x1086xf32> to vector<8x1086xf32>
    %26 = arith.mulf %24, %25 : vector<8x1086xf32>
    %27 = arith.addf %19, %26 : vector<8x1086xf32>
    %c3 = arith.constant 3 : index
    %c0_17 = arith.constant 0 : index
    %c0_18 = arith.constant 0 : index
    %28 = vector.load %arg2[%c3, %c0_17, %c0_18] : memref<9x8x1xf32, #tpu.memory_space<vmem>>, vector<1x8x1xf32>
    %29 = vector.shape_cast %28 : vector<1x8x1xf32> to vector<8x1xf32>
    %c0_19 = arith.constant 0 : index
    %c34 = arith.constant 34 : index
    %30 = vector.load %arg39[%c0_19, %c34] : memref<1x1156xbf16, #tpu.memory_space<vmem>>, vector<1x1086xbf16>
    %31 = arith.extf %30 : vector<1x1086xbf16> to vector<1x1086xf32>
    %32 = vector.broadcast %29 : vector<8x1xf32> to vector<8x1086xf32>
    %33 = vector.broadcast %31 : vector<1x1086xf32> to vector<8x1086xf32>
    %34 = arith.mulf %32, %33 : vector<8x1086xf32>
    %35 = arith.addf %27, %34 : vector<8x1086xf32>
    %c4 = arith.constant 4 : index
    %c0_20 = arith.constant 0 : index
    %c0_21 = arith.constant 0 : index
    %36 = vector.load %arg2[%c4, %c0_20, %c0_21] : memref<9x8x1xf32, #tpu.memory_space<vmem>>, vector<1x8x1xf32>
    %37 = vector.shape_cast %36 : vector<1x8x1xf32> to vector<8x1xf32>
    %c0_22 = arith.constant 0 : index
    %c35 = arith.constant 35 : index
    %38 = vector.load %arg39[%c0_22, %c35] : memref<1x1156xbf16, #tpu.memory_space<vmem>>, vector<1x1086xbf16>
    %39 = arith.extf %38 : vector<1x1086xbf16> to vector<1x1086xf32>
    %40 = vector.broadcast %37 : vector<8x1xf32> to vector<8x1086xf32>
    %41 = vector.broadcast %39 : vector<1x1086xf32> to vector<8x1086xf32>
    %42 = arith.mulf %40, %41 : vector<8x1086xf32>
    %43 = arith.addf %35, %42 : vector<8x1086xf32>
    %c5 = arith.constant 5 : index
    %c0_23 = arith.constant 0 : index
    %c0_24 = arith.constant 0 : index
    %44 = vector.load %arg2[%c5, %c0_23, %c0_24] : memref<9x8x1xf32, #tpu.memory_space<vmem>>, vector<1x8x1xf32>
    %45 = vector.shape_cast %44 : vector<1x8x1xf32> to vector<8x1xf32>
    %c0_25 = arith.constant 0 : index
    %c36 = arith.constant 36 : index
    %46 = vector.load %arg39[%c0_25, %c36] : memref<1x1156xbf16, #tpu.memory_space<vmem>>, vector<1x1086xbf16>
    %47 = arith.extf %46 : vector<1x1086xbf16> to vector<1x1086xf32>
    %48 = vector.broadcast %45 : vector<8x1xf32> to vector<8x1086xf32>
    %49 = vector.broadcast %47 : vector<1x1086xf32> to vector<8x1086xf32>
    %50 = arith.mulf %48, %49 : vector<8x1086xf32>
    %51 = arith.addf %43, %50 : vector<8x1086xf32>
    %c6 = arith.constant 6 : index
    %c0_26 = arith.constant 0 : index
    %c0_27 = arith.constant 0 : index
    %52 = vector.load %arg2[%c6, %c0_26, %c0_27] : memref<9x8x1xf32, #tpu.memory_space<vmem>>, vector<1x8x1xf32>
    %53 = vector.shape_cast %52 : vector<1x8x1xf32> to vector<8x1xf32>
    %c0_28 = arith.constant 0 : index
    %c68 = arith.constant 68 : index
    %54 = vector.load %arg39[%c0_28, %c68] : memref<1x1156xbf16, #tpu.memory_space<vmem>>, vector<1x1086xbf16>
    %55 = arith.extf %54 : vector<1x1086xbf16> to vector<1x1086xf32>
    %56 = vector.broadcast %53 : vector<8x1xf32> to vector<8x1086xf32>
    %57 = vector.broadcast %55 : vector<1x1086xf32> to vector<8x1086xf32>
    %58 = arith.mulf %56, %57 : vector<8x1086xf32>
    %59 = arith.addf %51, %58 : vector<8x1086xf32>
    %c7 = arith.constant 7 : index
    %c0_29 = arith.constant 0 : index
    %c0_30 = arith.constant 0 : index
    %60 = vector.load %arg2[%c7, %c0_29, %c0_30] : memref<9x8x1xf32, #tpu.memory_space<vmem>>, vector<1x8x1xf32>
    %61 = vector.shape_cast %60 : vector<1x8x1xf32> to vector<8x1xf32>
    %c0_31 = arith.constant 0 : index
    %c69 = arith.constant 69 : index
    %62 = vector.load %arg39[%c0_31, %c69] : memref<1x1156xbf16, #tpu.memory_space<vmem>>, vector<1x1086xbf16>
    %63 = arith.extf %62 : vector<1x1086xbf16> to vector<1x1086xf32>
    %64 = vector.broadcast %61 : vector<8x1xf32> to vector<8x1086xf32>
    %65 = vector.broadcast %63 : vector<1x1086xf32> to vector<8x1086xf32>
    %66 = arith.mulf %64, %65 : vector<8x1086xf32>
    %67 = arith.addf %59, %66 : vector<8x1086xf32>
    %c8 = arith.constant 8 : index
    %c0_32 = arith.constant 0 : index
    %c0_33 = arith.constant 0 : index
    %68 = vector.load %arg2[%c8, %c0_32, %c0_33] : memref<9x8x1xf32, #tpu.memory_space<vmem>>, vector<1x8x1xf32>
    %69 = vector.shape_cast %68 : vector<1x8x1xf32> to vector<8x1xf32>
    %c0_34 = arith.constant 0 : index
    %c70 = arith.constant 70 : index
    %70 = vector.load %arg39[%c0_34, %c70] : memref<1x1156xbf16, #tpu.memory_space<vmem>>, vector<1x1086xbf16>
    %71 = arith.extf %70 : vector<1x1086xbf16> to vector<1x1086xf32>
    %72 = vector.broadcast %69 : vector<8x1xf32> to vector<8x1086xf32>
    %73 = vector.broadcast %71 : vector<1x1086xf32> to vector<8x1086xf32>
    %74 = arith.mulf %72, %73 : vector<8x1086xf32>
    %75 = arith.addf %67, %74 : vector<8x1086xf32>
    %c0_35 = arith.constant 0 : index
    %c0_36 = arith.constant 0 : index
    %76 = vector.load %arg3[%c0_35, %c0_36] : memref<8x1xf32, #tpu.memory_space<vmem>>, vector<8x1xf32>
    %77 = vector.broadcast %76 : vector<8x1xf32> to vector<8x1086xf32>
    %78 = arith.addf %75, %77 : vector<8x1086xf32>
    %cst_37 = arith.constant 0.000000e+00 : f32
    %79 = vector.broadcast %cst_37 : f32 to vector<8x1086xf32>
    %80 = arith.maximumf %78, %79 : vector<8x1086xf32>
    %81 = arith.truncf %80 : vector<8x1086xf32> to vector<8x1086xbf16>
    %c0_38 = arith.constant 0 : index
    %c0_39 = arith.constant 0 : index
    %82 = vector.load %arg26[%c0_38, %c0_39] : memref<1086x324xbf16, #tpu.memory_space<vmem>>, vector<1086x324xbf16>
    %cst_40 = arith.constant dense<0.000000e+00> : vector<8x324xf32>
    %83 = tpu.matmul %81, %82, %cst_40 {dimension_numbers = #tpu.dot_dimension_numbers<[1], [0], [0], [1], [0, 0, 1, 1], [], []>} : vector<8x1086xbf16>, vector<1086x324xbf16>, vector<8x324xf32> -> vector<8x324xf32>
    %84 = arith.truncf %83 : vector<8x324xf32> to vector<8x324xbf16>
    %c0_41 = arith.constant 0 : index
    %c0_42 = arith.constant 0 : index
    %85 = vector.load %arg40[%c0_41, %c0_42] : memref<8x324xbf16, #tpu.memory_space<vmem>>, vector<8x324xbf16>
    tpu.vector_store %arg40[%c0_41, %c0_42], %84 {strides = array<i32>} : memref<8x324xbf16, #tpu.memory_space<vmem>>, vector<8x324xbf16>,
    %c0_43 = arith.constant 0 : index
    %c0_44 = arith.constant 0 : index
    %86 = vector.load %arg40[%c0_43, %c0_44] : memref<8x324xbf16, #tpu.memory_space<vmem>>, vector<8x286xbf16>
    %c0_45 = arith.constant 0 : index
    %c0_46 = arith.constant 0 : index
    %87 = vector.load %arg51[%c0_45, %c0_46] : memref<864x286xbf16, #tpu.memory_space<vmem>>, vector<8x286xbf16>
    tpu.vector_store %arg51[%c0_45, %c0_46], %86 {strides = array<i32>} : memref<864x286xbf16, #tpu.memory_space<vmem>>, vector<8x286xbf16>,
    %c0_47 = arith.constant 0 : index
    %c1_48 = arith.constant 1 : index
    %88 = vector.load %arg40[%c0_47, %c1_48] : memref<8x324xbf16, #tpu.memory_space<vmem>>, vector<8x286xbf16>
    %c8_49 = arith.constant 8 : index
    %c0_50 = arith.constant 0 : index
    %89 = vector.load %arg51[%c8_49, %c0_50] : memref<864x286xbf16, #tpu.memory_space<vmem>>, vector<8x286xbf16>
    tpu.vector_store %arg51[%c8_49, %c0_50], %88 {strides = array<i32>} : memref<864x286xbf16, #tpu.memory_space<vmem>>, vector<8x286xbf16>,
    %c0_51 = arith.constant 0 : index
    %c2_52 = arith.constant 2 : index
    %90 = vector.load %arg40[%c0_51, %c2_52] : memref<8x324xbf16, #tpu.memory_space<vmem>>, vector<8x286xbf16>
    %c16 = arith.constant 16 : index
    %c0_53 = arith.constant 0 : index
    %91 = vector.load %arg51[%c16, %c0_53] : memref<864x286xbf16, #tpu.memory_space<vmem>>, vector<8x286xbf16>
    tpu.vector_store %arg51[%c16, %c0_53], %90 {strides = array<i32>} : memref<864x286xbf16, #tpu.memory_space<vmem>>, vector<8x286xbf16>,
    %c0_54 = arith.constant 0 : index
    %c18 = arith.constant 18 : index
    %92 = vector.load %arg40[%c0_54, %c18] : memref<8x324xbf16, #tpu.memory_space<vmem>>, vector<8x286xbf16>
    %c24 = arith.constant 24 : index
    %c0_55 = arith.constant 0 : index
    %93 = vector.load %arg51[%c24, %c0_55] : memref<864x286xbf16, #tpu.memory_space<vmem>>, vector<8x286xbf16>
    tpu.vector_store %arg51[%c24, %c0_55], %92 {strides = array<i32>} : memref<864x286xbf16, #tpu.memory_space<vmem>>, vector<8x286xbf16>,
    %c0_56 = arith.constant 0 : index
    %c19 = arith.constant 19 : index
    %94 = vector.load %arg40[%c0_56, %c19] : memref<8x324xbf16, #tpu.memory_space<vmem>>, vector<8x286xbf16>
    %c32 = arith.constant 32 : index
    %c0_57 = arith.constant 0 : index
    %95 = vector.load %arg51[%c32, %c0_57] : memref<864x286xbf16, #tpu.memory_space<vmem>>, vector<8x286xbf16>
    tpu.vector_store %arg51[%c32, %c0_57], %94 {strides = array<i32>} : memref<864x286xbf16, #tpu.memory_space<vmem>>, vector<8x286xbf16>,
    %c0_58 = arith.constant 0 : index
    %c20 = arith.constant 20 : index
    %96 = vector.load %arg40[%c0_58, %c20] : memref<8x324xbf16, #tpu.memory_space<vmem>>, vector<8x286xbf16>
    %c40 = arith.constant 40 : index
    %c0_59 = arith.constant 0 : index
    %97 = vector.load %arg51[%c40, %c0_59] : memref<864x286xbf16, #tpu.memory_space<vmem>>, vector<8x286xbf16>
    tpu.vector_store %arg51[%c40, %c0_59], %96 {strides = array<i32>} : memref<864x286xbf16, #tpu.memory_space<vmem>>, vector<8x286xbf16>,
    %c0_60 = arith.constant 0 : index
    %c36_61 = arith.constant 36 : index
    %98 = vector.load %arg40[%c0_60, %c36_61] : memref<8x324xbf16, #tpu.memory_space<vmem>>, vector<8x286xbf16>
    %c48 = arith.constant 48 : index
    %c0_62 = arith.constant 0 : index
    %99 = vector.load %arg51[%c48, %c0_62] : memref<864x286xbf16, #tpu.memory_space<vmem>>, vector<8x286xbf16>
    tpu.vector_store %arg51[%c48, %c0_62], %98 {strides = array<i32>} : memref<864x286xbf16, #tpu.memory_space<vmem>>, vector<8x286xbf16>,
    %c0_63 = arith.constant 0 : index
    %c37 = arith.constant 37 : index
    %100 = vector.load %arg40[%c0_63, %c37] : memref<8x324xbf16, #tpu.memory_space<vmem>>, vector<8x286xbf16>
    %c56 = arith.constant 56 : index
    %c0_64 = arith.constant 0 : index
    %101 = vector.load %arg51[%c56, %c0_64] : memref<864x286xbf16, #tpu.memory_space<vmem>>, vector<8x286xbf16>
    tpu.vector_store %arg51[%c56, %c0_64], %100 {strides = array<i32>} : memref<864x286xbf16, #tpu.memory_space<vmem>>, vector<8x286xbf16>,
    %c0_65 = arith.constant 0 : index
    %c38 = arith.constant 38 : index
    %102 = vector.load %arg40[%c0_65, %c38] : memref<8x324xbf16, #tpu.memory_space<vmem>>, vector<8x286xbf16>
    %c64 = arith.constant 64 : index
    %c0_66 = arith.constant 0 : index
    %103 = vector.load %arg51[%c64, %c0_66] : memref<864x286xbf16, #tpu.memory_space<vmem>>, vector<8x286xbf16>
    tpu.vector_store %arg51[%c64, %c0_66], %102 {strides = array<i32>} : memref<864x286xbf16, #tpu.memory_space<vmem>>, vector<8x286xbf16>,
    %c0_67 = arith.constant 0 : index
    %c0_68 = arith.constant 0 : index
    %104 = vector.load %arg4[%c0_67, %c0_68] : memref<8x72xbf16, #tpu.memory_space<vmem>>, vector<8x72xbf16>
    %c0_69 = arith.constant 0 : index
    %c0_70 = arith.constant 0 : index
    %105 = vector.load %arg51[%c0_69, %c0_70] : memref<864x286xbf16, #tpu.memory_space<vmem>>, vector<72x286xbf16>
    %cst_71 = arith.constant dense<0.000000e+00> : vector<8x286xf32>
    %106 = tpu.matmul %104, %105, %cst_71 {dimension_numbers = #tpu.dot_dimension_numbers<[1], [0], [0], [1], [0, 0, 1, 1], [], []>} : vector<8x72xbf16>, vector<72x286xbf16>, vector<8x286xf32> -> vector<8x286xf32>
    %c0_72 = arith.constant 0 : index
    %c0_73 = arith.constant 0 : index
    %107 = vector.load %arg5[%c0_72, %c0_73] : memref<8x1xf32, #tpu.memory_space<vmem>>, vector<8x1xf32>
    %108 = vector.broadcast %107 : vector<8x1xf32> to vector<8x286xf32>
    %109 = arith.addf %106, %108 : vector<8x286xf32>
    %cst_74 = arith.constant 0.000000e+00 : f32
    %110 = vector.broadcast %cst_74 : f32 to vector<8x286xf32>
    %111 = arith.maximumf %109, %110 : vector<8x286xf32>
    %112 = arith.truncf %111 : vector<8x286xf32> to vector<8x286xbf16>
    %c0_75 = arith.constant 0 : index
    %c0_76 = arith.constant 0 : index
    %113 = vector.load %arg27[%c0_75, %c0_76] : memref<286x324xbf16, #tpu.memory_space<vmem>>, vector<286x324xbf16>
    %cst_77 = arith.constant dense<0.000000e+00> : vector<8x324xf32>
    %114 = tpu.matmul %112, %113, %cst_77 {dimension_numbers = #tpu.dot_dimension_numbers<[1], [0], [0], [1], [0, 0, 1, 1], [], []>} : vector<8x286xbf16>, vector<286x324xbf16>, vector<8x324xf32> -> vector<8x324xf32>
    %115 = arith.truncf %114 : vector<8x324xf32> to vector<8x324xbf16>
    %c0_78 = arith.constant 0 : index
    %c0_79 = arith.constant 0 : index
    %116 = vector.load %arg41[%c0_78, %c0_79] : memref<8x324xbf16, #tpu.memory_space<vmem>>, vector<8x324xbf16>
    tpu.vector_store %arg41[%c0_78, %c0_79], %115 {strides = array<i32>} : memref<8x324xbf16, #tpu.memory_space<vmem>>, vector<8x324xbf16>,
    %c0_80 = arith.constant 0 : index
    %c0_81 = arith.constant 0 : index
    %117 = vector.load %arg41[%c0_80, %c0_81] : memref<8x324xbf16, #tpu.memory_space<vmem>>, vector<8x286xbf16>
    %c0_82 = arith.constant 0 : index
    %c0_83 = arith.constant 0 : index
    %118 = vector.load %arg51[%c0_82, %c0_83] : memref<864x286xbf16, #tpu.memory_space<vmem>>, vector<8x286xbf16>
    tpu.vector_store %arg51[%c0_82, %c0_83], %117 {strides = array<i32>} : memref<864x286xbf16, #tpu.memory_space<vmem>>, vector<8x286xbf16>,
    %c0_84 = arith.constant 0 : index
    %c1_85 = arith.constant 1 : index
    %119 = vector.load %arg41[%c0_84, %c1_85] : memref<8x324xbf16, #tpu.memory_space<vmem>>, vector<8x286xbf16>
    %c8_86 = arith.constant 8 : index
    %c0_87 = arith.constant 0 : index
    %120 = vector.load %arg51[%c8_86, %c0_87] : memref<864x286xbf16, #tpu.memory_space<vmem>>, vector<8x286xbf16>
    tpu.vector_store %arg51[%c8_86, %c0_87], %119 {strides = array<i32>} : memref<864x286xbf16, #tpu.memory_space<vmem>>, vector<8x286xbf16>,
    %c0_88 = arith.constant 0 : index
    %c2_89 = arith.constant 2 : index
    %121 = vector.load %arg41[%c0_88, %c2_89] : memref<8x324xbf16, #tpu.memory_space<vmem>>, vector<8x286xbf16>
    %c16_90 = arith.constant 16 : index
    %c0_91 = arith.constant 0 : index
    %122 = vector.load %arg51[%c16_90, %c0_91] : memref<864x286xbf16, #tpu.memory_space<vmem>>, vector<8x286xbf16>
    tpu.vector_store %arg51[%c16_90, %c0_91], %121 {strides = array<i32>} : memref<864x286xbf16, #tpu.memory_space<vmem>>, vector<8x286xbf16>,
    %c0_92 = arith.constant 0 : index
    %c18_93 = arith.constant 18 : index
    %123 = vector.load %arg41[%c0_92, %c18_93] : memref<8x324xbf16, #tpu.memory_space<vmem>>, vector<8x286xbf16>
    %c24_94 = arith.constant 24 : index
    %c0_95 = arith.constant 0 : index
    %124 = vector.load %arg51[%c24_94, %c0_95] : memref<864x286xbf16, #tpu.memory_space<vmem>>, vector<8x286xbf16>
    tpu.vector_store %arg51[%c24_94, %c0_95], %123 {strides = array<i32>} : memref<864x286xbf16, #tpu.memory_space<vmem>>, vector<8x286xbf16>,
    %c0_96 = arith.constant 0 : index
    %c19_97 = arith.constant 19 : index
    %125 = vector.load %arg41[%c0_96, %c19_97] : memref<8x324xbf16, #tpu.memory_space<vmem>>, vector<8x286xbf16>
    %c32_98 = arith.constant 32 : index
    %c0_99 = arith.constant 0 : index
    %126 = vector.load %arg51[%c32_98, %c0_99] : memref<864x286xbf16, #tpu.memory_space<vmem>>, vector<8x286xbf16>
    tpu.vector_store %arg51[%c32_98, %c0_99], %125 {strides = array<i32>} : memref<864x286xbf16, #tpu.memory_space<vmem>>, vector<8x286xbf16>,
    %c0_100 = arith.constant 0 : index
    %c20_101 = arith.constant 20 : index
    %127 = vector.load %arg41[%c0_100, %c20_101] : memref<8x324xbf16, #tpu.memory_space<vmem>>, vector<8x286xbf16>
    %c40_102 = arith.constant 40 : index
    %c0_103 = arith.constant 0 : index
    %128 = vector.load %arg51[%c40_102, %c0_103] : memref<864x286xbf16, #tpu.memory_space<vmem>>, vector<8x286xbf16>
    tpu.vector_store %arg51[%c40_102, %c0_103], %127 {strides = array<i32>} : memref<864x286xbf16, #tpu.memory_space<vmem>>, vector<8x286xbf16>,
    %c0_104 = arith.constant 0 : index
    %c36_105 = arith.constant 36 : index
    %129 = vector.load %arg41[%c0_104, %c36_105] : memref<8x324xbf16, #tpu.memory_space<vmem>>, vector<8x286xbf16>
    %c48_106 = arith.constant 48 : index
    %c0_107 = arith.constant 0 : index
    %130 = vector.load %arg51[%c48_106, %c0_107] : memref<864x286xbf16, #tpu.memory_space<vmem>>, vector<8x286xbf16>
    tpu.vector_store %arg51[%c48_106, %c0_107], %129 {strides = array<i32>} : memref<864x286xbf16, #tpu.memory_space<vmem>>, vector<8x286xbf16>,
    %c0_108 = arith.constant 0 : index
    %c37_109 = arith.constant 37 : index
    %131 = vector.load %arg41[%c0_108, %c37_109] : memref<8x324xbf16, #tpu.memory_space<vmem>>, vector<8x286xbf16>
    %c56_110 = arith.constant 56 : index
    %c0_111 = arith.constant 0 : index
    %132 = vector.load %arg51[%c56_110, %c0_111] : memref<864x286xbf16, #tpu.memory_space<vmem>>, vector<8x286xbf16>
    tpu.vector_store %arg51[%c56_110, %c0_111], %131 {strides = array<i32>} : memref<864x286xbf16, #tpu.memory_space<vmem>>, vector<8x286xbf16>,
    %c0_112 = arith.constant 0 : index
    %c38_113 = arith.constant 38 : index
    %133 = vector.load %arg41[%c0_112, %c38_113] : memref<8x324xbf16, #tpu.memory_space<vmem>>, vector<8x286xbf16>
    %c64_114 = arith.constant 64 : index
    %c0_115 = arith.constant 0 : index
    %134 = vector.load %arg51[%c64_114, %c0_115] : memref<864x286xbf16, #tpu.memory_space<vmem>>, vector<8x286xbf16>
    tpu.vector_store %arg51[%c64_114, %c0_115], %133 {strides = array<i32>} : memref<864x286xbf16, #tpu.memory_space<vmem>>, vector<8x286xbf16>,
    %c0_116 = arith.constant 0 : index
    %c0_117 = arith.constant 0 : index
    %135 = vector.load %arg6[%c0_116, %c0_117] : memref<16x72xbf16, #tpu.memory_space<vmem>>, vector<16x72xbf16>
    %c0_118 = arith.constant 0 : index
    %c0_119 = arith.constant 0 : index
    %136 = vector.load %arg51[%c0_118, %c0_119] : memref<864x286xbf16, #tpu.memory_space<vmem>>, vector<72x286xbf16>
    %cst_120 = arith.constant dense<0.000000e+00> : vector<16x286xf32>
    %137 = tpu.matmul %135, %136, %cst_120 {dimension_numbers = #tpu.dot_dimension_numbers<[1], [0], [0], [1], [0, 0, 1, 1], [], []>} : vector<16x72xbf16>, vector<72x286xbf16>, vector<16x286xf32> -> vector<16x286xf32>
    %c0_121 = arith.constant 0 : index
    %c0_122 = arith.constant 0 : index
    %138 = vector.load %arg7[%c0_121, %c0_122] : memref<16x1xf32, #tpu.memory_space<vmem>>, vector<16x1xf32>
    %139 = vector.broadcast %138 : vector<16x1xf32> to vector<16x286xf32>
    %140 = arith.addf %137, %139 : vector<16x286xf32>
    %cst_123 = arith.constant 0.000000e+00 : f32
    %141 = vector.broadcast %cst_123 : f32 to vector<16x286xf32>
    %142 = arith.maximumf %140, %141 : vector<16x286xf32>
    %143 = arith.truncf %142 : vector<16x286xf32> to vector<16x286xbf16>
    %c0_124 = arith.constant 0 : index
    %c0_125 = arith.constant 0 : index
    %144 = vector.load %arg28[%c0_124, %c0_125] : memref<286x100xbf16, #tpu.memory_space<vmem>>, vector<286x100xbf16>
    %cst_126 = arith.constant dense<0.000000e+00> : vector<16x100xf32>
    %145 = tpu.matmul %143, %144, %cst_126 {dimension_numbers = #tpu.dot_dimension_numbers<[1], [0], [0], [1], [0, 0, 1, 1], [], []>} : vector<16x286xbf16>, vector<286x100xbf16>, vector<16x100xf32> -> vector<16x100xf32>
    %146 = arith.truncf %145 : vector<16x100xf32> to vector<16x100xbf16>
    %c0_127 = arith.constant 0 : index
    %c0_128 = arith.constant 0 : index
    %147 = vector.load %arg42[%c0_127, %c0_128] : memref<16x100xbf16, #tpu.memory_space<vmem>>, vector<16x100xbf16>
    tpu.vector_store %arg42[%c0_127, %c0_128], %146 {strides = array<i32>} : memref<16x100xbf16, #tpu.memory_space<vmem>>, vector<16x100xbf16>,
    %c0_129 = arith.constant 0 : index
    %c0_130 = arith.constant 0 : index
    %148 = vector.load %arg42[%c0_129, %c0_130] : memref<16x100xbf16, #tpu.memory_space<vmem>>, vector<16x78xbf16>
    %c0_131 = arith.constant 0 : index
    %c0_132 = arith.constant 0 : index
    %149 = vector.load %arg51[%c0_131, %c0_132] : memref<864x286xbf16, #tpu.memory_space<vmem>>, vector<16x78xbf16>
    tpu.vector_store %arg51[%c0_131, %c0_132], %148 {strides = array<i32>} : memref<864x286xbf16, #tpu.memory_space<vmem>>, vector<16x78xbf16>,
    %c0_133 = arith.constant 0 : index
    %c1_134 = arith.constant 1 : index
    %150 = vector.load %arg42[%c0_133, %c1_134] : memref<16x100xbf16, #tpu.memory_space<vmem>>, vector<16x78xbf16>
    %c16_135 = arith.constant 16 : index
    %c0_136 = arith.constant 0 : index
    %151 = vector.load %arg51[%c16_135, %c0_136] : memref<864x286xbf16, #tpu.memory_space<vmem>>, vector<16x78xbf16>
    tpu.vector_store %arg51[%c16_135, %c0_136], %150 {strides = array<i32>} : memref<864x286xbf16, #tpu.memory_space<vmem>>, vector<16x78xbf16>,
    %c0_137 = arith.constant 0 : index
    %c2_138 = arith.constant 2 : index
    %152 = vector.load %arg42[%c0_137, %c2_138] : memref<16x100xbf16, #tpu.memory_space<vmem>>, vector<16x78xbf16>
    %c32_139 = arith.constant 32 : index
    %c0_140 = arith.constant 0 : index
    %153 = vector.load %arg51[%c32_139, %c0_140] : memref<864x286xbf16, #tpu.memory_space<vmem>>, vector<16x78xbf16>
    tpu.vector_store %arg51[%c32_139, %c0_140], %152 {strides = array<i32>} : memref<864x286xbf16, #tpu.memory_space<vmem>>, vector<16x78xbf16>,
    %c0_141 = arith.constant 0 : index
    %c10 = arith.constant 10 : index
    %154 = vector.load %arg42[%c0_141, %c10] : memref<16x100xbf16, #tpu.memory_space<vmem>>, vector<16x78xbf16>
    %c48_142 = arith.constant 48 : index
    %c0_143 = arith.constant 0 : index
    %155 = vector.load %arg51[%c48_142, %c0_143] : memref<864x286xbf16, #tpu.memory_space<vmem>>, vector<16x78xbf16>
    tpu.vector_store %arg51[%c48_142, %c0_143], %154 {strides = array<i32>} : memref<864x286xbf16, #tpu.memory_space<vmem>>, vector<16x78xbf16>,
    %c0_144 = arith.constant 0 : index
    %c11 = arith.constant 11 : index
    %156 = vector.load %arg42[%c0_144, %c11] : memref<16x100xbf16, #tpu.memory_space<vmem>>, vector<16x78xbf16>
    %c64_145 = arith.constant 64 : index
    %c0_146 = arith.constant 0 : index
    %157 = vector.load %arg51[%c64_145, %c0_146] : memref<864x286xbf16, #tpu.memory_space<vmem>>, vector<16x78xbf16>
    tpu.vector_store %arg51[%c64_145, %c0_146], %156 {strides = array<i32>} : memref<864x286xbf16, #tpu.memory_space<vmem>>, vector<16x78xbf16>,
    %c0_147 = arith.constant 0 : index
    %c12 = arith.constant 12 : index
    %158 = vector.load %arg42[%c0_147, %c12] : memref<16x100xbf16, #tpu.memory_space<vmem>>, vector<16x78xbf16>
    %c80 = arith.constant 80 : index
    %c0_148 = arith.constant 0 : index
    %159 = vector.load %arg51[%c80, %c0_148] : memref<864x286xbf16, #tpu.memory_space<vmem>>, vector<16x78xbf16>
    tpu.vector_store %arg51[%c80, %c0_148], %158 {strides = array<i32>} : memref<864x286xbf16, #tpu.memory_space<vmem>>, vector<16x78xbf16>,
    %c0_149 = arith.constant 0 : index
    %c20_150 = arith.constant 20 : index
    %160 = vector.load %arg42[%c0_149, %c20_150] : memref<16x100xbf16, #tpu.memory_space<vmem>>, vector<16x78xbf16>
    %c96 = arith.constant 96 : index
    %c0_151 = arith.constant 0 : index
    %161 = vector.load %arg51[%c96, %c0_151] : memref<864x286xbf16, #tpu.memory_space<vmem>>, vector<16x78xbf16>
    tpu.vector_store %arg51[%c96, %c0_151], %160 {strides = array<i32>} : memref<864x286xbf16, #tpu.memory_space<vmem>>, vector<16x78xbf16>,
    %c0_152 = arith.constant 0 : index
    %c21 = arith.constant 21 : index
    %162 = vector.load %arg42[%c0_152, %c21] : memref<16x100xbf16, #tpu.memory_space<vmem>>, vector<16x78xbf16>
    %c112 = arith.constant 112 : index
    %c0_153 = arith.constant 0 : index
    %163 = vector.load %arg51[%c112, %c0_153] : memref<864x286xbf16, #tpu.memory_space<vmem>>, vector<16x78xbf16>
    tpu.vector_store %arg51[%c112, %c0_153], %162 {strides = array<i32>} : memref<864x286xbf16, #tpu.memory_space<vmem>>, vector<16x78xbf16>,
    %c0_154 = arith.constant 0 : index
    %c22 = arith.constant 22 : index
    %164 = vector.load %arg42[%c0_154, %c22] : memref<16x100xbf16, #tpu.memory_space<vmem>>, vector<16x78xbf16>
    %c128 = arith.constant 128 : index
    %c0_155 = arith.constant 0 : index
    %165 = vector.load %arg51[%c128, %c0_155] : memref<864x286xbf16, #tpu.memory_space<vmem>>, vector<16x78xbf16>
    tpu.vector_store %arg51[%c128, %c0_155], %164 {strides = array<i32>} : memref<864x286xbf16, #tpu.memory_space<vmem>>, vector<16x78xbf16>,
    %c0_156 = arith.constant 0 : index
    %c0_157 = arith.constant 0 : index
    %166 = vector.load %arg8[%c0_156, %c0_157] : memref<16x144xbf16, #tpu.memory_space<vmem>>, vector<16x144xbf16>
    %c0_158 = arith.constant 0 : index
    %c0_159 = arith.constant 0 : index
    %167 = vector.load %arg51[%c0_158, %c0_159] : memref<864x286xbf16, #tpu.memory_space<vmem>>, vector<144x78xbf16>
    %cst_160 = arith.constant dense<0.000000e+00> : vector<16x78xf32>
    %168 = tpu.matmul %166, %167, %cst_160 {dimension_numbers = #tpu.dot_dimension_numbers<[1], [0], [0], [1], [0, 0, 1, 1], [], []>} : vector<16x144xbf16>, vector<144x78xbf16>, vector<16x78xf32> -> vector<16x78xf32>
    %c0_161 = arith.constant 0 : index
    %c0_162 = arith.constant 0 : index
    %169 = vector.load %arg9[%c0_161, %c0_162] : memref<16x1xf32, #tpu.memory_space<vmem>>, vector<16x1xf32>
    %170 = vector.broadcast %169 : vector<16x1xf32> to vector<16x78xf32>
    %171 = arith.addf %168, %170 : vector<16x78xf32>
    %cst_163 = arith.constant 0.000000e+00 : f32
    %172 = vector.broadcast %cst_163 : f32 to vector<16x78xf32>
    %173 = arith.maximumf %171, %172 : vector<16x78xf32>
    %174 = arith.truncf %173 : vector<16x78xf32> to vector<16x78xbf16>
    %c0_164 = arith.constant 0 : index
    %c0_165 = arith.constant 0 : index
    %175 = vector.load %arg29[%c0_164, %c0_165] : memref<78x100xbf16, #tpu.memory_space<vmem>>, vector<78x100xbf16>
    %cst_166 = arith.constant dense<0.000000e+00> : vector<16x100xf32>
    %176 = tpu.matmul %174, %175, %cst_166 {dimension_numbers = #tpu.dot_dimension_numbers<[1], [0], [0], [1], [0, 0, 1, 1], [], []>} : vector<16x78xbf16>, vector<78x100xbf16>, vector<16x100xf32> -> vector<16x100xf32>
    %177 = arith.truncf %176 : vector<16x100xf32> to vector<16x100xbf16>
    %c0_167 = arith.constant 0 : index
    %c0_168 = arith.constant 0 : index
    %178 = vector.load %arg43[%c0_167, %c0_168] : memref<16x100xbf16, #tpu.memory_space<vmem>>, vector<16x100xbf16>
    tpu.vector_store %arg43[%c0_167, %c0_168], %177 {strides = array<i32>} : memref<16x100xbf16, #tpu.memory_space<vmem>>, vector<16x100xbf16>,
    %c0_169 = arith.constant 0 : index
    %c0_170 = arith.constant 0 : index
    %179 = vector.load %arg43[%c0_169, %c0_170] : memref<16x100xbf16, #tpu.memory_space<vmem>>, vector<16x78xbf16>
    %c0_171 = arith.constant 0 : index
    %c0_172 = arith.constant 0 : index
    %180 = vector.load %arg51[%c0_171, %c0_172] : memref<864x286xbf16, #tpu.memory_space<vmem>>, vector<16x78xbf16>
    tpu.vector_store %arg51[%c0_171, %c0_172], %179 {strides = array<i32>} : memref<864x286xbf16, #tpu.memory_space<vmem>>, vector<16x78xbf16>,
    %c0_173 = arith.constant 0 : index
    %c1_174 = arith.constant 1 : index
    %181 = vector.load %arg43[%c0_173, %c1_174] : memref<16x100xbf16, #tpu.memory_space<vmem>>, vector<16x78xbf16>
    %c16_175 = arith.constant 16 : index
    %c0_176 = arith.constant 0 : index
    %182 = vector.load %arg51[%c16_175, %c0_176] : memref<864x286xbf16, #tpu.memory_space<vmem>>, vector<16x78xbf16>
    tpu.vector_store %arg51[%c16_175, %c0_176], %181 {strides = array<i32>} : memref<864x286xbf16, #tpu.memory_space<vmem>>, vector<16x78xbf16>,
    %c0_177 = arith.constant 0 : index
    %c2_178 = arith.constant 2 : index
    %183 = vector.load %arg43[%c0_177, %c2_178] : memref<16x100xbf16, #tpu.memory_space<vmem>>, vector<16x78xbf16>
    %c32_179 = arith.constant 32 : index
    %c0_180 = arith.constant 0 : index
    %184 = vector.load %arg51[%c32_179, %c0_180] : memref<864x286xbf16, #tpu.memory_space<vmem>>, vector<16x78xbf16>
    tpu.vector_store %arg51[%c32_179, %c0_180], %183 {strides = array<i32>} : memref<864x286xbf16, #tpu.memory_space<vmem>>, vector<16x78xbf16>,
    %c0_181 = arith.constant 0 : index
    %c10_182 = arith.constant 10 : index
    %185 = vector.load %arg43[%c0_181, %c10_182] : memref<16x100xbf16, #tpu.memory_space<vmem>>, vector<16x78xbf16>
    %c48_183 = arith.constant 48 : index
    %c0_184 = arith.constant 0 : index
    %186 = vector.load %arg51[%c48_183, %c0_184] : memref<864x286xbf16, #tpu.memory_space<vmem>>, vector<16x78xbf16>
    tpu.vector_store %arg51[%c48_183, %c0_184], %185 {strides = array<i32>} : memref<864x286xbf16, #tpu.memory_space<vmem>>, vector<16x78xbf16>,
    %c0_185 = arith.constant 0 : index
    %c11_186 = arith.constant 11 : index
    %187 = vector.load %arg43[%c0_185, %c11_186] : memref<16x100xbf16, #tpu.memory_space<vmem>>, vector<16x78xbf16>
    %c64_187 = arith.constant 64 : index
    %c0_188 = arith.constant 0 : index
    %188 = vector.load %arg51[%c64_187, %c0_188] : memref<864x286xbf16, #tpu.memory_space<vmem>>, vector<16x78xbf16>
    tpu.vector_store %arg51[%c64_187, %c0_188], %187 {strides = array<i32>} : memref<864x286xbf16, #tpu.memory_space<vmem>>, vector<16x78xbf16>,
    %c0_189 = arith.constant 0 : index
    %c12_190 = arith.constant 12 : index
    %189 = vector.load %arg43[%c0_189, %c12_190] : memref<16x100xbf16, #tpu.memory_space<vmem>>, vector<16x78xbf16>
    %c80_191 = arith.constant 80 : index
    %c0_192 = arith.constant 0 : index
    %190 = vector.load %arg51[%c80_191, %c0_192] : memref<864x286xbf16, #tpu.memory_space<vmem>>, vector<16x78xbf16>
    tpu.vector_store %arg51[%c80_191, %c0_192], %189 {strides = array<i32>} : memref<864x286xbf16, #tpu.memory_space<vmem>>, vector<16x78xbf16>,
    %c0_193 = arith.constant 0 : index
    %c20_194 = arith.constant 20 : index
    %191 = vector.load %arg43[%c0_193, %c20_194] : memref<16x100xbf16, #tpu.memory_space<vmem>>, vector<16x78xbf16>
    %c96_195 = arith.constant 96 : index
    %c0_196 = arith.constant 0 : index
    %192 = vector.load %arg51[%c96_195, %c0_196] : memref<864x286xbf16, #tpu.memory_space<vmem>>, vector<16x78xbf16>
    tpu.vector_store %arg51[%c96_195, %c0_196], %191 {strides = array<i32>} : memref<864x286xbf16, #tpu.memory_space<vmem>>, vector<16x78xbf16>,
    %c0_197 = arith.constant 0 : index
    %c21_198 = arith.constant 21 : index
    %193 = vector.load %arg43[%c0_197, %c21_198] : memref<16x100xbf16, #tpu.memory_space<vmem>>, vector<16x78xbf16>
    %c112_199 = arith.constant 112 : index
    %c0_200 = arith.constant 0 : index
    %194 = vector.load %arg51[%c112_199, %c0_200] : memref<864x286xbf16, #tpu.memory_space<vmem>>, vector<16x78xbf16>
    tpu.vector_store %arg51[%c112_199, %c0_200], %193 {strides = array<i32>} : memref<864x286xbf16, #tpu.memory_space<vmem>>, vector<16x78xbf16>,
    %c0_201 = arith.constant 0 : index
    %c22_202 = arith.constant 22 : index
    %195 = vector.load %arg43[%c0_201, %c22_202] : memref<16x100xbf16, #tpu.memory_space<vmem>>, vector<16x78xbf16>
    %c128_203 = arith.constant 128 : index
    %c0_204 = arith.constant 0 : index
    %196 = vector.load %arg51[%c128_203, %c0_204] : memref<864x286xbf16, #tpu.memory_space<vmem>>, vector<16x78xbf16>
    tpu.vector_store %arg51[%c128_203, %c0_204], %195 {strides = array<i32>} : memref<864x286xbf16, #tpu.memory_space<vmem>>, vector<16x78xbf16>,
    %c0_205 = arith.constant 0 : index
    %c0_206 = arith.constant 0 : index
    %197 = vector.load %arg10[%c0_205, %c0_206] : memref<32x144xbf16, #tpu.memory_space<vmem>>, vector<32x144xbf16>
    %c0_207 = arith.constant 0 : index
    %c0_208 = arith.constant 0 : index
    %198 = vector.load %arg51[%c0_207, %c0_208] : memref<864x286xbf16, #tpu.memory_space<vmem>>, vector<144x78xbf16>
    %cst_209 = arith.constant dense<0.000000e+00> : vector<32x78xf32>
    %199 = tpu.matmul %197, %198, %cst_209 {dimension_numbers = #tpu.dot_dimension_numbers<[1], [0], [0], [1], [0, 0, 1, 1], [], []>} : vector<32x144xbf16>, vector<144x78xbf16>, vector<32x78xf32> -> vector<32x78xf32>
    %c0_210 = arith.constant 0 : index
    %c0_211 = arith.constant 0 : index
    %200 = vector.load %arg11[%c0_210, %c0_211] : memref<32x1xf32, #tpu.memory_space<vmem>>, vector<32x1xf32>
    %201 = vector.broadcast %200 : vector<32x1xf32> to vector<32x78xf32>
    %202 = arith.addf %199, %201 : vector<32x78xf32>
    %cst_212 = arith.constant 0.000000e+00 : f32
    %203 = vector.broadcast %cst_212 : f32 to vector<32x78xf32>
    %204 = arith.maximumf %202, %203 : vector<32x78xf32>
    %205 = arith.truncf %204 : vector<32x78xf32> to vector<32x78xbf16>
    %c0_213 = arith.constant 0 : index
    %c0_214 = arith.constant 0 : index
    %206 = vector.load %arg30[%c0_213, %c0_214] : memref<78x36xbf16, #tpu.memory_space<vmem>>, vector<78x36xbf16>
    %cst_215 = arith.constant dense<0.000000e+00> : vector<32x36xf32>
    %207 = tpu.matmul %205, %206, %cst_215 {dimension_numbers = #tpu.dot_dimension_numbers<[1], [0], [0], [1], [0, 0, 1, 1], [], []>} : vector<32x78xbf16>, vector<78x36xbf16>, vector<32x36xf32> -> vector<32x36xf32>
    %208 = arith.truncf %207 : vector<32x36xf32> to vector<32x36xbf16>
    %c0_216 = arith.constant 0 : index
    %c0_217 = arith.constant 0 : index
    %209 = vector.load %arg44[%c0_216, %c0_217] : memref<32x36xbf16, #tpu.memory_space<vmem>>, vector<32x36xbf16>
    tpu.vector_store %arg44[%c0_216, %c0_217], %208 {strides = array<i32>} : memref<32x36xbf16, #tpu.memory_space<vmem>>, vector<32x36xbf16>,
    %c0_218 = arith.constant 0 : index
    %c0_219 = arith.constant 0 : index
    %210 = vector.load %arg44[%c0_218, %c0_219] : memref<32x36xbf16, #tpu.memory_space<vmem>>, vector<32x22xbf16>
    %c0_220 = arith.constant 0 : index
    %c0_221 = arith.constant 0 : index
    %211 = vector.load %arg51[%c0_220, %c0_221] : memref<864x286xbf16, #tpu.memory_space<vmem>>, vector<32x22xbf16>
    tpu.vector_store %arg51[%c0_220, %c0_221], %210 {strides = array<i32>} : memref<864x286xbf16, #tpu.memory_space<vmem>>, vector<32x22xbf16>,
    %c0_222 = arith.constant 0 : index
    %c1_223 = arith.constant 1 : index
    %212 = vector.load %arg44[%c0_222, %c1_223] : memref<32x36xbf16, #tpu.memory_space<vmem>>, vector<32x22xbf16>
    %c32_224 = arith.constant 32 : index
    %c0_225 = arith.constant 0 : index
    %213 = vector.load %arg51[%c32_224, %c0_225] : memref<864x286xbf16, #tpu.memory_space<vmem>>, vector<32x22xbf16>
    tpu.vector_store %arg51[%c32_224, %c0_225], %212 {strides = array<i32>} : memref<864x286xbf16, #tpu.memory_space<vmem>>, vector<32x22xbf16>,
    %c0_226 = arith.constant 0 : index
    %c2_227 = arith.constant 2 : index
    %214 = vector.load %arg44[%c0_226, %c2_227] : memref<32x36xbf16, #tpu.memory_space<vmem>>, vector<32x22xbf16>
    %c64_228 = arith.constant 64 : index
    %c0_229 = arith.constant 0 : index
    %215 = vector.load %arg51[%c64_228, %c0_229] : memref<864x286xbf16, #tpu.memory_space<vmem>>, vector<32x22xbf16>
    tpu.vector_store %arg51[%c64_228, %c0_229], %214 {strides = array<i32>} : memref<864x286xbf16, #tpu.memory_space<vmem>>, vector<32x22xbf16>,
    %c0_230 = arith.constant 0 : index
    %c6_231 = arith.constant 6 : index
    %216 = vector.load %arg44[%c0_230, %c6_231] : memref<32x36xbf16, #tpu.memory_space<vmem>>, vector<32x22xbf16>
    %c96_232 = arith.constant 96 : index
    %c0_233 = arith.constant 0 : index
    %217 = vector.load %arg51[%c96_232, %c0_233] : memref<864x286xbf16, #tpu.memory_space<vmem>>, vector<32x22xbf16>
    tpu.vector_store %arg51[%c96_232, %c0_233], %216 {strides = array<i32>} : memref<864x286xbf16, #tpu.memory_space<vmem>>, vector<32x22xbf16>,
    %c0_234 = arith.constant 0 : index
    %c7_235 = arith.constant 7 : index
    %218 = vector.load %arg44[%c0_234, %c7_235] : memref<32x36xbf16, #tpu.memory_space<vmem>>, vector<32x22xbf16>
    %c128_236 = arith.constant 128 : index
    %c0_237 = arith.constant 0 : index
    %219 = vector.load %arg51[%c128_236, %c0_237] : memref<864x286xbf16, #tpu.memory_space<vmem>>, vector<32x22xbf16>
    tpu.vector_store %arg51[%c128_236, %c0_237], %218 {strides = array<i32>} : memref<864x286xbf16, #tpu.memory_space<vmem>>, vector<32x22xbf16>,
    %c0_238 = arith.constant 0 : index
    %c8_239 = arith.constant 8 : index
    %220 = vector.load %arg44[%c0_238, %c8_239] : memref<32x36xbf16, #tpu.memory_space<vmem>>, vector<32x22xbf16>
    %c160 = arith.constant 160 : index
    %c0_240 = arith.constant 0 : index
    %221 = vector.load %arg51[%c160, %c0_240] : memref<864x286xbf16, #tpu.memory_space<vmem>>, vector<32x22xbf16>
    tpu.vector_store %arg51[%c160, %c0_240], %220 {strides = array<i32>} : memref<864x286xbf16, #tpu.memory_space<vmem>>, vector<32x22xbf16>,
    %c0_241 = arith.constant 0 : index
    %c12_242 = arith.constant 12 : index
    %222 = vector.load %arg44[%c0_241, %c12_242] : memref<32x36xbf16, #tpu.memory_space<vmem>>, vector<32x22xbf16>
    %c192 = arith.constant 192 : index
    %c0_243 = arith.constant 0 : index
    %223 = vector.load %arg51[%c192, %c0_243] : memref<864x286xbf16, #tpu.memory_space<vmem>>, vector<32x22xbf16>
    tpu.vector_store %arg51[%c192, %c0_243], %222 {strides = array<i32>} : memref<864x286xbf16, #tpu.memory_space<vmem>>, vector<32x22xbf16>,
    %c0_244 = arith.constant 0 : index
    %c13 = arith.constant 13 : index
    %224 = vector.load %arg44[%c0_244, %c13] : memref<32x36xbf16, #tpu.memory_space<vmem>>, vector<32x22xbf16>
    %c224 = arith.constant 224 : index
    %c0_245 = arith.constant 0 : index
    %225 = vector.load %arg51[%c224, %c0_245] : memref<864x286xbf16, #tpu.memory_space<vmem>>, vector<32x22xbf16>
    tpu.vector_store %arg51[%c224, %c0_245], %224 {strides = array<i32>} : memref<864x286xbf16, #tpu.memory_space<vmem>>, vector<32x22xbf16>,
    %c0_246 = arith.constant 0 : index
    %c14 = arith.constant 14 : index
    %226 = vector.load %arg44[%c0_246, %c14] : memref<32x36xbf16, #tpu.memory_space<vmem>>, vector<32x22xbf16>
    %c256 = arith.constant 256 : index
    %c0_247 = arith.constant 0 : index
    %227 = vector.load %arg51[%c256, %c0_247] : memref<864x286xbf16, #tpu.memory_space<vmem>>, vector<32x22xbf16>
    tpu.vector_store %arg51[%c256, %c0_247], %226 {strides = array<i32>} : memref<864x286xbf16, #tpu.memory_space<vmem>>, vector<32x22xbf16>,
    %c0_248 = arith.constant 0 : index
    %c0_249 = arith.constant 0 : index
    %228 = vector.load %arg12[%c0_248, %c0_249] : memref<32x288xbf16, #tpu.memory_space<vmem>>, vector<32x288xbf16>
    %c0_250 = arith.constant 0 : index
    %c0_251 = arith.constant 0 : index
    %229 = vector.load %arg51[%c0_250, %c0_251] : memref<864x286xbf16, #tpu.memory_space<vmem>>, vector<288x22xbf16>
    %cst_252 = arith.constant dense<0.000000e+00> : vector<32x22xf32>
    %230 = tpu.matmul %228, %229, %cst_252 {dimension_numbers = #tpu.dot_dimension_numbers<[1], [0], [0], [1], [0, 0, 1, 1], [], []>} : vector<32x288xbf16>, vector<288x22xbf16>, vector<32x22xf32> -> vector<32x22xf32>
    %c0_253 = arith.constant 0 : index
    %c0_254 = arith.constant 0 : index
    %231 = vector.load %arg13[%c0_253, %c0_254] : memref<32x1xf32, #tpu.memory_space<vmem>>, vector<32x1xf32>
    %232 = vector.broadcast %231 : vector<32x1xf32> to vector<32x22xf32>
    %233 = arith.addf %230, %232 : vector<32x22xf32>
    %cst_255 = arith.constant 0.000000e+00 : f32
    %234 = vector.broadcast %cst_255 : f32 to vector<32x22xf32>
    %235 = arith.maximumf %233, %234 : vector<32x22xf32>
    %236 = arith.truncf %235 : vector<32x22xf32> to vector<32x22xbf16>
    %c0_256 = arith.constant 0 : index
    %c0_257 = arith.constant 0 : index
    %237 = vector.load %arg31[%c0_256, %c0_257] : memref<22x36xbf16, #tpu.memory_space<vmem>>, vector<22x36xbf16>
    %cst_258 = arith.constant dense<0.000000e+00> : vector<32x36xf32>
    %238 = tpu.matmul %236, %237, %cst_258 {dimension_numbers = #tpu.dot_dimension_numbers<[1], [0], [0], [1], [0, 0, 1, 1], [], []>} : vector<32x22xbf16>, vector<22x36xbf16>, vector<32x36xf32> -> vector<32x36xf32>
    %239 = arith.truncf %238 : vector<32x36xf32> to vector<32x36xbf16>
    %c0_259 = arith.constant 0 : index
    %c0_260 = arith.constant 0 : index
    %240 = vector.load %arg45[%c0_259, %c0_260] : memref<32x36xbf16, #tpu.memory_space<vmem>>, vector<32x36xbf16>
    tpu.vector_store %arg45[%c0_259, %c0_260], %239 {strides = array<i32>} : memref<32x36xbf16, #tpu.memory_space<vmem>>, vector<32x36xbf16>,
    %c0_261 = arith.constant 0 : index
    %c0_262 = arith.constant 0 : index
    %241 = vector.load %arg45[%c0_261, %c0_262] : memref<32x36xbf16, #tpu.memory_space<vmem>>, vector<32x22xbf16>
    %c0_263 = arith.constant 0 : index
    %c0_264 = arith.constant 0 : index
    %242 = vector.load %arg51[%c0_263, %c0_264] : memref<864x286xbf16, #tpu.memory_space<vmem>>, vector<32x22xbf16>
    tpu.vector_store %arg51[%c0_263, %c0_264], %241 {strides = array<i32>} : memref<864x286xbf16, #tpu.memory_space<vmem>>, vector<32x22xbf16>,
    %c0_265 = arith.constant 0 : index
    %c1_266 = arith.constant 1 : index
    %243 = vector.load %arg45[%c0_265, %c1_266] : memref<32x36xbf16, #tpu.memory_space<vmem>>, vector<32x22xbf16>
    %c32_267 = arith.constant 32 : index
    %c0_268 = arith.constant 0 : index
    %244 = vector.load %arg51[%c32_267, %c0_268] : memref<864x286xbf16, #tpu.memory_space<vmem>>, vector<32x22xbf16>
    tpu.vector_store %arg51[%c32_267, %c0_268], %243 {strides = array<i32>} : memref<864x286xbf16, #tpu.memory_space<vmem>>, vector<32x22xbf16>,
    %c0_269 = arith.constant 0 : index
    %c2_270 = arith.constant 2 : index
    %245 = vector.load %arg45[%c0_269, %c2_270] : memref<32x36xbf16, #tpu.memory_space<vmem>>, vector<32x22xbf16>
    %c64_271 = arith.constant 64 : index
    %c0_272 = arith.constant 0 : index
    %246 = vector.load %arg51[%c64_271, %c0_272] : memref<864x286xbf16, #tpu.memory_space<vmem>>, vector<32x22xbf16>
    tpu.vector_store %arg51[%c64_271, %c0_272], %245 {strides = array<i32>} : memref<864x286xbf16, #tpu.memory_space<vmem>>, vector<32x22xbf16>,
    %c0_273 = arith.constant 0 : index
    %c6_274 = arith.constant 6 : index
    %247 = vector.load %arg45[%c0_273, %c6_274] : memref<32x36xbf16, #tpu.memory_space<vmem>>, vector<32x22xbf16>
    %c96_275 = arith.constant 96 : index
    %c0_276 = arith.constant 0 : index
    %248 = vector.load %arg51[%c96_275, %c0_276] : memref<864x286xbf16, #tpu.memory_space<vmem>>, vector<32x22xbf16>
    tpu.vector_store %arg51[%c96_275, %c0_276], %247 {strides = array<i32>} : memref<864x286xbf16, #tpu.memory_space<vmem>>, vector<32x22xbf16>,
    %c0_277 = arith.constant 0 : index
    %c7_278 = arith.constant 7 : index
    %249 = vector.load %arg45[%c0_277, %c7_278] : memref<32x36xbf16, #tpu.memory_space<vmem>>, vector<32x22xbf16>
    %c128_279 = arith.constant 128 : index
    %c0_280 = arith.constant 0 : index
    %250 = vector.load %arg51[%c128_279, %c0_280] : memref<864x286xbf16, #tpu.memory_space<vmem>>, vector<32x22xbf16>
    tpu.vector_store %arg51[%c128_279, %c0_280], %249 {strides = array<i32>} : memref<864x286xbf16, #tpu.memory_space<vmem>>, vector<32x22xbf16>,
    %c0_281 = arith.constant 0 : index
    %c8_282 = arith.constant 8 : index
    %251 = vector.load %arg45[%c0_281, %c8_282] : memref<32x36xbf16, #tpu.memory_space<vmem>>, vector<32x22xbf16>
    %c160_283 = arith.constant 160 : index
    %c0_284 = arith.constant 0 : index
    %252 = vector.load %arg51[%c160_283, %c0_284] : memref<864x286xbf16, #tpu.memory_space<vmem>>, vector<32x22xbf16>
    tpu.vector_store %arg51[%c160_283, %c0_284], %251 {strides = array<i32>} : memref<864x286xbf16, #tpu.memory_space<vmem>>, vector<32x22xbf16>,
    %c0_285 = arith.constant 0 : index
    %c12_286 = arith.constant 12 : index
    %253 = vector.load %arg45[%c0_285, %c12_286] : memref<32x36xbf16, #tpu.memory_space<vmem>>, vector<32x22xbf16>
    %c192_287 = arith.constant 192 : index
    %c0_288 = arith.constant 0 : index
    %254 = vector.load %arg51[%c192_287, %c0_288] : memref<864x286xbf16, #tpu.memory_space<vmem>>, vector<32x22xbf16>
    tpu.vector_store %arg51[%c192_287, %c0_288], %253 {strides = array<i32>} : memref<864x286xbf16, #tpu.memory_space<vmem>>, vector<32x22xbf16>,
    %c0_289 = arith.constant 0 : index
    %c13_290 = arith.constant 13 : index
    %255 = vector.load %arg45[%c0_289, %c13_290] : memref<32x36xbf16, #tpu.memory_space<vmem>>, vector<32x22xbf16>
    %c224_291 = arith.constant 224 : index
    %c0_292 = arith.constant 0 : index
    %256 = vector.load %arg51[%c224_291, %c0_292] : memref<864x286xbf16, #tpu.memory_space<vmem>>, vector<32x22xbf16>
    tpu.vector_store %arg51[%c224_291, %c0_292], %255 {strides = array<i32>} : memref<864x286xbf16, #tpu.memory_space<vmem>>, vector<32x22xbf16>,
    %c0_293 = arith.constant 0 : index
    %c14_294 = arith.constant 14 : index
    %257 = vector.load %arg45[%c0_293, %c14_294] : memref<32x36xbf16, #tpu.memory_space<vmem>>, vector<32x22xbf16>
    %c256_295 = arith.constant 256 : index
    %c0_296 = arith.constant 0 : index
    %258 = vector.load %arg51[%c256_295, %c0_296] : memref<864x286xbf16, #tpu.memory_space<vmem>>, vector<32x22xbf16>
    tpu.vector_store %arg51[%c256_295, %c0_296], %257 {strides = array<i32>} : memref<864x286xbf16, #tpu.memory_space<vmem>>, vector<32x22xbf16>,
    %c0_297 = arith.constant 0 : index
    %c0_298 = arith.constant 0 : index
    %259 = vector.load %arg14[%c0_297, %c0_298] : memref<64x288xbf16, #tpu.memory_space<vmem>>, vector<64x288xbf16>
    %c0_299 = arith.constant 0 : index
    %c0_300 = arith.constant 0 : index
    %260 = vector.load %arg51[%c0_299, %c0_300] : memref<864x286xbf16, #tpu.memory_space<vmem>>, vector<288x22xbf16>
    %cst_301 = arith.constant dense<0.000000e+00> : vector<64x22xf32>
    %261 = tpu.matmul %259, %260, %cst_301 {dimension_numbers = #tpu.dot_dimension_numbers<[1], [0], [0], [1], [0, 0, 1, 1], [], []>} : vector<64x288xbf16>, vector<288x22xbf16>, vector<64x22xf32> -> vector<64x22xf32>
    %c0_302 = arith.constant 0 : index
    %c0_303 = arith.constant 0 : index
    %262 = vector.load %arg15[%c0_302, %c0_303] : memref<64x1xf32, #tpu.memory_space<vmem>>, vector<64x1xf32>
    %263 = vector.broadcast %262 : vector<64x1xf32> to vector<64x22xf32>
    %264 = arith.addf %261, %263 : vector<64x22xf32>
    %cst_304 = arith.constant 0.000000e+00 : f32
    %265 = vector.broadcast %cst_304 : f32 to vector<64x22xf32>
    %266 = arith.maximumf %264, %265 : vector<64x22xf32>
    %267 = arith.truncf %266 : vector<64x22xf32> to vector<64x22xbf16>
    %c0_305 = arith.constant 0 : index
    %c0_306 = arith.constant 0 : index
    %268 = vector.load %arg32[%c0_305, %c0_306] : memref<22x16xbf16, #tpu.memory_space<vmem>>, vector<22x16xbf16>
    %cst_307 = arith.constant dense<0.000000e+00> : vector<64x16xf32>
    %269 = tpu.matmul %267, %268, %cst_307 {dimension_numbers = #tpu.dot_dimension_numbers<[1], [0], [0], [1], [0, 0, 1, 1], [], []>} : vector<64x22xbf16>, vector<22x16xbf16>, vector<64x16xf32> -> vector<64x16xf32>
    %270 = arith.truncf %269 : vector<64x16xf32> to vector<64x16xbf16>
    %c0_308 = arith.constant 0 : index
    %c0_309 = arith.constant 0 : index
    %271 = vector.load %arg46[%c0_308, %c0_309] : memref<64x16xbf16, #tpu.memory_space<vmem>>, vector<64x16xbf16>
    tpu.vector_store %arg46[%c0_308, %c0_309], %270 {strides = array<i32>} : memref<64x16xbf16, #tpu.memory_space<vmem>>, vector<64x16xbf16>,
    %c0_310 = arith.constant 0 : index
    %c0_311 = arith.constant 0 : index
    %272 = vector.load %arg46[%c0_310, %c0_311] : memref<64x16xbf16, #tpu.memory_space<vmem>>, vector<64x6xbf16>
    %c0_312 = arith.constant 0 : index
    %c0_313 = arith.constant 0 : index
    %273 = vector.load %arg51[%c0_312, %c0_313] : memref<864x286xbf16, #tpu.memory_space<vmem>>, vector<64x6xbf16>
    tpu.vector_store %arg51[%c0_312, %c0_313], %272 {strides = array<i32>} : memref<864x286xbf16, #tpu.memory_space<vmem>>, vector<64x6xbf16>,
    %c0_314 = arith.constant 0 : index
    %c1_315 = arith.constant 1 : index
    %274 = vector.load %arg46[%c0_314, %c1_315] : memref<64x16xbf16, #tpu.memory_space<vmem>>, vector<64x6xbf16>
    %c64_316 = arith.constant 64 : index
    %c0_317 = arith.constant 0 : index
    %275 = vector.load %arg51[%c64_316, %c0_317] : memref<864x286xbf16, #tpu.memory_space<vmem>>, vector<64x6xbf16>
    tpu.vector_store %arg51[%c64_316, %c0_317], %274 {strides = array<i32>} : memref<864x286xbf16, #tpu.memory_space<vmem>>, vector<64x6xbf16>,
    %c0_318 = arith.constant 0 : index
    %c2_319 = arith.constant 2 : index
    %276 = vector.load %arg46[%c0_318, %c2_319] : memref<64x16xbf16, #tpu.memory_space<vmem>>, vector<64x6xbf16>
    %c128_320 = arith.constant 128 : index
    %c0_321 = arith.constant 0 : index
    %277 = vector.load %arg51[%c128_320, %c0_321] : memref<864x286xbf16, #tpu.memory_space<vmem>>, vector<64x6xbf16>
    tpu.vector_store %arg51[%c128_320, %c0_321], %276 {strides = array<i32>} : memref<864x286xbf16, #tpu.memory_space<vmem>>, vector<64x6xbf16>,
    %c0_322 = arith.constant 0 : index
    %c4_323 = arith.constant 4 : index
    %278 = vector.load %arg46[%c0_322, %c4_323] : memref<64x16xbf16, #tpu.memory_space<vmem>>, vector<64x6xbf16>
    %c192_324 = arith.constant 192 : index
    %c0_325 = arith.constant 0 : index
    %279 = vector.load %arg51[%c192_324, %c0_325] : memref<864x286xbf16, #tpu.memory_space<vmem>>, vector<64x6xbf16>
    tpu.vector_store %arg51[%c192_324, %c0_325], %278 {strides = array<i32>} : memref<864x286xbf16, #tpu.memory_space<vmem>>, vector<64x6xbf16>,
    %c0_326 = arith.constant 0 : index
    %c5_327 = arith.constant 5 : index
    %280 = vector.load %arg46[%c0_326, %c5_327] : memref<64x16xbf16, #tpu.memory_space<vmem>>, vector<64x6xbf16>
    %c256_328 = arith.constant 256 : index
    %c0_329 = arith.constant 0 : index
    %281 = vector.load %arg51[%c256_328, %c0_329] : memref<864x286xbf16, #tpu.memory_space<vmem>>, vector<64x6xbf16>
    tpu.vector_store %arg51[%c256_328, %c0_329], %280 {strides = array<i32>} : memref<864x286xbf16, #tpu.memory_space<vmem>>, vector<64x6xbf16>,
    %c0_330 = arith.constant 0 : index
    %c6_331 = arith.constant 6 : index
    %282 = vector.load %arg46[%c0_330, %c6_331] : memref<64x16xbf16, #tpu.memory_space<vmem>>, vector<64x6xbf16>
    %c320 = arith.constant 320 : index
    %c0_332 = arith.constant 0 : index
    %283 = vector.load %arg51[%c320, %c0_332] : memref<864x286xbf16, #tpu.memory_space<vmem>>, vector<64x6xbf16>
    tpu.vector_store %arg51[%c320, %c0_332], %282 {strides = array<i32>} : memref<864x286xbf16, #tpu.memory_space<vmem>>, vector<64x6xbf16>,
    %c0_333 = arith.constant 0 : index
    %c8_334 = arith.constant 8 : index
    %284 = vector.load %arg46[%c0_333, %c8_334] : memref<64x16xbf16, #tpu.memory_space<vmem>>, vector<64x6xbf16>
    %c384 = arith.constant 384 : index
    %c0_335 = arith.constant 0 : index
    %285 = vector.load %arg51[%c384, %c0_335] : memref<864x286xbf16, #tpu.memory_space<vmem>>, vector<64x6xbf16>
    tpu.vector_store %arg51[%c384, %c0_335], %284 {strides = array<i32>} : memref<864x286xbf16, #tpu.memory_space<vmem>>, vector<64x6xbf16>,
    %c0_336 = arith.constant 0 : index
    %c9 = arith.constant 9 : index
    %286 = vector.load %arg46[%c0_336, %c9] : memref<64x16xbf16, #tpu.memory_space<vmem>>, vector<64x6xbf16>
    %c448 = arith.constant 448 : index
    %c0_337 = arith.constant 0 : index
    %287 = vector.load %arg51[%c448, %c0_337] : memref<864x286xbf16, #tpu.memory_space<vmem>>, vector<64x6xbf16>
    tpu.vector_store %arg51[%c448, %c0_337], %286 {strides = array<i32>} : memref<864x286xbf16, #tpu.memory_space<vmem>>, vector<64x6xbf16>,
    %c0_338 = arith.constant 0 : index
    %c10_339 = arith.constant 10 : index
    %288 = vector.load %arg46[%c0_338, %c10_339] : memref<64x16xbf16, #tpu.memory_space<vmem>>, vector<64x6xbf16>
    %c512 = arith.constant 512 : index
    %c0_340 = arith.constant 0 : index
    %289 = vector.load %arg51[%c512, %c0_340] : memref<864x286xbf16, #tpu.memory_space<vmem>>, vector<64x6xbf16>
    tpu.vector_store %arg51[%c512, %c0_340], %288 {strides = array<i32>} : memref<864x286xbf16, #tpu.memory_space<vmem>>, vector<64x6xbf16>,
    %c0_341 = arith.constant 0 : index
    %c0_342 = arith.constant 0 : index
    %290 = vector.load %arg16[%c0_341, %c0_342] : memref<64x576xbf16, #tpu.memory_space<vmem>>, vector<64x576xbf16>
    %c0_343 = arith.constant 0 : index
    %c0_344 = arith.constant 0 : index
    %291 = vector.load %arg51[%c0_343, %c0_344] : memref<864x286xbf16, #tpu.memory_space<vmem>>, vector<576x6xbf16>
    %cst_345 = arith.constant dense<0.000000e+00> : vector<64x6xf32>
    %292 = tpu.matmul %290, %291, %cst_345 {dimension_numbers = #tpu.dot_dimension_numbers<[1], [0], [0], [1], [0, 0, 1, 1], [], []>} : vector<64x576xbf16>, vector<576x6xbf16>, vector<64x6xf32> -> vector<64x6xf32>
    %c0_346 = arith.constant 0 : index
    %c0_347 = arith.constant 0 : index
    %293 = vector.load %arg17[%c0_346, %c0_347] : memref<64x1xf32, #tpu.memory_space<vmem>>, vector<64x1xf32>
    %294 = vector.broadcast %293 : vector<64x1xf32> to vector<64x6xf32>
    %295 = arith.addf %292, %294 : vector<64x6xf32>
    %cst_348 = arith.constant 0.000000e+00 : f32
    %296 = vector.broadcast %cst_348 : f32 to vector<64x6xf32>
    %297 = arith.maximumf %295, %296 : vector<64x6xf32>
    %298 = arith.truncf %297 : vector<64x6xf32> to vector<64x6xbf16>
    %c0_349 = arith.constant 0 : index
    %c0_350 = arith.constant 0 : index
    %299 = vector.load %arg33[%c0_349, %c0_350] : memref<6x36xbf16, #tpu.memory_space<vmem>>, vector<6x36xbf16>
    %cst_351 = arith.constant dense<0.000000e+00> : vector<64x36xf32>
    %300 = tpu.matmul %298, %299, %cst_351 {dimension_numbers = #tpu.dot_dimension_numbers<[1], [0], [0], [1], [0, 0, 1, 1], [], []>} : vector<64x6xbf16>, vector<6x36xbf16>, vector<64x36xf32> -> vector<64x36xf32>
    %301 = arith.truncf %300 : vector<64x36xf32> to vector<64x36xbf16>
    %c0_352 = arith.constant 0 : index
    %c0_353 = arith.constant 0 : index
    %302 = vector.load %arg47[%c0_352, %c0_353] : memref<64x36xbf16, #tpu.memory_space<vmem>>, vector<64x36xbf16>
    tpu.vector_store %arg47[%c0_352, %c0_353], %301 {strides = array<i32>} : memref<64x36xbf16, #tpu.memory_space<vmem>>, vector<64x36xbf16>,
    %c0_354 = arith.constant 0 : index
    %c0_355 = arith.constant 0 : index
    %303 = vector.load %arg47[%c0_354, %c0_355] : memref<64x36xbf16, #tpu.memory_space<vmem>>, vector<64x22xbf16>
    %c0_356 = arith.constant 0 : index
    %c0_357 = arith.constant 0 : index
    %304 = vector.load %arg51[%c0_356, %c0_357] : memref<864x286xbf16, #tpu.memory_space<vmem>>, vector<64x22xbf16>
    tpu.vector_store %arg51[%c0_356, %c0_357], %303 {strides = array<i32>} : memref<864x286xbf16, #tpu.memory_space<vmem>>, vector<64x22xbf16>,
    %c0_358 = arith.constant 0 : index
    %c1_359 = arith.constant 1 : index
    %305 = vector.load %arg47[%c0_358, %c1_359] : memref<64x36xbf16, #tpu.memory_space<vmem>>, vector<64x22xbf16>
    %c64_360 = arith.constant 64 : index
    %c0_361 = arith.constant 0 : index
    %306 = vector.load %arg51[%c64_360, %c0_361] : memref<864x286xbf16, #tpu.memory_space<vmem>>, vector<64x22xbf16>
    tpu.vector_store %arg51[%c64_360, %c0_361], %305 {strides = array<i32>} : memref<864x286xbf16, #tpu.memory_space<vmem>>, vector<64x22xbf16>,
    %c0_362 = arith.constant 0 : index
    %c2_363 = arith.constant 2 : index
    %307 = vector.load %arg47[%c0_362, %c2_363] : memref<64x36xbf16, #tpu.memory_space<vmem>>, vector<64x22xbf16>
    %c128_364 = arith.constant 128 : index
    %c0_365 = arith.constant 0 : index
    %308 = vector.load %arg51[%c128_364, %c0_365] : memref<864x286xbf16, #tpu.memory_space<vmem>>, vector<64x22xbf16>
    tpu.vector_store %arg51[%c128_364, %c0_365], %307 {strides = array<i32>} : memref<864x286xbf16, #tpu.memory_space<vmem>>, vector<64x22xbf16>,
    %c0_366 = arith.constant 0 : index
    %c6_367 = arith.constant 6 : index
    %309 = vector.load %arg47[%c0_366, %c6_367] : memref<64x36xbf16, #tpu.memory_space<vmem>>, vector<64x22xbf16>
    %c192_368 = arith.constant 192 : index
    %c0_369 = arith.constant 0 : index
    %310 = vector.load %arg51[%c192_368, %c0_369] : memref<864x286xbf16, #tpu.memory_space<vmem>>, vector<64x22xbf16>
    tpu.vector_store %arg51[%c192_368, %c0_369], %309 {strides = array<i32>} : memref<864x286xbf16, #tpu.memory_space<vmem>>, vector<64x22xbf16>,
    %c0_370 = arith.constant 0 : index
    %c7_371 = arith.constant 7 : index
    %311 = vector.load %arg47[%c0_370, %c7_371] : memref<64x36xbf16, #tpu.memory_space<vmem>>, vector<64x22xbf16>
    %c256_372 = arith.constant 256 : index
    %c0_373 = arith.constant 0 : index
    %312 = vector.load %arg51[%c256_372, %c0_373] : memref<864x286xbf16, #tpu.memory_space<vmem>>, vector<64x22xbf16>
    tpu.vector_store %arg51[%c256_372, %c0_373], %311 {strides = array<i32>} : memref<864x286xbf16, #tpu.memory_space<vmem>>, vector<64x22xbf16>,
    %c0_374 = arith.constant 0 : index
    %c8_375 = arith.constant 8 : index
    %313 = vector.load %arg47[%c0_374, %c8_375] : memref<64x36xbf16, #tpu.memory_space<vmem>>, vector<64x22xbf16>
    %c320_376 = arith.constant 320 : index
    %c0_377 = arith.constant 0 : index
    %314 = vector.load %arg51[%c320_376, %c0_377] : memref<864x286xbf16, #tpu.memory_space<vmem>>, vector<64x22xbf16>
    tpu.vector_store %arg51[%c320_376, %c0_377], %313 {strides = array<i32>} : memref<864x286xbf16, #tpu.memory_space<vmem>>, vector<64x22xbf16>,
    %c0_378 = arith.constant 0 : index
    %c12_379 = arith.constant 12 : index
    %315 = vector.load %arg47[%c0_378, %c12_379] : memref<64x36xbf16, #tpu.memory_space<vmem>>, vector<64x22xbf16>
    %c384_380 = arith.constant 384 : index
    %c0_381 = arith.constant 0 : index
    %316 = vector.load %arg51[%c384_380, %c0_381] : memref<864x286xbf16, #tpu.memory_space<vmem>>, vector<64x22xbf16>
    tpu.vector_store %arg51[%c384_380, %c0_381], %315 {strides = array<i32>} : memref<864x286xbf16, #tpu.memory_space<vmem>>, vector<64x22xbf16>,
    %c0_382 = arith.constant 0 : index
    %c13_383 = arith.constant 13 : index
    %317 = vector.load %arg47[%c0_382, %c13_383] : memref<64x36xbf16, #tpu.memory_space<vmem>>, vector<64x22xbf16>
    %c448_384 = arith.constant 448 : index
    %c0_385 = arith.constant 0 : index
    %318 = vector.load %arg51[%c448_384, %c0_385] : memref<864x286xbf16, #tpu.memory_space<vmem>>, vector<64x22xbf16>
    tpu.vector_store %arg51[%c448_384, %c0_385], %317 {strides = array<i32>} : memref<864x286xbf16, #tpu.memory_space<vmem>>, vector<64x22xbf16>,
    %c0_386 = arith.constant 0 : index
    %c14_387 = arith.constant 14 : index
    %319 = vector.load %arg47[%c0_386, %c14_387] : memref<64x36xbf16, #tpu.memory_space<vmem>>, vector<64x22xbf16>
    %c512_388 = arith.constant 512 : index
    %c0_389 = arith.constant 0 : index
    %320 = vector.load %arg51[%c512_388, %c0_389] : memref<864x286xbf16, #tpu.memory_space<vmem>>, vector<64x22xbf16>
    tpu.vector_store %arg51[%c512_388, %c0_389], %319 {strides = array<i32>} : memref<864x286xbf16, #tpu.memory_space<vmem>>, vector<64x22xbf16>,
    %c0_390 = arith.constant 0 : index
    %c0_391 = arith.constant 0 : index
    %321 = vector.load %arg45[%c0_390, %c0_391] : memref<32x36xbf16, #tpu.memory_space<vmem>>, vector<32x22xbf16>
    %c576 = arith.constant 576 : index
    %c0_392 = arith.constant 0 : index
    %322 = vector.load %arg51[%c576, %c0_392] : memref<864x286xbf16, #tpu.memory_space<vmem>>, vector<32x22xbf16>
    tpu.vector_store %arg51[%c576, %c0_392], %321 {strides = array<i32>} : memref<864x286xbf16, #tpu.memory_space<vmem>>, vector<32x22xbf16>,
    %c0_393 = arith.constant 0 : index
    %c1_394 = arith.constant 1 : index
    %323 = vector.load %arg45[%c0_393, %c1_394] : memref<32x36xbf16, #tpu.memory_space<vmem>>, vector<32x22xbf16>
    %c608 = arith.constant 608 : index
    %c0_395 = arith.constant 0 : index
    %324 = vector.load %arg51[%c608, %c0_395] : memref<864x286xbf16, #tpu.memory_space<vmem>>, vector<32x22xbf16>
    tpu.vector_store %arg51[%c608, %c0_395], %323 {strides = array<i32>} : memref<864x286xbf16, #tpu.memory_space<vmem>>, vector<32x22xbf16>,
    %c0_396 = arith.constant 0 : index
    %c2_397 = arith.constant 2 : index
    %325 = vector.load %arg45[%c0_396, %c2_397] : memref<32x36xbf16, #tpu.memory_space<vmem>>, vector<32x22xbf16>
    %c640 = arith.constant 640 : index
    %c0_398 = arith.constant 0 : index
    %326 = vector.load %arg51[%c640, %c0_398] : memref<864x286xbf16, #tpu.memory_space<vmem>>, vector<32x22xbf16>
    tpu.vector_store %arg51[%c640, %c0_398], %325 {strides = array<i32>} : memref<864x286xbf16, #tpu.memory_space<vmem>>, vector<32x22xbf16>,
    %c0_399 = arith.constant 0 : index
    %c6_400 = arith.constant 6 : index
    %327 = vector.load %arg45[%c0_399, %c6_400] : memref<32x36xbf16, #tpu.memory_space<vmem>>, vector<32x22xbf16>
    %c672 = arith.constant 672 : index
    %c0_401 = arith.constant 0 : index
    %328 = vector.load %arg51[%c672, %c0_401] : memref<864x286xbf16, #tpu.memory_space<vmem>>, vector<32x22xbf16>
    tpu.vector_store %arg51[%c672, %c0_401], %327 {strides = array<i32>} : memref<864x286xbf16, #tpu.memory_space<vmem>>, vector<32x22xbf16>,
    %c0_402 = arith.constant 0 : index
    %c7_403 = arith.constant 7 : index
    %329 = vector.load %arg45[%c0_402, %c7_403] : memref<32x36xbf16, #tpu.memory_space<vmem>>, vector<32x22xbf16>
    %c704 = arith.constant 704 : index
    %c0_404 = arith.constant 0 : index
    %330 = vector.load %arg51[%c704, %c0_404] : memref<864x286xbf16, #tpu.memory_space<vmem>>, vector<32x22xbf16>
    tpu.vector_store %arg51[%c704, %c0_404], %329 {strides = array<i32>} : memref<864x286xbf16, #tpu.memory_space<vmem>>, vector<32x22xbf16>,
    %c0_405 = arith.constant 0 : index
    %c8_406 = arith.constant 8 : index
    %331 = vector.load %arg45[%c0_405, %c8_406] : memref<32x36xbf16, #tpu.memory_space<vmem>>, vector<32x22xbf16>
    %c736 = arith.constant 736 : index
    %c0_407 = arith.constant 0 : index
    %332 = vector.load %arg51[%c736, %c0_407] : memref<864x286xbf16, #tpu.memory_space<vmem>>, vector<32x22xbf16>
    tpu.vector_store %arg51[%c736, %c0_407], %331 {strides = array<i32>} : memref<864x286xbf16, #tpu.memory_space<vmem>>, vector<32x22xbf16>,
    %c0_408 = arith.constant 0 : index
    %c12_409 = arith.constant 12 : index
    %333 = vector.load %arg45[%c0_408, %c12_409] : memref<32x36xbf16, #tpu.memory_space<vmem>>, vector<32x22xbf16>
    %c768 = arith.constant 768 : index
    %c0_410 = arith.constant 0 : index
    %334 = vector.load %arg51[%c768, %c0_410] : memref<864x286xbf16, #tpu.memory_space<vmem>>, vector<32x22xbf16>
    tpu.vector_store %arg51[%c768, %c0_410], %333 {strides = array<i32>} : memref<864x286xbf16, #tpu.memory_space<vmem>>, vector<32x22xbf16>,
    %c0_411 = arith.constant 0 : index
    %c13_412 = arith.constant 13 : index
    %335 = vector.load %arg45[%c0_411, %c13_412] : memref<32x36xbf16, #tpu.memory_space<vmem>>, vector<32x22xbf16>
    %c800 = arith.constant 800 : index
    %c0_413 = arith.constant 0 : index
    %336 = vector.load %arg51[%c800, %c0_413] : memref<864x286xbf16, #tpu.memory_space<vmem>>, vector<32x22xbf16>
    tpu.vector_store %arg51[%c800, %c0_413], %335 {strides = array<i32>} : memref<864x286xbf16, #tpu.memory_space<vmem>>, vector<32x22xbf16>,
    %c0_414 = arith.constant 0 : index
    %c14_415 = arith.constant 14 : index
    %337 = vector.load %arg45[%c0_414, %c14_415] : memref<32x36xbf16, #tpu.memory_space<vmem>>, vector<32x22xbf16>
    %c832 = arith.constant 832 : index
    %c0_416 = arith.constant 0 : index
    %338 = vector.load %arg51[%c832, %c0_416] : memref<864x286xbf16, #tpu.memory_space<vmem>>, vector<32x22xbf16>
    tpu.vector_store %arg51[%c832, %c0_416], %337 {strides = array<i32>} : memref<864x286xbf16, #tpu.memory_space<vmem>>, vector<32x22xbf16>,
    %c0_417 = arith.constant 0 : index
    %c0_418 = arith.constant 0 : index
    %339 = vector.load %arg18[%c0_417, %c0_418] : memref<64x864xbf16, #tpu.memory_space<vmem>>, vector<64x864xbf16>
    %c0_419 = arith.constant 0 : index
    %c0_420 = arith.constant 0 : index
    %340 = vector.load %arg51[%c0_419, %c0_420] : memref<864x286xbf16, #tpu.memory_space<vmem>>, vector<864x22xbf16>
    %cst_421 = arith.constant dense<0.000000e+00> : vector<64x22xf32>
    %341 = tpu.matmul %339, %340, %cst_421 {dimension_numbers = #tpu.dot_dimension_numbers<[1], [0], [0], [1], [0, 0, 1, 1], [], []>} : vector<64x864xbf16>, vector<864x22xbf16>, vector<64x22xf32> -> vector<64x22xf32>
    %c0_422 = arith.constant 0 : index
    %c0_423 = arith.constant 0 : index
    %342 = vector.load %arg19[%c0_422, %c0_423] : memref<64x1xf32, #tpu.memory_space<vmem>>, vector<64x1xf32>
    %343 = vector.broadcast %342 : vector<64x1xf32> to vector<64x22xf32>
    %344 = arith.addf %341, %343 : vector<64x22xf32>
    %cst_424 = arith.constant 0.000000e+00 : f32
    %345 = vector.broadcast %cst_424 : f32 to vector<64x22xf32>
    %346 = arith.maximumf %344, %345 : vector<64x22xf32>
    %347 = arith.truncf %346 : vector<64x22xf32> to vector<64x22xbf16>
    %c0_425 = arith.constant 0 : index
    %c0_426 = arith.constant 0 : index
    %348 = vector.load %arg34[%c0_425, %c0_426] : memref<22x100xbf16, #tpu.memory_space<vmem>>, vector<22x100xbf16>
    %cst_427 = arith.constant dense<0.000000e+00> : vector<64x100xf32>
    %349 = tpu.matmul %347, %348, %cst_427 {dimension_numbers = #tpu.dot_dimension_numbers<[1], [0], [0], [1], [0, 0, 1, 1], [], []>} : vector<64x22xbf16>, vector<22x100xbf16>, vector<64x100xf32> -> vector<64x100xf32>
    %350 = arith.truncf %349 : vector<64x100xf32> to vector<64x100xbf16>
    %c0_428 = arith.constant 0 : index
    %c0_429 = arith.constant 0 : index
    %351 = vector.load %arg48[%c0_428, %c0_429] : memref<64x100xbf16, #tpu.memory_space<vmem>>, vector<64x100xbf16>
    tpu.vector_store %arg48[%c0_428, %c0_429], %350 {strides = array<i32>} : memref<64x100xbf16, #tpu.memory_space<vmem>>, vector<64x100xbf16>,
    %c0_430 = arith.constant 0 : index
    %c0_431 = arith.constant 0 : index
    %352 = vector.load %arg48[%c0_430, %c0_431] : memref<64x100xbf16, #tpu.memory_space<vmem>>, vector<64x78xbf16>
    %c0_432 = arith.constant 0 : index
    %c0_433 = arith.constant 0 : index
    %353 = vector.load %arg51[%c0_432, %c0_433] : memref<864x286xbf16, #tpu.memory_space<vmem>>, vector<64x78xbf16>
    tpu.vector_store %arg51[%c0_432, %c0_433], %352 {strides = array<i32>} : memref<864x286xbf16, #tpu.memory_space<vmem>>, vector<64x78xbf16>,
    %c0_434 = arith.constant 0 : index
    %c1_435 = arith.constant 1 : index
    %354 = vector.load %arg48[%c0_434, %c1_435] : memref<64x100xbf16, #tpu.memory_space<vmem>>, vector<64x78xbf16>
    %c64_436 = arith.constant 64 : index
    %c0_437 = arith.constant 0 : index
    %355 = vector.load %arg51[%c64_436, %c0_437] : memref<864x286xbf16, #tpu.memory_space<vmem>>, vector<64x78xbf16>
    tpu.vector_store %arg51[%c64_436, %c0_437], %354 {strides = array<i32>} : memref<864x286xbf16, #tpu.memory_space<vmem>>, vector<64x78xbf16>,
    %c0_438 = arith.constant 0 : index
    %c2_439 = arith.constant 2 : index
    %356 = vector.load %arg48[%c0_438, %c2_439] : memref<64x100xbf16, #tpu.memory_space<vmem>>, vector<64x78xbf16>
    %c128_440 = arith.constant 128 : index
    %c0_441 = arith.constant 0 : index
    %357 = vector.load %arg51[%c128_440, %c0_441] : memref<864x286xbf16, #tpu.memory_space<vmem>>, vector<64x78xbf16>
    tpu.vector_store %arg51[%c128_440, %c0_441], %356 {strides = array<i32>} : memref<864x286xbf16, #tpu.memory_space<vmem>>, vector<64x78xbf16>,
    %c0_442 = arith.constant 0 : index
    %c10_443 = arith.constant 10 : index
    %358 = vector.load %arg48[%c0_442, %c10_443] : memref<64x100xbf16, #tpu.memory_space<vmem>>, vector<64x78xbf16>
    %c192_444 = arith.constant 192 : index
    %c0_445 = arith.constant 0 : index
    %359 = vector.load %arg51[%c192_444, %c0_445] : memref<864x286xbf16, #tpu.memory_space<vmem>>, vector<64x78xbf16>
    tpu.vector_store %arg51[%c192_444, %c0_445], %358 {strides = array<i32>} : memref<864x286xbf16, #tpu.memory_space<vmem>>, vector<64x78xbf16>,
    %c0_446 = arith.constant 0 : index
    %c11_447 = arith.constant 11 : index
    %360 = vector.load %arg48[%c0_446, %c11_447] : memref<64x100xbf16, #tpu.memory_space<vmem>>, vector<64x78xbf16>
    %c256_448 = arith.constant 256 : index
    %c0_449 = arith.constant 0 : index
    %361 = vector.load %arg51[%c256_448, %c0_449] : memref<864x286xbf16, #tpu.memory_space<vmem>>, vector<64x78xbf16>
    tpu.vector_store %arg51[%c256_448, %c0_449], %360 {strides = array<i32>} : memref<864x286xbf16, #tpu.memory_space<vmem>>, vector<64x78xbf16>,
    %c0_450 = arith.constant 0 : index
    %c12_451 = arith.constant 12 : index
    %362 = vector.load %arg48[%c0_450, %c12_451] : memref<64x100xbf16, #tpu.memory_space<vmem>>, vector<64x78xbf16>
    %c320_452 = arith.constant 320 : index
    %c0_453 = arith.constant 0 : index
    %363 = vector.load %arg51[%c320_452, %c0_453] : memref<864x286xbf16, #tpu.memory_space<vmem>>, vector<64x78xbf16>
    tpu.vector_store %arg51[%c320_452, %c0_453], %362 {strides = array<i32>} : memref<864x286xbf16, #tpu.memory_space<vmem>>, vector<64x78xbf16>,
    %c0_454 = arith.constant 0 : index
    %c20_455 = arith.constant 20 : index
    %364 = vector.load %arg48[%c0_454, %c20_455] : memref<64x100xbf16, #tpu.memory_space<vmem>>, vector<64x78xbf16>
    %c384_456 = arith.constant 384 : index
    %c0_457 = arith.constant 0 : index
    %365 = vector.load %arg51[%c384_456, %c0_457] : memref<864x286xbf16, #tpu.memory_space<vmem>>, vector<64x78xbf16>
    tpu.vector_store %arg51[%c384_456, %c0_457], %364 {strides = array<i32>} : memref<864x286xbf16, #tpu.memory_space<vmem>>, vector<64x78xbf16>,
    %c0_458 = arith.constant 0 : index
    %c21_459 = arith.constant 21 : index
    %366 = vector.load %arg48[%c0_458, %c21_459] : memref<64x100xbf16, #tpu.memory_space<vmem>>, vector<64x78xbf16>
    %c448_460 = arith.constant 448 : index
    %c0_461 = arith.constant 0 : index
    %367 = vector.load %arg51[%c448_460, %c0_461] : memref<864x286xbf16, #tpu.memory_space<vmem>>, vector<64x78xbf16>
    tpu.vector_store %arg51[%c448_460, %c0_461], %366 {strides = array<i32>} : memref<864x286xbf16, #tpu.memory_space<vmem>>, vector<64x78xbf16>,
    %c0_462 = arith.constant 0 : index
    %c22_463 = arith.constant 22 : index
    %368 = vector.load %arg48[%c0_462, %c22_463] : memref<64x100xbf16, #tpu.memory_space<vmem>>, vector<64x78xbf16>
    %c512_464 = arith.constant 512 : index
    %c0_465 = arith.constant 0 : index
    %369 = vector.load %arg51[%c512_464, %c0_465] : memref<864x286xbf16, #tpu.memory_space<vmem>>, vector<64x78xbf16>
    tpu.vector_store %arg51[%c512_464, %c0_465], %368 {strides = array<i32>} : memref<864x286xbf16, #tpu.memory_space<vmem>>, vector<64x78xbf16>,
    %c0_466 = arith.constant 0 : index
    %c0_467 = arith.constant 0 : index
    %370 = vector.load %arg43[%c0_466, %c0_467] : memref<16x100xbf16, #tpu.memory_space<vmem>>, vector<16x78xbf16>
    %c576_468 = arith.constant 576 : index
    %c0_469 = arith.constant 0 : index
    %371 = vector.load %arg51[%c576_468, %c0_469] : memref<864x286xbf16, #tpu.memory_space<vmem>>, vector<16x78xbf16>
    tpu.vector_store %arg51[%c576_468, %c0_469], %370 {strides = array<i32>} : memref<864x286xbf16, #tpu.memory_space<vmem>>, vector<16x78xbf16>,
    %c0_470 = arith.constant 0 : index
    %c1_471 = arith.constant 1 : index
    %372 = vector.load %arg43[%c0_470, %c1_471] : memref<16x100xbf16, #tpu.memory_space<vmem>>, vector<16x78xbf16>
    %c592 = arith.constant 592 : index
    %c0_472 = arith.constant 0 : index
    %373 = vector.load %arg51[%c592, %c0_472] : memref<864x286xbf16, #tpu.memory_space<vmem>>, vector<16x78xbf16>
    tpu.vector_store %arg51[%c592, %c0_472], %372 {strides = array<i32>} : memref<864x286xbf16, #tpu.memory_space<vmem>>, vector<16x78xbf16>,
    %c0_473 = arith.constant 0 : index
    %c2_474 = arith.constant 2 : index
    %374 = vector.load %arg43[%c0_473, %c2_474] : memref<16x100xbf16, #tpu.memory_space<vmem>>, vector<16x78xbf16>
    %c608_475 = arith.constant 608 : index
    %c0_476 = arith.constant 0 : index
    %375 = vector.load %arg51[%c608_475, %c0_476] : memref<864x286xbf16, #tpu.memory_space<vmem>>, vector<16x78xbf16>
    tpu.vector_store %arg51[%c608_475, %c0_476], %374 {strides = array<i32>} : memref<864x286xbf16, #tpu.memory_space<vmem>>, vector<16x78xbf16>,
    %c0_477 = arith.constant 0 : index
    %c10_478 = arith.constant 10 : index
    %376 = vector.load %arg43[%c0_477, %c10_478] : memref<16x100xbf16, #tpu.memory_space<vmem>>, vector<16x78xbf16>
    %c624 = arith.constant 624 : index
    %c0_479 = arith.constant 0 : index
    %377 = vector.load %arg51[%c624, %c0_479] : memref<864x286xbf16, #tpu.memory_space<vmem>>, vector<16x78xbf16>
    tpu.vector_store %arg51[%c624, %c0_479], %376 {strides = array<i32>} : memref<864x286xbf16, #tpu.memory_space<vmem>>, vector<16x78xbf16>,
    %c0_480 = arith.constant 0 : index
    %c11_481 = arith.constant 11 : index
    %378 = vector.load %arg43[%c0_480, %c11_481] : memref<16x100xbf16, #tpu.memory_space<vmem>>, vector<16x78xbf16>
    %c640_482 = arith.constant 640 : index
    %c0_483 = arith.constant 0 : index
    %379 = vector.load %arg51[%c640_482, %c0_483] : memref<864x286xbf16, #tpu.memory_space<vmem>>, vector<16x78xbf16>
    tpu.vector_store %arg51[%c640_482, %c0_483], %378 {strides = array<i32>} : memref<864x286xbf16, #tpu.memory_space<vmem>>, vector<16x78xbf16>,
    %c0_484 = arith.constant 0 : index
    %c12_485 = arith.constant 12 : index
    %380 = vector.load %arg43[%c0_484, %c12_485] : memref<16x100xbf16, #tpu.memory_space<vmem>>, vector<16x78xbf16>
    %c656 = arith.constant 656 : index
    %c0_486 = arith.constant 0 : index
    %381 = vector.load %arg51[%c656, %c0_486] : memref<864x286xbf16, #tpu.memory_space<vmem>>, vector<16x78xbf16>
    tpu.vector_store %arg51[%c656, %c0_486], %380 {strides = array<i32>} : memref<864x286xbf16, #tpu.memory_space<vmem>>, vector<16x78xbf16>,
    %c0_487 = arith.constant 0 : index
    %c20_488 = arith.constant 20 : index
    %382 = vector.load %arg43[%c0_487, %c20_488] : memref<16x100xbf16, #tpu.memory_space<vmem>>, vector<16x78xbf16>
    %c672_489 = arith.constant 672 : index
    %c0_490 = arith.constant 0 : index
    %383 = vector.load %arg51[%c672_489, %c0_490] : memref<864x286xbf16, #tpu.memory_space<vmem>>, vector<16x78xbf16>
    tpu.vector_store %arg51[%c672_489, %c0_490], %382 {strides = array<i32>} : memref<864x286xbf16, #tpu.memory_space<vmem>>, vector<16x78xbf16>,
    %c0_491 = arith.constant 0 : index
    %c21_492 = arith.constant 21 : index
    %384 = vector.load %arg43[%c0_491, %c21_492] : memref<16x100xbf16, #tpu.memory_space<vmem>>, vector<16x78xbf16>
    %c688 = arith.constant 688 : index
    %c0_493 = arith.constant 0 : index
    %385 = vector.load %arg51[%c688, %c0_493] : memref<864x286xbf16, #tpu.memory_space<vmem>>, vector<16x78xbf16>
    tpu.vector_store %arg51[%c688, %c0_493], %384 {strides = array<i32>} : memref<864x286xbf16, #tpu.memory_space<vmem>>, vector<16x78xbf16>,
    %c0_494 = arith.constant 0 : index
    %c22_495 = arith.constant 22 : index
    %386 = vector.load %arg43[%c0_494, %c22_495] : memref<16x100xbf16, #tpu.memory_space<vmem>>, vector<16x78xbf16>
    %c704_496 = arith.constant 704 : index
    %c0_497 = arith.constant 0 : index
    %387 = vector.load %arg51[%c704_496, %c0_497] : memref<864x286xbf16, #tpu.memory_space<vmem>>, vector<16x78xbf16>
    tpu.vector_store %arg51[%c704_496, %c0_497], %386 {strides = array<i32>} : memref<864x286xbf16, #tpu.memory_space<vmem>>, vector<16x78xbf16>,
    %c0_498 = arith.constant 0 : index
    %c0_499 = arith.constant 0 : index
    %388 = vector.load %arg20[%c0_498, %c0_499] : memref<32x720xbf16, #tpu.memory_space<vmem>>, vector<32x720xbf16>
    %c0_500 = arith.constant 0 : index
    %c0_501 = arith.constant 0 : index
    %389 = vector.load %arg51[%c0_500, %c0_501] : memref<864x286xbf16, #tpu.memory_space<vmem>>, vector<720x78xbf16>
    %cst_502 = arith.constant dense<0.000000e+00> : vector<32x78xf32>
    %390 = tpu.matmul %388, %389, %cst_502 {dimension_numbers = #tpu.dot_dimension_numbers<[1], [0], [0], [1], [0, 0, 1, 1], [], []>} : vector<32x720xbf16>, vector<720x78xbf16>, vector<32x78xf32> -> vector<32x78xf32>
    %c0_503 = arith.constant 0 : index
    %c0_504 = arith.constant 0 : index
    %391 = vector.load %arg21[%c0_503, %c0_504] : memref<32x1xf32, #tpu.memory_space<vmem>>, vector<32x1xf32>
    %392 = vector.broadcast %391 : vector<32x1xf32> to vector<32x78xf32>
    %393 = arith.addf %390, %392 : vector<32x78xf32>
    %cst_505 = arith.constant 0.000000e+00 : f32
    %394 = vector.broadcast %cst_505 : f32 to vector<32x78xf32>
    %395 = arith.maximumf %393, %394 : vector<32x78xf32>
    %396 = arith.truncf %395 : vector<32x78xf32> to vector<32x78xbf16>
    %c0_506 = arith.constant 0 : index
    %c0_507 = arith.constant 0 : index
    %397 = vector.load %arg35[%c0_506, %c0_507] : memref<78x324xbf16, #tpu.memory_space<vmem>>, vector<78x324xbf16>
    %cst_508 = arith.constant dense<0.000000e+00> : vector<32x324xf32>
    %398 = tpu.matmul %396, %397, %cst_508 {dimension_numbers = #tpu.dot_dimension_numbers<[1], [0], [0], [1], [0, 0, 1, 1], [], []>} : vector<32x78xbf16>, vector<78x324xbf16>, vector<32x324xf32> -> vector<32x324xf32>
    %399 = arith.truncf %398 : vector<32x324xf32> to vector<32x324xbf16>
    %c0_509 = arith.constant 0 : index
    %c0_510 = arith.constant 0 : index
    %400 = vector.load %arg49[%c0_509, %c0_510] : memref<32x324xbf16, #tpu.memory_space<vmem>>, vector<32x324xbf16>
    tpu.vector_store %arg49[%c0_509, %c0_510], %399 {strides = array<i32>} : memref<32x324xbf16, #tpu.memory_space<vmem>>, vector<32x324xbf16>,
    %c0_511 = arith.constant 0 : index
    %c0_512 = arith.constant 0 : index
    %401 = vector.load %arg49[%c0_511, %c0_512] : memref<32x324xbf16, #tpu.memory_space<vmem>>, vector<32x286xbf16>
    %c0_513 = arith.constant 0 : index
    %c0_514 = arith.constant 0 : index
    %402 = vector.load %arg51[%c0_513, %c0_514] : memref<864x286xbf16, #tpu.memory_space<vmem>>, vector<32x286xbf16>
    tpu.vector_store %arg51[%c0_513, %c0_514], %401 {strides = array<i32>} : memref<864x286xbf16, #tpu.memory_space<vmem>>, vector<32x286xbf16>,
    %c0_515 = arith.constant 0 : index
    %c1_516 = arith.constant 1 : index
    %403 = vector.load %arg49[%c0_515, %c1_516] : memref<32x324xbf16, #tpu.memory_space<vmem>>, vector<32x286xbf16>
    %c32_517 = arith.constant 32 : index
    %c0_518 = arith.constant 0 : index
    %404 = vector.load %arg51[%c32_517, %c0_518] : memref<864x286xbf16, #tpu.memory_space<vmem>>, vector<32x286xbf16>
    tpu.vector_store %arg51[%c32_517, %c0_518], %403 {strides = array<i32>} : memref<864x286xbf16, #tpu.memory_space<vmem>>, vector<32x286xbf16>,
    %c0_519 = arith.constant 0 : index
    %c2_520 = arith.constant 2 : index
    %405 = vector.load %arg49[%c0_519, %c2_520] : memref<32x324xbf16, #tpu.memory_space<vmem>>, vector<32x286xbf16>
    %c64_521 = arith.constant 64 : index
    %c0_522 = arith.constant 0 : index
    %406 = vector.load %arg51[%c64_521, %c0_522] : memref<864x286xbf16, #tpu.memory_space<vmem>>, vector<32x286xbf16>
    tpu.vector_store %arg51[%c64_521, %c0_522], %405 {strides = array<i32>} : memref<864x286xbf16, #tpu.memory_space<vmem>>, vector<32x286xbf16>,
    %c0_523 = arith.constant 0 : index
    %c18_524 = arith.constant 18 : index
    %407 = vector.load %arg49[%c0_523, %c18_524] : memref<32x324xbf16, #tpu.memory_space<vmem>>, vector<32x286xbf16>
    %c96_525 = arith.constant 96 : index
    %c0_526 = arith.constant 0 : index
    %408 = vector.load %arg51[%c96_525, %c0_526] : memref<864x286xbf16, #tpu.memory_space<vmem>>, vector<32x286xbf16>
    tpu.vector_store %arg51[%c96_525, %c0_526], %407 {strides = array<i32>} : memref<864x286xbf16, #tpu.memory_space<vmem>>, vector<32x286xbf16>,
    %c0_527 = arith.constant 0 : index
    %c19_528 = arith.constant 19 : index
    %409 = vector.load %arg49[%c0_527, %c19_528] : memref<32x324xbf16, #tpu.memory_space<vmem>>, vector<32x286xbf16>
    %c128_529 = arith.constant 128 : index
    %c0_530 = arith.constant 0 : index
    %410 = vector.load %arg51[%c128_529, %c0_530] : memref<864x286xbf16, #tpu.memory_space<vmem>>, vector<32x286xbf16>
    tpu.vector_store %arg51[%c128_529, %c0_530], %409 {strides = array<i32>} : memref<864x286xbf16, #tpu.memory_space<vmem>>, vector<32x286xbf16>,
    %c0_531 = arith.constant 0 : index
    %c20_532 = arith.constant 20 : index
    %411 = vector.load %arg49[%c0_531, %c20_532] : memref<32x324xbf16, #tpu.memory_space<vmem>>, vector<32x286xbf16>
    %c160_533 = arith.constant 160 : index
    %c0_534 = arith.constant 0 : index
    %412 = vector.load %arg51[%c160_533, %c0_534] : memref<864x286xbf16, #tpu.memory_space<vmem>>, vector<32x286xbf16>
    tpu.vector_store %arg51[%c160_533, %c0_534], %411 {strides = array<i32>} : memref<864x286xbf16, #tpu.memory_space<vmem>>, vector<32x286xbf16>,
    %c0_535 = arith.constant 0 : index
    %c36_536 = arith.constant 36 : index
    %413 = vector.load %arg49[%c0_535, %c36_536] : memref<32x324xbf16, #tpu.memory_space<vmem>>, vector<32x286xbf16>
    %c192_537 = arith.constant 192 : index
    %c0_538 = arith.constant 0 : index
    %414 = vector.load %arg51[%c192_537, %c0_538] : memref<864x286xbf16, #tpu.memory_space<vmem>>, vector<32x286xbf16>
    tpu.vector_store %arg51[%c192_537, %c0_538], %413 {strides = array<i32>} : memref<864x286xbf16, #tpu.memory_space<vmem>>, vector<32x286xbf16>,
    %c0_539 = arith.constant 0 : index
    %c37_540 = arith.constant 37 : index
    %415 = vector.load %arg49[%c0_539, %c37_540] : memref<32x324xbf16, #tpu.memory_space<vmem>>, vector<32x286xbf16>
    %c224_541 = arith.constant 224 : index
    %c0_542 = arith.constant 0 : index
    %416 = vector.load %arg51[%c224_541, %c0_542] : memref<864x286xbf16, #tpu.memory_space<vmem>>, vector<32x286xbf16>
    tpu.vector_store %arg51[%c224_541, %c0_542], %415 {strides = array<i32>} : memref<864x286xbf16, #tpu.memory_space<vmem>>, vector<32x286xbf16>,
    %c0_543 = arith.constant 0 : index
    %c38_544 = arith.constant 38 : index
    %417 = vector.load %arg49[%c0_543, %c38_544] : memref<32x324xbf16, #tpu.memory_space<vmem>>, vector<32x286xbf16>
    %c256_545 = arith.constant 256 : index
    %c0_546 = arith.constant 0 : index
    %418 = vector.load %arg51[%c256_545, %c0_546] : memref<864x286xbf16, #tpu.memory_space<vmem>>, vector<32x286xbf16>
    tpu.vector_store %arg51[%c256_545, %c0_546], %417 {strides = array<i32>} : memref<864x286xbf16, #tpu.memory_space<vmem>>, vector<32x286xbf16>,
    %c0_547 = arith.constant 0 : index
    %c0_548 = arith.constant 0 : index
    %419 = vector.load %arg41[%c0_547, %c0_548] : memref<8x324xbf16, #tpu.memory_space<vmem>>, vector<8x286xbf16>
    %c288 = arith.constant 288 : index
    %c0_549 = arith.constant 0 : index
    %420 = vector.load %arg51[%c288, %c0_549] : memref<864x286xbf16, #tpu.memory_space<vmem>>, vector<8x286xbf16>
    tpu.vector_store %arg51[%c288, %c0_549], %419 {strides = array<i32>} : memref<864x286xbf16, #tpu.memory_space<vmem>>, vector<8x286xbf16>,
    %c0_550 = arith.constant 0 : index
    %c1_551 = arith.constant 1 : index
    %421 = vector.load %arg41[%c0_550, %c1_551] : memref<8x324xbf16, #tpu.memory_space<vmem>>, vector<8x286xbf16>
    %c296 = arith.constant 296 : index
    %c0_552 = arith.constant 0 : index
    %422 = vector.load %arg51[%c296, %c0_552] : memref<864x286xbf16, #tpu.memory_space<vmem>>, vector<8x286xbf16>
    tpu.vector_store %arg51[%c296, %c0_552], %421 {strides = array<i32>} : memref<864x286xbf16, #tpu.memory_space<vmem>>, vector<8x286xbf16>,
    %c0_553 = arith.constant 0 : index
    %c2_554 = arith.constant 2 : index
    %423 = vector.load %arg41[%c0_553, %c2_554] : memref<8x324xbf16, #tpu.memory_space<vmem>>, vector<8x286xbf16>
    %c304 = arith.constant 304 : index
    %c0_555 = arith.constant 0 : index
    %424 = vector.load %arg51[%c304, %c0_555] : memref<864x286xbf16, #tpu.memory_space<vmem>>, vector<8x286xbf16>
    tpu.vector_store %arg51[%c304, %c0_555], %423 {strides = array<i32>} : memref<864x286xbf16, #tpu.memory_space<vmem>>, vector<8x286xbf16>,
    %c0_556 = arith.constant 0 : index
    %c18_557 = arith.constant 18 : index
    %425 = vector.load %arg41[%c0_556, %c18_557] : memref<8x324xbf16, #tpu.memory_space<vmem>>, vector<8x286xbf16>
    %c312 = arith.constant 312 : index
    %c0_558 = arith.constant 0 : index
    %426 = vector.load %arg51[%c312, %c0_558] : memref<864x286xbf16, #tpu.memory_space<vmem>>, vector<8x286xbf16>
    tpu.vector_store %arg51[%c312, %c0_558], %425 {strides = array<i32>} : memref<864x286xbf16, #tpu.memory_space<vmem>>, vector<8x286xbf16>,
    %c0_559 = arith.constant 0 : index
    %c19_560 = arith.constant 19 : index
    %427 = vector.load %arg41[%c0_559, %c19_560] : memref<8x324xbf16, #tpu.memory_space<vmem>>, vector<8x286xbf16>
    %c320_561 = arith.constant 320 : index
    %c0_562 = arith.constant 0 : index
    %428 = vector.load %arg51[%c320_561, %c0_562] : memref<864x286xbf16, #tpu.memory_space<vmem>>, vector<8x286xbf16>
    tpu.vector_store %arg51[%c320_561, %c0_562], %427 {strides = array<i32>} : memref<864x286xbf16, #tpu.memory_space<vmem>>, vector<8x286xbf16>,
    %c0_563 = arith.constant 0 : index
    %c20_564 = arith.constant 20 : index
    %429 = vector.load %arg41[%c0_563, %c20_564] : memref<8x324xbf16, #tpu.memory_space<vmem>>, vector<8x286xbf16>
    %c328 = arith.constant 328 : index
    %c0_565 = arith.constant 0 : index
    %430 = vector.load %arg51[%c328, %c0_565] : memref<864x286xbf16, #tpu.memory_space<vmem>>, vector<8x286xbf16>
    tpu.vector_store %arg51[%c328, %c0_565], %429 {strides = array<i32>} : memref<864x286xbf16, #tpu.memory_space<vmem>>, vector<8x286xbf16>,
    %c0_566 = arith.constant 0 : index
    %c36_567 = arith.constant 36 : index
    %431 = vector.load %arg41[%c0_566, %c36_567] : memref<8x324xbf16, #tpu.memory_space<vmem>>, vector<8x286xbf16>
    %c336 = arith.constant 336 : index
    %c0_568 = arith.constant 0 : index
    %432 = vector.load %arg51[%c336, %c0_568] : memref<864x286xbf16, #tpu.memory_space<vmem>>, vector<8x286xbf16>
    tpu.vector_store %arg51[%c336, %c0_568], %431 {strides = array<i32>} : memref<864x286xbf16, #tpu.memory_space<vmem>>, vector<8x286xbf16>,
    %c0_569 = arith.constant 0 : index
    %c37_570 = arith.constant 37 : index
    %433 = vector.load %arg41[%c0_569, %c37_570] : memref<8x324xbf16, #tpu.memory_space<vmem>>, vector<8x286xbf16>
    %c344 = arith.constant 344 : index
    %c0_571 = arith.constant 0 : index
    %434 = vector.load %arg51[%c344, %c0_571] : memref<864x286xbf16, #tpu.memory_space<vmem>>, vector<8x286xbf16>
    tpu.vector_store %arg51[%c344, %c0_571], %433 {strides = array<i32>} : memref<864x286xbf16, #tpu.memory_space<vmem>>, vector<8x286xbf16>,
    %c0_572 = arith.constant 0 : index
    %c38_573 = arith.constant 38 : index
    %435 = vector.load %arg41[%c0_572, %c38_573] : memref<8x324xbf16, #tpu.memory_space<vmem>>, vector<8x286xbf16>
    %c352 = arith.constant 352 : index
    %c0_574 = arith.constant 0 : index
    %436 = vector.load %arg51[%c352, %c0_574] : memref<864x286xbf16, #tpu.memory_space<vmem>>, vector<8x286xbf16>
    tpu.vector_store %arg51[%c352, %c0_574], %435 {strides = array<i32>} : memref<864x286xbf16, #tpu.memory_space<vmem>>, vector<8x286xbf16>,
    %c0_575 = arith.constant 0 : index
    %c0_576 = arith.constant 0 : index
    %437 = vector.load %arg22[%c0_575, %c0_576] : memref<16x360xbf16, #tpu.memory_space<vmem>>, vector<16x360xbf16>
    %c0_577 = arith.constant 0 : index
    %c0_578 = arith.constant 0 : index
    %438 = vector.load %arg51[%c0_577, %c0_578] : memref<864x286xbf16, #tpu.memory_space<vmem>>, vector<360x286xbf16>
    %cst_579 = arith.constant dense<0.000000e+00> : vector<16x286xf32>
    %439 = tpu.matmul %437, %438, %cst_579 {dimension_numbers = #tpu.dot_dimension_numbers<[1], [0], [0], [1], [0, 0, 1, 1], [], []>} : vector<16x360xbf16>, vector<360x286xbf16>, vector<16x286xf32> -> vector<16x286xf32>
    %c0_580 = arith.constant 0 : index
    %c0_581 = arith.constant 0 : index
    %440 = vector.load %arg23[%c0_580, %c0_581] : memref<16x1xf32, #tpu.memory_space<vmem>>, vector<16x1xf32>
    %441 = vector.broadcast %440 : vector<16x1xf32> to vector<16x286xf32>
    %442 = arith.addf %439, %441 : vector<16x286xf32>
    %cst_582 = arith.constant 0.000000e+00 : f32
    %443 = vector.broadcast %cst_582 : f32 to vector<16x286xf32>
    %444 = arith.maximumf %442, %443 : vector<16x286xf32>
    %445 = arith.truncf %444 : vector<16x286xf32> to vector<16x286xbf16>
    %c0_583 = arith.constant 0 : index
    %c0_584 = arith.constant 0 : index
    %446 = vector.load %arg36[%c0_583, %c0_584] : memref<286x256xbf16, #tpu.memory_space<vmem>>, vector<286x256xbf16>
    %cst_585 = arith.constant dense<0.000000e+00> : vector<16x256xf32>
    %447 = tpu.matmul %445, %446, %cst_585 {dimension_numbers = #tpu.dot_dimension_numbers<[1], [0], [0], [1], [0, 0, 1, 1], [], []>} : vector<16x286xbf16>, vector<286x256xbf16>, vector<16x256xf32> -> vector<16x256xf32>
    %448 = arith.truncf %447 : vector<16x256xf32> to vector<16x256xbf16>
    %c0_586 = arith.constant 0 : index
    %c0_587 = arith.constant 0 : index
    %449 = vector.load %arg50[%c0_586, %c0_587] : memref<16x256xbf16, #tpu.memory_space<vmem>>, vector<16x256xbf16>
    tpu.vector_store %arg50[%c0_586, %c0_587], %448 {strides = array<i32>} : memref<16x256xbf16, #tpu.memory_space<vmem>>, vector<16x256xbf16>,
    %c0_588 = arith.constant 0 : index
    %c0_589 = arith.constant 0 : index
    %450 = vector.load %arg50[%c0_588, %c0_589] : memref<16x256xbf16, #tpu.memory_space<vmem>>, vector<16x256xbf16>
    %c0_590 = arith.constant 0 : index
    %c0_591 = arith.constant 0 : index
    %451 = vector.load %arg37[%c0_590, %c0_591] : memref<256x1024xbf16, #tpu.memory_space<vmem>>, vector<256x1024xbf16>
    %cst_592 = arith.constant dense<0.000000e+00> : vector<16x1024xf32>
    %452 = tpu.matmul %450, %451, %cst_592 {dimension_numbers = #tpu.dot_dimension_numbers<[1], [0], [0], [1], [0, 0, 1, 1], [], []>} : vector<16x256xbf16>, vector<256x1024xbf16>, vector<16x1024xf32> -> vector<16x1024xf32>
    %453 = arith.truncf %452 : vector<16x1024xf32> to vector<16x1024xbf16>
    %c0_593 = arith.constant 0 : index
    %c0_594 = arith.constant 0 : index
    %454 = vector.load %arg24[%c0_593, %c0_594] : memref<32x16xbf16, #tpu.memory_space<vmem>>, vector<32x16xbf16>
    %cst_595 = arith.constant dense<0.000000e+00> : vector<32x1024xf32>
    %455 = tpu.matmul %454, %453, %cst_595 {dimension_numbers = #tpu.dot_dimension_numbers<[1], [0], [0], [1], [0, 0, 1, 1], [], []>} : vector<32x16xbf16>, vector<16x1024xbf16>, vector<32x1024xf32> -> vector<32x1024xf32>
    %c0_596 = arith.constant 0 : index
    %c0_597 = arith.constant 0 : index
    %456 = vector.load %arg25[%c0_596, %c0_597] : memref<32x1xf32, #tpu.memory_space<vmem>>, vector<32x1xf32>
    %457 = vector.broadcast %456 : vector<32x1xf32> to vector<32x1024xf32>
    %458 = arith.addf %455, %457 : vector<32x1024xf32>
    %c0_598 = arith.constant 0 : index
    %c0_599 = arith.constant 0 : index
    %c0_600 = arith.constant 0 : index
    %459 = vector.load %arg38[%c0_598, %c0_599, %c0_600] : memref<1x32x1024xf32, #tpu.memory_space<vmem>>, vector<1x32x1024xf32>
    %460 = vector.shape_cast %459 : vector<1x32x1024xf32> to vector<32x1024xf32>
    %461 = vector.shape_cast %458 : vector<32x1024xf32> to vector<1x32x1024xf32>
    tpu.vector_store %arg38[%c0_598, %c0_599, %c0_600], %461 {strides = array<i32>} : memref<1x32x1024xf32, #tpu.memory_space<vmem>>, vector<1x32x1024xf32>,
    return
  }
  func.func @transform_0(%arg0: i32) -> (i32, i32, i32) {
    %c0_i32 = arith.constant 0 : i32
    %c0_i32_0 = arith.constant 0 : i32
    %c0_i32_1 = arith.constant 0 : i32
    return %arg0, %c0_i32, %c0_i32_0 : i32, i32, i32
  }
  func.func @transform_1(%arg0: i32) -> (i32, i32, i32) {
    %c0_i32 = arith.constant 0 : i32
    %c0_i32_0 = arith.constant 0 : i32
    %c0_i32_1 = arith.constant 0 : i32
    %c0_i32_2 = arith.constant 0 : i32
    return %c0_i32, %c0_i32_0, %c0_i32_1 : i32, i32, i32
  }
  func.func @transform_2(%arg0: i32) -> (i32, i32) {
    %c0_i32 = arith.constant 0 : i32
    %c0_i32_0 = arith.constant 0 : i32
    %c0_i32_1 = arith.constant 0 : i32
    return %c0_i32, %c0_i32_0 : i32, i32
  }
  func.func @transform_3(%arg0: i32) -> (i32, i32) {
    %c0_i32 = arith.constant 0 : i32
    %c0_i32_0 = arith.constant 0 : i32
    %c0_i32_1 = arith.constant 0 : i32
    return %c0_i32, %c0_i32_0 : i32, i32
  }
  func.func @transform_4(%arg0: i32) -> (i32, i32) {
    %c0_i32 = arith.constant 0 : i32
    %c0_i32_0 = arith.constant 0 : i32
    %c0_i32_1 = arith.constant 0 : i32
    return %c0_i32, %c0_i32_0 : i32, i32
  }
  func.func @transform_5(%arg0: i32) -> (i32, i32) {
    %c0_i32 = arith.constant 0 : i32
    %c0_i32_0 = arith.constant 0 : i32
    %c0_i32_1 = arith.constant 0 : i32
    return %c0_i32, %c0_i32_0 : i32, i32
  }
  func.func @transform_6(%arg0: i32) -> (i32, i32) {
    %c0_i32 = arith.constant 0 : i32
    %c0_i32_0 = arith.constant 0 : i32
    %c0_i32_1 = arith.constant 0 : i32
    return %c0_i32, %c0_i32_0 : i32, i32
  }
  func.func @transform_7(%arg0: i32) -> (i32, i32) {
    %c0_i32 = arith.constant 0 : i32
    %c0_i32_0 = arith.constant 0 : i32
    %c0_i32_1 = arith.constant 0 : i32
    return %c0_i32, %c0_i32_0 : i32, i32
  }
  func.func @transform_8(%arg0: i32) -> (i32, i32) {
    %c0_i32 = arith.constant 0 : i32
    %c0_i32_0 = arith.constant 0 : i32
    %c0_i32_1 = arith.constant 0 : i32
    return %c0_i32, %c0_i32_0 : i32, i32
  }
  func.func @transform_9(%arg0: i32) -> (i32, i32) {
    %c0_i32 = arith.constant 0 : i32
    %c0_i32_0 = arith.constant 0 : i32
    %c0_i32_1 = arith.constant 0 : i32
    return %c0_i32, %c0_i32_0 : i32, i32
  }
  func.func @transform_10(%arg0: i32) -> (i32, i32) {
    %c0_i32 = arith.constant 0 : i32
    %c0_i32_0 = arith.constant 0 : i32
    %c0_i32_1 = arith.constant 0 : i32
    return %c0_i32, %c0_i32_0 : i32, i32
  }
  func.func @transform_11(%arg0: i32) -> (i32, i32) {
    %c0_i32 = arith.constant 0 : i32
    %c0_i32_0 = arith.constant 0 : i32
    %c0_i32_1 = arith.constant 0 : i32
    return %c0_i32, %c0_i32_0 : i32, i32
  }
  func.func @transform_12(%arg0: i32) -> (i32, i32) {
    %c0_i32 = arith.constant 0 : i32
    %c0_i32_0 = arith.constant 0 : i32
    %c0_i32_1 = arith.constant 0 : i32
    return %c0_i32, %c0_i32_0 : i32, i32
  }
  func.func @transform_13(%arg0: i32) -> (i32, i32) {
    %c0_i32 = arith.constant 0 : i32
    %c0_i32_0 = arith.constant 0 : i32
    %c0_i32_1 = arith.constant 0 : i32
    return %c0_i32, %c0_i32_0 : i32, i32
  }
  func.func @transform_14(%arg0: i32) -> (i32, i32) {
    %c0_i32 = arith.constant 0 : i32
    %c0_i32_0 = arith.constant 0 : i32
    %c0_i32_1 = arith.constant 0 : i32
    return %c0_i32, %c0_i32_0 : i32, i32
  }
  func.func @transform_15(%arg0: i32) -> (i32, i32) {
    %c0_i32 = arith.constant 0 : i32
    %c0_i32_0 = arith.constant 0 : i32
    %c0_i32_1 = arith.constant 0 : i32
    return %c0_i32, %c0_i32_0 : i32, i32
  }
  func.func @transform_16(%arg0: i32) -> (i32, i32) {
    %c0_i32 = arith.constant 0 : i32
    %c0_i32_0 = arith.constant 0 : i32
    %c0_i32_1 = arith.constant 0 : i32
    return %c0_i32, %c0_i32_0 : i32, i32
  }
  func.func @transform_17(%arg0: i32) -> (i32, i32) {
    %c0_i32 = arith.constant 0 : i32
    %c0_i32_0 = arith.constant 0 : i32
    %c0_i32_1 = arith.constant 0 : i32
    return %c0_i32, %c0_i32_0 : i32, i32
  }
  func.func @transform_18(%arg0: i32) -> (i32, i32) {
    %c0_i32 = arith.constant 0 : i32
    %c0_i32_0 = arith.constant 0 : i32
    %c0_i32_1 = arith.constant 0 : i32
    return %c0_i32, %c0_i32_0 : i32, i32
  }
  func.func @transform_19(%arg0: i32) -> (i32, i32) {
    %c0_i32 = arith.constant 0 : i32
    %c0_i32_0 = arith.constant 0 : i32
    %c0_i32_1 = arith.constant 0 : i32
    return %c0_i32, %c0_i32_0 : i32, i32
  }
  func.func @transform_20(%arg0: i32) -> (i32, i32) {
    %c0_i32 = arith.constant 0 : i32
    %c0_i32_0 = arith.constant 0 : i32
    %c0_i32_1 = arith.constant 0 : i32
    return %c0_i32, %c0_i32_0 : i32, i32
  }
  func.func @transform_21(%arg0: i32) -> (i32, i32) {
    %c0_i32 = arith.constant 0 : i32
    %c0_i32_0 = arith.constant 0 : i32
    %c0_i32_1 = arith.constant 0 : i32
    return %c0_i32, %c0_i32_0 : i32, i32
  }
  func.func @transform_22(%arg0: i32) -> (i32, i32) {
    %c0_i32 = arith.constant 0 : i32
    %c0_i32_0 = arith.constant 0 : i32
    %c0_i32_1 = arith.constant 0 : i32
    return %c0_i32, %c0_i32_0 : i32, i32
  }
  func.func @transform_23(%arg0: i32) -> (i32, i32) {
    %c0_i32 = arith.constant 0 : i32
    %c0_i32_0 = arith.constant 0 : i32
    %c0_i32_1 = arith.constant 0 : i32
    return %c0_i32, %c0_i32_0 : i32, i32
  }
  func.func @transform_24(%arg0: i32) -> (i32, i32) {
    %c0_i32 = arith.constant 0 : i32
    %c0_i32_0 = arith.constant 0 : i32
    %c0_i32_1 = arith.constant 0 : i32
    return %c0_i32, %c0_i32_0 : i32, i32
  }
  func.func @transform_25(%arg0: i32) -> (i32, i32) {
    %c0_i32 = arith.constant 0 : i32
    %c0_i32_0 = arith.constant 0 : i32
    %c0_i32_1 = arith.constant 0 : i32
    return %c0_i32, %c0_i32_0 : i32, i32
  }
  func.func @transform_26(%arg0: i32) -> (i32, i32) {
    %c0_i32 = arith.constant 0 : i32
    %c0_i32_0 = arith.constant 0 : i32
    %c0_i32_1 = arith.constant 0 : i32
    return %c0_i32, %c0_i32_0 : i32, i32
  }
  func.func @transform_27(%arg0: i32) -> (i32, i32) {
    %c0_i32 = arith.constant 0 : i32
    %c0_i32_0 = arith.constant 0 : i32
    %c0_i32_1 = arith.constant 0 : i32
    return %c0_i32, %c0_i32_0 : i32, i32
  }
  func.func @transform_28(%arg0: i32) -> (i32, i32) {
    %c0_i32 = arith.constant 0 : i32
    %c0_i32_0 = arith.constant 0 : i32
    %c0_i32_1 = arith.constant 0 : i32
    return %c0_i32, %c0_i32_0 : i32, i32
  }
  func.func @transform_29(%arg0: i32) -> (i32, i32) {
    %c0_i32 = arith.constant 0 : i32
    %c0_i32_0 = arith.constant 0 : i32
    %c0_i32_1 = arith.constant 0 : i32
    return %c0_i32, %c0_i32_0 : i32, i32
  }
  func.func @transform_30(%arg0: i32) -> (i32, i32) {
    %c0_i32 = arith.constant 0 : i32
    %c0_i32_0 = arith.constant 0 : i32
    %c0_i32_1 = arith.constant 0 : i32
    return %c0_i32, %c0_i32_0 : i32, i32
  }
  func.func @transform_31(%arg0: i32) -> (i32, i32) {
    %c0_i32 = arith.constant 0 : i32
    %c0_i32_0 = arith.constant 0 : i32
    %c0_i32_1 = arith.constant 0 : i32
    return %c0_i32, %c0_i32_0 : i32, i32
  }
  func.func @transform_32(%arg0: i32) -> (i32, i32) {
    %c0_i32 = arith.constant 0 : i32
    %c0_i32_0 = arith.constant 0 : i32
    %c0_i32_1 = arith.constant 0 : i32
    return %c0_i32, %c0_i32_0 : i32, i32
  }
  func.func @transform_33(%arg0: i32) -> (i32, i32) {
    %c0_i32 = arith.constant 0 : i32
    %c0_i32_0 = arith.constant 0 : i32
    %c0_i32_1 = arith.constant 0 : i32
    return %c0_i32, %c0_i32_0 : i32, i32
  }
  func.func @transform_34(%arg0: i32) -> (i32, i32) {
    %c0_i32 = arith.constant 0 : i32
    %c0_i32_0 = arith.constant 0 : i32
    %c0_i32_1 = arith.constant 0 : i32
    return %c0_i32, %c0_i32_0 : i32, i32
  }
  func.func @transform_35(%arg0: i32) -> (i32, i32) {
    %c0_i32 = arith.constant 0 : i32
    %c0_i32_0 = arith.constant 0 : i32
    %c0_i32_1 = arith.constant 0 : i32
    return %c0_i32, %c0_i32_0 : i32, i32
  }
  func.func @transform_36(%arg0: i32) -> (i32, i32) {
    %c0_i32 = arith.constant 0 : i32
    %c0_i32_0 = arith.constant 0 : i32
    %c0_i32_1 = arith.constant 0 : i32
    return %c0_i32, %c0_i32_0 : i32, i32
  }
  func.func @transform_37(%arg0: i32) -> (i32, i32, i32) {
    %c0_i32 = arith.constant 0 : i32
    %c0_i32_0 = arith.constant 0 : i32
    %c0_i32_1 = arith.constant 0 : i32
    return %arg0, %c0_i32, %c0_i32_0 : i32, i32, i32
  }
}

</mosaic_0001>

<bundles_post_ra>
// kernel: depth_unet_forward.1
= control target key start
LH: loop header
LB: loop body
LE: loop exit
PB: predicated region body
PF: predicated region fallthrough
CT: control target
= control target key end

     0   :  { %s13782_s6 = smov 1   ;;  %s13783_s10 = smov 2   ;;  %s16301_s0 = inlined_call_operand.smem [shape: u32[38], index: -1, kind: input, shape index: {}] }
   0x1   :  { %s13856_s5 = sld [smem:[%s16301_s0]]   ;;  %s13784_s14 = smov 3  }
   0x2   :  { %s13861_s9 = sld [smem:[%s16301_s0 + %s13782_s6]]   ;;  %s13785_s18 = smov 4  }
   0x3   :  { %s13866_s13 = sld [smem:[%s16301_s0 + %s13783_s10]]   ;;  %s13786_s22 = smov 5  }
   0x4   :  { %s13871_s17 = sld [smem:[%s16301_s0 + %s13784_s14]]   ;;  %s13787_s26 = smov 6  }
   0x5   :  { %s13876_s21 = sld [smem:[%s16301_s0 + %s13785_s18]]   ;;  %s13788_s30 = smov 7  }
   0x6   :  { %s13881_s25 = sld [smem:[%s16301_s0 + %s13786_s22]]   ;;  %s13789_s4 = smov 8  }
   0x7   :  { %16375 = sst [smem:[#allocation15_spill]] %s13856_s5  ;;  %s13790_s10 = smov 9  }
   0x8   :  { %16376 = sst [smem:[#allocation16_spill]] %s13861_s9  ;;  %s13791_s15 = smov 10  }
   0x9   :  { %s13886_s29 = sld [smem:[%s16301_s0 + %s13787_s26]]   ;;  %s13792_s20 = smov 11  }
   0xa   :  { %s13891_s3 = sld [smem:[%s16301_s0 + %s13788_s30]]   ;;  %s13793_s26 = smov 12  }
   0xb   :  { %s13896_s8 = sld [smem:[%s16301_s0 + %s13789_s4]]   ;;  %s13794_s1 = smov 13  }
   0xc   :  { %s13901_s14 = sld [smem:[%s16301_s0 + %s13790_s10]]   ;;  %s13795_s7 = smov 14  }
   0xd   :  { %s13906_s19 = sld [smem:[%s16301_s0 + %s13791_s15]]   ;;  %s13796_s15 = smov 15  }
   0xe   :  { %s13911_s24 = sld [smem:[%s16301_s0 + %s13792_s20]]   ;;  %s13797_s22 = smov 16  }
   0xf   :  { %s13916_s30 = sld [smem:[%s16301_s0 + %s13793_s26]]   ;;  %s13798_s28 = smov 17  }
  0x10   :  { %16377 = sst [smem:[#allocation17_spill]] %s13891_s3 }
  0x11   :  { %16378 = sst [smem:[#allocation18_spill]] %s13896_s8 }
  0x12   :  { %16379 = sst [smem:[#allocation19_spill]] %s13901_s14 }
  0x13   :  { %s13921_s6 = sld [smem:[%s16301_s0 + %s13794_s1]]  }
  0x14   :  { %16380 = sst [smem:[#allocation20_spill]] %s13911_s24 }
  0x15   :  { %16381 = sst [smem:[#allocation21_spill]] %s13916_s30 }
  0x16   :  { %s13926_s12 = sld [smem:[%s16301_s0 + %s13795_s7]]   ;;  %s13799_s7 = smov 18  }
  0x17   :  { %s13931_s20 = sld [smem:[%s16301_s0 + %s13796_s15]]   ;;  %s13800_s15 = smov 19  }
  0x18   :  { %s13936_s27 = sld [smem:[%s16301_s0 + %s13797_s22]]   ;;  %s13801_s22 = smov 20  }
  0x19   :  { %16382 = sst [smem:[#allocation22_spill]] %s13921_s6 }
  0x1a   :  { %s13941_s4 = sld [smem:[%s16301_s0 + %s13798_s28]]   ;;  %s13802_s28 = smov 21  }
  0x1c   :  { %16383 = sst [smem:[#allocation23_spill]] %s13926_s12 }
  0x1d   :  { %16384 = sst [smem:[#allocation24_spill]] %s13931_s20 }
  0x1e   :  { %16385 = sst [smem:[#allocation25_spill]] %s13936_s27 }
  0x1f   :  { %s13946_s12 = sld [smem:[%s16301_s0 + %s13799_s7]]   ;;  %s13803_s7 = smov 22  }
  0x20   :  { %16386 = sst [smem:[#allocation26_spill]] %s13941_s4 }
  0x21   :  { %s13951_s20 = sld [smem:[%s16301_s0 + %s13800_s15]]   ;;  %s13804_s15 = smov 23  }
  0x22   :  { %s13956_s27 = sld [smem:[%s16301_s0 + %s13801_s22]]   ;;  %s13805_s22 = smov 24  }
  0x23   :  { %s13961_s4 = sld [smem:[%s16301_s0 + %s13802_s28]]   ;;  %s13806_s28 = smov 25  }
  0x25   :  { %16387 = sst [smem:[#allocation27_spill]] %s13946_s12 }
  0x26   :  { %s13966_s12 = sld [smem:[%s16301_s0 + %s13803_s7]]   ;;  %s13807_s7 = smov 26  }
  0x27   :  { %16388 = sst [smem:[#allocation28_spill]] %s13951_s20 }
  0x28   :  { %16389 = sst [smem:[#allocation29_spill]] %s13956_s27 }
  0x29   :  { %16390 = sst [smem:[#allocation30_spill]] %s13961_s4 }
  0x2a   :  { %s13971_s20 = sld [smem:[%s16301_s0 + %s13804_s15]]   ;;  %s13808_s15 = smov 27  }
  0x2b   :  { %s13976_s27 = sld [smem:[%s16301_s0 + %s13805_s22]]   ;;  %s13809_s22 = smov 28  }
  0x2c   :  { %16391 = sst [smem:[#allocation31_spill]] %s13966_s12 }
  0x2d   :  { %s13981_s4 = sld [smem:[%s16301_s0 + %s13806_s28]]   ;;  %s13810_s28 = smov 29  }
  0x2e   :  { %s13986_s12 = sld [smem:[%s16301_s0 + %s13807_s7]]   ;;  %s13811_s7 = smov 30  }
  0x2f   :  { %s14001_s6 = sld [smem:[%s16301_s0 + %s13810_s28]]   ;;  %s13814_s28 = smov 33  }
  0x30   :  { %16392 = sst [smem:[#allocation32_spill]] %s13971_s20 }
  0x31   :  { %16393 = sst [smem:[#allocation33_spill]] %s13976_s27 }
  0x32   :  { %s13991_s20 = sld [smem:[%s16301_s0 + %s13808_s15]]   ;;  %s13812_s15 = smov 31  }
  0x33   :  { %16394 = sst [smem:[#allocation34_spill]] %s13981_s4 }
  0x34   :  { %16395 = sst [smem:[#allocation35_spill]] %s13986_s12 }
  0x35   :  { %s13996_s27 = sld [smem:[%s16301_s0 + %s13809_s22]]   ;;  %s13813_s22 = smov 32  }
  0x36   :  { %16396 = sst [smem:[#allocation36_spill]] %s14001_s6 }
  0x37   :  { %s14006_s30 = sld [smem:[%s16301_s0 + %s13811_s7]]   ;;  %s13815_s7 = smov 34  }
  0x38   :  { %s14011_s24 = sld [smem:[%s16301_s0 + %s13812_s15]]   ;;  %s13816_s15 = smov 35  }
  0x39   :  { %s14016_s14 = sld [smem:[%s16301_s0 + %s13813_s22]]   ;;  %s13817_s22 = smov 36  }
  0x3a   :  { %s14021_s6 = sld [smem:[%s16301_s0 + %s13814_s28]]   ;;  %s13818_s28 = smov 37  }
  0x3d   :  { %16397 = sst [smem:[#allocation37_spill]] %s14006_s30 }
  0x3e   :  { %16398 = sst [smem:[#allocation38_spill]] %s14011_s24 }
  0x3f   :  { %16399 = sst [smem:[#allocation39_spill]] %s14016_s14 }
  0x40   :  { %16400 = sst [smem:[#allocation40_spill]] %s14021_s6 }
  0x41   :  { %s14026_s30 = sld [smem:[%s16301_s0 + %s13815_s7]]   ;;  %s14043_s7 = smov 0  }
  0x42   :  { %s14031_s24 = sld [smem:[%s16301_s0 + %s13816_s15]]  }
  0x43   :  { %s14036_s14 = sld [smem:[%s16301_s0 + %s13817_s22]]  }
  0x44   :  { %s14041_s6 = sld [smem:[%s16301_s0 + %s13818_s28]]  }
  0x45 LB: > { %s16401_s12 = sld [smem:[#allocation35_spill]]  ;;  %s16402_s9 = sld [smem:[#allocation16_spill]]  ;;  %s13780_s7 = sphi %s14043_s7, %s85_s7  }
  0x46   : > { %s16403_s8 = sld [smem:[#allocation18_spill]]  ;;  %s16405_s3 = sld [smem:[#allocation17_spill]] }
  0x47   : > { %s16404_s4 = sld [smem:[#allocation34_spill]]  ;;  %s11523_s10 = sadd.s32 4294967295, %s13780_s7  }
  0x48   : > { %p11527_p0 = scmp.ge.s32.totalorder %s13780_s7, 1  ;;  %p1024_p1 = scmp.lt.s32.totalorder %s13780_s7, 3 }
  0x4a   : > { %p1025_p2 = pnand %p11527_p0, %p1024_p1 }
  0x4b   : > { %v11532_v0 = vld [vmem:[%s16402_s9 + $0x18] sm:$0xff] (!%p1025_p2)  ;;  %v11530_v1 = vld [vmem:[%s16402_s9 + $0x8] sm:$0xff] (!%p1025_p2)  ;;  %p14053_p3 = scmp.lt.s32.totalorder (!%p1025_p2), %s11523_s10, 1  ;;  %vm1127_vm0 = vcmask (!%p1025_p2), 1040384   ;;  %v13819_v2 = vmov (!%p1025_p2), 0   ;;  %vm1130_vm2 = vcmask (!%p1025_p2), 1041409   ;;  %v1181_v9 = vlaneseq (!%p1025_p2) }
  0x4c   : > { %1028 = sbr.rel (%p1025_p2) target bundleno = 7686 (0x1e06), region = 168  ;;  %13162 = vset.pattern.permute.xlu1 (!%p1025_p2), %v13819_v2  ;;  %13161 = vset.pattern.permute.xlu0 (!%p1025_p2), %v13819_v2  ;;  %vm1128_vm1 = vsmask.f32 (!%p1025_p2), 256  ;;  %v11533_v3 = vld [vmem:[%s16402_s9 + $0x20] sm:$0xff] (!%p1025_p2)  ;;  %v11531_v4 = vld [vmem:[%s16402_s9 + $0x10] sm:$0xff] (!%p1025_p2)  ;;  %vm1134_vm5 = vcmask (!%p1025_p2), 1042434  }
  0x4d   : > { %1424 = vperm.xlu1 (!%p1025_p2), %13162, %v11532_v0   ;;  %1284 = vperm.xlu0 (!%p1025_p2), %13161, %v11530_v1   ;;  %vm14061_vm3 = vmand (!%p1025_p2), %vm1127_vm0, %vm1128_vm1  ;;  %vm1131_vm4 = vsmask.f32 (!%p1025_p2), 1280  ;;  %vm1135_vm6 = vsmask.f32 (!%p1025_p2), 2304  ;;  %vm1138_vm9 = vcmask (!%p1025_p2), 1043459   ;;  %v11535_v6 = vld [vmem:[%s16402_s9 + $0x30] sm:$0xff] (!%p1025_p2) }
  0x4e   : > { %vm1132_vm7 = vmand (!%p1025_p2), %vm1130_vm2, %vm1131_vm4  ;;  %vm1139_vm10 = vsmask.f32 (!%p1025_p2), 3328  ;;  %v11534_v7 = vld [vmem:[%s16402_s9 + $0x28] sm:$0xff] (!%p1025_p2)  ;;  %vm1142_vm13 = vcmask (!%p1025_p2), 1044484   ;;  %s16411_s5 = sld [smem:[#allocation15_spill]] (!%p1025_p2)  ;;  %vm1146_vm1 = vcmask (!%p1025_p2), 1045509  }
  0x4f   : > { %vm1133_vm8 = vmor (!%p1025_p2), %vm1132_vm7, %vm14061_vm3  ;;  %vm1143_vm14 = vsmask.f32 (!%p1025_p2), 4352  ;;  %vm1147_vm2 = vsmask.f32 (!%p1025_p2), 5376  ;;  %v11537_v10 = vld [vmem:[%s16402_s9 + $0x40] sm:$0xff] (!%p1025_p2)  ;;  %v11536_v11 = vld [vmem:[%s16402_s9 + $0x38] sm:$0xff] (!%p1025_p2) }
  0x50   : > { %vm1136_vm11 = vmand (!%p1025_p2), %vm1134_vm5, %vm1135_vm6  ;;  %vm1150_vm7 = vcmask (!%p1025_p2), 1046534   ;;  %v1167_v13 = vld [vmem:[%s16402_s9] sm:$0xff] (!%p1025_p2)  ;;  %v14091_v16 = vshrl.u32 (!%p1025_p2), %v1181_v9, 7  ;;  %v1164_v18 = vld [vmem:[#allocation2 + $0x8] sm:$0x3] (!%p1025_p2)  ;;  %s16358_s16 = smov (!%p1025_p2), 127  }
  0x51   : > { %1494 = vperm.xlu1 (!%p1025_p2), %13162, %v11533_v3   ;;  %1354 = vperm.xlu0 (!%p1025_p2), %13161, %v11531_v4   ;;  %vm14074_vm12 = vmor (!%p1025_p2), %vm1136_vm11, %vm1133_vm8  ;;  %vm1151_vm8 = vsmask.f32 (!%p1025_p2), 6400  ;;  %v1158_v15 = vld [vmem:[#allocation2] sm:$0xff] (!%p1025_p2)  ;;  %v13166_v39 = vld [vmem:[%s16404_s4 + $0x1c] ss:$12 sps:$4 sm:$0xff] (!%p1025_p2)   ;;  %s16362_s18 = smov (!%p1025_p2), 126  }
  0x52   : > { %vm1140_vm15 = vmand (!%p1025_p2), %vm1138_vm9, %vm1139_vm10  ;;  %vm1154_vm10 = vcmask (!%p1025_p2), 1047559   ;;  %v1953_v19 = vld [vmem:[%s13866_s13] sm:$0xff] (!%p1025_p2)  ;;  %v1191_v20 = vsub.s32 (!%p1025_p2), 4, %v14091_v16  ;;  %v1187_v22 = vsub.s32 (!%p1025_p2), 2, %v14091_v16  ;;  %v1195_v23 = vsub.s32 (!%p1025_p2), 6, %v14091_v16  ;;  %s13822_s22 = smov (!%p1025_p2), 94  }
  0x53   : > { %s16479_s10 = smov (!%p14053_p3, %s11523_s10), 1  ;;  %vm1141_vm0 = vmor %vm1140_vm15, %vm14074_vm12  ;;  %vm1155_vm12 = vsmask.f32 7424  ;;  %vm1161_vm15 = vcmask 25601   ;;  %v14103_v26 = vsub.s32 0, %v14091_v16  ;;  %s13823_s23 = smov 93  }
  0x54   : > { %s13086_s11 = smul.u32 10, %s16479_s10  ;;  %vm1144_vm5 = vmand %vm1142_vm13, %vm1143_vm14  ;;  %v13163_v37 = vld [vmem:[%s16404_s4 + $0x4] ss:$12 sps:$4 sm:$0xff]   ;;  %v13165_v38 = vld [vmem:[%s16404_s4] ss:$12 sps:$4 sm:$0xff]   ;;  %s16326_s26 = smov 92  }
  0x55   : > { %1639 = vperm.xlu1 %13162, %v11535_v6   ;;  %1564 = vperm.xlu0 %13161, %v11534_v7   ;;  %vm14083_vm6 = vmor %vm1144_vm5, %vm1141_vm0  ;;  %v13168_v40 = vld [vmem:[%s16404_s4 + $0x18] ss:$12 sps:$4 sm:$0xff]   ;;  %v13169_v42 = vld [vmem:[%s16404_s4 + $0x34] ss:$12 sps:$4 sm:$0xff]   ;;  %s13825_s28 = smov 60   ;;  %s13826_s1 = smov 59  }
  0x56   : > { %s1118_s15 = scalar_lea.vmem %s16411_s5, %s13086_s11  ;;  %vm1148_vm11 = vmand %vm1146_vm1, %vm1147_vm2  ;;  %3357 = vmatprep.subr.bf16.mxu0 %v13163_v37  ;;  %v13171_v43 = vld [vmem:[%s16404_s4 + $0x30] ss:$12 sps:$4 sm:$0xff]   ;;  %v13172_v46 = vld [vmem:[%s16404_s4 + $0x4c] ss:$12 sps:$4 sm:$0xff]   ;;  %s13827_s2 = smov 58  }
  0x57   : > { %v1125_v14 = vld [vmem:[%s1118_s15] sm:$0xff]  ;;  %vm1149_vm9 = vmor %vm1148_vm11, %vm14083_vm6  ;;  %v1126_v17 = vld [vmem:[%s1118_s15 + $0x8] sm:$0x3]  ;;  %3358 = vmatpush1.bf16.msra.mxu0 %v13165_v38  ;;  %vm1463_vm6 = vcmask 769024   ;;  %vm1775_vm11 = vcmask 490496   ;;  %s16332_s0 = smov 110  }
  0x58   : > { %vm1152_vm13 = vmand %vm1150_vm7, %vm1151_vm8  ;;  %3359 = vmatprep.subr.bf16.mxu0 %v13166_v39  ;;  %v13174_v47 = vld [vmem:[%s16404_s4 + $0x48] ss:$12 sps:$4 sm:$0xff]   ;;  %v13175_v51 = vld [vmem:[%s16404_s4 + $0x64] ss:$12 sps:$4 sm:$0xff]   ;;  %vm1533_vm7 = vcmask 760832   ;;  %vm1603_vm8 = vcmask 752640  }
  0x59   : > { %1882 = vperm.xlu1 %13162, %v11537_v10   ;;  %1807 = vperm.xlu0 %13161, %v11536_v11   ;;  %vm1153_vm14 = vmor %vm1152_vm13, %vm1149_vm9  ;;  %v13177_v52 = vld [vmem:[%s16404_s4 + $0x60] ss:$12 sps:$4 sm:$0xff]   ;;  %v13178_v57 = vld [vmem:[%s16404_s4 + $0x7c] ss:$12 sps:$4 sm:$0xff]   ;;  %vm1850_vm9 = vcmask 482304   ;;  %vm3347_vm13 = vcmask 1046528  }
  0x5a   : > { %vm1156_vm0 = vmand %vm1154_vm10, %vm1155_vm12  ;;  %v13180_v58 = vld [vmem:[%s16404_s4 + $0x78] ss:$12 sps:$4 sm:$0xff]   ;;  %v13181_v62 = vld [vmem:[%s16404_s4 + $0x94] ss:$12 sps:$4 sm:$0xff]   ;;  %vm1925_vm10 = vcmask 474112   ;;  %vm16330_vm12 = vmmov 0  }
  0x5b   : > { %vm1157_vm1 = vmor %vm1156_vm0, %vm1153_vm14  ;;  %3360 = vmatpush1.bf16.msra.mxu0 %v13168_v40  ;;  %v13183_v63 = vld [vmem:[%s16404_s4 + $0x90] ss:$12 sps:$4 sm:$0xff]   ;;  %v13184_v6 = vld [vmem:[%s16404_s4 + $0xac] ss:$12 sps:$4 sm:$0xff]   ;;  %vm3343_vm14 = vcmask 506880   ;;  %vm16331_vm0 = vcmask 240640  }
  0x5c   : > { %v1159_v21 = vsel %vm1157_vm1, %v1125_v14, %v1158_v15  ;;  %vm1162_vm2 = vmand %vm1161_vm15, %vm1131_vm4  ;;  %3361 = vmatprep.subr.bf16.mxu0 %v13169_v42  ;;  %v13186_v7 = vld [vmem:[%s16404_s4 + $0xa8] ss:$12 sps:$4 sm:$0xff]   ;;  %v13187_v8 = vld [vmem:[%s16404_s4 + $0xc4] ss:$12 sps:$4 sm:$0xff]   ;;  %vm1393_vm4 = vcmask 1031168   ;;  %vm3776_vm15 = vcmask 551936  }
  0x5d   : > { %1175 = vperm.xlu0 %13161, %v1167_v13   ;;  %1160 = vst [vmem:[#allocation2] sm:$0xff] %v1159_v21  ;;  %v14098_v24 = vunpack.c.h.bf16 %v1159_v21  ;;  %vm1163_vm5 = vmor %vm1162_vm2, %vm14061_vm3  ;;  %v14131_v41 = vunpack.c.l.bf16 %v1159_v21  ;;  %v13189_v9 = vld [vmem:[%s16404_s4 + $0xc0] ss:$12 sps:$4 sm:$0xff]   ;;  %v13190_v11 = vld [vmem:[%s16404_s4 + $0xc8] ss:$12 sps:$4 sm:$0xff]   ;;  %vm1323_vm3 = vcmask 1039360  }
  0x5e   : > { %v1165_v25 = vsel %vm1163_vm5, %v1126_v17, %v1164_v18  ;;  %v13191_v12 = vld [vmem:[%s16404_s4 + $0x8] ss:$12 sps:$4 sm:$0xff]   ;;  %v13194_v17 = vld [vmem:[%s16404_s4 + $0xd8] ss:$12 sps:$4 sm:$0xff]   ;;  %12258 = vmatprep.subr.bf16.mxu1 %v13190_v11  ;;  %v13195_v18 = vld [vmem:[%s16404_s4 + $0xe0] ss:$12 sps:$4 sm:$0xff]  }
  0x5f   : > { %1166 = vst [vmem:[#allocation2 + $0x8] sm:$0x3] %v1165_v25  ;;  %v1204_v27 = vrot.slane %v14098_v24, %v1187_v22  ;;  %v1208_v28 = vrot.slane %v14098_v24, %v1191_v20  ;;  %v1212_v29 = vrot.slane %v14098_v24, %v1195_v23  ;;  %v1192_v44 = vrot.slane %v14131_v41, %v1191_v20  ;;  %v13192_v15 = vld [vmem:[%s16404_s4 + $0xdc] ss:$12 sps:$4 sm:$0xff]   ;;  %v13197_v25 = vld [vmem:[%s16404_s4 + $0xf4] ss:$12 sps:$4 sm:$0xff]  }
  0x60   : > { %v1188_v45 = vrot.slane %v14131_v41, %v1187_v22  ;;  %3362 = vmatpush1.bf16.msra.mxu0 %v13171_v43  ;;  %v1184_v50 = vrot.slane %v14131_v41, %v14103_v26  ;;  %12259 = vmatpush3.bf16.msra.mxu1 %v13191_v12  ;;  %v13202_v38 = vld [vmem:[%s16404_s4 + $0x10c] ss:$12 sps:$4 sm:$0xff]   ;;  %v13204_v39 = vld [vmem:[%s16404_s4 + $0x108] ss:$12 sps:$4 sm:$0xff]   ;;  %v13205_v42 = vld [vmem:[%s16404_s4 + $0x110] ss:$12 sps:$4 sm:$0xff]  }
  0x61   : > { %1956 = vperm.xlu0 %13161, %v1953_v19   ;;  %v14111_v30 = vrot.slane %v1204_v27, %v14103_v26  ;;  %v14114_v31 = vrot.slane %v1208_v28, %v14103_v26  ;;  %v14117_v32 = vrot.slane %v1212_v29, %v14103_v26  ;;  %v14140_v48 = vrot.slane %v1192_v44, %v14103_v26  ;;  %v13196_v19 = vld [vmem:[%s16404_s4 + $0x20] ss:$12 sps:$4 sm:$0xff]   ;;  %v13199_v27 = vld [vmem:[%s16404_s4 + $0xf0] ss:$12 sps:$4 sm:$0xff]   ;;  %v13200_v28 = vld [vmem:[%s16404_s4 + $0xf8] ss:$12 sps:$4 sm:$0xff]  }
  0x62   : > { %v14143_v49 = vrot.slane %v1188_v45, %v14103_v26  ;;  %3363 = vmatprep.subr.bf16.mxu0 %v13172_v46  ;;  %v14156_v56 = vrot.slane %v1184_v50, %v14103_v26  ;;  %12260 = vmatprep.subr.bf16.mxu1 %v13195_v18  ;;  %v13201_v29 = vld [vmem:[%s16404_s4 + $0x38] ss:$12 sps:$4 sm:$0xff]   ;;  %v13206_v43 = vld [vmem:[%s16404_s4 + $0x50] ss:$12 sps:$4 sm:$0xff]   ;;  %v13209_v50 = vld [vmem:[%s16404_s4 + $0x120] ss:$12 sps:$4 sm:$0xff]  }
  0x63   : > { %v13225_v11 = vld [vmem:[%s16404_s4 + $0x170] ss:$12 sps:$4 sm:$0xff]   ;;  %v13230_v18 = vld [vmem:[%s16404_s4 + $0x248] ss:$12 sps:$4 sm:$0xff]   ;;  %s16328_s11 = smov 109   ;;  %s16338_s15 = smov 108  }
  0x64   : > { %3364 = vmatpush1.bf16.msra.mxu0 %v13174_v47  ;;  %12261 = vmatpush3.bf16.msra.mxu1 %v13196_v19  ;;  %v13207_v47 = vld [vmem:[%s16404_s4 + $0x124] ss:$12 sps:$4 sm:$0xff]   ;;  %vm16346_vm1 = vcmask 244740   ;;  %vm3862_vm2 = vcmask 900096   ;;  %vm3887_vm5 = vcmask 891904   ;;  %s13846_s5 = smov 124  }
  0x65   : > { %3365 = vmatprep.subr.bf16.mxu0 %v13175_v51  ;;  %12262 = vmatprep.subr.bf16.mxu1 %v13200_v28  ;;  %v13210_v51 = vld [vmem:[%s16404_s4 + $0x128] ss:$12 sps:$4 sm:$0xff]   ;;  %v13226_v12 = vld [vmem:[%s16404_s4 + $0xb0] ss:$12 sps:$4 sm:$0xff]   ;;  %s16429_s9 = sld [smem:[#allocation24_spill]] }
  0x66   : > { %v14119_v33 = vld [vmem:[#allocation2 + $0x8] sm:$0x3] }
  0x67   : > { %v1636_v34 = vunpack.c.l.bf16 %v14119_v33 }
  0x68   : > { %3366 = vmatpush1.bf16.msra.mxu0 %v13177_v52  ;;  %12263 = vmatpush3.bf16.msra.mxu1 %v13201_v29  ;;  %v13211_v52 = vld [vmem:[%s16404_s4 + $0x68] ss:$12 sps:$4 sm:$0xff]  }
  0x69   : > { %v1684_v35 = vrot.slane %v1636_v34, %v1187_v22  ;;  %3367 = vmatprep.subr.bf16.mxu0 %v13178_v57  ;;  %12264 = vmatprep.subr.bf16.mxu1 %v13205_v42  ;;  %v13212_v57 = vld [vmem:[%s16404_s4 + $0x13c] ss:$12 sps:$4 sm:$0xff]  }
  0x6b   : > { %v14125_v36 = vrot.slane %v1684_v35, %v14103_v26 }
  0x6c   : > { %3368 = vmatpush1.bf16.msra.mxu0 %v13180_v58  ;;  %12265 = vmatpush3.bf16.msra.mxu1 %v13206_v43  ;;  %v13214_v58 = vld [vmem:[%s16404_s4 + $0x138] ss:$12 sps:$4 sm:$0xff]  }
  0x6d   : > { %3369 = vmatprep.subr.bf16.mxu0 %v13181_v62  ;;  %12266 = vmatprep.subr.bf16.mxu1 %v13210_v51 }
  0x70   : > { %3370 = vmatpush1.bf16.msra.mxu0 %v13183_v63  ;;  %12267 = vmatpush3.bf16.msra.mxu1 %v13211_v52 }
  0x71   : > { %3371 = vmatprep.subr.bf16.mxu0 %v13184_v6  ;;  %v13220_v6 = vld [vmem:[%s16404_s4 + $0x158] ss:$12 sps:$4 sm:$0xff]  }
  0x74   : > { %3372 = vmatpush1.bf16.msra.mxu0 %v13186_v7  ;;  %v13221_v7 = vld [vmem:[%s16404_s4 + $0x98] ss:$12 sps:$4 sm:$0xff]  }
  0x75   : > { %3373 = vmatprep.subr.bf16.mxu0 %v13187_v8  ;;  %v13222_v8 = vld [vmem:[%s16404_s4 + $0x16c] ss:$12 sps:$4 sm:$0xff]  }
  0x78   : > { %3374 = vmatpush1.bf16.msra.mxu0 %v13189_v9  ;;  %v13224_v9 = vld [vmem:[%s16404_s4 + $0x168] ss:$12 sps:$4 sm:$0xff]  }
  0x79   : > { %3375 = vmatprep.subr.bf16.mxu0 %v13192_v15  ;;  %v1200_v15 = vrot.slane %v14098_v24, %v14103_v26 }
  0x7c   : > { %3376 = vmatpush1.bf16.msra.mxu0 %v13194_v17  ;;  %v13229_v17 = vld [vmem:[%s16404_s4 + $0x184] ss:$12 sps:$4 sm:$0xff]  }
  0x7d   : > { %3377 = vmatprep.subr.bf16.mxu0 %v13197_v25 }
  0x80   : > { %3378 = vmatpush1.bf16.msra.mxu0 %v13199_v27 }
  0x81   : > { %3379 = vmatprep.subr.bf16.mxu0 %v13202_v38 }
  0x84   : > { %3380 = vmatpush1.bf16.msra.mxu0 %v13204_v39 }
  0x85   : > { %3381 = vmatprep.subr.bf16.mxu0 %v13207_v47 }
  0x88   : > { %3382 = vmatpush1.bf16.msra.mxu0 %v13209_v50 }
  0x89   : > { %3383 = vmatprep.subr.bf16.mxu0 %v13212_v57 }
  0x8c   : > { %3384 = vmatpush1.bf16.msra.mxu0 %v13214_v58 }
  0xcc   : > { %v14149_v53 = vpop.permute.xlu0 %1284  ;;  %v14176_v3 = vpop.permute.xlu1 %1424 }
  0xcd   : > { %v1289_v54 = vmul.f32 %v14149_v53, %v14140_v48  ;;  %v1288_v55 = vmul.f32 %v14149_v53, %v14143_v49  ;;  %v1287_v61 = vmul.f32 %v14149_v53, %v14156_v56  ;;  %v1429_v4 = vmul.f32 %v14176_v3, %v14140_v48 }
  0xce   : > { %v1428_v5 = vmul.f32 %v14176_v3, %v14143_v49  ;;  %v1427_v14 = vmul.f32 %v14176_v3, %v14156_v56  ;;  %v1432_v52 = vmul.f32 %v14176_v3, %v14111_v30 }
  0xcf   : > { %1309 = vrot.lane.b32.xlu0 %v1289_v54, %s16358_s16  ;;  %1307 = vrot.lane.b32.xlu1 %v1288_v55, %s16358_s16 }
  0xd0   : > { %v14162_v59 = vpop.permute.xlu0 %1354  ;;  %v14190_v10 = vpop.permute.xlu1 %1494 }
  0xd1   : > { %v1358_v60 = vmul.f32 %v14162_v59, %v14143_v49  ;;  %v1357_v0 = vmul.f32 %v14162_v59, %v14156_v56  ;;  %v1359_v1 = vmul.f32 %v14162_v59, %v14140_v48  ;;  %v1498_v13 = vmul.f32 %v14190_v10, %v14143_v49 }
  0xd2   : > { %v1497_v20 = vmul.f32 %v14190_v10, %v14156_v56  ;;  %v1499_v21 = vmul.f32 %v14190_v10, %v14140_v48  ;;  %v1362_v50 = vmul.f32 %v14162_v59, %v14111_v30  ;;  %v1363_v57 = vmul.f32 %v14162_v59, %v14114_v31 }
  0xd3   : > { %1377 = vrot.lane.b32.xlu0 %v1358_v60, %s16362_s18  ;;  %1305 = vrot.lane.b32.xlu1 %v1287_v61, %s16358_s16  ;;  %v13215_v60 = vld [vmem:[%s16404_s4 + $0x140] ss:$12 sps:$4 sm:$0xff]  }
  0xd4   : > { %v14208_v22 = vpop.permute.xlu0 %1564  ;;  %v14224_v40 = vpop.permute.xlu1 %1639  ;;  %v13216_v61 = vld [vmem:[%s16404_s4 + $0x80] ss:$12 sps:$4 sm:$0xff]   ;;  %12268 = vmatprep.subr.bf16.mxu1 %v13215_v60  ;;  %v1433_v60 = vmul.f32 %v14176_v3, %v14114_v31 }
  0xd5   : > { %v1569_v35 = vmul.f32 %v14208_v22, %v14140_v48  ;;  %v1568_v37 = vmul.f32 %v14208_v22, %v14143_v49  ;;  %v1736_v44 = vmul.f32 %v14224_v40, %v14143_v49  ;;  %v1567_v45 = vmul.f32 %v14208_v22, %v14156_v56  ;;  %12269 = vmatpush3.bf16.msra.mxu1 %v13216_v61 }
  0xd6   : > { %v1737_v55 = vmul.f32 %v14224_v40, %v14140_v48  ;;  %v1735_v63 = vmul.f32 %v14224_v40, %v14156_v56  ;;  %12270 = vmatprep.subr.bf16.mxu1 %v13220_v6  ;;  %v1572_v58 = vmul.f32 %v14208_v22, %v14111_v30  ;;  %v1740_v61 = vmul.f32 %v14224_v40, %v14111_v30 }
  0xd7   : > { %1375 = vrot.lane.b32.xlu0 %v1357_v0, %s16362_s18  ;;  %1379 = vrot.lane.b32.xlu1 %v1359_v1, %s16362_s18  ;;  %v1196_v0 = vrot.slane %v14131_v41, %v1195_v23  ;;  %v13217_v41 = vld [vmem:[%s16404_s4 + $0x154] ss:$12 sps:$4 sm:$0xff]  }
  0xd8   : > { %v14232_v46 = vpop.permute.xlu0 %1807  ;;  %v14257_v1 = vpop.permute.xlu1 %1882  ;;  %3385 = vmatprep.subr.bf16.mxu0 %v13217_v41  ;;  %v1741_v41 = vmul.f32 %v14224_v40, %v14114_v31 }
  0xd9   : > { %v1811_v54 = vmul.f32 %v14232_v46, %v14143_v49  ;;  %v1810_v62 = vmul.f32 %v14232_v46, %v14156_v56  ;;  %v1812_v16 = vmul.f32 %v14232_v46, %v14140_v48  ;;  %v14266_v23 = vrot.slane %v1196_v0, %v14103_v26  ;;  %12271 = vmatpush3.bf16.msra.mxu1 %v13221_v7 }
  0xda   : > { %12272 = vmatprep.subr.bf16.mxu1 %v13225_v11  ;;  %v1573_v0 = vmul.f32 %v14208_v22, %v14114_v31  ;;  %v1294_v7 = vmul.f32 %v14149_v53, %v14117_v32 }
  0xdb   : > { %1449 = vrot.lane.b32.xlu0 %v1429_v4, %s13822_s22  ;;  %1447 = vrot.lane.b32.xlu1 %v1428_v5, %s13822_s22  ;;  %v1887_v4 = vmul.f32 %v14257_v1, %v14140_v48  ;;  %v13219_v5 = vld [vmem:[%s16404_s4 + $0x150] ss:$12 sps:$4 sm:$0xff]   ;;  %v1360_v19 = vmul.f32 %v14162_v59, %v14266_v23  ;;  %v1430_v24 = vmul.f32 %v14176_v3, %v14266_v23 }
  0xdc   : > { %3386 = vmatpush1.bf16.msra.mxu0 %v13219_v5  ;;  %v1500_v27 = vmul.f32 %v14190_v10, %v14266_v23  ;;  %v1570_v29 = vmul.f32 %v14208_v22, %v14266_v23  ;;  %v1813_v39 = vmul.f32 %v14232_v46, %v14266_v23  ;;  %v1888_v43 = vmul.f32 %v14257_v1, %v14266_v23  ;;  %v14379_v6 = vpop.permute.xlu0 %1175 }
  0xdd   : > { %3387 = vmatprep.subr.bf16.mxu0 %v13222_v8  ;;  %12273 = vmatpush3.bf16.msra.mxu1 %v13226_v12  ;;  %v1816_v8 = vmul.f32 %v14232_v46, %v14114_v31  ;;  %v1364_v12 = vmul.f32 %v14162_v59, %v14117_v32 }
  0xde   : > { %12280 = vmatprep.subr.bf16.mxu1 %v13230_v18  ;;  %v1434_v18 = vmul.f32 %v14176_v3, %v14117_v32 }
  0xdf   : > { %1517 = vrot.lane.b32.xlu0 %v1498_v13, %s13823_s23  ;;  %1445 = vrot.lane.b32.xlu1 %v1427_v14, %s13822_s22  ;;  %v1290_v13 = vmul.f32 %v14149_v53, %v14266_v23  ;;  %v1886_v14 = vmul.f32 %v14257_v1, %v14143_v49 }
  0xe0   : > { %3388 = vmatpush1.bf16.msra.mxu0 %v13224_v9  ;;  %v14390_v11 = vpop.permute.xlu0 %1956 }
  0xe1   : > { %3398 = vmatprep.subr.bf16.mxu0 %v13229_v17 }
  0xe3   : > { %1515 = vrot.lane.b32.xlu0 %v1497_v20, %s13823_s23  ;;  %1519 = vrot.lane.b32.xlu1 %v1499_v21, %s13823_s23  ;;  %v1885_v20 = vmul.f32 %v14257_v1, %v14156_v56  ;;  %v14293_v21 = vrot.slane %v1200_v15, %v14103_v26 }
  0xe5   : > { %v1291_v25 = vmul.f32 %v14149_v53, %v14293_v21  ;;  %v1361_v28 = vmul.f32 %v14162_v59, %v14293_v21  ;;  %v1501_v38 = vmul.f32 %v14190_v10, %v14293_v21  ;;  %v1571_v42 = vmul.f32 %v14208_v22, %v14293_v21 }
  0xe6   : > { %v1814_v47 = vmul.f32 %v14232_v46, %v14293_v21  ;;  %v1889_v51 = vmul.f32 %v14257_v1, %v14293_v21 }
  0xe7   : > { %1589 = vrot.lane.b32.xlu0 %v1569_v35, %s16326_s26  ;;  %1587 = vrot.lane.b32.xlu1 %v1568_v37, %s16326_s26  ;;  %v1431_v35 = vmul.f32 %v14176_v3, %v14293_v21  ;;  %v1738_v37 = vmul.f32 %v14224_v40, %v14266_v23 }
  0xeb   : > { %1757 = vrot.lane.b32.xlu0 %v1736_v44, %s13825_s28  ;;  %1585 = vrot.lane.b32.xlu1 %v1567_v45, %s16326_s26  ;;  %v1739_v44 = vmul.f32 %v14224_v40, %v14293_v21  ;;  %v1292_v45 = vmul.f32 %v14149_v53, %v14111_v30 }
  0xef   : > { %1832 = vrot.lane.b32.xlu0 %v1811_v54, %s13826_s1  ;;  %1759 = vrot.lane.b32.xlu1 %v1737_v55, %s13825_s28  ;;  %v1293_v54 = vmul.f32 %v14149_v53, %v14114_v31  ;;  %v1502_v55 = vmul.f32 %v14190_v10, %v14111_v30 }
  0xf3   : > { %1830 = vrot.lane.b32.xlu0 %v1810_v62, %s13826_s1  ;;  %1755 = vrot.lane.b32.xlu1 %v1735_v63, %s13825_s28  ;;  %v1503_v62 = vmul.f32 %v14190_v10, %v14114_v31  ;;  %v1815_v63 = vmul.f32 %v14232_v46, %v14111_v30 }
  0xf7   : > { %1909 = vrot.lane.b32.xlu0 %v1887_v4, %s13827_s2  ;;  %1834 = vrot.lane.b32.xlu1 %v1812_v16, %s13826_s1  ;;  %v1169_v4 = vld [vmem:[#allocation2 + $0x8] sm:$0x1]  ;;  %v1890_v16 = vmul.f32 %v14257_v1, %v14111_v30 }
  0xf8   : > { %v1172_v5 = vunpack.c.l.bf16 %v1169_v4 }
  0xfa   : > { %v1216_v9 = vrot.slane %v1172_v5, %v14103_v26 }
  0xfb   : > { %1311 = vrot.lane.b32.xlu0 %v1290_v13, %s16358_s16  ;;  %1907 = vrot.lane.b32.xlu1 %v1886_v14, %s13827_s2  ;;  %v1891_v13 = vmul.f32 %v14257_v1, %v14114_v31 }
  0xfc   : > { %v14397_v14 = vrot.slane %v1216_v9, %v14103_v26 }
  0xff   : > { %1381 = vrot.lane.b32.xlu0 %v1360_v19, %s16362_s18  ;;  %1905 = vrot.lane.b32.xlu1 %v1885_v20, %s13827_s2  ;;  %v1295_v19 = vmul.f32 %v14149_v53, %v14397_v14  ;;  %v1574_v53 = vmul.f32 %v14208_v22, %v14117_v32 }
 0x103   : > { %1451 = vrot.lane.b32.xlu0 %v1430_v24, %s13822_s22  ;;  %1313 = vrot.lane.b32.xlu1 %v1291_v25, %s16358_s16  ;;  %v1504_v25 = vmul.f32 %v14190_v10, %v14117_v32 }
 0x107   : > { %1521 = vrot.lane.b32.xlu0 %v1500_v27, %s13823_s23  ;;  %1383 = vrot.lane.b32.xlu1 %v1361_v28, %s16362_s18  ;;  %v1365_v27 = vmul.f32 %v14162_v59, %v14397_v14 }
 0x10b   : > { %1591 = vrot.lane.b32.xlu0 %v1570_v29, %s16326_s26  ;;  %1453 = vrot.lane.b32.xlu1 %v1431_v35, %s13822_s22  ;;  %v1435_v35 = vmul.f32 %v14176_v3, %v14397_v14 }
 0x10f   : > { %1761 = vrot.lane.b32.xlu0 %v1738_v37, %s13825_s28  ;;  %1523 = vrot.lane.b32.xlu1 %v1501_v38, %s13823_s23  ;;  %v1742_v38 = vmul.f32 %v14224_v40, %v14117_v32 }
 0x113   : > { %1836 = vrot.lane.b32.xlu0 %v1813_v39, %s13826_s1  ;;  %1593 = vrot.lane.b32.xlu1 %v1571_v42, %s16326_s26  ;;  %v1505_v39 = vmul.f32 %v14190_v10, %v14397_v14  ;;  %v1680_v42 = vrot.slane %v1636_v34, %v14103_v26  ;;  %v1892_v10 = vmul.f32 %v14257_v1, %v14117_v32 }
 0x117   : > { %1911 = vrot.lane.b32.xlu0 %v1888_v43, %s13827_s2  ;;  %1763 = vrot.lane.b32.xlu1 %v1739_v44, %s13825_s28  ;;  %v1817_v44 = vmul.f32 %v14232_v46, %v14117_v32 }
 0x11b   : > { %1315 = vrot.lane.b32.xlu0 %v1292_v45, %s16358_s16  ;;  %1838 = vrot.lane.b32.xlu1 %v1814_v47, %s13826_s1  ;;  %v1575_v45 = vmul.f32 %v14208_v22, %v14397_v14  ;;  %v1730_v47 = vrot.slane %v1680_v42, %v14103_v26  ;;  %v1744_v26 = vmul.f32 %v14125_v36, %v14224_v40 }
 0x11f   : > { %1385 = vrot.lane.b32.xlu0 %v1362_v50, %s16362_s18  ;;  %1913 = vrot.lane.b32.xlu1 %v1889_v51, %s13827_s2  ;;  %v1743_v50 = vmul.f32 %v1730_v47, %v14224_v40  ;;  %v1263_v40 = vmul.f32 %v14143_v49, %v14379_v6  ;;  %v1819_v49 = vmul.f32 %v14232_v46, %v14125_v36 }
 0x123   : > { %1455 = vrot.lane.b32.xlu0 %v1432_v52, %s13822_s22  ;;  %1317 = vrot.lane.b32.xlu1 %v1293_v54, %s16358_s16  ;;  %v1818_v52 = vmul.f32 %v14232_v46, %v1730_v47 }
 0x127   : > { %1525 = vrot.lane.b32.xlu0 %v1502_v55, %s13823_s23  ;;  %1387 = vrot.lane.b32.xlu1 %v1363_v57, %s16362_s18  ;;  %v1894_v57 = vmul.f32 %v14257_v1, %v14125_v36 }
 0x12b   : > { %1595 = vrot.lane.b32.xlu0 %v1572_v58, %s16326_s26  ;;  %1457 = vrot.lane.b32.xlu1 %v1433_v60, %s13822_s22  ;;  %v1893_v58 = vmul.f32 %v14257_v1, %v1730_v47  ;;  %v1262_v1 = vmul.f32 %v14156_v56, %v14379_v6 }
 0x12f   : > { %1765 = vrot.lane.b32.xlu0 %v1740_v61, %s13825_s28  ;;  %1527 = vrot.lane.b32.xlu1 %v1503_v62, %s13823_s23 }
 0x133   : > { %1840 = vrot.lane.b32.xlu0 %v1815_v63, %s13826_s1  ;;  %1597 = vrot.lane.b32.xlu1 %v1573_v0, %s16326_s26 }
 0x137   : > { %1915 = vrot.lane.b32.xlu0 %v1890_v16, %s13827_s2  ;;  %1767 = vrot.lane.b32.xlu1 %v1741_v41, %s13825_s28 }
 0x13b   : > { %1319 = vrot.lane.b32.xlu0 %v1294_v7, %s16358_s16  ;;  %1842 = vrot.lane.b32.xlu1 %v1816_v8, %s13826_s1 }
 0x13f   : > { %1389 = vrot.lane.b32.xlu0 %v1364_v12, %s16362_s18  ;;  %1917 = vrot.lane.b32.xlu1 %v1891_v13, %s13827_s2 }
 0x141   : > { %v14401_v15 = vpop.permute.xlu0 %1309  ;;  %v1308_v17 = vpop.permute.xlu1 %1307 }
 0x142   : > { %v1325_v60 = vsel %vm1323_vm3, %v1308_v17, %v14401_v15 }
 0x143   : > { %1459 = vrot.lane.b32.xlu0 %v1434_v18, %s13822_s22  ;;  %1321 = vrot.lane.b32.xlu1 %v1295_v19, %s16358_s16  ;;  %v1342_v63 = vadd.f32 %v1325_v60, %v1263_v40 }
 0x145   : > { %v1378_v20 = vpop.permute.xlu0 %1377  ;;  %v1306_v24 = vpop.permute.xlu1 %1305 }
 0x146   : > { %v1324_v61 = vsel %vm1323_vm3, %v1306_v24, %v1308_v17 }
 0x147   : > { %1529 = vrot.lane.b32.xlu0 %v1504_v25, %s13823_s23  ;;  %1391 = vrot.lane.b32.xlu1 %v1365_v27, %s16362_s18  ;;  %v1341_v5 = vadd.f32 %v1324_v61, %v1262_v1 }
 0x149   : > { %v1376_v28 = vpop.permute.xlu0 %1375  ;;  %v14415_v29 = vpop.permute.xlu1 %1379 }
 0x14a   : > { %v1395_v62 = vsel %vm1393_vm4, %v1378_v20, %v14415_v29  ;;  %v1394_v16 = vsel %vm1393_vm4, %v1376_v28, %v1378_v20 }
 0x14b   : > { %1599 = vrot.lane.b32.xlu0 %v1574_v53, %s16326_s26  ;;  %1461 = vrot.lane.b32.xlu1 %v1435_v35, %s13822_s22  ;;  %v1412_v7 = vadd.f32 %v1395_v62, %v1342_v63  ;;  %v1411_v9 = vadd.f32 %v1394_v16, %v1341_v5  ;;  %v13227_v62 = vld [vmem:[%s16404_s4 + $0x180] ss:$12 sps:$4 sm:$0xff]   ;;  %v13231_v63 = vld [vmem:[%s16404_s4 + $0x188] ss:$12 sps:$4 sm:$0xff]   ;;  %s16323_s22 = smov 91  }
 0x14c   : > { %v13234_v16 = vld [vmem:[%s16404_s4 + $0x19c] ss:$12 sps:$4 sm:$0xff]   ;;  %v13232_v5 = vld [vmem:[%s16404_s4 + $0x198] ss:$12 sps:$4 sm:$0xff]  }
 0x14d   : > { %v14423_v37 = vpop.permute.xlu0 %1449  ;;  %v1448_v59 = vpop.permute.xlu1 %1447 }
 0x14e   : > { %v1465_v41 = vsel %vm1463_vm6, %v1448_v59, %v14423_v37 }
 0x14f   : > { %1769 = vrot.lane.b32.xlu0 %v1742_v38, %s13825_s28  ;;  %1531 = vrot.lane.b32.xlu1 %v1505_v39, %s13823_s23  ;;  %v1482_v12 = vadd.f32 %v1465_v41, %v1412_v7  ;;  %v13235_v41 = vld [vmem:[%s16404_s4 + $0x260] ss:$12 sps:$4 sm:$0xff]   ;;  %s16321_s23 = smov 90  }
 0x150   : > { %v13236_v7 = vld [vmem:[%s16404_s4 + $0x1a0] ss:$12 sps:$4 sm:$0xff]  }
 0x151   : > { %v1518_v3 = vpop.permute.xlu0 %1517  ;;  %v1446_v43 = vpop.permute.xlu1 %1445 }
 0x152   : > { %v1464_v8 = vsel %vm1463_vm6, %v1446_v43, %v1448_v59 }
 0x153   : > { %1844 = vrot.lane.b32.xlu0 %v1817_v44, %s13826_s1  ;;  %1601 = vrot.lane.b32.xlu1 %v1575_v45, %s16326_s26  ;;  %v1481_v18 = vadd.f32 %v1464_v8, %v1411_v9 }
 0x155   : > { %v1516_v33 = vpop.permute.xlu0 %1515  ;;  %v14441_v34 = vpop.permute.xlu1 %1519 }
 0x156   : > { %v1535_v56 = vsel %vm1533_vm7, %v1518_v3, %v14441_v34  ;;  %v1534_v46 = vsel %vm1533_vm7, %v1516_v33, %v1518_v3 }
 0x157   : > { %1919 = vrot.lane.b32.xlu0 %v1892_v10, %s13827_s2  ;;  %1771 = vrot.lane.b32.xlu1 %v1743_v50, %s13825_s28  ;;  %v1552_v19 = vadd.f32 %v1535_v56, %v1482_v12  ;;  %v1551_v25 = vadd.f32 %v1534_v46, %v1481_v18  ;;  %v13239_v12 = vld [vmem:[%s16404_s4 + $0x1b4] ss:$12 sps:$4 sm:$0xff]   ;;  %v13237_v18 = vld [vmem:[%s16404_s4 + $0x1b0] ss:$12 sps:$4 sm:$0xff]  }
 0x159   : > { %v14448_v51 = vpop.permute.xlu0 %1589  ;;  %v1588_v22 = vpop.permute.xlu1 %1587 }
 0x15a   : > { %v1605_v17 = vsel %vm1603_vm8, %v1588_v22, %v14448_v51 }
 0x15b   : > { %1773 = vrot.lane.b32.xlu0 %v1744_v26, %s13825_s28  ;;  %1846 = vrot.lane.b32.xlu1 %v1818_v52, %s13826_s1  ;;  %v1622_v27 = vadd.f32 %v1605_v17, %v1552_v19  ;;  %s16336_s28 = smov 117  }
 0x15d   : > { %v1758_v54 = vpop.permute.xlu0 %1757  ;;  %v1586_v55 = vpop.permute.xlu1 %1585 }
 0x15e   : > { %v1604_v20 = vsel %vm1603_vm8, %v1586_v55, %v1588_v22 }
 0x15f   : > { %1923 = vrot.lane.b32.xlu0 %v1894_v57, %s13827_s2  ;;  %1921 = vrot.lane.b32.xlu1 %v1893_v58, %s13827_s2  ;;  %v1621_v38 = vadd.f32 %v1604_v20, %v1551_v25  ;;  %v13244_v25 = vld [vmem:[%s16404_s4 + $0x1cc] ss:$12 sps:$4 sm:$0xff]   ;;  %s16354_s2 = smov 116  }
 0x161   : > { %v1833_v0 = vpop.permute.xlu0 %1832  ;;  %v14469_v4 = vpop.permute.xlu1 %1759 }
 0x162   : > { %v1777_v24 = vsel %vm1775_vm11, %v1758_v54, %v14469_v4 }
 0x163   : > { %1848 = vrot.lane.b32.xlu1 %v1819_v49, %s13826_s1  ;;  %v1795_v39 = vadd.f32 %v1777_v24, %v1622_v27  ;;  %s16342_s1 = smov 118  }
 0x165   : > { %v1831_v13 = vpop.permute.xlu0 %1830  ;;  %v1756_v36 = vpop.permute.xlu1 %1755 }
 0x166   : > { %v1776_v35 = vsel %vm1775_vm11, %v1756_v36, %v1758_v54  ;;  %v1851_v33 = vsel %vm1850_vm9, %v1831_v13, %v1833_v0  ;;  %v13240_v13 = vld [vmem:[%s16404_s4 + $0x278] ss:$12 sps:$4 sm:$0xff]   ;;  %v1264_v36 = vmul.f32 %v14140_v48, %v14379_v6  ;;  %v13245_v48 = vld [vmem:[%s16404_s4 + $0x290] ss:$12 sps:$4 sm:$0xff]  }
 0x167   : > { %v1794_v42 = vadd.f32 %v1776_v35, %v1621_v38  ;;  %v1265_v35 = vmul.f32 %v14266_v23, %v14379_v6  ;;  %v13249_v23 = vld [vmem:[%s16404_s4 + $0x1e4] ss:$12 sps:$4 sm:$0xff]  }
 0x169   : > { %v14486_v28 = vpop.permute.xlu0 %1909  ;;  %v14488_v53 = vpop.permute.xlu1 %1834  ;;  %v1869_v22 = vadd.f32 %v1851_v33, %v1794_v42  ;;  %v13246_v42 = vld [vmem:[%s16404_s4 + $0x1d0] ss:$12 sps:$4 sm:$0xff]  }
 0x16a   : > { %v1852_v59 = vsel %vm1850_vm9, %v1833_v0, %v14488_v53 }
 0x16b   : > { %v1870_v3 = vadd.f32 %v1852_v59, %v1795_v39  ;;  %v13242_v39 = vld [vmem:[%s16404_s4 + $0x1c8] ss:$12 sps:$4 sm:$0xff]  }
 0x16d   : > { %v1312_v43 = vpop.permute.xlu0 %1311  ;;  %v1908_v44 = vpop.permute.xlu1 %1907 }
 0x16e   : > { %v1927_v45 = vsel %vm1925_vm10, %v1908_v44, %v14486_v28  ;;  %v1326_v8 = vsel %vm1323_vm3, %v14401_v15, %v1312_v43  ;;  %v13241_v15 = vld [vmem:[%s16404_s4 + $0x1b8] ss:$12 sps:$4 sm:$0xff]  }
 0x16f   : > { %v1945_v47 = vadd.f32 %v1927_v45, %v1870_v3  ;;  %v1343_v17 = vadd.f32 %v1326_v8, %v1264_v36 }
 0x171   : > { %v1382_v10 = vpop.permute.xlu0 %1381  ;;  %v1906_v50 = vpop.permute.xlu1 %1905  ;;  %v1960_v26 = vadd.f32 %v14390_v11, %v1945_v47 }
 0x172   : > { %v1926_v52 = vsel %vm1925_vm10, %v1906_v50, %v1908_v44  ;;  %v1396_v46 = vsel %vm1393_vm4, %v14415_v29, %v1382_v10 }
 0x173   : > { %v1944_v54 = vadd.f32 %v1926_v52, %v1869_v22  ;;  %v1969_v55 = vmax.f32 %v1960_v26, 0.0  ;;  %v1413_v27 = vadd.f32 %v1396_v46, %v1343_v17  ;;  %v13247_v26 = vld [vmem:[%s16404_s4 + $0x1e0] ss:$12 sps:$4 sm:$0xff]   ;;  %v13251_v52 = vld [vmem:[%s16404_s4 + $0x1e8] ss:$12 sps:$4 sm:$0xff]  }
 0x174   : > { %v13257_v46 = vld [vmem:[%s16404_s4 + $0x210] ss:$12 sps:$4 sm:$0xff]   ;;  %v13261_v17 = vld [vmem:[%s16404_s4 + $0x218] ss:$12 sps:$4 sm:$0xff]  }
 0x175   : > { %v1959_v57 = vadd.f32 %v14390_v11, %v1944_v54  ;;  %v1452_v58 = vpop.permute.xlu0 %1451  ;;  %v14499_v60 = vpop.permute.xlu1 %1313  ;;  %v1978_v40 = vpack.c.bf16 %v1969_v55, %v1969_v55 }
 0x176   : > { %v1466_v19 = vsel %vm1463_vm6, %v14423_v37, %v1452_v58  ;;  %v1327_v29 = vsel %vm1323_vm3, %v1312_v43, %v14499_v60 }
 0x177   : > { %3389 = vmatprep.mubr.bf16.mxu0 %v1978_v40  ;;  %3594 = vmatprep.mubr.bf16.mxu1 %v1978_v40  ;;  %v1968_v61 = vmax.f32 %v1959_v57, 0.0  ;;  %v1483_v59 = vadd.f32 %v1466_v19, %v1413_v27  ;;  %v1344_v3 = vadd.f32 %v1327_v29, %v1265_v35  ;;  %v13255_v40 = vld [vmem:[%s16404_s4 + $0x2c0] ss:$12 sps:$4 sm:$0xff]   ;;  %v13262_v35 = vld [vmem:[%s16404_s4 + $0x228] ss:$12 sps:$4 sm:$0xff]  }
 0x179   : > { %v1522_v1 = vpop.permute.xlu0 %1521  ;;  %v14503_v0 = vpop.permute.xlu1 %1383  ;;  %v1977_v49 = vpack.c.bf16 %v1968_v61, %v1968_v61 }
 0x17a   : > { %v1536_v37 = vsel %vm1533_vm7, %v14441_v34, %v1522_v1  ;;  %v1397_v38 = vsel %vm1393_vm4, %v1382_v10, %v14503_v0  ;;  %v13250_v34 = vld [vmem:[%s16404_s4 + $0x2a8] ss:$12 sps:$4 sm:$0xff]  }
 0x17b   : > { %3390 = vmatmul.mubr.bf16.vlgmr.msra.gmra.mrb[0].mxu0 %v1977_v49  ;;  %3595 = vmatmul.mubr.bf16.vlgmr.msra.gmra.mrb[0].mxu1 %v1977_v49  ;;  %v1553_v47 = vadd.f32 %v1536_v37, %v1483_v59  ;;  %v1414_v10 = vadd.f32 %v1397_v38, %v1344_v3  ;;  %v13266_v37 = vld [vmem:[%s16404_s4 + $0x230] ss:$12 sps:$4 sm:$0xff]   ;;  %v13270_v3 = vld [vmem:[%s16404_s4 + $0x3c8] ss:$12 sps:$4 sm:$0xff]  }
 0x17c   : > { %3399 = vmatpush1.bf16.msra.mxu0 %v13227_v62  ;;  %12281 = vmatpush3.bf16.msra.mxu1 %v13231_v63 }
 0x17d   : > { %v1592_v56 = vpop.permute.xlu0 %1591  ;;  %v14511_v9 = vpop.permute.xlu1 %1453  ;;  %3400 = vmatprep.subr.bf16.mxu0 %v13234_v16  ;;  %12282 = vmatprep.subr.bf16.mxu1 %v13235_v41  ;;  %v13252_v16 = vld [vmem:[%s16404_s4 + $0x1f8] ss:$12 sps:$4 sm:$0xff]   ;;  %v13256_v41 = vld [vmem:[%s16404_s4 + $0x200] ss:$12 sps:$4 sm:$0xff]  }
 0x17e   : > { %v1606_v43 = vsel %vm1603_vm8, %v14448_v51, %v1592_v56  ;;  %v1467_v33 = vsel %vm1463_vm6, %v1452_v58, %v14511_v9 }
 0x17f   : > { %v1623_v22 = vadd.f32 %v1606_v43, %v1553_v47  ;;  %v1484_v54 = vadd.f32 %v1467_v33, %v1414_v10  ;;  %v13271_v10 = vld [vmem:[%s16404_s4 + $0x308] ss:$12 sps:$4 sm:$0xff]  }
 0x180   : > { %3401 = vmatpush1.bf16.msra.mxu0 %v13232_v5  ;;  %12283 = vmatpush3.bf16.msra.mxu1 %v13236_v7 }
 0x181   : > { %v1762_v20 = vpop.permute.xlu0 %1761  ;;  %v14523_v24 = vpop.permute.xlu1 %1523  ;;  %3402 = vmatprep.subr.bf16.mxu0 %v13239_v12  ;;  %12284 = vmatprep.subr.bf16.mxu1 %v13240_v13 }
 0x182   : > { %v1778_v50 = vsel %vm1775_vm11, %v14469_v4, %v1762_v20  ;;  %v1537_v51 = vsel %vm1533_vm7, %v1522_v1, %v14523_v24  ;;  %v13254_v4 = vld [vmem:[%s16404_s4 + $0x1fc] ss:$12 sps:$4 sm:$0xff]  }
 0x183   : > { %v1796_v61 = vadd.f32 %v1778_v50, %v1623_v22  ;;  %v1554_v63 = vadd.f32 %v1537_v51, %v1484_v54  ;;  %v13274_v50 = vld [vmem:[%s16404_s4 + $0x25c] ss:$12 sps:$4 sm:$0xff]   ;;  %v13275_v51 = vld [vmem:[%s16404_s4 + $0x3e0] ss:$12 sps:$4 sm:$0xff]  }
 0x184   : > { %3403 = vmatpush1.bf16.msra.mxu0 %v13237_v18  ;;  %12285 = vmatpush3.bf16.msra.mxu1 %v13241_v15 }
 0x185   : > { %v1837_v44 = vpop.permute.xlu0 %1836  ;;  %v14539_v45 = vpop.permute.xlu1 %1593  ;;  %3404 = vmatprep.subr.bf16.mxu0 %v13244_v25  ;;  %12286 = vmatprep.subr.bf16.mxu1 %v13245_v48  ;;  %v13265_v25 = vld [vmem:[%s16404_s4 + $0x2f0] ss:$12 sps:$4 sm:$0xff]  }
 0x186   : > { %v1853_v55 = vsel %vm1850_vm9, %v14488_v53, %v1837_v44  ;;  %v1607_v62 = vsel %vm1603_vm8, %v1592_v56, %v14539_v45  ;;  %v13260_v56 = vld [vmem:[%s16404_s4 + $0x2d8] ss:$12 sps:$4 sm:$0xff]  }
 0x187   : > { %v1871_v49 = vadd.f32 %v1853_v55, %v1796_v61  ;;  %v1624_v5 = vadd.f32 %v1607_v62, %v1554_v63  ;;  %v13276_v55 = vld [vmem:[%s16404_s4 + $0x320] ss:$12 sps:$4 sm:$0xff]   ;;  %v1266_v61 = vmul.f32 %v14293_v21, %v14379_v6  ;;  %v13277_v63 = vld [vmem:[%s16404_s4 + $0x270] ss:$12 sps:$4 sm:$0xff]  }
 0x188   : > { %3405 = vmatpush1.bf16.msra.mxu0 %v13242_v39  ;;  %12287 = vmatpush3.bf16.msra.mxu1 %v13246_v42  ;;  %v13269_v39 = vld [vmem:[%s16404_s4 + $0x244] ss:$12 sps:$4 sm:$0xff]  }
 0x189   : > { %v1912_v57 = vpop.permute.xlu0 %1911  ;;  %v14553_v58 = vpop.permute.xlu1 %1763  ;;  %3406 = vmatprep.subr.bf16.mxu0 %v13249_v23  ;;  %12288 = vmatprep.subr.bf16.mxu1 %v13250_v34  ;;  %v13267_v23 = vld [vmem:[%s16404_s4 + $0x240] ss:$12 sps:$4 sm:$0xff]  }
 0x18a   : > { %v1928_v1 = vsel %vm1925_vm10, %v14486_v28, %v1912_v57  ;;  %v1779_v53 = vsel %vm1775_vm11, %v1762_v20, %v14553_v58  ;;  %v13259_v28 = vld [vmem:[%s16404_s4 + $0x214] ss:$12 sps:$4 sm:$0xff]   ;;  %v13264_v20 = vld [vmem:[%s16404_s4 + $0x22c] ss:$12 sps:$4 sm:$0xff]  }
 0x18b   : > { %v1946_v12 = vadd.f32 %v1928_v1, %v1871_v49  ;;  %v1797_v36 = vadd.f32 %v1779_v53, %v1624_v5 }
 0x18c   : > { %3407 = vmatpush1.bf16.msra.mxu0 %v13247_v26  ;;  %12289 = vmatpush3.bf16.msra.mxu1 %v13251_v52  ;;  %v13272_v26 = vld [vmem:[%s16404_s4 + $0x258] ss:$12 sps:$4 sm:$0xff]  }
 0x18d   : > { %v14565_v7 = vpop.permute.xlu0 %1315  ;;  %v14567_v8 = vpop.permute.xlu1 %1838  ;;  %3408 = vmatprep.subr.bf16.mxu0 %v13254_v4  ;;  %12290 = vmatprep.subr.bf16.mxu1 %v13255_v40  ;;  %v1961_v48 = vadd.f32 %v14390_v11, %v1946_v12  ;;  %v13280_v40 = vld [vmem:[%s16404_s4 + $0x3f8] ss:$12 sps:$4 sm:$0xff]   ;;  %v13282_v12 = vld [vmem:[%s16404_s4 + $0x288] ss:$12 sps:$4 sm:$0xff]  }
 0x18e   : > { %v1854_v13 = vsel %vm1850_vm9, %v1837_v44, %v14567_v8  ;;  %v1328_v4 = vsel %vm1323_vm3, %v14499_v60, %v14565_v7  ;;  %v13281_v60 = vld [vmem:[%s16404_s4 + $0x338] ss:$12 sps:$4 sm:$0xff]  }
 0x18f   : > { %v1872_v18 = vadd.f32 %v1854_v13, %v1797_v36  ;;  %v1970_v43 = vmax.f32 %v1961_v48, 0.0  ;;  %v1345_v1 = vadd.f32 %v1328_v4, %v1266_v61  ;;  %v13297_v61 = vld [vmem:[%s16404_s4 + $0x2d0] ss:$12 sps:$4 sm:$0xff]  }
 0x190   : > { %3409 = vmatpush1.bf16.msra.mxu0 %v13252_v16  ;;  %12291 = vmatpush3.bf16.msra.mxu1 %v13256_v41  ;;  %v13284_v16 = vld [vmem:[%s16404_s4 + $0x28c] ss:$12 sps:$4 sm:$0xff]  }
 0x191   : > { %v14575_v15 = vpop.permute.xlu0 %1385  ;;  %v14577_v19 = vpop.permute.xlu1 %1913  ;;  %3410 = vmatprep.subr.bf16.mxu0 %v13259_v28  ;;  %12292 = vmatprep.subr.bf16.mxu1 %v13260_v56  ;;  %v14598_v22 = vpack.c.bf16 %v1970_v43, %v1970_v43  ;;  %v1267_v28 = vmul.f32 %v14111_v30, %v14379_v6  ;;  %v13289_v30 = vld [vmem:[%s16404_s4 + $0x2a4] ss:$12 sps:$4 sm:$0xff]   ;;  %v13295_v43 = vld [vmem:[%s16404_s4 + $0x440] ss:$12 sps:$4 sm:$0xff]  }
 0x192   : > { %v1929_v27 = vsel %vm1925_vm10, %v1912_v57, %v14577_v19  ;;  %v13279_v57 = vld [vmem:[%s16404_s4 + $0x274] ss:$12 sps:$4 sm:$0xff]   ;;  %v1398_v62 = vsel %vm1393_vm4, %v14503_v0, %v14575_v15  ;;  %v13285_v0 = vld [vmem:[%s16404_s4 + $0x410] ss:$12 sps:$4 sm:$0xff]  }
 0x193   : > { %v1947_v29 = vadd.f32 %v1929_v27, %v1872_v18  ;;  %v1415_v5 = vadd.f32 %v1398_v62, %v1345_v1 }
 0x194   : > { %3411 = vmatpush1.bf16.msra.mxu0 %v13257_v46  ;;  %12293 = vmatpush3.bf16.msra.mxu1 %v13261_v17  ;;  %v13286_v17 = vld [vmem:[%s16404_s4 + $0x350] ss:$12 sps:$4 sm:$0xff]  }
 0x195   : > { %v14586_v59 = vpop.permute.xlu0 %1455  ;;  %v14588_v38 = vpop.permute.xlu1 %1317  ;;  %3412 = vmatprep.subr.bf16.mxu0 %v13264_v20  ;;  %12294 = vmatprep.subr.bf16.mxu1 %v13265_v25  ;;  %v1962_v42 = vadd.f32 %v14390_v11, %v1947_v29  ;;  %v13287_v29 = vld [vmem:[%s16404_s4 + $0x2a0] ss:$12 sps:$4 sm:$0xff]  }
 0x196   : > { %v1468_v41 = vsel %vm1463_vm6, %v14511_v9, %v14586_v59  ;;  %v1329_v21 = vsel %vm1323_vm3, %v14565_v7, %v14588_v38 }
 0x197   : > { %v1971_v44 = vmax.f32 %v1962_v42, 0.0  ;;  %v1485_v13 = vadd.f32 %v1468_v41, %v1415_v5  ;;  %v1346_v36 = vadd.f32 %v1329_v21, %v1267_v28  ;;  %v13294_v42 = vld [vmem:[%s16404_s4 + $0x2bc] ss:$12 sps:$4 sm:$0xff]  }
 0x198   : > { %3413 = vmatpush1.bf16.msra.mxu0 %v13262_v35  ;;  %12295 = vmatpush3.bf16.msra.mxu1 %v13266_v37  ;;  %v13305_v41 = vld [vmem:[%s16404_s4 + $0x470] ss:$12 sps:$4 sm:$0xff]   ;;  %v13302_v5 = vld [vmem:[%s16404_s4 + $0x2e8] ss:$12 sps:$4 sm:$0xff]  }
 0x199   : > { %v1526_v34 = vpop.permute.xlu0 %1525  ;;  %v14594_v47 = vpop.permute.xlu1 %1387  ;;  %3414 = vmatprep.subr.bf16.mxu0 %v13269_v39  ;;  %v1980_v33 = vpack.c.bf16 %v1971_v44, %v1971_v44  ;;  %12302 = vmatprep.subr.bf16.mxu1 %v13270_v3  ;;  %v13291_v39 = vld [vmem:[%s16404_s4 + $0x368] ss:$12 sps:$4 sm:$0xff]  }
 0x19a   : > { %v1538_v56 = vsel %vm1533_vm7, %v14523_v24, %v1526_v34  ;;  %v1399_v9 = vsel %vm1393_vm4, %v14575_v15, %v14594_v47  ;;  %v13290_v15 = vld [vmem:[%s16404_s4 + $0x428] ss:$12 sps:$4 sm:$0xff]  }
 0x19b   : > { %3430 = vmatprep.mubr.bf16.mxu0 %v1980_v33  ;;  %3634 = vmatprep.mubr.bf16.mxu1 %v1980_v33  ;;  %v1555_v20 = vadd.f32 %v1538_v56, %v1485_v13  ;;  %v1416_v25 = vadd.f32 %v1399_v9, %v1346_v36  ;;  %v13306_v9 = vld [vmem:[%s16404_s4 + $0x3b0] ss:$12 sps:$4 sm:$0xff]   ;;  %v13310_v36 = vld [vmem:[%s16404_s4 + $0x548] ss:$12 sps:$4 sm:$0xff]  }
 0x19c   : > { %3415 = vmatpush1.bf16.msra.mxu0 %v13267_v23  ;;  %3635 = vmatmul.mubr.bf16.vlgmr.msra.gmra.mrb[4].mxu1 %v14598_v22 }
 0x19d   : > { %12303 = vmatpush3.bf16.msra.mxu1 %v13271_v10  ;;  %v1596_v52 = vpop.permute.xlu0 %1595  ;;  %v14603_v54 = vpop.permute.xlu1 %1457  ;;  %3416 = vmatprep.subr.bf16.mxu0 %v13274_v50  ;;  %v13292_v10 = vld [vmem:[%s16404_s4 + $0x2b8] ss:$12 sps:$4 sm:$0xff]  }
 0x19e   : > { %12304 = vmatprep.subr.bf16.mxu1 %v13275_v51  ;;  %v1608_v18 = vsel %vm1603_vm8, %v14539_v45, %v1596_v52  ;;  %v1469_v24 = vsel %vm1463_vm6, %v14586_v59, %v14603_v54 }
 0x19f   : > { %v1625_v45 = vadd.f32 %v1608_v18, %v1555_v20  ;;  %v1486_v35 = vadd.f32 %v1469_v24, %v1416_v25  ;;  %v13314_v20 = vld [vmem:[%s16404_s4 + $0x31c] ss:$12 sps:$4 sm:$0xff]  }
 0x1a0   : > { %3417 = vmatpush1.bf16.msra.mxu0 %v13272_v26  ;;  %v13311_v25 = vld [vmem:[%s16404_s4 + $0x488] ss:$12 sps:$4 sm:$0xff]  }
 0x1a1   : > { %12305 = vmatpush3.bf16.msra.mxu1 %v13276_v55  ;;  %v1766_v49 = vpop.permute.xlu0 %1765  ;;  %v14617_v53 = vpop.permute.xlu1 %1527  ;;  %3418 = vmatprep.subr.bf16.mxu0 %v13279_v57  ;;  %v13299_v55 = vld [vmem:[%s16404_s4 + $0x2d4] ss:$12 sps:$4 sm:$0xff]   ;;  %v13300_v57 = vld [vmem:[%s16404_s4 + $0x458] ss:$12 sps:$4 sm:$0xff]  }
 0x1a2   : > { %12306 = vmatprep.subr.bf16.mxu1 %v13280_v40  ;;  %v1780_v48 = vsel %vm1775_vm11, %v14553_v58, %v1766_v49  ;;  %v1539_v27 = vsel %vm1533_vm7, %v1526_v34, %v14617_v53 }
 0x1a3   : > { %v1798_v44 = vadd.f32 %v1780_v48, %v1625_v45  ;;  %v1556_v23 = vadd.f32 %v1539_v27, %v1486_v35  ;;  %v13315_v27 = vld [vmem:[%s16404_s4 + $0x560] ss:$12 sps:$4 sm:$0xff]  }
 0x1a4   : > { %3419 = vmatpush1.bf16.msra.mxu0 %v13277_v63 }
 0x1a5   : > { %12307 = vmatpush3.bf16.msra.mxu1 %v13281_v60  ;;  %v1841_v7 = vpop.permute.xlu0 %1840  ;;  %v14636_v46 = vpop.permute.xlu1 %1597  ;;  %3420 = vmatprep.subr.bf16.mxu0 %v13284_v16  ;;  %v13304_v60 = vld [vmem:[%s16404_s4 + $0x2ec] ss:$12 sps:$4 sm:$0xff]  }
 0x1a6   : > { %12308 = vmatprep.subr.bf16.mxu1 %v13285_v0  ;;  %v1855_v3 = vsel %vm1850_vm9, %v14567_v8, %v1841_v7  ;;  %v1609_v58 = vsel %vm1603_vm8, %v1596_v52, %v14636_v46  ;;  %v13296_v52 = vld [vmem:[%s16404_s4 + $0x380] ss:$12 sps:$4 sm:$0xff]  }
 0x1a7   : > { %v1873_v8 = vadd.f32 %v1855_v3, %v1798_v44  ;;  %v1626_v50 = vadd.f32 %v1609_v58, %v1556_v23  ;;  %v13320_v3 = vld [vmem:[%s16404_s4 + $0x578] ss:$12 sps:$4 sm:$0xff]  }
 0x1a8   : > { %3421 = vmatpush1.bf16.msra.mxu0 %v13282_v12  ;;  %v13309_v12 = vld [vmem:[%s16404_s4 + $0x304] ss:$12 sps:$4 sm:$0xff]  }
 0x1a9   : > { %12309 = vmatpush3.bf16.msra.mxu1 %v13286_v17  ;;  %v1916_v37 = vpop.permute.xlu0 %1915  ;;  %v14651_v59 = vpop.permute.xlu1 %1767  ;;  %3422 = vmatprep.subr.bf16.mxu0 %v13289_v30  ;;  %v13307_v30 = vld [vmem:[%s16404_s4 + $0x300] ss:$12 sps:$4 sm:$0xff]  }
 0x1aa   : > { %12310 = vmatprep.subr.bf16.mxu1 %v13290_v15  ;;  %v1930_v34 = vsel %vm1925_vm10, %v14577_v19, %v1916_v37  ;;  %v1781_v33 = vsel %vm1775_vm11, %v1766_v49, %v14651_v59  ;;  %v13301_v49 = vld [vmem:[%s16404_s4 + $0x398] ss:$12 sps:$4 sm:$0xff]  }
 0x1ab   : > { %v1948_v4 = vadd.f32 %v1930_v34, %v1873_v8  ;;  %v1799_v40 = vadd.f32 %v1781_v33, %v1626_v50  ;;  %v1269_v8 = vmul.f32 %v14117_v32, %v14379_v6  ;;  %v13325_v50 = vld [vmem:[%s16404_s4 + $0x590] ss:$12 sps:$4 sm:$0xff]  }
 0x1ac   : > { %3423 = vmatpush1.bf16.msra.mxu0 %v13287_v29  ;;  %v13312_v29 = vld [vmem:[%s16404_s4 + $0x318] ss:$12 sps:$4 sm:$0xff]  }
 0x1ad   : > { %12311 = vmatpush3.bf16.msra.mxu1 %v13291_v39  ;;  %v14665_v51 = vpop.permute.xlu0 %1319  ;;  %v14667_v26 = vpop.permute.xlu1 %1842  ;;  %3424 = vmatprep.subr.bf16.mxu0 %v13294_v42  ;;  %v1963_v21 = vadd.f32 %v14390_v11, %v1948_v4  ;;  %v13316_v39 = vld [vmem:[%s16404_s4 + $0x4a0] ss:$12 sps:$4 sm:$0xff]   ;;  %v1268_v42 = vmul.f32 %v14114_v31, %v14379_v6  ;;  %v13329_v32 = vld [vmem:[%s16404_s4 + $0x364] ss:$12 sps:$4 sm:$0xff]  }
 0x1ae   : > { %v1856_v19 = vsel %vm1850_vm9, %v1841_v7, %v14667_v26  ;;  %12312 = vmatprep.subr.bf16.mxu1 %v13295_v43  ;;  %v13317_v43 = vld [vmem:[%s16404_s4 + $0x330] ss:$12 sps:$4 sm:$0xff]  }
 0x1af   : > { %v1874_v62 = vadd.f32 %v1856_v19, %v1799_v40  ;;  %v1972_v7 = vmax.f32 %v1963_v21, 0.0 }
 0x1b0   : > { %3425 = vmatpush1.bf16.msra.mxu0 %v13292_v10 }
 0x1b1   : > { %12313 = vmatpush3.bf16.msra.mxu1 %v13296_v52  ;;  %v14675_v63 = vpop.permute.xlu0 %1389  ;;  %v14677_v1 = vpop.permute.xlu1 %1917  ;;  %3426 = vmatprep.subr.bf16.mxu0 %v13299_v55  ;;  %v14700_v48 = vpack.c.bf16 %v1972_v7, %v1972_v7  ;;  %v13335_v7 = vld [vmem:[%s16404_s4 + $0x5c0] ss:$12 sps:$4 sm:$0xff]  }
 0x1b2   : > { %v1931_v16 = vsel %vm1925_vm10, %v1916_v37, %v14677_v1  ;;  %12314 = vmatprep.subr.bf16.mxu1 %v13300_v57  ;;  %v13319_v37 = vld [vmem:[%s16404_s4 + $0x334] ss:$12 sps:$4 sm:$0xff]   ;;  %v1400_v58 = vsel %vm1393_vm4, %v14594_v47, %v14675_v63  ;;  %v13321_v47 = vld [vmem:[%s16404_s4 + $0x4b8] ss:$12 sps:$4 sm:$0xff]  }
 0x1b3   : > { %v1949_v0 = vadd.f32 %v1931_v16, %v1874_v62 }
 0x1b4   : > { %3427 = vmatpush1.bf16.msra.mxu0 %v13297_v61  ;;  %v13326_v61 = vld [vmem:[%s16404_s4 + $0x4d0] ss:$12 sps:$4 sm:$0xff]  }
 0x1b5   : > { %12315 = vmatpush3.bf16.msra.mxu1 %v13301_v49  ;;  %v14686_v28 = vpop.permute.xlu0 %1459  ;;  %v14688_v56 = vpop.permute.xlu1 %1321  ;;  %3428 = vmatprep.subr.bf16.mxu0 %v13304_v60  ;;  %v1964_v13 = vadd.f32 %v14390_v11, %v1949_v0  ;;  %v13330_v49 = vld [vmem:[%s16404_s4 + $0x5a8] ss:$12 sps:$4 sm:$0xff]  }
 0x1b6   : > { %12316 = vmatprep.subr.bf16.mxu1 %v13305_v41  ;;  %v1470_v31 = vsel %vm1463_vm6, %v14603_v54, %v14686_v28  ;;  %v1331_v33 = vsel %vm1323_vm3, %v14665_v51, %v14688_v56 }
 0x1b7   : > { %v1973_v17 = vmax.f32 %v1964_v13, 0.0  ;;  %v1348_v19 = vadd.f32 %v1331_v33, %v1269_v8  ;;  %v13345_v33 = vld [vmem:[%s16404_s4 + $0x5f0] ss:$12 sps:$4 sm:$0xff]  }
 0x1b8   : > { %3429 = vmatpush1.bf16.msra.mxu0 %v13302_v5  ;;  %v13349_v8 = vld [vmem:[%s16404_s4 + $0x3c4] ss:$12 sps:$4 sm:$0xff]  }
 0x1b9   : > { %12317 = vmatpush3.bf16.msra.mxu1 %v13306_v9  ;;  %v1530_v18 = vpop.permute.xlu0 %1529  ;;  %v14695_v24 = vpop.permute.xlu1 %1391  ;;  %3439 = vmatprep.subr.bf16.mxu0 %v13309_v12  ;;  %v1982_v15 = vpack.c.bf16 %v1973_v17, %v1973_v17 }
 0x1ba   : > { %12324 = vmatprep.subr.bf16.mxu1 %v13310_v36  ;;  %v1540_v52 = vsel %vm1533_vm7, %v14617_v53, %v1530_v18  ;;  %v1401_v54 = vsel %vm1393_vm4, %v14675_v63, %v14695_v24 }
 0x1bb   : > { %3431 = vmatmul.mubr.bf16.vlgmr.msra.gmra.mrb[0].mxu0 %v14598_v22  ;;  %3674 = vmatprep.mubr.bf16.mxu1 %v1982_v15  ;;  %v1330_v22 = vsel %vm1323_vm3, %v14588_v38, %v14665_v51  ;;  %v13324_v38 = vld [vmem:[%s16404_s4 + $0x34c] ss:$12 sps:$4 sm:$0xff]   ;;  %v13322_v51 = vld [vmem:[%s16404_s4 + $0x348] ss:$12 sps:$4 sm:$0xff]   ;;  %v1418_v63 = vadd.f32 %v1401_v54, %v1348_v19 }
 0x1bc   : > { %3440 = vmatpush1.bf16.msra.mxu0 %v13307_v30  ;;  %3471 = vmatprep.mubr.bf16.mxu0 %v1982_v15  ;;  %v1347_v44 = vadd.f32 %v1330_v22, %v1268_v42 }
 0x1bd   : > { %3675 = vmatmul.mubr.bf16.vlgmr.msra.gmra.mrb[8].mxu1 %v14700_v48  ;;  %v1600_v45 = vpop.permute.xlu0 %1599  ;;  %v14705_v35 = vpop.permute.xlu1 %1461  ;;  %3441 = vmatprep.subr.bf16.mxu0 %v13314_v20 }
 0x1be   : > { %12325 = vmatpush3.bf16.msra.mxu1 %v13311_v25  ;;  %v1417_v10 = vadd.f32 %v1400_v58, %v1347_v44  ;;  %v1610_v40 = vsel %vm1603_vm8, %v14636_v46, %v1600_v45  ;;  %v1471_v53 = vsel %vm1463_vm6, %v14686_v28, %v14705_v35  ;;  %v13327_v46 = vld [vmem:[%s16404_s4 + $0x360] ss:$12 sps:$4 sm:$0xff]   ;;  %v13334_v28 = vld [vmem:[%s16404_s4 + $0x37c] ss:$12 sps:$4 sm:$0xff]   ;;  %v13341_v44 = vld [vmem:[%s16404_s4 + $0x518] ss:$12 sps:$4 sm:$0xff]  }
 0x1bf   : > { %12326 = vmatprep.subr.bf16.mxu1 %v13315_v27  ;;  %v1488_v21 = vadd.f32 %v1471_v53, %v1418_v63  ;;  %v13339_v27 = vld [vmem:[%s16404_s4 + $0x394] ss:$12 sps:$4 sm:$0xff]   ;;  %v13344_v58 = vld [vmem:[%s16404_s4 + $0x3ac] ss:$12 sps:$4 sm:$0xff]   ;;  %vm3912_vm6 = vcmask 883712  }
 0x1c0   : > { %3442 = vmatpush1.bf16.msra.mxu0 %v13312_v29  ;;  %v1487_v55 = vadd.f32 %v1470_v31, %v1417_v10  ;;  %v13350_v53 = vld [vmem:[%s16404_s4 + $0x608] ss:$12 sps:$4 sm:$0xff]  }
 0x1c1   : > { %v1770_v23 = vpop.permute.xlu0 %1769  ;;  %v14719_v34 = vpop.permute.xlu1 %1531  ;;  %3443 = vmatprep.subr.bf16.mxu0 %v13319_v37 }
 0x1c2   : > { %12327 = vmatpush3.bf16.msra.mxu1 %v13316_v39  ;;  %v1557_v62 = vadd.f32 %v1540_v52, %v1487_v55  ;;  %v1782_v60 = vsel %vm1775_vm11, %v14651_v59, %v1770_v23  ;;  %v1541_v16 = vsel %vm1533_vm7, %v1530_v18, %v14719_v34  ;;  %v13331_v59 = vld [vmem:[%s16404_s4 + $0x4e8] ss:$12 sps:$4 sm:$0xff]   ;;  %v13332_v18 = vld [vmem:[%s16404_s4 + $0x378] ss:$12 sps:$4 sm:$0xff]   ;;  %v13346_v52 = vld [vmem:[%s16404_s4 + $0x530] ss:$12 sps:$4 sm:$0xff]  }
 0x1c3   : > { %12328 = vmatprep.subr.bf16.mxu1 %v13320_v3  ;;  %v1558_v36 = vadd.f32 %v1541_v16, %v1488_v21  ;;  %v13340_v39 = vld [vmem:[%s16404_s4 + $0x5d8] ss:$12 sps:$4 sm:$0xff]   ;;  %v13355_v21 = vld [vmem:[%s16404_s4 + $0x3f0] ss:$12 sps:$4 sm:$0xff]   ;;  %vm3962_vm7 = vcmask 744448  }
 0x1c4   : > { %3444 = vmatpush1.bf16.msra.mxu0 %v13317_v43  ;;  %v1627_v41 = vadd.f32 %v1610_v40, %v1557_v62  ;;  %v13353_v40 = vld [vmem:[%s16404_s4 + $0x3dc] ss:$12 sps:$4 sm:$0xff]  }
 0x1c5   : > { %v1845_v57 = vpop.permute.xlu0 %1844  ;;  %v14738_v4 = vpop.permute.xlu1 %1601  ;;  %3445 = vmatprep.subr.bf16.mxu0 %v13324_v38 }
 0x1c6   : > { %12329 = vmatpush3.bf16.msra.mxu1 %v13321_v47  ;;  %v1857_v9 = vsel %vm1850_vm9, %v14667_v26, %v1845_v57  ;;  %v1611_v12 = vsel %vm1603_vm8, %v1600_v45, %v14738_v4  ;;  %v1800_v13 = vadd.f32 %v1782_v60, %v1627_v41  ;;  %v1270_v26 = vmul.f32 %v14397_v14, %v14379_v6  ;;  %v13337_v6 = vld [vmem:[%s16404_s4 + $0x390] ss:$12 sps:$4 sm:$0xff]   ;;  %v13357_v60 = vld [vmem:[%s16404_s4 + $0x3f4] ss:$12 sps:$4 sm:$0xff]  }
 0x1c7   : > { %12330 = vmatprep.subr.bf16.mxu1 %v13325_v50  ;;  %v1628_v20 = vadd.f32 %v1611_v12, %v1558_v36  ;;  %v13359_v12 = vld [vmem:[%s16404_s4 + $0x408] ss:$12 sps:$4 sm:$0xff]  }
 0x1c8   : > { %3446 = vmatpush1.bf16.msra.mxu0 %v13322_v51  ;;  %v1875_v15 = vadd.f32 %v1857_v9, %v1800_v13  ;;  %v1349_v45 = vadd.f32 %v14688_v56, %v1270_v26  ;;  %v13362_v9 = vld [vmem:[%s16404_s4 + $0x650] ss:$12 sps:$4 sm:$0x7f]  }
 0x1c9   : > { %v1920_v0 = vpop.permute.xlu0 %1919  ;;  %v1772_v5 = vpop.permute.xlu1 %1771  ;;  %3447 = vmatprep.subr.bf16.mxu0 %v13329_v32  ;;  %v3355_v36 = vsel %vm3347_vm13, %v13362_v9, 0  ;;  %v13369_v26 = vld [vmem:[%s16404_s4 + $0x450] ss:$12 sps:$4 sm:$0xff]  }
 0x1ca   : > { %12331 = vmatpush3.bf16.msra.mxu1 %v13326_v61  ;;  %v1932_v17 = vsel %vm1925_vm10, %v14677_v1, %v1920_v0  ;;  %v1783_v30 = vsel %vm1775_vm11, %v1770_v23, %v1772_v5  ;;  %v13336_v1 = vld [vmem:[%s16404_s4 + $0x500] ss:$12 sps:$4 sm:$0xff]   ;;  %v1419_v14 = vadd.f32 %v14695_v24, %v1349_v45  ;;  %v13342_v24 = vld [vmem:[%s16404_s4 + $0x3a8] ss:$12 sps:$4 sm:$0xff]  }
 0x1cb   : > { %12332 = vmatprep.subr.bf16.mxu1 %v13330_v49  ;;  %v1950_v37 = vadd.f32 %v1932_v17, %v1875_v15  ;;  %v1801_v22 = vadd.f32 %v1783_v30, %v1628_v20  ;;  %v13351_v49 = vld [vmem:[%s16404_s4 + $0x3d8] ss:$12 sps:$4 sm:$0xff]   ;;  %v13372_v20 = vld [vmem:[%s16404_s4 + $0x468] ss:$12 sps:$4 sm:$0xff]  }
 0x1cc   : > { %3448 = vmatpush1.bf16.msra.mxu0 %v13327_v46  ;;  %v1489_v56 = vadd.f32 %v14705_v35, %v1419_v14  ;;  %v13354_v46 = vld [vmem:[%s16404_s4 + $0x620] ss:$12 sps:$4 sm:$0xff]   ;;  %v13366_v30 = vld [vmem:[%s16404_s4 + $0x438] ss:$12 sps:$4 sm:$0xff]   ;;  %v13392_v14 = vld [vmem:[%s16404_s4 + $0x4fc] ss:$12 sps:$4 sm:$0xff]  }
 0x1cd   : > { %v1847_v25 = vpop.permute.xlu1 %1846  ;;  %3449 = vmatprep.subr.bf16.mxu0 %v13334_v28  ;;  %v1965_v23 = vadd.f32 %v14390_v11, %v1950_v37  ;;  %v1774_v38 = vpop.permute.xlu0 %1773  ;;  %v13374_v15 = vld [vmem:[%s16404_s4 + $0x46c] ss:$12 sps:$4 sm:$0xff]   ;;  %v13383_v45 = vld [vmem:[%s16404_s4 + $0x4b4] ss:$12 sps:$4 sm:$0xff]   ;;  %v13381_v37 = vld [vmem:[%s16404_s4 + $0x4b0] ss:$12 sps:$4 sm:$0xff]  }
 0x1ce   : > { %12333 = vmatpush3.bf16.msra.mxu1 %v13331_v59  ;;  %v1858_v29 = vsel %vm1850_vm9, %v1845_v57, %v1847_v25  ;;  %v1559_v47 = vadd.f32 %v14719_v34, %v1489_v56  ;;  %v1784_v35 = vsel %vm1775_vm11, %v1772_v5, %v1774_v38  ;;  %v13347_v34 = vld [vmem:[%s16404_s4 + $0x3c0] ss:$12 sps:$4 sm:$0xff]   ;;  %v13358_v5 = vld [vmem:[%s16404_s4 + $0x638] ss:$12 sps:$4 sm:$0xff]   ;;  %v13404_v38 = vld [vmem:[%s16404_s4 + $0x55c] ss:$12 sps:$4 sm:$0xff]  }
 0x1cf   : > { %12334 = vmatprep.subr.bf16.mxu1 %v13335_v7  ;;  %v1876_v42 = vadd.f32 %v1858_v29, %v1801_v22  ;;  %v1974_v51 = vmax.f32 %v1965_v23, 0.0  ;;  %v13365_v59 = vld [vmem:[%s16404_s4 + $0x424] ss:$12 sps:$4 sm:$0xff]   ;;  %v13368_v7 = vld [vmem:[%s16404_s4 + $0x43c] ss:$12 sps:$4 sm:$0xff]   ;;  %vm16349_vm11 = vcmask 736256  }
 0x1d0   : > { %3450 = vmatpush1.bf16.msra.mxu0 %v13332_v18  ;;  %v1629_v54 = vadd.f32 %v14738_v4, %v1559_v47  ;;  %v13828_v4 = vmov 0.0   ;;  %v13371_v18 = vld [vmem:[%s16404_s4 + $0x454] ss:$12 sps:$4 sm:$0xff]   ;;  %v13380_v29 = vld [vmem:[%s16404_s4 + $0x49c] ss:$12 sps:$4 sm:$0xff]  }
 0x1d1   : > { %v1922_v3 = vpop.permute.xlu1 %1921  ;;  %3451 = vmatprep.subr.bf16.mxu0 %v13339_v27  ;;  %v1924_v61 = vpop.permute.xlu0 %1923  ;;  %v14794_v63 = vpack.c.bf16 %v1974_v51, %v1974_v51  ;;  %v13375_v27 = vld [vmem:[%s16404_s4 + $0x480] ss:$12 sps:$4 sm:$0xff]   ;;  %v13401_v56 = vld [vmem:[%s16404_s4 + $0x544] ss:$12 sps:$4 sm:$0xff]  }
 0x1d2   : > { %12335 = vmatpush3.bf16.msra.mxu1 %v13336_v1  ;;  %v1933_v43 = vsel %vm1925_vm10, %v1920_v0, %v1922_v3  ;;  %v1802_v57 = vadd.f32 %v1784_v35, %v1629_v54  ;;  %v1934_v16 = vsel %vm1925_vm10, %v1922_v3, %v1924_v61  ;;  %v13361_v0 = vld [vmem:[%s16404_s4 + $0x40c] ss:$12 sps:$4 sm:$0xff]   ;;  %v13395_v3 = vld [vmem:[%s16404_s4 + $0x514] ss:$12 sps:$4 sm:$0xff]   ;;  %v13416_v35 = vld [vmem:[%s16404_s4 + $0x5bc] ss:$12 sps:$4 sm:$0xff]  }
 0x1d3   : > { %v1951_v31 = vadd.f32 %v1933_v43, %v1876_v42  ;;  %12336 = vmatprep.subr.bf16.mxu1 %v13340_v39  ;;  %v13378_v1 = vld [vmem:[%s16404_s4 + $0x498] ss:$12 sps:$4 sm:$0xff]   ;;  %v13384_v39 = vld [vmem:[%s16404_s4 + $0x4c8] ss:$12 sps:$4 sm:$0xff]   ;;  %v13399_v23 = vld [vmem:[%s16404_s4 + $0x540] ss:$12 sps:$4 sm:$0xff]  }
 0x1d4   : > { %3452 = vmatpush1.bf16.msra.mxu0 %v13337_v6  ;;  %v13386_v22 = vld [vmem:[%s16404_s4 + $0x4cc] ss:$12 sps:$4 sm:$0xff]   ;;  %v13419_v54 = vld [vmem:[%s16404_s4 + $0x5d4] ss:$12 sps:$4 sm:$0xff]   ;;  %v13417_v51 = vld [vmem:[%s16404_s4 + $0x5d0] ss:$12 sps:$4 sm:$0xff]  }
 0x1d5   : > { %v1849_v10 = vpop.permute.xlu1 %1848  ;;  %3453 = vmatprep.subr.bf16.mxu0 %v13344_v58  ;;  %v1966_v50 = vadd.f32 %v14390_v11, %v1951_v31  ;;  %v13387_v6 = vld [vmem:[%s16404_s4 + $0x4e0] ss:$12 sps:$4 sm:$0xff]   ;;  %v13390_v42 = vld [vmem:[%s16404_s4 + $0x4f8] ss:$12 sps:$4 sm:$0xff]   ;;  %v13393_v58 = vld [vmem:[%s16404_s4 + $0x510] ss:$12 sps:$4 sm:$0xff]  }
 0x1d6   : > { %12337 = vmatpush3.bf16.msra.mxu1 %v13341_v44  ;;  %v1859_v19 = vsel %vm1850_vm9, %v1847_v25, %v1849_v10  ;;  %v13377_v25 = vld [vmem:[%s16404_s4 + $0x484] ss:$12 sps:$4 sm:$0xff]   ;;  %v13398_v43 = vld [vmem:[%s16404_s4 + $0x52c] ss:$12 sps:$4 sm:$0xff]   ;;  %v13396_v44 = vld [vmem:[%s16404_s4 + $0x528] ss:$12 sps:$4 sm:$0xff]  }
 0x1d7   : > { %12338 = vmatprep.subr.bf16.mxu1 %v13345_v33  ;;  %v1975_v55 = vmax.f32 %v1966_v50, 0.0  ;;  %v1877_v62 = vadd.f32 %v1859_v19, %v1802_v57  ;;  %v13402_v31 = vld [vmem:[%s16404_s4 + $0x558] ss:$12 sps:$4 sm:$0xff]   ;;  %v13407_v33 = vld [vmem:[%s16404_s4 + $0x574] ss:$12 sps:$4 sm:$0xff]   ;;  %vm16325_vm9 = vcmask 1043456  }
 0x1d8   : > { %3454 = vmatpush1.bf16.msra.mxu0 %v13342_v24  ;;  %v13405_v24 = vld [vmem:[%s16404_s4 + $0x570] ss:$12 sps:$4 sm:$0xff]   ;;  %v13410_v47 = vld [vmem:[%s16404_s4 + $0x58c] ss:$12 sps:$4 sm:$0xff]   ;;  %v13408_v10 = vld [vmem:[%s16404_s4 + $0x588] ss:$12 sps:$4 sm:$0xff]  }
 0x1d9   : > { %3455 = vmatprep.subr.bf16.mxu0 %v13349_v8  ;;  %v14788_v32 = vpack.c.bf16 %v1975_v55, %v1975_v55  ;;  %v1952_v41 = vadd.f32 %v1934_v16, %v1877_v62  ;;  %v13413_v8 = vld [vmem:[%s16404_s4 + $0x5a4] ss:$12 sps:$4 sm:$0xff]   ;;  %v13411_v50 = vld [vmem:[%s16404_s4 + $0x5a0] ss:$12 sps:$4 sm:$0xff]   ;;  %v13420_v19 = vld [vmem:[%s16404_s4 + $0x5e8] ss:$12 sps:$4 sm:$0xff]  }
 0x1da   : > { %12339 = vmatpush3.bf16.msra.mxu1 %v13346_v52  ;;  %v13414_v52 = vld [vmem:[%s16404_s4 + $0x5b8] ss:$12 sps:$4 sm:$0xff]   ;;  %v13423_v57 = vld [vmem:[%s16404_s4 + $0x600] ss:$12 sps:$4 sm:$0xff]   ;;  %v13429_v61 = vld [vmem:[%s16404_s4 + $0x630] ss:$12 sps:$4 sm:$0xff]  }
 0x1db   : > { %3714 = vmatprep.mubr.bf16.mxu1 %v14788_v32  ;;  %12836 = vmatprep.subr.bf16.mxu1 %v13828_v4  ;;  %v1967_v28 = vadd.f32 %v14390_v11, %v1952_v41  ;;  %v13363_v11 = vld [vmem:[%s16404_s4 + $0x420] ss:$12 sps:$4 sm:$0xff]   ;;  %vm4018_vm10 = vcmask 588800  }
 0x1dc   : > { %3456 = vmatpush1.bf16.msra.mxu0 %v13347_v34  ;;  %v13422_v55 = vld [vmem:[%s16404_s4 + $0x5ec] ss:$12 sps:$4 sm:$0xff]   ;;  %v13425_v34 = vld [vmem:[%s16404_s4 + $0x604] ss:$12 sps:$4 sm:$0xff]  }
 0x1dd   : > { %3715 = vmatmul.mubr.bf16.vlgmr.msra.gmra.mrb[12].mxu1 %v14794_v63  ;;  %3457 = vmatprep.subr.bf16.mxu0 %v13353_v40  ;;  %v1976_v13 = vmax.f32 %v1967_v28, 0.0  ;;  %v13426_v40 = vld [vmem:[%s16404_s4 + $0x618] ss:$12 sps:$4 sm:$0xff]  }
 0x1de   : > { %12837 = vmatpush3.bf16.msra.mxu1 %v13350_v53  ;;  %12844 = vmatprep.mubr.msk.bf16.mxu1 %vm16330_vm12, %v13828_v4  ;;  %v13431_v53 = vld [vmem:[%s16404_s4 + $0x634] ss:$12 sps:$4 sm:$0xff]   ;;  %v13432_v62 = vld [vmem:[%s16404_s4 + $0x64c] ss:$12 sps:$4 sm:$0x7f]  }
 0x1df   : > { %12838 = vmatprep.subr.bf16.mxu1 %v13828_v4  ;;  %v14816_v17 = vpack.c.bf16 %v1976_v13, %v1976_v13 }
 0x1e0   : > { %3458 = vmatpush1.bf16.msra.mxu0 %v13351_v49  ;;  %v13434_v49 = vld [vmem:[%s16404_s4 + $0x648] ss:$12 sps:$4 sm:$0x7f]  }
 0x1e1   : > { %3459 = vmatprep.subr.bf16.mxu0 %v13357_v60  ;;  %v3349_v60 = vsel %vm3347_vm13, %v13434_v49, 0 }
 0x1e2   : > { %12839 = vmatpush3.bf16.msra.mxu1 %v13354_v46 }
 0x1e3   : > { %12840 = vmatprep.subr.bf16.mxu1 %v13828_v4 }
 0x1e4   : > { %3460 = vmatpush1.bf16.msra.mxu0 %v13355_v21 }
 0x1e5   : > { %3461 = vmatprep.subr.bf16.mxu0 %v13361_v0 }
 0x1e6   : > { %12841 = vmatpush3.bf16.msra.mxu1 %v13358_v5 }
 0x1e7   : > { %12842 = vmatprep.subr.bf16.mxu1 %v13828_v4 }
 0x1e8   : > { %3462 = vmatpush1.bf16.msra.mxu0 %v13359_v12 }
 0x1e9   : > { %3463 = vmatprep.subr.bf16.mxu0 %v13365_v59 }
 0x1ea   : > { %12843 = vmatpush3.bf16.msra.mxu1 %v3355_v36 }
 0x1ec   : > { %3464 = vmatpush1.bf16.msra.mxu0 %v13363_v11 }
 0x1ed   : > { %12845 = vmatmul.mubr.msk.bf16.vlgmr.msra.gmra.mrb[16].mxu1 %vm3343_vm14, %v14816_v17  ;;  %3465 = vmatprep.subr.bf16.mxu0 %v13368_v7 }
 0x1ee   : > { %4064 = vmatprep.mubr.bf16.mxu1 %v13819_v2 }
 0x1f0   : > { %3466 = vmatpush1.bf16.msra.mxu0 %v13366_v30 }
 0x1f1   : > { %3467 = vmatprep.subr.bf16.mxu0 %v13371_v18 }
 0x1f4   : > { %3468 = vmatpush1.bf16.msra.mxu0 %v13369_v26 }
 0x1f5   : > { %3469 = vmatprep.subr.bf16.mxu0 %v13374_v15 }
 0x1f8   : > { %3470 = vmatpush1.bf16.msra.mxu0 %v13372_v20 }
 0x1f9   : > { %3480 = vmatprep.subr.bf16.mxu0 %v13377_v25 }
 0x1fb   : > { %3472 = vmatmul.mubr.bf16.vlgmr.msra.gmra.mrb[0].mxu0 %v14700_v48  ;;  %v13389_v48 = vld [vmem:[%s16404_s4 + $0x4e4] ss:$12 sps:$4 sm:$0xff]  }
 0x1fc   : > { %3481 = vmatpush1.bf16.msra.mxu0 %v13375_v27  ;;  %3512 = vmatprep.mubr.bf16.mxu0 %v14788_v32  ;;  %v13428_v32 = vld [vmem:[%s16404_s4 + $0x61c] ss:$12 sps:$4 sm:$0xff]   ;;  %s16425_s4 = smov 114  }
 0x1fd   : > { %3482 = vmatprep.subr.bf16.mxu0 %v13380_v29 }
 0x200   : > { %3483 = vmatpush1.bf16.msra.mxu0 %v13378_v1 }
 0x201   : > { %3484 = vmatprep.subr.bf16.mxu0 %v13383_v45 }
 0x204   : > { %3485 = vmatpush1.bf16.msra.mxu0 %v13381_v37 }
 0x205   : > { %3486 = vmatprep.subr.bf16.mxu0 %v13386_v22 }
 0x208   : > { %3487 = vmatpush1.bf16.msra.mxu0 %v13384_v39 }
 0x209   : > { %3488 = vmatprep.subr.bf16.mxu0 %v13389_v48 }
 0x20c   : > { %3489 = vmatpush1.bf16.msra.mxu0 %v13387_v6 }
 0x20d   : > { %3490 = vmatprep.subr.bf16.mxu0 %v13392_v14 }
 0x210   : > { %3491 = vmatpush1.bf16.msra.mxu0 %v13390_v42 }
 0x211   : > { %3492 = vmatprep.subr.bf16.mxu0 %v13395_v3 }
 0x214   : > { %3493 = vmatpush1.bf16.msra.mxu0 %v13393_v58 }
 0x215   : > { %3494 = vmatprep.subr.bf16.mxu0 %v13398_v43 }
 0x218   : > { %3495 = vmatpush1.bf16.msra.mxu0 %v13396_v44 }
 0x219   : > { %3496 = vmatprep.subr.bf16.mxu0 %v13401_v56 }
 0x21c   : > { %3497 = vmatpush1.bf16.msra.mxu0 %v13399_v23 }
 0x21d   : > { %3498 = vmatprep.subr.bf16.mxu0 %v13404_v38 }
 0x220   : > { %3499 = vmatpush1.bf16.msra.mxu0 %v13402_v31 }
 0x221   : > { %3500 = vmatprep.subr.bf16.mxu0 %v13407_v33 }
 0x224   : > { %3501 = vmatpush1.bf16.msra.mxu0 %v13405_v24 }
 0x225   : > { %3502 = vmatprep.subr.bf16.mxu0 %v13410_v47  ;;  %v4012_v47 = vld [vmem:[%s13876_s21] sm:$0xff] }
 0x228   : > { %3503 = vmatpush1.bf16.msra.mxu0 %v13408_v10 }
 0x229   : > { %3504 = vmatprep.subr.bf16.mxu0 %v13413_v8 }
 0x22c   : > { %3505 = vmatpush1.bf16.msra.mxu0 %v13411_v50 }
 0x22d   : > { %3506 = vmatprep.subr.bf16.mxu0 %v13416_v35 }
 0x230   : > { %3507 = vmatpush1.bf16.msra.mxu0 %v13414_v52 }
 0x231   : > { %3508 = vmatprep.subr.bf16.mxu0 %v13419_v54 }
 0x234   : > { %3509 = vmatpush1.bf16.msra.mxu0 %v13417_v51 }
 0x235   : > { %3510 = vmatprep.subr.bf16.mxu0 %v13422_v55 }
 0x238   : > { %3511 = vmatpush1.bf16.msra.mxu0 %v13420_v19 }
 0x239   : > { %3521 = vmatprep.subr.bf16.mxu0 %v13425_v34 }
 0x23b   : > { %3513 = vmatmul.mubr.bf16.vlgmr.msra.gmra.mrb[0].mxu0 %v14794_v63 }
 0x23c   : > { %3522 = vmatpush1.bf16.msra.mxu0 %v13423_v57  ;;  %3553 = vmatprep.mubr.bf16.mxu0 %v13819_v2 }
 0x23d   : > { %3523 = vmatprep.subr.bf16.mxu0 %v13428_v32 }
 0x240   : > { %3524 = vmatpush1.bf16.msra.mxu0 %v13426_v40 }
 0x241   : > { %3525 = vmatprep.subr.bf16.mxu0 %v13431_v53 }
 0x244   : > { %3526 = vmatpush1.bf16.msra.mxu0 %v13429_v61 }
 0x245   : > { %11742 = vmatprep.subr.msk.bf16.mxu0 %vm3347_vm13, %v13432_v62 }
 0x248   : > { %3528 = vmatpush1.bf16.msra.mxu0 %v3349_v60 }
 0x24b   : > { %11743 = vmatmul.mubr.msk.bf16.vlgmr.msra.gmra.mrb[0].mxu0 %vm3343_vm14, %v14816_v17  ;;  %vm4476_vm14 = vcmask 244736  }
 0x24c   : > { %4562 = vmatprep.mubr.bf16.mxu0 %v13819_v2 }
 0x24e   : > { %v12274_v63 = vpop.f32.mrb[0].mxu1 }
 0x24f   : > { %v12275_v16 = vpop.f32.mrb[1].mxu1 }
 0x250   : > { %v12276_v46 = vadd.f32 %v12275_v16, %v12274_v63  ;;  %v12277_v41 = vpop.f32.mrb[2].mxu1 }
 0x251   : > { %v12278_v21 = vpop.f32.mrb[3].mxu1 }
 0x26f   : > { %v12296_v0 = vpop.f32.mrb[4].mxu1 }
 0x270   : > { %v12297_v5 = vpop.f32.mrb[5].mxu1 }
 0x271   : > { %v12298_v28 = vadd.f32 %v12297_v5, %v12296_v0  ;;  %v12299_v9 = vpop.f32.mrb[6].mxu1 }
 0x272   : > { %v12300_v12 = vpop.f32.mrb[7].mxu1 }
 0x273   : > { %v3637_v59 = vadd.f32 %v12298_v28, %v12276_v46 }
 0x290   : > { %v12318_v13 = vpop.f32.mrb[8].mxu1 }
 0x291   : > { %v12319_v36 = vpop.f32.mrb[9].mxu1 }
 0x292   : > { %v12320_v11 = vadd.f32 %v12319_v36, %v12318_v13  ;;  %v12321_v7 = vpop.f32.mrb[10].mxu1 }
 0x293   : > { %v12322_v30 = vpop.f32.mrb[11].mxu1 }
 0x294   : > { %v3677_v18 = vadd.f32 %v12320_v11, %v3637_v59 }
 0x2b0   : > { %v12340_v17 = vpop.f32.mrb[12].mxu1 }
 0x2b1   : > { %v12341_v26 = vpop.f32.mrb[13].mxu1 }
 0x2b2   : > { %v12342_v15 = vadd.f32 %v12341_v26, %v12340_v17  ;;  %v12343_v20 = vpop.f32.mrb[14].mxu1 }
 0x2b3   : > { %v12344_v25 = vpop.f32.mrb[15].mxu1 }
 0x2b4   : > { %v3717_v27 = vadd.f32 %v12342_v15, %v3677_v18 }
 0x2c0   : > { %v3756_v29 = vpop.f32.mrb[16].mxu1 }
 0x2c1   : > { %v3757_v1 = vadd.f32 %v3756_v29, %v3717_v27  ;;  %v12846_v45 = vpop.f32.mrb[17].mxu1 }
 0x2c2   : > { %v3759_v37 = vpop.f32.mrb[18].mxu1 }
 0x2c3   : > { %v12255_v22 = vpack.c.bf16 %v3757_v1, %v3757_v1  ;;  %v12847_v39 = vpop.f32.mrb[19].mxu1 }
 0x2c5   : > { %3777 = vst.msk [vmem:[#allocation3 + $0x8] sm:$0xf] %vm3776_vm15, %v12255_v22 }
 0x2cc   : > { %v13435_v48 = vld [vmem:[#allocation3 + $0x8] ss:$0 sps:$4 sm:$0xff]  }
 0x2cd   : > { %v13436_v6 = vld [vmem:[#allocation3 + $0x8] ss:$0 sps:$4 sm:$0xff]   ;;  %3794 = vst.msk [vmem:[#allocation14 + $0x10] sm:$0xf] %vm16331_vm0, %v13435_v48 }
 0x2ce   : > { %v13437_v14 = vld [vmem:[#allocation3 + $0x8] ss:$0 sps:$4 sm:$0xff]   ;;  %3835 = vrot.lane.b32.xlu1 %v13436_v6, %s16362_s18 }
 0x2cf   : > { %3809 = vrot.lane.b32.xlu0 %v13437_v14, %s16358_s16  ;;  %v13438_v42 = vld [vmem:[#allocation3 + $0x8] ss:$0 sps:$4 sm:$0xff]  }
 0x2d0   : > { %v13439_v3 = vld [vmem:[#allocation3 + $0x8] ss:$0 sps:$4 sm:$0xff]  }
 0x2d1   : > { %v13440_v58 = vld [vmem:[#allocation3 + $0x8] ss:$0 sps:$4 sm:$0xff]  }
 0x2d2   : > { %3860 = vrot.lane.b32.xlu1 %v13438_v42, %s16332_s0  ;;  %v13441_v43 = vld [vmem:[#allocation3 + $0x8] ss:$0 sps:$4 sm:$0xff]  }
 0x2d3   : > { %v13442_v44 = vld [vmem:[#allocation3 + $0x8] ss:$0 sps:$4 sm:$0xff]  }
 0x2d4   : > { %v13443_v52 = vld [vmem:[#allocation3 + $0x8] ss:$0 sps:$4 sm:$0xff]  }
 0x2d6   : > { %3885 = vrot.lane.b32.xlu1 %v13439_v3, %s16328_s11 }
 0x2da   : > { %3910 = vrot.lane.b32.xlu1 %v13440_v58, %s16338_s15  ;;  %v3996_v58 = vld [vmem:[%s13871_s17] sm:$0xf] }
 0x2de   : > { %3935 = vrot.lane.b32.xlu1 %v13441_v43, %s16326_s26 }
 0x2e2   : > { %3960 = vrot.lane.b32.xlu1 %v13442_v44, %s16323_s22 }
 0x31e   : > { %v3555_v56 = vpop.f32.mrb[0].mxu0 }
 0x31f   : > { %v3557_v23 = vpop.f32.mrb[1].mxu0  ;;  %v13770_v33 = vpack.c.bf16 %v3555_v56, %v3555_v56 }
 0x320   : > { %v3559_v38 = vpop.f32.mrb[2].mxu0  ;;  %v13771_v24 = vpack.c.bf16 %v3557_v23, %v3557_v23 }
 0x321   : > { %v3560_v31 = vpop.f32.mrb[3].mxu0  ;;  %3791 = vst [vmem:[#allocation14] sm:$0xf] %v13770_v33 }
 0x322   : > { %3792 = vst [vmem:[#allocation14 + $0x8] sm:$0xf] %v13771_v24  ;;  %3833 = vrot.lane.b32.xlu0 %v13771_v24, %s16362_s18  ;;  %3807 = vrot.lane.b32.xlu1 %v13771_v24, %s16358_s16  ;;  %v13446_v31 = vld [vmem:[%s16401_s12 + $0x4] ss:$12 sps:$4 sm:$0xff]  }
 0x326   : > { %3858 = vrot.lane.b32.xlu0 %v13771_v24, %s16332_s0  ;;  %3805 = vrot.lane.b32.xlu1 %v13770_v33, %s16358_s16 }
 0x32a   : > { %3831 = vrot.lane.b32.xlu0 %v13770_v33, %s16362_s18  ;;  %3856 = vrot.lane.b32.xlu1 %v13770_v33, %s16332_s0 }
 0x32e   : > { %3883 = vrot.lane.b32.xlu0 %v13771_v24, %s16328_s11  ;;  %3906 = vrot.lane.b32.xlu1 %v13770_v33, %s16338_s15 }
 0x332   : > { %3908 = vrot.lane.b32.xlu0 %v13771_v24, %s16338_s15  ;;  %3956 = vrot.lane.b32.xlu1 %v13770_v33, %s16323_s22 }
 0x336   : > { %3881 = vrot.lane.b32.xlu0 %v13770_v33, %s16328_s11  ;;  %3983 = vrot.lane.b32.xlu1 %v13771_v24, %s16321_s23 }
 0x33a   : > { %3933 = vrot.lane.b32.xlu0 %v13771_v24, %s16326_s26  ;;  %4015 = vperm.xlu1 %13162, %v4012_v47   ;;  %v13449_v47 = vld [vmem:[%s16401_s12 + $0x1c] ss:$12 sps:$4 sm:$0xff]  }
 0x33e   : > { %3958 = vrot.lane.b32.xlu0 %v13771_v24, %s16323_s22  ;;  %v13444_v24 = vld [vmem:[%s16401_s12] ss:$12 sps:$4 sm:$0xff]  }
 0x340   : > { %v3836_v10 = vpop.permute.xlu1 %3835 }
 0x341   : > { %v3810_v8 = vpop.permute.xlu0 %3809  ;;  %3845 = vst.msk [vmem:[#allocation14 + $0x28] sm:$0xf] %vm16331_vm0, %v3836_v10 }
 0x342   : > { %3820 = vst.msk [vmem:[#allocation14 + $0x10] sm:$0xf0] %vm16346_vm1, %v3810_v8  ;;  %3931 = vrot.lane.b32.xlu0 %v13770_v33, %s16326_s26 }
 0x344   : > { %v3861_v50 = vpop.permute.xlu1 %3860 }
 0x345   : > { %3870 = vst.msk [vmem:[#allocation14 + $0x28] sm:$0xf0] %vm16346_vm1, %v3861_v50 }
 0x346   : > { %3981 = vrot.lane.b32.xlu0 %v13770_v33, %s16321_s23 }
 0x348   : > { %v3886_v35 = vpop.permute.xlu1 %3885 }
 0x349   : > { %3895 = vst.msk [vmem:[#allocation14 + $0x40] sm:$0xf] %vm16331_vm0, %v3886_v35  ;;  %v3999_v43 = vld [vmem:[#allocation14 + $0x10] sm:$0xff] }
 0x34a   : > { %3985 = vrot.lane.b32.xlu0 %v13443_v52, %s16321_s23  ;;  %v13453_v52 = vld [vmem:[%s16401_s12 + $0x48] ss:$12 sps:$4 sm:$0xff]  }
 0x34c   : > { %v3911_v54 = vpop.permute.xlu1 %3910  ;;  %v4002_v44 = vld [vmem:[#allocation14 + $0x28] sm:$0xff] }
 0x34d   : > { %3920 = vst.msk [vmem:[#allocation14 + $0x40] sm:$0xf0] %vm16346_vm1, %v3911_v54 }
 0x350   : > { %v3936_v51 = vpop.permute.xlu1 %3935 }
 0x351   : > { %3945 = vst.msk [vmem:[#allocation14 + $0x58] sm:$0xf] %vm16331_vm0, %v3936_v51 }
 0x354   : > { %v3961_v55 = vpop.permute.xlu1 %3960  ;;  %v4005_v56 = vld [vmem:[#allocation14 + $0x40] sm:$0xff] }
 0x355   : > { %3970 = vst.msk [vmem:[#allocation14 + $0x58] sm:$0xf0] %vm16346_vm1, %v3961_v55 }
 0x35c   : > { %v4008_v23 = vld [vmem:[#allocation14 + $0x58] sm:$0xff] }
 0x394   : > { %v3834_v19 = vpop.permute.xlu0 %3833  ;;  %v3808_v34 = vpop.permute.xlu1 %3807 }
 0x395   : > { %v3839_v57 = vsel %vm1393_vm4, %v3834_v19, %v3836_v10  ;;  %v3813_v32 = vsel %vm1323_vm3, %v3808_v34, %v3810_v8  ;;  %v13447_v10 = vld [vmem:[%s16401_s12 + $0x18] ss:$12 sps:$4 sm:$0xff]   ;;  %v13452_v8 = vld [vmem:[%s16401_s12 + $0x34] ss:$12 sps:$4 sm:$0xff]  }
 0x396   : > { %3844 = vst [vmem:[#allocation14 + $0x20] sm:$0xf] %v3839_v57  ;;  %3818 = vst [vmem:[#allocation14 + $0x8] sm:$0xf0] %v3813_v32  ;;  %v13462_v57 = vld [vmem:[%s16401_s12 + $0x90] ss:$12 sps:$4 sm:$0xff]  }
 0x397   : > { %v13467_v32 = vld [vmem:[%s16401_s12 + $0xac] ss:$12 sps:$4 sm:$0xff]  }
 0x398   : > { %v3859_v40 = vpop.permute.xlu0 %3858  ;;  %v3806_v53 = vpop.permute.xlu1 %3805 }
 0x399   : > { %v3864_v61 = vsel %vm3862_vm2, %v3859_v40, %v3861_v50  ;;  %v3812_v62 = vsel %vm1323_vm3, %v3806_v53, %v3808_v34  ;;  %v13450_v50 = vld [vmem:[%s16401_s12 + $0x30] ss:$12 sps:$4 sm:$0xff]   ;;  %v13464_v34 = vld [vmem:[%s16401_s12 + $0x94] ss:$12 sps:$4 sm:$0xff]  }
 0x39a   : > { %3869 = vst [vmem:[#allocation14 + $0x20] sm:$0xf0] %v3864_v61  ;;  %3817 = vst [vmem:[#allocation14] sm:$0xf0] %v3812_v62  ;;  %v13470_v53 = vld [vmem:[%s16401_s12 + $0xc4] ss:$12 sps:$4 sm:$0xff]  }
 0x39b   : > { %v13468_v61 = vld [vmem:[%s16401_s12 + $0xc0] ss:$12 sps:$4 sm:$0xff]   ;;  %v13473_v62 = vld [vmem:[%s16401_s12 + $0xdc] ss:$12 sps:$4 sm:$0xff]  }
 0x39c   : > { %v3832_v49 = vpop.permute.xlu0 %3831  ;;  %v3857_v60 = vpop.permute.xlu1 %3856 }
 0x39d   : > { %v3838_v63 = vsel %vm1393_vm4, %v3832_v49, %v3834_v19  ;;  %v3863_v16 = vsel %vm3862_vm2, %v3857_v60, %v3859_v40  ;;  %v3998_v46 = vld [vmem:[#allocation14 + $0x8] sm:$0xff]  ;;  %v13459_v19 = vld [vmem:[%s16401_s12 + $0x78] ss:$12 sps:$4 sm:$0xff]   ;;  %v13476_v60 = vld [vmem:[%s16401_s12 + $0xf4] ss:$12 sps:$4 sm:$0xff]  }
 0x39e   : > { %3843 = vst [vmem:[#allocation14 + $0x18] sm:$0xf] %v3838_v63  ;;  %3868 = vst [vmem:[#allocation14 + $0x18] sm:$0xf0] %v3863_v16  ;;  %4032 = vmatprep.subr.bf16.mxu1 %v3998_v46  ;;  %v13465_v40 = vld [vmem:[%s16401_s12 + $0xa8] ss:$12 sps:$4 sm:$0xff]  }
 0x39f   : > { %v13471_v49 = vld [vmem:[%s16401_s12 + $0xd8] ss:$12 sps:$4 sm:$0xff]   ;;  %v13474_v63 = vld [vmem:[%s16401_s12 + $0xf0] ss:$12 sps:$4 sm:$0xff]   ;;  %v13477_v46 = vld [vmem:[%s16401_s12 + $0x108] ss:$12 sps:$4 sm:$0xff]  }
 0x3a0   : > { %v3884_v41 = vpop.permute.xlu0 %3883  ;;  %v3907_v28 = vpop.permute.xlu1 %3906  ;;  %v13479_v16 = vld [vmem:[%s16401_s12 + $0x10c] ss:$12 sps:$4 sm:$0xff]  }
 0x3a1   : > { %v3889_v21 = vsel %vm3887_vm5, %v3884_v41, %v3886_v35  ;;  %v3997_v0 = vld [vmem:[#allocation14] sm:$0xff]  ;;  %v13455_v35 = vld [vmem:[%s16401_s12 + $0x4c] ss:$12 sps:$4 sm:$0xff]  }
 0x3a2   : > { %v4001_v5 = vld [vmem:[#allocation14 + $0x20] sm:$0xff]  ;;  %3894 = vst [vmem:[#allocation14 + $0x38] sm:$0xf] %v3889_v21  ;;  %4033 = vmatpush1.bf16.msra.mxu1 %v3997_v0 }
 0x3a3   : > { %4034 = vmatprep.subr.bf16.mxu1 %v4001_v5  ;;  %v13480_v21 = vld [vmem:[%s16401_s12 + $0x120] ss:$12 sps:$4 sm:$0xff]   ;;  %v13485_v0 = vld [vmem:[%s16401_s12 + $0x13c] ss:$12 sps:$4 sm:$0xff]   ;;  %v13483_v5 = vld [vmem:[%s16401_s12 + $0x138] ss:$12 sps:$4 sm:$0xff]  }
 0x3a4   : > { %v3909_v9 = vpop.permute.xlu0 %3908  ;;  %v3957_v17 = vpop.permute.xlu1 %3956 }
 0x3a5   : > { %v3913_v12 = vsel %vm3912_vm6, %v3907_v28, %v3909_v9  ;;  %v3914_v59 = vsel %vm3912_vm6, %v3909_v9, %v3911_v54  ;;  %v4000_v13 = vld [vmem:[#allocation14 + $0x18] sm:$0xff]  ;;  %v13458_v54 = vld [vmem:[%s16401_s12 + $0x64] ss:$12 sps:$4 sm:$0xff]  }
 0x3a6   : > { %3918 = vst [vmem:[#allocation14 + $0x30] sm:$0xf0] %v3913_v12  ;;  %3919 = vst [vmem:[#allocation14 + $0x38] sm:$0xf0] %v3914_v59  ;;  %4035 = vmatpush1.bf16.msra.mxu1 %v4000_v13  ;;  %v13486_v28 = vld [vmem:[%s16401_s12 + $0x150] ss:$12 sps:$4 sm:$0xff]  }
 0x3a7   : > { %v13488_v9 = vld [vmem:[%s16401_s12 + $0x154] ss:$12 sps:$4 sm:$0xff]   ;;  %v13491_v12 = vld [vmem:[%s16401_s12 + $0x16c] ss:$12 sps:$4 sm:$0xff]  }
 0x3a8   : > { %v3882_v36 = vpop.permute.xlu0 %3881  ;;  %v3984_v1 = vpop.permute.xlu1 %3983  ;;  %v13489_v59 = vld [vmem:[%s16401_s12 + $0x168] ss:$12 sps:$4 sm:$0xff]  }
 0x3a9   : > { %v3888_v11 = vsel %vm3887_vm5, %v3882_v36, %v3884_v41  ;;  %v13482_v41 = vld [vmem:[%s16401_s12 + $0x124] ss:$12 sps:$4 sm:$0xff]   ;;  %v13492_v13 = vld [vmem:[%s16401_s12 + $0xc8] ss:$12 sps:$4 sm:$0xff]   ;;  %v13498_v36 = vld [vmem:[%s16401_s12 + $0x180] ss:$12 sps:$4 sm:$0xff]  }
 0x3aa   : > { %3893 = vst [vmem:[#allocation14 + $0x30] sm:$0xf] %v3888_v11  ;;  %v13500_v11 = vld [vmem:[%s16401_s12 + $0x184] ss:$12 sps:$4 sm:$0xff]  }
 0x3ab   : > { %4530 = vmatprep.subr.bf16.mxu0 %v13500_v11 }
 0x3ac   : > { %v3934_v7 = vpop.permute.xlu0 %3933  ;;  %4531 = vmatpush1.bf16.msra.mxu0 %v13498_v36 }
 0x3ad   : > { %v3939_v30 = vsel %vm1603_vm8, %v3934_v7, %v3936_v51  ;;  %v4004_v18 = vld [vmem:[#allocation14 + $0x38] sm:$0xff] }
 0x3ae   : > { %3944 = vst [vmem:[#allocation14 + $0x50] sm:$0xf] %v3939_v30  ;;  %4036 = vmatprep.subr.bf16.mxu1 %v4004_v18  ;;  %v13456_v51 = vld [vmem:[%s16401_s12 + $0x60] ss:$12 sps:$4 sm:$0xff]  }
 0x3af   : > { %v13505_v30 = vld [vmem:[%s16401_s12 + $0x198] ss:$12 sps:$4 sm:$0x7f]  }
 0x3b0   : > { %v3959_v26 = vpop.permute.xlu0 %3958  ;;  %v4481_v18 = vsel %vm3347_vm13, %v13505_v30, 0 }
 0x3b1   : > { %v3963_v15 = vsel %vm3962_vm7, %v3957_v17, %v3959_v26  ;;  %v3964_v20 = vsel %vm3962_vm7, %v3959_v26, %v3961_v55  ;;  %v4003_v25 = vld [vmem:[#allocation14 + $0x30] sm:$0xff]  ;;  %v13461_v55 = vld [vmem:[%s16401_s12 + $0x7c] ss:$12 sps:$4 sm:$0xff]  }
 0x3b2   : > { %3968 = vst [vmem:[#allocation14 + $0x48] sm:$0xf0] %v3963_v15  ;;  %3969 = vst [vmem:[#allocation14 + $0x50] sm:$0xf0] %v3964_v20  ;;  %4037 = vmatpush1.bf16.msra.mxu1 %v4003_v25 }
 0x3b4   : > { %v3932_v27 = vpop.permute.xlu0 %3931 }
 0x3b5   : > { %v3938_v29 = vsel %vm1603_vm8, %v3932_v27, %v3934_v7  ;;  %v13503_v7 = vld [vmem:[%s16401_s12 + $0x19c] ss:$12 sps:$4 sm:$0x7f]  }
 0x3b6   : > { %3943 = vst [vmem:[#allocation14 + $0x48] sm:$0xf] %v3938_v29  ;;  %11831 = vmatprep.subr.msk.bf16.mxu0 %vm3347_vm13, %v13503_v7 }
 0x3b7   : > { %4533 = vmatpush1.bf16.msra.mxu0 %v4481_v18 }
 0x3b8   : > { %v3982_v45 = vpop.permute.xlu0 %3981  ;;  %12862 = vmatprep.subr.bf16.mxu0 %v13828_v4 }
 0x3b9   : > { %v3988_v37 = vsel %vm16349_vm11, %v3982_v45, %v3984_v1  ;;  %v4007_v22 = vld [vmem:[#allocation14 + $0x50] sm:$0xff]  ;;  %v4016_v17 = vpop.permute.xlu1 %4015 }
 0x3ba   : > { %3993 = vst [vmem:[#allocation14 + $0x60] sm:$0xf] %v3988_v37  ;;  %4038 = vmatprep.subr.bf16.mxu1 %v4007_v22  ;;  %v13493_v22 = vld [vmem:[%s16401_s12 + $0x8] ss:$12 sps:$4 sm:$0xff]  }
 0x3bc   : > { %v3986_v39 = vpop.permute.xlu0 %3985 }
 0x3bd   : > { %v3989_v48 = vsel %vm16349_vm11, %v3984_v1, %v3986_v39  ;;  %3995 = vst.msk [vmem:[#allocation14 + $0x70] sm:$0xf] %vm16331_vm0, %v3986_v39  ;;  %v4006_v6 = vld [vmem:[#allocation14 + $0x48] sm:$0xff] }
 0x3be   : > { %3994 = vst [vmem:[#allocation14 + $0x68] sm:$0xf] %v3989_v48  ;;  %4039 = vmatpush1.bf16.msra.mxu1 %v4006_v6  ;;  %v13494_v48 = vld [vmem:[%s16401_s12 + $0xe0] ss:$12 sps:$4 sm:$0xff]  }
 0x3bf   : > { %v13495_v6 = vld [vmem:[%s16401_s12 + $0x20] ss:$12 sps:$4 sm:$0xff]  }
 0x3c1   : > { %v4009_v14 = vld [vmem:[#allocation14 + $0x60] sm:$0xf] }
 0x3c2   : > { %v4024_v3 = vsel %vm16325_vm9, %v4009_v14, 0  ;;  %v13496_v14 = vld [vmem:[%s16401_s12 + $0xf8] ss:$12 sps:$4 sm:$0xff]  }
 0x3c4   : > { %v4011_v38 = vld [vmem:[#allocation14 + $0x70] sm:$0xf] }
 0x3c5   : > { %v4010_v42 = vld [vmem:[#allocation14 + $0x68] sm:$0xf]  ;;  %v4030_v33 = vsel %vm16325_vm9, %v4011_v38, 0 }
 0x3c6   : > { %11774 = vmatprep.subr.msk.bf16.mxu1 %vm16325_vm9, %v4010_v42  ;;  %v13497_v42 = vld [vmem:[%s16401_s12 + $0x38] ss:$12 sps:$4 sm:$0xff]  }
 0x3c7   : > { %4041 = vmatpush1.bf16.msra.mxu1 %v4024_v3  ;;  %v13501_v3 = vld [vmem:[%s16401_s12 + $0x110] ss:$12 sps:$4 sm:$0xff]  }
 0x3c8   : > { %12848 = vmatprep.subr.bf16.mxu1 %v13828_v4 }
 0x3ca   : > { %11775 = vmatmul.mubr.msk.bf16.vlgmr.msra.gmra.mrb[20].mxu1 %vm4018_vm10, %v3996_v58 }
 0x3cb   : > { %12849 = vmatpush3.bf16.msra.mxu1 %v3999_v43  ;;  %12858 = vmatprep.mubr.msk.bf16.mxu1 %vm16330_vm12, %v13828_v4  ;;  %v13506_v43 = vld [vmem:[%s16401_s12 + $0x128] ss:$12 sps:$4 sm:$0xff]  }
 0x3cc   : > { %12850 = vmatprep.subr.bf16.mxu1 %v13828_v4 }
 0x3cf   : > { %12851 = vmatpush3.bf16.msra.mxu1 %v4002_v44 }
 0x3d0   : > { %12852 = vmatprep.subr.bf16.mxu1 %v13828_v4 }
 0x3d3   : > { %12853 = vmatpush3.bf16.msra.mxu1 %v4005_v56 }
 0x3d4   : > { %12854 = vmatprep.subr.bf16.mxu1 %v13828_v4 }
 0x3d7   : > { %12855 = vmatpush3.bf16.msra.mxu1 %v4008_v23 }
 0x3d8   : > { %12856 = vmatprep.subr.bf16.mxu1 %v13828_v4 }
 0x3db   : > { %12857 = vmatpush3.bf16.msra.mxu1 %v4030_v33 }
 0x3dc   : > { %4489 = vmatprep.subr.bf16.mxu1 %v13446_v31  ;;  %v13507_v31 = vld [vmem:[%s16401_s12 + $0x68] ss:$12 sps:$4 sm:$0xff]  }
 0x3de   : > { %12859 = vmatmul.mubr.msk.bf16.vlgmr.msra.gmra.mrb[24].mxu1 %vm4018_vm10, %v3996_v58  ;;  %v13502_v58 = vld [vmem:[%s16401_s12 + $0x50] ss:$12 sps:$4 sm:$0xff]  }
 0x3df   : > { %4490 = vmatpush1.bf16.msra.mxu1 %v13444_v24 }
 0x3e0   : > { %4491 = vmatprep.subr.bf16.mxu1 %v13449_v47  ;;  %v13508_v47 = vld [vmem:[%s16401_s12 + $0x140] ss:$12 sps:$4 sm:$0xff]  }
 0x3e3   : > { %4492 = vmatpush1.bf16.msra.mxu1 %v13447_v10  ;;  %v13509_v10 = vld [vmem:[%s16401_s12 + $0x188] ss:$12 sps:$4 sm:$0xff]  }
 0x3e4   : > { %4493 = vmatprep.subr.bf16.mxu1 %v13452_v8 }
 0x3e7   : > { %4494 = vmatpush1.bf16.msra.mxu1 %v13450_v50  ;;  %v13512_v50 = vld [vmem:[%s16401_s12 + $0x1a0] ss:$12 sps:$4 sm:$0x7f]  }
 0x3e8   : > { %4495 = vmatprep.subr.bf16.mxu1 %v13455_v35  ;;  %v13510_v35 = vld [vmem:[%s16401_s12 + $0x80] ss:$12 sps:$4 sm:$0xff]  }
 0x3eb   : > { %4496 = vmatpush1.bf16.msra.mxu1 %v13453_v52  ;;  %v13511_v52 = vld [vmem:[%s16401_s12 + $0x158] ss:$12 sps:$4 sm:$0xff]  }
 0x3ec   : > { %4497 = vmatprep.subr.bf16.mxu1 %v13458_v54  ;;  %v4487_v54 = vsel %vm3347_vm13, %v13512_v50, 0 }
 0x3ef   : > { %4498 = vmatpush1.bf16.msra.mxu1 %v13456_v51  ;;  %v13513_v51 = vld [vmem:[%s16401_s12 + $0x98] ss:$12 sps:$4 sm:$0xff]  }
 0x3f0   : > { %4499 = vmatprep.subr.bf16.mxu1 %v13461_v55  ;;  %v13514_v55 = vld [vmem:[%s16401_s12 + $0x170] ss:$12 sps:$4 sm:$0xff]  }
 0x3f3   : > { %4500 = vmatpush1.bf16.msra.mxu1 %v13459_v19  ;;  %v13515_v19 = vld [vmem:[%s16401_s12 + $0xb0] ss:$12 sps:$4 sm:$0xff]   ;;  %s13847_s12 = smov 119  }
 0x3f4   : > { %4501 = vmatprep.subr.bf16.mxu1 %v13464_v34 }
 0x3f7   : > { %4502 = vmatpush1.bf16.msra.mxu1 %v13462_v57 }
 0x3f8   : > { %4503 = vmatprep.subr.bf16.mxu1 %v13467_v32 }
 0x3fb   : > { %4504 = vmatpush1.bf16.msra.mxu1 %v13465_v40 }
 0x3fc   : > { %4505 = vmatprep.subr.bf16.mxu1 %v13470_v53 }
 0x3ff   : > { %4506 = vmatpush1.bf16.msra.mxu1 %v13468_v61 }
 0x400   : > { %4507 = vmatprep.subr.bf16.mxu1 %v13473_v62 }
 0x403   : > { %4508 = vmatpush1.bf16.msra.mxu1 %v13471_v49 }
 0x404   : > { %4509 = vmatprep.subr.bf16.mxu1 %v13476_v60 }
 0x407   : > { %4510 = vmatpush1.bf16.msra.mxu1 %v13474_v63 }
 0x408   : > { %4511 = vmatprep.subr.bf16.mxu1 %v13479_v16 }
 0x40b   : > { %4512 = vmatpush1.bf16.msra.mxu1 %v13477_v46 }
 0x40c   : > { %4513 = vmatprep.subr.bf16.mxu1 %v13482_v41 }
 0x40f   : > { %4514 = vmatpush1.bf16.msra.mxu1 %v13480_v21 }
 0x410   : > { %4515 = vmatprep.subr.bf16.mxu1 %v13485_v0 }
 0x413   : > { %4516 = vmatpush1.bf16.msra.mxu1 %v13483_v5 }
 0x414   : > { %4517 = vmatprep.subr.bf16.mxu1 %v13488_v9 }
 0x417   : > { %4518 = vmatpush1.bf16.msra.mxu1 %v13486_v28 }
 0x418   : > { %4519 = vmatprep.subr.bf16.mxu1 %v13491_v12 }
 0x41b   : > { %4520 = vmatpush1.bf16.msra.mxu1 %v13489_v59 }
 0x41c   : > { %12357 = vmatprep.subr.bf16.mxu1 %v13492_v13 }
 0x49d   : > { %v4066_v26 = vpop.f32.mrb[20].mxu1 }
 0x49e   : > { %v4067_v15 = vadd.f32 %v4066_v26, %v4016_v17  ;;  %v4068_v20 = vpop.f32.mrb[21].mxu1 }
 0x49f   : > { %v4069_v25 = vadd.f32 %v4068_v20, %v4016_v17  ;;  %v4070_v27 = vpop.f32.mrb[22].mxu1 }
 0x4a0   : > { %v4113_v29 = vmax.f32 %v4067_v15, 0.0  ;;  %v4071_v1 = vpop.f32.mrb[23].mxu1 }
 0x4a1   : > { %v4114_v45 = vmax.f32 %v4069_v25, 0.0 }
 0x4a2   : > { %v4116_v39 = vpack.c.bf16 %v4113_v29, %v4113_v29 }
 0x4a3   : > { %v4117_v37 = vpack.c.bf16 %v4114_v45, %v4114_v45 }
 0x4a5   : > { %4521 = vmatprep.mubr.bf16.mxu1 %v4117_v37 }
 0x4a6   : > { %4522 = vmatmul.mubr.bf16.vlgmr.msra.gmra.mrb[28].mxu1 %v4116_v39 }
 0x4a7   : > { %12358 = vmatpush3.bf16.msra.mxu1 %v13493_v22  ;;  %4603 = vmatprep.mubr.bf16.mxu1 %v4117_v37  ;;  %v4892_v22 = vld [vmem:[%s13886_s29 + $0x8] sm:$0xff] }
 0x4a8   : > { %12359 = vmatprep.subr.bf16.mxu1 %v13494_v48 }
 0x4ab   : > { %12360 = vmatpush3.bf16.msra.mxu1 %v13495_v6 }
 0x4ac   : > { %12361 = vmatprep.subr.bf16.mxu1 %v13496_v14 }
 0x4af   : > { %12362 = vmatpush3.bf16.msra.mxu1 %v13497_v42 }
 0x4b0   : > { %12363 = vmatprep.subr.bf16.mxu1 %v13501_v3 }
 0x4b1   : > { %v4107_v44 = vpop.f32.mrb[24].mxu1 }
 0x4b2   : > { %v4108_v56 = vadd.f32 %v4107_v44, %v4016_v17  ;;  %v12860_v23 = vpop.f32.mrb[25].mxu1 }
 0x4b3   : > { %12364 = vmatpush3.bf16.msra.mxu1 %v13502_v58  ;;  %v4110_v38 = vpop.f32.mrb[26].mxu1 }
 0x4b4   : > { %v4115_v33 = vmax.f32 %v4108_v56, 0.0  ;;  %v12861_v24 = vpop.f32.mrb[27].mxu1  ;;  %12365 = vmatprep.subr.bf16.mxu1 %v13506_v43 }
 0x4b6   : > { %v4118_v8 = vpack.c.bf16 %v4115_v33, %v4115_v33 }
 0x4b7   : > { %12366 = vmatpush3.bf16.msra.mxu1 %v13507_v31 }
 0x4b8   : > { %11832 = vmatmul.mubr.msk.bf16.vlgmr.msra.gmra.mrb[4].mxu0 %vm4476_vm14, %v4118_v8  ;;  %12367 = vmatprep.subr.bf16.mxu1 %v13508_v47 }
 0x4b9   : > { %12863 = vmatpush3.bf16.msra.mxu0 %v13509_v10  ;;  %12866 = vmatprep.mubr.msk.bf16.mxu0 %vm16330_vm12, %v13828_v4 }
 0x4ba   : > { %12864 = vmatprep.subr.bf16.mxu0 %v13828_v4 }
 0x4bb   : > { %12368 = vmatpush3.bf16.msra.mxu1 %v13510_v35 }
 0x4bc   : > { %12369 = vmatprep.subr.bf16.mxu1 %v13511_v52 }
 0x4bd   : > { %12865 = vmatpush3.bf16.msra.mxu0 %v4487_v54 }
 0x4bf   : > { %12370 = vmatpush3.bf16.msra.mxu1 %v13513_v51 }
 0x4c0   : > { %12867 = vmatmul.mubr.msk.bf16.vlgmr.msra.gmra.mrb[8].mxu0 %vm4476_vm14, %v4118_v8  ;;  %12371 = vmatprep.subr.bf16.mxu1 %v13514_v55 }
 0x4c1   : > { %4952 = vmatprep.mubr.bf16.mxu0 %v13819_v2 }
 0x4c3   : > { %12372 = vmatpush3.bf16.msra.mxu1 %v13515_v19 }
 0x4c4   : > { %12870 = vmatprep.subr.bf16.mxu1 %v13828_v4 }
 0x4c6   : > { %4604 = vmatmul.mubr.bf16.vlgmr.msra.gmra.mrb[32].mxu1 %v4116_v39  ;;  %v4891_v39 = vld [vmem:[%s13886_s29] sm:$0xff] }
 0x4c7   : > { %12880 = vmatprep.mubr.msk.bf16.mxu1 %vm16330_vm12, %v13828_v4 }
 0x579   : > { %v4523_v34 = vpop.f32.mrb[28].mxu1 }
 0x57a   : > { %v4525_v57 = vpop.f32.mrb[29].mxu1 }
 0x57b   : > { %v4527_v32 = vpop.f32.mrb[30].mxu1 }
 0x57c   : > { %v4528_v40 = vpop.f32.mrb[31].mxu1 }
 0x58b   : > { %v4564_v53 = vpop.f32.mrb[4].mxu0 }
 0x58c   : > { %v4565_v61 = vadd.f32 %v4564_v53, %v4523_v34  ;;  %v4566_v62 = vpop.f32.mrb[5].mxu0 }
 0x58d   : > { %v4567_v49 = vadd.f32 %v4566_v62, %v4525_v57  ;;  %v4568_v60 = vpop.f32.mrb[6].mxu0 }
 0x58e   : > { %v4569_v63 = vpop.f32.mrb[7].mxu0  ;;  %v13772_v46 = vpack.c.bf16 %v4565_v61, %v4565_v61 }
 0x58f   : > { %v12256_v16 = vpack.c.bf16 %v4567_v49, %v4565_v61  ;;  %v13773_v41 = vpack.c.bf16 %v4567_v49, %v4567_v49 }
 0x590   : > { %4679 = vst [vmem:[#allocation14] sm:$0xf] %v13772_v46 }
 0x591   : > { %4664 = vst [vmem:[#allocation4] sm:$0xff] %v12256_v16  ;;  %4680 = vst [vmem:[#allocation14 + $0x8] sm:$0xf] %v13773_v41  ;;  %4718 = vrot.lane.b32.xlu1 %v13773_v41, %s16362_s18  ;;  %4694 = vrot.lane.b32.xlu0 %v13773_v41, %s16358_s16 }
 0x593   : > { %v4645_v21 = vpop.f32.mrb[8].mxu0 }
 0x594   : > { %v12868_v0 = vpop.f32.mrb[9].mxu0 }
 0x595   : > { %v4648_v5 = vpop.f32.mrb[10].mxu0  ;;  %4742 = vrot.lane.b32.xlu1 %v13773_v41, %s16332_s0  ;;  %4692 = vrot.lane.b32.xlu0 %v13772_v46, %s16358_s16 }
 0x596   : > { %v12869_v28 = vpop.f32.mrb[11].mxu0 }
 0x598   : > { %v9382_v9 = vld [vmem:[#allocation4] sm:$0xff] }
 0x599   : > { %v12373_v12 = vpop.f32.mrb[32].mxu1  ;;  %v15010_v59 = vcombine.high %v9382_v9, %v9382_v9  ;;  %4716 = vrot.lane.b32.xlu1 %v13772_v46, %s16362_s18  ;;  %4740 = vrot.lane.b32.xlu0 %v13772_v46, %s16332_s0 }
 0x59a   : > { %v12374_v13 = vpop.f32.mrb[33].mxu1 }
 0x59b   : > { %v12375_v36 = vadd.f32 %v12374_v13, %v12373_v12  ;;  %v12376_v11 = vpop.f32.mrb[34].mxu1  ;;  %9396 = vst [vmem:[#allocation14 + $0x1b8] sm:$0xf] %v15010_v59 }
 0x59c   : > { %v12377_v7 = vpop.f32.mrb[35].mxu1 }
 0x59d   : > { %v4646_v30 = vadd.f32 %v12375_v36, %v4645_v21  ;;  %4766 = vrot.lane.b32.xlu1 %v13773_v41, %s16328_s11  ;;  %4788 = vrot.lane.b32.xlu0 %v13772_v46, %s16338_s15 }
 0x59f   : > { %v12257_v18 = vpack.c.bf16 %v4646_v30, %v4646_v30 }
 0x5a1   : > { %4665 = vst.msk [vmem:[#allocation4 + $0x8] sm:$0xf] %vm3776_vm15, %v12257_v18  ;;  %4790 = vrot.lane.b32.xlu1 %v13773_v41, %s16338_s15  ;;  %4836 = vrot.lane.b32.xlu0 %v13772_v46, %s16323_s22  ;;  %vm5245_vm15 = vcmask 818176  }
 0x5a5   : > { %4764 = vrot.lane.b32.xlu1 %v13772_v46, %s16328_s11 }
 0x5a8   : > { %v13516_v17 = vld [vmem:[#allocation4 + $0x8] ss:$0 sps:$4 sm:$0xff]  }
 0x5a9   : > { %v13517_v26 = vld [vmem:[#allocation4 + $0x8] ss:$0 sps:$4 sm:$0xff]   ;;  %4681 = vst.msk [vmem:[#allocation14 + $0x10] sm:$0xf] %vm16331_vm0, %v13516_v17  ;;  %4814 = vrot.lane.b32.xlu1 %v13773_v41, %s16326_s26 }
 0x5aa   : > { %v13518_v15 = vld [vmem:[#allocation4 + $0x8] ss:$0 sps:$4 sm:$0xff]   ;;  %9397 = vst.msk [vmem:[#allocation14 + $0x1c0] sm:$0xf] %vm16331_vm0, %v13517_v26 }
 0x5ab   : > { %4720 = vrot.lane.b32.xlu0 %v13518_v15, %s16362_s18  ;;  %v13519_v20 = vld [vmem:[#allocation4 + $0x8] ss:$0 sps:$4 sm:$0xff]  }
 0x5ac   : > { %v13520_v25 = vld [vmem:[#allocation4 + $0x8] ss:$0 sps:$4 sm:$0xff]  }
 0x5ad   : > { %4696 = vrot.lane.b32.xlu1 %v13520_v25, %s16358_s16  ;;  %v13521_v27 = vld [vmem:[#allocation4 + $0x8] ss:$0 sps:$4 sm:$0xff]  }
 0x5ae   : > { %v13522_v29 = vld [vmem:[#allocation4 + $0x8] ss:$0 sps:$4 sm:$0xff]  }
 0x5af   : > { %4744 = vrot.lane.b32.xlu0 %v13519_v20, %s16332_s0  ;;  %v13523_v1 = vld [vmem:[#allocation4 + $0x8] ss:$0 sps:$4 sm:$0xff]   ;;  %s16356_s0 = smov 121  }
 0x5b0   : > { %v13524_v45 = vld [vmem:[#allocation4 + $0x8] ss:$0 sps:$4 sm:$0xff]  }
 0x5b1   : > { %4838 = vrot.lane.b32.xlu1 %v13773_v41, %s16323_s22  ;;  %v13525_v37 = vld [vmem:[#allocation4 + $0x8] ss:$0 sps:$4 sm:$0xff]  }
 0x5b3   : > { %4768 = vrot.lane.b32.xlu0 %v13521_v27, %s16328_s11  ;;  %v13526_v27 = vld [vmem:[%s13881_s25] sm:$0xff]   ;;  %s16415_s11 = sld [smem:[#allocation36_spill]] }
 0x5b5   : > { %4812 = vrot.lane.b32.xlu1 %v13772_v46, %s16326_s26 }
 0x5b7   : > { %4792 = vrot.lane.b32.xlu0 %v13522_v29, %s16338_s15  ;;  %v13527_v29 = vld [vmem:[%s13991_s20 + $0x40] sm:$0xff]  }
 0x5b9   : > { %4860 = vrot.lane.b32.xlu1 %v13772_v46, %s16321_s23 }
 0x5bb   : > { %4816 = vrot.lane.b32.xlu0 %v13523_v1, %s16326_s26  ;;  %s16414_s26 = sld [smem:[#allocation19_spill]] }
 0x5bd   : > { %4864 = vrot.lane.b32.xlu1 %v13525_v37, %s16321_s23 }
 0x5bf   : > { %4840 = vrot.lane.b32.xlu0 %v13524_v45, %s16323_s22  ;;  %s16334_s22 = smov 107  }
 0x5c1   : > { %4900 = vperm.xlu1 %13162, %v4892_v22   ;;  %v13528_v22 = vld [vmem:[%s13991_s20] sm:$0xff]  }
 0x5c3   : > { %4862 = vrot.lane.b32.xlu0 %v13773_v41, %s16321_s23  ;;  %s16340_s23 = smov 106  }
 0x5c7   : > { %4895 = vperm.xlu0 %13161, %v4891_v39   ;;  %v13529_v39 = vld [vmem:[%s13991_s20 + $0x48] sm:$0xff]  }
 0x603   : > { %v4719_v48 = vpop.permute.xlu1 %4718  ;;  %v4695_v6 = vpop.permute.xlu0 %4694 }
 0x607   : > { %v4743_v14 = vpop.permute.xlu1 %4742  ;;  %v4693_v42 = vpop.permute.xlu0 %4692 }
 0x608   : > { %v4698_v3 = vsel %vm1323_vm3, %v4693_v42, %v4695_v6  ;;  %v13533_v42 = vld [vmem:[%s13991_s20 + $0x58] sm:$0xff]  }
 0x609   : > { %4703 = vst [vmem:[#allocation14] sm:$0xf0] %v4698_v3  ;;  %v13534_v3 = vld [vmem:[%s13991_s20 + $0x18] sm:$0xff]  }
 0x60b   : > { %v4717_v58 = vpop.permute.xlu1 %4716  ;;  %v4741_v43 = vpop.permute.xlu0 %4740 }
 0x60c   : > { %v4722_v44 = vsel %vm1393_vm4, %v4717_v58, %v4719_v48  ;;  %v4746_v56 = vsel %vm3862_vm2, %v4741_v43, %v4743_v14  ;;  %v13535_v58 = vld [vmem:[%s13991_s20 + $0x60] sm:$0xff]  }
 0x60d   : > { %4727 = vst [vmem:[#allocation14 + $0x18] sm:$0xf] %v4722_v44  ;;  %4751 = vst [vmem:[#allocation14 + $0x18] sm:$0xf0] %v4746_v56  ;;  %v13536_v43 = vld [vmem:[%s13991_s20 + $0x20] sm:$0xff]   ;;  %v13537_v44 = vld [vmem:[%s13991_s20 + $0x68] sm:$0xff]  }
 0x60e   : > { %v13538_v56 = vld [vmem:[%s13991_s20 + $0x28] sm:$0xff]  }
 0x60f   : > { %v4767_v23 = vpop.permute.xlu1 %4766  ;;  %v4789_v38 = vpop.permute.xlu0 %4788 }
 0x610   : > { %v4876_v63 = vld [vmem:[#allocation14] sm:$0xff] }
 0x613   : > { %v4791_v31 = vpop.permute.xlu1 %4790  ;;  %v4837_v24 = vpop.permute.xlu0 %4836 }
 0x614   : > { %v4794_v33 = vsel %vm3912_vm6, %v4789_v38, %v4791_v31  ;;  %v4879_v5 = vld [vmem:[#allocation14 + $0x18] sm:$0xff]  ;;  %v13540_v38 = vld [vmem:[%s13991_s20 + $0x70] sm:$0xff]  }
 0x615   : > { %4799 = vst [vmem:[#allocation14 + $0x30] sm:$0xf0] %v4794_v33  ;;  %v13542_v33 = vld [vmem:[%s13991_s20 + $0x88] sm:$0x7f]  }
 0x617   : > { %v4765_v47 = vpop.permute.xlu1 %4764 }
 0x618   : > { %v4770_v10 = vsel %vm3887_vm5, %v4765_v47, %v4767_v23  ;;  %v5160_v47 = vsel %vm3347_vm13, %v13542_v33, 0 }
 0x619   : > { %4775 = vst [vmem:[#allocation14 + $0x30] sm:$0xf] %v4770_v10  ;;  %v13544_v10 = vld [vmem:[%s13991_s20 + $0x38] sm:$0xff]  }
 0x61b   : > { %v4815_v50 = vpop.permute.xlu1 %4814 }
 0x61d   : > { %v4721_v8 = vpop.permute.xlu0 %4720 }
 0x61e   : > { %v4723_v35 = vsel %vm1393_vm4, %v4719_v48, %v4721_v8  ;;  %4729 = vst.msk [vmem:[#allocation14 + $0x28] sm:$0xf] %vm16331_vm0, %v4721_v8  ;;  %v13530_v48 = vld [vmem:[%s13991_s20 + $0x8] sm:$0xff]  }
 0x61f   : > { %4728 = vst [vmem:[#allocation14 + $0x20] sm:$0xf] %v4723_v35  ;;  %v4697_v54 = vpop.permute.xlu1 %4696 }
 0x620   : > { %v4699_v55 = vsel %vm1323_vm3, %v4695_v6, %v4697_v54  ;;  %4705 = vst.msk [vmem:[#allocation14 + $0x10] sm:$0xf0] %vm16346_vm1, %v4697_v54  ;;  %v4882_v11 = vld [vmem:[#allocation14 + $0x30] sm:$0xff] }
 0x621   : > { %v4745_v52 = vpop.permute.xlu0 %4744  ;;  %4704 = vst [vmem:[#allocation14 + $0x8] sm:$0xf0] %v4699_v55  ;;  %v13531_v6 = vld [vmem:[%s13991_s20 + $0x50] sm:$0xff]  }
 0x622   : > { %v4747_v51 = vsel %vm3862_vm2, %v4743_v14, %v4745_v52  ;;  %4753 = vst.msk [vmem:[#allocation14 + $0x28] sm:$0xf0] %vm16346_vm1, %v4745_v52  ;;  %v13532_v14 = vld [vmem:[%s13991_s20 + $0x10] sm:$0xff]  }
 0x623   : > { %4752 = vst [vmem:[#allocation14 + $0x20] sm:$0xf0] %v4747_v51  ;;  %v4839_v34 = vpop.permute.xlu1 %4838 }
 0x624   : > { %v4842_v32 = vsel %vm3962_vm7, %v4837_v24, %v4839_v34  ;;  %v13543_v24 = vld [vmem:[%s13991_s20 + $0x78] sm:$0xff]  }
 0x625   : > { %v4769_v19 = vpop.permute.xlu0 %4768  ;;  %4847 = vst [vmem:[#allocation14 + $0x48] sm:$0xf0] %v4842_v32 }
 0x626   : > { %v4771_v57 = vsel %vm3887_vm5, %v4767_v23, %v4769_v19  ;;  %4777 = vst.msk [vmem:[#allocation14 + $0x40] sm:$0xf] %vm16331_vm0, %v4769_v19  ;;  %v13539_v23 = vld [vmem:[%s13991_s20 + $0x80] sm:$0xff]  }
 0x627   : > { %4776 = vst [vmem:[#allocation14 + $0x38] sm:$0xf] %v4771_v57  ;;  %v4813_v53 = vpop.permute.xlu1 %4812  ;;  %v4878_v61 = vld [vmem:[#allocation14 + $0x10] sm:$0xff] }
 0x628   : > { %v4818_v49 = vsel %vm1603_vm8, %v4813_v53, %v4815_v50  ;;  %12871 = vmatpush3.bf16.msra.mxu1 %v4878_v61  ;;  %v4877_v60 = vld [vmem:[#allocation14 + $0x8] sm:$0xff] }
 0x629   : > { %v4793_v40 = vpop.permute.xlu0 %4792  ;;  %4823 = vst [vmem:[#allocation14 + $0x48] sm:$0xf] %v4818_v49  ;;  %4920 = vmatprep.subr.bf16.mxu0 %v4877_v60  ;;  %12872 = vmatprep.subr.bf16.mxu1 %v13828_v4  ;;  %v4881_v21 = vld [vmem:[#allocation14 + $0x28] sm:$0xff] }
 0x62a   : > { %v4795_v62 = vsel %vm3912_vm6, %v4791_v31, %v4793_v40  ;;  %4801 = vst.msk [vmem:[#allocation14 + $0x40] sm:$0xf0] %vm16346_vm1, %v4793_v40  ;;  %4921 = vmatpush1.bf16.msra.mxu0 %v4876_v63  ;;  %v4880_v16 = vld [vmem:[#allocation14 + $0x20] sm:$0xff]  ;;  %v13541_v31 = vld [vmem:[%s13991_s20 + $0x30] sm:$0xff]  }
 0x62b   : > { %4800 = vst [vmem:[#allocation14 + $0x38] sm:$0xf0] %v4795_v62  ;;  %v4861_v41 = vpop.permute.xlu1 %4860  ;;  %4922 = vmatprep.subr.bf16.mxu0 %v4880_v16 }
 0x62c   : > { %12873 = vmatpush3.bf16.msra.mxu1 %v4881_v21 }
 0x62d   : > { %v4817_v46 = vpop.permute.xlu0 %4816  ;;  %12874 = vmatprep.subr.bf16.mxu1 %v13828_v4 }
 0x62e   : > { %v4819_v0 = vsel %vm1603_vm8, %v4815_v50, %v4817_v46  ;;  %4825 = vst.msk [vmem:[#allocation14 + $0x58] sm:$0xf] %vm16331_vm0, %v4817_v46  ;;  %4923 = vmatpush1.bf16.msra.mxu0 %v4879_v5 }
 0x62f   : > { %4824 = vst [vmem:[#allocation14 + $0x50] sm:$0xf] %v4819_v0  ;;  %v4865_v9 = vpop.permute.xlu1 %4864 }
 0x630   : > { %4873 = vst.msk [vmem:[#allocation14 + $0x70] sm:$0xf] %vm16331_vm0, %v4865_v9  ;;  %v4885_v20 = vld [vmem:[#allocation14 + $0x48] sm:$0xff]  ;;  %vm5736_vm0 = vcmask 179200  }
 0x631   : > { %v4841_v28 = vpop.permute.xlu0 %4840  ;;  %v4884_v12 = vld [vmem:[#allocation14 + $0x40] sm:$0xff] }
 0x632   : > { %v4843_v13 = vsel %vm3962_vm7, %v4839_v34, %v4841_v28  ;;  %4849 = vst.msk [vmem:[#allocation14 + $0x58] sm:$0xf0] %vm16346_vm1, %v4841_v28  ;;  %v4883_v36 = vld [vmem:[#allocation14 + $0x38] sm:$0xff]  ;;  %12875 = vmatpush3.bf16.msra.mxu1 %v4884_v12  ;;  %vm5915_vm1 = vcmask 261120  }
 0x633   : > { %4848 = vst [vmem:[#allocation14 + $0x50] sm:$0xf0] %v4843_v13  ;;  %4924 = vmatprep.subr.bf16.mxu0 %v4883_v36  ;;  %12876 = vmatprep.subr.bf16.mxu1 %v13828_v4 }
 0x634   : > { %4925 = vmatpush1.bf16.msra.mxu0 %v4882_v11 }
 0x635   : > { %v4863_v7 = vpop.permute.xlu0 %4862 }
 0x636   : > { %v4866_v30 = vsel %vm16349_vm11, %v4861_v41, %v4863_v7  ;;  %v4867_v18 = vsel %vm16349_vm11, %v4863_v7, %v4865_v9  ;;  %vm6044_vm11 = vcmask 1042432  }
 0x637   : > { %4871 = vst [vmem:[#allocation14 + $0x60] sm:$0xf] %v4866_v30  ;;  %4872 = vst [vmem:[#allocation14 + $0x68] sm:$0xf] %v4867_v18  ;;  %v4890_v26 = vld [vmem:[#allocation14 + $0x70] sm:$0xf] }
 0x638   : > { %v4918_v25 = vsel %vm16325_vm9, %v4890_v26, 0 }
 0x639   : > { %v4887_v17 = vld [vmem:[#allocation14 + $0x58] sm:$0xff] }
 0x63a   : > { %12877 = vmatpush3.bf16.msra.mxu1 %v4887_v17  ;;  %v4886_v15 = vld [vmem:[#allocation14 + $0x50] sm:$0xff] }
 0x63b   : > { %4926 = vmatprep.subr.bf16.mxu0 %v4886_v15  ;;  %12878 = vmatprep.subr.bf16.mxu1 %v13828_v4 }
 0x63c   : > { %4927 = vmatpush1.bf16.msra.mxu0 %v4885_v20 }
 0x63e   : > { %v4889_v1 = vld [vmem:[#allocation14 + $0x68] sm:$0xf]  ;;  %12879 = vmatpush3.bf16.msra.mxu1 %v4918_v25  ;;  %v4888_v45 = vld [vmem:[#allocation14 + $0x60] sm:$0xf] }
 0x63f   : > { %11864 = vmatprep.subr.msk.bf16.mxu0 %vm16325_vm9, %v4889_v1  ;;  %v4912_v37 = vsel %vm16325_vm9, %v4888_v45, 0  ;;  %12884 = vmatprep.subr.bf16.mxu1 %v13828_v4  ;;  %v5310_v1 = vld [vmem:[%s16403_s8 + $0x8] sm:$0xff]  ;;  %v5309_v45 = vld [vmem:[%s16403_s8] sm:$0xff]  ;;  %vm16370_vm9 = vcmask 130048   ;;  %s16428_s8 = smov 127  }
 0x640   : > { %4929 = vmatpush1.bf16.msra.mxu0 %v4912_v37  ;;  %v4901_v35 = vpop.permute.xlu1 %4900  ;;  %v13545_v37 = vld [vmem:[%s16405_s3 + $0x4] ss:$8 sps:$4 sm:$0xff]  }
 0x641   : > { %12881 = vmatmul.mubr.msk.bf16.vlgmr.msra.gmra.mrb[36].mxu1 %vm4018_vm10, %v13526_v27  ;;  %12388 = vmatprep.subr.bf16.mxu0 %v13527_v29 }
 0x642   : > { %12888 = vmatprep.mubr.msk.bf16.mxu1 %vm16330_vm12, %v13828_v4  ;;  %12885 = vmatpush3.bf16.msra.mxu1 %v13539_v23 }
 0x643   : > { %11865 = vmatmul.mubr.msk.bf16.vlgmr.msra.gmra.mrb[12].mxu0 %vm4018_vm10, %v13526_v27  ;;  %12886 = vmatprep.subr.bf16.mxu1 %v13828_v4  ;;  %vm5248_vm10 = vcmask 637952  }
 0x644   : > { %12389 = vmatpush3.bf16.msra.mxu0 %v13528_v22  ;;  %v13548_v22 = vld [vmem:[%s13996_s27] sm:$0xff]  }
 0x645   : > { %12390 = vmatprep.subr.bf16.mxu0 %v13529_v39  ;;  %v13549_v39 = vld [vmem:[%s13996_s27 + $0x8] sm:$0xff]  }
 0x646   : > { %12887 = vmatpush3.bf16.msra.mxu1 %v5160_v47  ;;  %v4896_v8 = vpop.permute.xlu0 %4895 }
 0x647   : > { %5334 = vmatprep.subr.bf16.mxu1 %v13819_v2 }
 0x648   : > { %12391 = vmatpush3.bf16.msra.mxu0 %v13530_v48  ;;  %v13550_v48 = vld [vmem:[%s13996_s27 + $0x10] sm:$0xff]  }
 0x649   : > { %12392 = vmatprep.subr.bf16.mxu0 %v13531_v6 }
 0x64c   : > { %12393 = vmatpush3.bf16.msra.mxu0 %v13532_v14 }
 0x64d   : > { %12394 = vmatprep.subr.bf16.mxu0 %v13533_v42 }
 0x650   : > { %12395 = vmatpush3.bf16.msra.mxu0 %v13534_v3 }
 0x651   : > { %12396 = vmatprep.subr.bf16.mxu0 %v13535_v58 }
 0x654   : > { %12397 = vmatpush3.bf16.msra.mxu0 %v13536_v43 }
 0x655   : > { %12398 = vmatprep.subr.bf16.mxu0 %v13537_v44 }
 0x658   : > { %12399 = vmatpush3.bf16.msra.mxu0 %v13538_v56 }
 0x659   : > { %12400 = vmatprep.subr.bf16.mxu0 %v13540_v38 }
 0x65c   : > { %12401 = vmatpush3.bf16.msra.mxu0 %v13541_v31 }
 0x65d   : > { %12402 = vmatprep.subr.bf16.mxu0 %v13543_v24 }
 0x660   : > { %12403 = vmatpush3.bf16.msra.mxu0 %v13544_v10 }
 0x661   : > { %12892 = vmatprep.subr.bf16.mxu0 %v13828_v4 }
 0x714   : > { %v4997_v50 = vpop.f32.mrb[36].mxu1 }
 0x715   : > { %v4998_v52 = vadd.f32 %v4997_v50, %v4896_v8  ;;  %v12882_v54 = vpop.f32.mrb[37].mxu1  ;;  %v13547_v50 = vld [vmem:[%s16405_s3] ss:$8 sps:$4 sm:$0xff]   ;;  %s16424_s3 = smov 115  }
 0x716   : > { %v4954_v51 = vpop.f32.mrb[12].mxu0  ;;  %v5000_v55 = vpop.f32.mrb[38].mxu1 }
 0x717   : > { %v4955_v19 = vadd.f32 %v4954_v51, %v4896_v8  ;;  %v4956_v34 = vpop.f32.mrb[13].mxu0  ;;  %v5001_v57 = vadd.f32 %v5000_v55, %v4901_v35  ;;  %v12883_v32 = vpop.f32.mrb[39].mxu1  ;;  %v5006_v61 = vmax.f32 %v4998_v52, 0.0  ;;  %v13552_v52 = vld [vmem:[%s13996_s27 + $0x20] sm:$0x7f]  }
 0x718   : > { %v4957_v40 = vadd.f32 %v4956_v34, %v4896_v8  ;;  %v4958_v53 = vpop.f32.mrb[14].mxu0  ;;  %v5421_v54 = vsel %vm3347_vm13, %v13552_v52, 0 }
 0x719   : > { %v5009_v62 = vmax.f32 %v5001_v57, 0.0  ;;  %v4959_v49 = vadd.f32 %v4958_v53, %v4901_v35  ;;  %v4960_v60 = vpop.f32.mrb[15].mxu0  ;;  %v5004_v16 = vmax.f32 %v4955_v19, 0.0 }
 0x71a   : > { %v4961_v63 = vadd.f32 %v4960_v60, %v4901_v35  ;;  %v5005_v21 = vmax.f32 %v4957_v40, 0.0  ;;  %v13551_v35 = vld [vmem:[%s13996_s27 + $0x18] sm:$0xff]  }
 0x71b   : > { %v5012_v46 = vpack.c.bf16 %v5009_v62, %v5006_v61  ;;  %v5007_v41 = vmax.f32 %v4959_v49, 0.0 }
 0x71c   : > { %v5008_v0 = vmax.f32 %v4961_v63, 0.0 }
 0x71d   : > { %v5010_v5 = vpack.c.bf16 %v5007_v41, %v5004_v16  ;;  %12889 = vmatmul.mubr.msk.bf16.vlgmr.msra.gmra.mrb[40].mxu1 %vm4476_vm14, %v5012_v46 }
 0x71e   : > { %v5011_v28 = vpack.c.bf16 %v5008_v0, %v5005_v21  ;;  %11888 = vmatprep.mubr.msk.bf16.mxu1 %vm16370_vm9, %v13545_v37 }
 0x720   : > { %5194 = vmatprep.mubr.bf16.mxu0 %v5011_v28  ;;  %v5529_v28 = vld [vmem:[%s13906_s19] sm:$0xff] }
 0x721   : > { %5195 = vmatmul.mubr.bf16.vlgmr.msra.gmra.mrb[16].mxu0 %v5010_v5  ;;  %v5530_v5 = vld [vmem:[%s13906_s19 + $0x8] sm:$0xff] }
 0x722   : > { %12902 = vmatprep.mubr.msk.bf16.mxu0 %vm16330_vm12, %v13828_v4  ;;  %12893 = vmatpush3.bf16.msra.mxu0 %v13548_v22  ;;  %vm5731_vm12 = vcmask 293888  }
 0x723   : > { %12894 = vmatprep.subr.bf16.mxu0 %v13828_v4 }
 0x726   : > { %12895 = vmatpush3.bf16.msra.mxu0 %v13549_v39 }
 0x727   : > { %12896 = vmatprep.subr.bf16.mxu0 %v13828_v4 }
 0x72a   : > { %12897 = vmatpush3.bf16.msra.mxu0 %v13550_v48  ;;  %v13555_v48 = vld [vmem:[%s16414_s26] ss:$8 sps:$4 sm:$0xff]  }
 0x72b   : > { %12898 = vmatprep.subr.bf16.mxu0 %v13828_v4 }
 0x72e   : > { %12899 = vmatpush3.bf16.msra.mxu0 %v13551_v35 }
 0x72f   : > { %12900 = vmatprep.subr.bf16.mxu0 %v13828_v4 }
 0x732   : > { %12901 = vmatpush3.bf16.msra.mxu0 %v5421_v54 }
 0x733   : > { %5577 = vmatprep.subr.bf16.mxu0 %v13819_v2 }
 0x7f0   : > { %v5237_v9 = vpop.f32.mrb[40].mxu1 }
 0x7f1   : > { %v12890_v12 = vpop.f32.mrb[41].mxu1 }
 0x7f2   : > { %v5240_v13 = vpop.f32.mrb[42].mxu1  ;;  %v5531_v12 = vld [vmem:[%s13906_s19 + $0x10] sm:$0xff] }
 0x7f3   : > { %v12891_v36 = vpop.f32.mrb[43].mxu1 }
 0x7f4   : > { %v12404_v11 = vpop.f32.mrb[16].mxu0  ;;  %v13559_v36 = vld [vmem:[%s16415_s11] sm:$0xff]  }
 0x7f5   : > { %v12405_v7 = vpop.f32.mrb[17].mxu0 }
 0x7f6   : > { %v12406_v30 = vadd.f32 %v12405_v7, %v12404_v11  ;;  %v12407_v18 = vpop.f32.mrb[18].mxu0 }
 0x7f7   : > { %v12408_v17 = vpop.f32.mrb[19].mxu0 }
 0x7f8   : > { %v5238_v26 = vadd.f32 %v12406_v30, %v5237_v9  ;;  %v12409_v15 = vadd.f32 %v12408_v17, %v12407_v18  ;;  %v5532_v9 = vld [vmem:[%s13906_s19 + $0x18] sm:$0xff] }
 0x7fa   : > { %v5241_v20 = vadd.f32 %v12409_v15, %v5240_v13  ;;  %v13553_v13 = vld [vmem:[%s16414_s26 + $0x4] ss:$8 sps:$4 sm:$0xff]  }
 0x7fc   : > { %v5244_v25 = vpack.c.bf16 %v5241_v20, %v5238_v26 }
 0x7fe   : > { %5246 = vst.msk [vmem:[#allocation5] sm:$0xff] %vm5245_vm15, %v5244_v25 }
 0x805   : > { %v5247_v27 = vld [vmem:[#allocation5] sm:$0xff] }
 0x806   : > { %5258 = vrot.lane.b32.xlu1 %v5247_v27, %s16362_s18  ;;  %5252 = vrot.lane.b32.xlu0 %v5247_v27, %s16358_s16  ;;  %5249 = vst.msk [vmem:[#allocation14] sm:$0xff] %vm5248_vm10, %v5247_v27 }
 0x80a   : > { %5270 = vrot.lane.b32.xlu1 %v5247_v27, %s16336_s28  ;;  %5264 = vrot.lane.b32.xlu0 %v5247_v27, %s16342_s1 }
 0x80d   : > { %v5300_v29 = vld [vmem:[#allocation14] sm:$0xff] }
 0x80e   : > { %5282 = vrot.lane.b32.xlu1 %v5247_v27, %s16338_s15  ;;  %5276 = vrot.lane.b32.xlu0 %v5247_v27, %s16354_s2 }
 0x80f   : > { %5335 = vmatpush1.bf16.msra.mxu1 %v5300_v29 }
 0x810   : > { %5336 = vmatprep.subr.bf16.mxu1 %v13819_v2 }
 0x812   : > { %5294 = vrot.lane.b32.xlu1 %v5247_v27, %s16340_s23  ;;  %5288 = vrot.lane.b32.xlu0 %v5247_v27, %s16334_s22 }
 0x816   : > { %5318 = vperm.xlu1 %13162, %v5310_v1   ;;  %5313 = vperm.xlu0 %13161, %v5309_v45  }
 0x878   : > { %v5259_v6 = vpop.permute.xlu1 %5258  ;;  %v5253_v14 = vpop.permute.xlu0 %5252 }
 0x879   : > { %5261 = vst.msk [vmem:[#allocation14 + $0x30] sm:$0xff] %vm5248_vm10, %v5259_v6  ;;  %5255 = vst.msk [vmem:[#allocation14 + $0x18] sm:$0xff] %vm5248_vm10, %v5253_v14  ;;  %v13556_v6 = vld [vmem:[%s16414_s26 + $0x14] ss:$8 sps:$4 sm:$0xff]   ;;  %v13558_v14 = vld [vmem:[%s16414_s26 + $0x10] ss:$8 sps:$4 sm:$0xff]  }
 0x87c   : > { %v5271_v42 = vpop.permute.xlu1 %5270  ;;  %v5265_v3 = vpop.permute.xlu0 %5264 }
 0x87d   : > { %5273 = vst.msk [vmem:[#allocation14 + $0x60] sm:$0xff] %vm5248_vm10, %v5271_v42  ;;  %5267 = vst.msk [vmem:[#allocation14 + $0x48] sm:$0xff] %vm5248_vm10, %v5265_v3  ;;  %v13560_v42 = vld [vmem:[%s16415_s11 + $0x8] sm:$0xff]   ;;  %v13561_v3 = vld [vmem:[%s16415_s11 + $0x10] sm:$0xff]  }
 0x880   : > { %v5283_v58 = vpop.permute.xlu1 %5282  ;;  %v5277_v43 = vpop.permute.xlu0 %5276  ;;  %v5301_v44 = vld [vmem:[#allocation14 + $0x18] sm:$0xff]  ;;  %v5302_v38 = vld [vmem:[#allocation14 + $0x30] sm:$0xff] }
 0x881   : > { %5285 = vst.msk [vmem:[#allocation14 + $0x90] sm:$0xff] %vm5248_vm10, %v5283_v58  ;;  %5279 = vst.msk [vmem:[#allocation14 + $0x78] sm:$0xff] %vm5248_vm10, %v5277_v43  ;;  %5337 = vmatpush1.bf16.msra.mxu1 %v5301_v44  ;;  %v13562_v58 = vld [vmem:[%s16415_s11 + $0x18] sm:$0xff]   ;;  %v13563_v43 = vld [vmem:[%s16415_s11 + $0x20] sm:$0x7f]   ;;  %s16430_s11 = sld [smem:[#allocation25_spill]] }
 0x882   : > { %5338 = vmatprep.subr.bf16.mxu1 %v13819_v2  ;;  %v5678_v44 = vsel %vm3347_vm13, %v13563_v43, 0 }
 0x884   : > { %v5295_v56 = vpop.permute.xlu1 %5294  ;;  %v5289_v23 = vpop.permute.xlu0 %5288  ;;  %v5303_v31 = vld [vmem:[#allocation14 + $0x48] sm:$0xff]  ;;  %v5304_v33 = vld [vmem:[#allocation14 + $0x60] sm:$0xff] }
 0x885   : > { %5297 = vst.msk [vmem:[#allocation14 + $0xc0] sm:$0xff] %vm5248_vm10, %v5295_v56  ;;  %5291 = vst.msk [vmem:[#allocation14 + $0xa8] sm:$0xff] %vm5248_vm10, %v5289_v23  ;;  %5339 = vmatpush1.bf16.msra.mxu1 %v5302_v38 }
 0x886   : > { %5340 = vmatprep.subr.bf16.mxu1 %v13819_v2 }
 0x888   : > { %v5305_v24 = vld [vmem:[#allocation14 + $0x78] sm:$0xff]  ;;  %v5306_v47 = vld [vmem:[#allocation14 + $0x90] sm:$0xff] }
 0x889   : > { %5341 = vmatpush1.bf16.msra.mxu1 %v5303_v31 }
 0x88a   : > { %5342 = vmatprep.subr.bf16.mxu1 %v13819_v2 }
 0x88c   : > { %v5307_v10 = vld [vmem:[#allocation14 + $0xa8] sm:$0xff]  ;;  %v5308_v8 = vld [vmem:[#allocation14 + $0xc0] sm:$0xff] }
 0x88d   : > { %5343 = vmatpush1.bf16.msra.mxu1 %v5304_v33 }
 0x88e   : > { %5344 = vmatprep.subr.bf16.mxu1 %v13819_v2 }
 0x891   : > { %5345 = vmatpush1.bf16.msra.mxu1 %v5305_v24 }
 0x892   : > { %5346 = vmatprep.subr.bf16.mxu1 %v13819_v2 }
 0x895   : > { %5347 = vmatpush1.bf16.msra.mxu1 %v5306_v47  ;;  %v5314_v51 = vpop.permute.xlu0 %5313  ;;  %v5319_v57 = vpop.permute.xlu1 %5318 }
 0x896   : > { %5348 = vmatprep.subr.bf16.mxu1 %v13819_v2 }
 0x899   : > { %5349 = vmatpush1.bf16.msra.mxu1 %v5307_v10 }
 0x89a   : > { %5350 = vmatprep.subr.bf16.mxu1 %v13819_v2 }
 0x89d   : > { %5351 = vmatpush1.bf16.msra.mxu1 %v5308_v8 }
 0x89e   : > { %12906 = vmatprep.subr.bf16.mxu1 %v13559_v36 }
 0x8a0   : > { %5367 = vmatmul.mubr.bf16.vlgmr.msra.gmra.mrb[44].mxu1 %v13547_v50 }
 0x8a1   : > { %12907 = vmatpush3.bf16.msra.mxu1 %v13559_v36 }
 0x8a2   : > { %12908 = vmatprep.subr.bf16.mxu1 %v13560_v42 }
 0x8a5   : > { %12909 = vmatpush3.bf16.msra.mxu1 %v13560_v42 }
 0x8a6   : > { %12910 = vmatprep.subr.bf16.mxu1 %v13561_v3 }
 0x8a9   : > { %12911 = vmatpush3.bf16.msra.mxu1 %v13561_v3 }
 0x8aa   : > { %12912 = vmatprep.subr.bf16.mxu1 %v13562_v58 }
 0x8ad   : > { %12913 = vmatpush3.bf16.msra.mxu1 %v13562_v58 }
 0x8ae   : > { %13080 = vmatprep.subr.msk.bf16.mxu1 %vm3347_vm13, %v13563_v43 }
 0x8b1   : > { %12915 = vmatpush3.bf16.msra.mxu1 %v5678_v44 }
 0x973   : > { %v5368_v55 = vpop.f32.mrb[44].mxu1 }
 0x974   : > { %v5369_v19 = vadd.f32 %v5368_v55, %v5314_v51  ;;  %v5370_v34 = vpop.f32.mrb[45].mxu1 }
 0x975   : > { %v5371_v32 = vpop.f32.mrb[46].mxu1 }
 0x976   : > { %v5372_v40 = vadd.f32 %v5371_v32, %v5319_v57  ;;  %v5373_v53 = vpop.f32.mrb[47].mxu1  ;;  %v5375_v61 = vmax.f32 %v5369_v19, 0.0 }
 0x978   : > { %v5376_v62 = vmax.f32 %v5372_v40, 0.0 }
 0x97a   : > { %v5377_v49 = vpack.c.bf16 %v5376_v62, %v5375_v61 }
 0x97c   : > { %12903 = vmatmul.mubr.msk.bf16.vlgmr.msra.gmra.mrb[20].mxu0 %vm5248_vm10, %v5377_v49 }
 0x97d   : > { %11899 = vmatprep.mubr.msk.bf16.mxu0 %vm16370_vm9, %v13553_v13 }
 0xa4f   : > { %v5457_v60 = vpop.f32.mrb[20].mxu0 }
 0xa50   : > { %v12904_v63 = vpop.f32.mrb[21].mxu0 }
 0xa51   : > { %v5460_v16 = vpop.f32.mrb[22].mxu0 }
 0xa52   : > { %v5464_v46 = vpack.c.bf16 %v5460_v16, %v5457_v60  ;;  %v12905_v41 = vpop.f32.mrb[23].mxu0 }
 0xa54   : > { %5465 = vst.msk [vmem:[#allocation6] sm:$0xff] %vm5245_vm15, %v5464_v46 }
 0xa5b   : > { %v5466_v21 = vld [vmem:[#allocation6] sm:$0xff] }
 0xa5c   : > { %5467 = vst.msk [vmem:[#allocation14] sm:$0xff] %vm5248_vm10, %v5466_v21  ;;  %5476 = vrot.lane.b32.xlu1 %v5466_v21, %s16362_s18  ;;  %5470 = vrot.lane.b32.xlu0 %v5466_v21, %s16358_s16 }
 0xa60   : > { %5488 = vrot.lane.b32.xlu1 %v5466_v21, %s16336_s28  ;;  %5482 = vrot.lane.b32.xlu0 %v5466_v21, %s16342_s1  ;;  %s16344_s28 = smov 120   ;;  %s16350_s1 = smov 115  }
 0xa63   : > { %v5520_v0 = vld [vmem:[#allocation14] sm:$0xff] }
 0xa64   : > { %5500 = vrot.lane.b32.xlu1 %v5466_v21, %s16338_s15  ;;  %5494 = vrot.lane.b32.xlu0 %v5466_v21, %s16354_s2  ;;  %s16417_s15 = sld [smem:[#allocation21_spill]] }
 0xa65   : > { %5578 = vmatpush1.bf16.msra.mxu0 %v5520_v0 }
 0xa66   : > { %5579 = vmatprep.subr.bf16.mxu0 %v13819_v2 }
 0xa68   : > { %5512 = vrot.lane.b32.xlu1 %v5466_v21, %s16340_s23  ;;  %5506 = vrot.lane.b32.xlu0 %v5466_v21, %s16334_s22  ;;  %s16416_s22 = sld [smem:[#allocation20_spill]]  ;;  %s16352_s23 = smov 122  }
 0xa6a   : > { %v5863_v13 = vld [vmem:[%s16417_s15 + $0x10] sm:$0xff] }
 0xa6c   : > { %5540 = vperm.xlu1 %13162, %v5530_v5   ;;  %5535 = vperm.xlu0 %13161, %v5529_v28   ;;  %v5862_v5 = vld [vmem:[%s16417_s15 + $0x8] sm:$0xff] }
 0xa6e   : > { %v13566_v0 = vld [vmem:[%s16416_s22 + $0x4] ss:$12 sps:$4 sm:$0xff]   ;;  %v13567_v28 = vld [vmem:[%s16416_s22 + $0x8] ss:$12 sps:$4 sm:$0xff]  }
 0xa70   : > { %5550 = vperm.xlu1 %13162, %v5532_v9   ;;  %5545 = vperm.xlu0 %13161, %v5531_v12   ;;  %v5861_v9 = vld [vmem:[%s16417_s15] sm:$0xff]  ;;  %v5864_v12 = vld [vmem:[%s16417_s15 + $0x18] sm:$0xff] }
 0xace   : > { %v5477_v11 = vpop.permute.xlu1 %5476  ;;  %v5471_v7 = vpop.permute.xlu0 %5470 }
 0xacf   : > { %5479 = vst.msk [vmem:[#allocation14 + $0x30] sm:$0xff] %vm5248_vm10, %v5477_v11  ;;  %5473 = vst.msk [vmem:[#allocation14 + $0x18] sm:$0xff] %vm5248_vm10, %v5471_v7 }
 0xad2   : > { %v5489_v30 = vpop.permute.xlu1 %5488  ;;  %v5483_v18 = vpop.permute.xlu0 %5482 }
 0xad3   : > { %5491 = vst.msk [vmem:[#allocation14 + $0x60] sm:$0xff] %vm5248_vm10, %v5489_v30  ;;  %5485 = vst.msk [vmem:[#allocation14 + $0x48] sm:$0xff] %vm5248_vm10, %v5483_v18 }
 0xad6   : > { %v5501_v17 = vpop.permute.xlu1 %5500  ;;  %v5495_v26 = vpop.permute.xlu0 %5494  ;;  %v5521_v15 = vld [vmem:[#allocation14 + $0x18] sm:$0xff]  ;;  %v5522_v27 = vld [vmem:[#allocation14 + $0x30] sm:$0xff] }
 0xad7   : > { %5503 = vst.msk [vmem:[#allocation14 + $0x90] sm:$0xff] %vm5248_vm10, %v5501_v17  ;;  %5497 = vst.msk [vmem:[#allocation14 + $0x78] sm:$0xff] %vm5248_vm10, %v5495_v26  ;;  %5580 = vmatpush1.bf16.msra.mxu0 %v5521_v15 }
 0xad8   : > { %5581 = vmatprep.subr.bf16.mxu0 %v13819_v2 }
 0xada   : > { %v5513_v20 = vpop.permute.xlu1 %5512  ;;  %v5507_v25 = vpop.permute.xlu0 %5506  ;;  %v5523_v29 = vld [vmem:[#allocation14 + $0x48] sm:$0xff]  ;;  %v5524_v1 = vld [vmem:[#allocation14 + $0x60] sm:$0xff] }
 0xadb   : > { %5515 = vst.msk [vmem:[#allocation14 + $0xc0] sm:$0xff] %vm5248_vm10, %v5513_v20  ;;  %5509 = vst.msk [vmem:[#allocation14 + $0xa8] sm:$0xff] %vm5248_vm10, %v5507_v25  ;;  %5582 = vmatpush1.bf16.msra.mxu0 %v5522_v27 }
 0xadc   : > { %5583 = vmatprep.subr.bf16.mxu0 %v13819_v2 }
 0xade   : > { %v5525_v45 = vld [vmem:[#allocation14 + $0x78] sm:$0xff]  ;;  %v5526_v37 = vld [vmem:[#allocation14 + $0x90] sm:$0xff] }
 0xadf   : > { %5584 = vmatpush1.bf16.msra.mxu0 %v5523_v29 }
 0xae0   : > { %5585 = vmatprep.subr.bf16.mxu0 %v13819_v2 }
 0xae2   : > { %v5527_v22 = vld [vmem:[#allocation14 + $0xa8] sm:$0xff]  ;;  %v5528_v39 = vld [vmem:[#allocation14 + $0xc0] sm:$0xff] }
 0xae3   : > { %5586 = vmatpush1.bf16.msra.mxu0 %v5524_v1 }
 0xae4   : > { %5587 = vmatprep.subr.bf16.mxu0 %v13819_v2 }
 0xae7   : > { %5588 = vmatpush1.bf16.msra.mxu0 %v5525_v45 }
 0xae8   : > { %5589 = vmatprep.subr.bf16.mxu0 %v13819_v2 }
 0xaeb   : > { %5590 = vmatpush1.bf16.msra.mxu0 %v5526_v37  ;;  %v5536_v56 = vpop.permute.xlu0 %5535  ;;  %v5541_v33 = vpop.permute.xlu1 %5540 }
 0xaec   : > { %5591 = vmatprep.subr.bf16.mxu0 %v13819_v2 }
 0xaef   : > { %5592 = vmatpush1.bf16.msra.mxu0 %v5527_v22  ;;  %v5546_v52 = vpop.permute.xlu0 %5545  ;;  %v5551_v19 = vpop.permute.xlu1 %5550 }
 0xaf0   : > { %5593 = vmatprep.subr.bf16.mxu0 %v13819_v2 }
 0xaf3   : > { %5594 = vmatpush1.bf16.msra.mxu0 %v5528_v39 }
 0xaf6   : > { %5610 = vmatmul.mubr.bf16.vlgmr.msra.gmra.mrb[24].mxu0 %v13555_v48 }
 0xaf7   : > { %11900 = vmatprep.mubr.msk.bf16.mxu0 %vm16370_vm9, %v13556_v6 }
 0xafe   : > { %5618 = vmatmul.mubr.bf16.gmra.mrb[28].mxu0 %v13558_v14 }
 0xaff   : > { %12924 = vmatprep.mubr.msk.bf16.mxu0 %vm5915_vm1, %v13567_v28 }
 0xbc9   : > { %v5611_v23 = vpop.f32.mrb[24].mxu0 }
 0xbca   : > { %v5612_v38 = vadd.f32 %v5611_v23, %v5536_v56  ;;  %v5613_v31 = vpop.f32.mrb[25].mxu0 }
 0xbcb   : > { %v5614_v24 = vpop.f32.mrb[26].mxu0 }
 0xbcc   : > { %v5615_v47 = vadd.f32 %v5614_v24, %v5541_v33  ;;  %v5616_v10 = vpop.f32.mrb[27].mxu0  ;;  %v5626_v8 = vmax.f32 %v5612_v38, 0.0 }
 0xbce   : > { %v5627_v50 = vmax.f32 %v5615_v47, 0.0 }
 0xbd0   : > { %v5630_v35 = vpack.c.bf16 %v5627_v50, %v5626_v8  ;;  %v13564_v8 = vld [vmem:[%s16416_s22] ss:$12 sps:$4 sm:$0xff]  }
 0xbd1   : > { %v5619_v54 = vpop.f32.mrb[28].mxu0 }
 0xbd2   : > { %v5620_v51 = vadd.f32 %v5619_v54, %v5546_v52  ;;  %v5621_v55 = vpop.f32.mrb[29].mxu0  ;;  %12916 = vmatprep.mubr.msk.bf16.mxu1 %vm5248_vm10, %v5630_v35  ;;  %v13569_v35 = vld [vmem:[%s16416_s22 + $0x1c] ss:$12 sps:$4 sm:$0xff]   ;;  %v13568_v52 = vld [vmem:[%s16416_s22 + $0x20] ss:$12 sps:$4 sm:$0xff]  }
 0xbd3   : > { %v5622_v34 = vpop.f32.mrb[30].mxu0  ;;  %v13571_v54 = vld [vmem:[%s16416_s22 + $0x18] ss:$12 sps:$4 sm:$0xff]  }
 0xbd4   : > { %v5623_v57 = vadd.f32 %v5622_v34, %v5551_v19  ;;  %v5624_v32 = vpop.f32.mrb[31].mxu0  ;;  %v5628_v40 = vmax.f32 %v5620_v51, 0.0 }
 0xbd6   : > { %v5629_v53 = vmax.f32 %v5623_v57, 0.0 }
 0xbd8   : > { %v5631_v61 = vpack.c.bf16 %v5629_v53, %v5628_v40 }
 0xbda   : > { %12917 = vmatmul.mubr.msk.bf16.vlgmr.msra.gmra.mrb[48].mxu1 %vm5248_vm10, %v5631_v61 }
 0xbdb   : > { %5954 = vmatprep.mubr.bf16.mxu1 %v13566_v0 }
 0xcad   : > { %v12918_v62 = vpop.f32.mrb[48].mxu1 }
 0xcae   : > { %v5714_v49 = vpop.f32.mrb[49].mxu1 }
 0xcaf   : > { %v12919_v60 = vpop.f32.mrb[50].mxu1 }
 0xcb0   : > { %v5730_v63 = vpack.c.bf16 %v12919_v60, %v12918_v62  ;;  %v5717_v16 = vpop.f32.mrb[51].mxu1 }
 0xcb1   : > { %v5729_v46 = vpack.c.bf16 %v5717_v16, %v5714_v49 }
 0xcb2   : > { %5733 = vst.msk [vmem:[#allocation7 + $0x8] sm:$0xff] %vm5731_vm12, %v5730_v63 }
 0xcb3   : > { %5732 = vst.msk [vmem:[#allocation7] sm:$0xff] %vm5731_vm12, %v5729_v46 }
 0xcb9   : > { %v5735_v41 = vld [vmem:[#allocation7 + $0x8] sm:$0xff] }
 0xcba   : > { %v5734_v21 = vld [vmem:[#allocation7] sm:$0xff]  ;;  %5781 = vrot.lane.b32.xlu1 %v5735_v41, %s16356_s0  ;;  %5738 = vst.msk [vmem:[#allocation14 + $0x18] sm:$0xff] %vm5736_vm0, %v5735_v41 }
 0xcbb   : > { %5779 = vrot.lane.b32.xlu0 %v5734_v21, %s16356_s0  ;;  %5737 = vst.msk [vmem:[#allocation14] sm:$0xff] %vm5736_vm0, %v5734_v21 }
 0xcbe   : > { %5743 = vrot.lane.b32.xlu1 %v5734_v21, %s16358_s16 }
 0xcbf   : > { %5791 = vrot.lane.b32.xlu0 %v5734_v21, %s16344_s28 }
 0xcc1   : > { %v5844_v29 = vld [vmem:[#allocation14 + $0x18] sm:$0xff] }
 0xcc2   : > { %5745 = vrot.lane.b32.xlu1 %v5735_v41, %s16358_s16  ;;  %v5843_v15 = vld [vmem:[#allocation14] sm:$0xff] }
 0xcc3   : > { %5793 = vrot.lane.b32.xlu0 %v5735_v41, %s16344_s28  ;;  %s16347_s28 = smov 114  }
 0xcc6   : > { %5755 = vrot.lane.b32.xlu1 %v5734_v21, %s16362_s18 }
 0xcc7   : > { %5803 = vrot.lane.b32.xlu0 %v5734_v21, %s16354_s2 }
 0xcca   : > { %5757 = vrot.lane.b32.xlu1 %v5735_v41, %s16362_s18 }
 0xccb   : > { %5805 = vrot.lane.b32.xlu0 %v5735_v41, %s16354_s2  ;;  %s16421_s2 = sld [smem:[#allocation23_spill]] }
 0xcce   : > { %5767 = vrot.lane.b32.xlu1 %v5734_v21, %s16352_s23 }
 0xccf   : > { %5815 = vrot.lane.b32.xlu0 %v5734_v21, %s16350_s1 }
 0xcd2   : > { %5769 = vrot.lane.b32.xlu1 %v5735_v41, %s16352_s23  ;;  %s16420_s23 = smov 120  }
 0xcd3   : > { %5817 = vrot.lane.b32.xlu0 %v5735_v41, %s16350_s1  ;;  %s16419_s1 = sld [smem:[#allocation22_spill]] }
 0xcd6   : > { %5829 = vrot.lane.b32.xlu1 %v5735_v41, %s16347_s28 }
 0xcd7   : > { %5827 = vrot.lane.b32.xlu0 %v5734_v21, %s16347_s28  ;;  %s16418_s28 = sld [smem:[#allocation37_spill]] }
 0xcda   : > { %5872 = vperm.xlu1 %13162, %v5862_v5  }
 0xcdb   : > { %5867 = vperm.xlu0 %13161, %v5861_v9  }
 0xcdd   : > { %v13572_v51 = vld [vmem:[%s16418_s28] sm:$0xff]   ;;  %v13573_v55 = vld [vmem:[%s16418_s28 + $0x8] ss:$0 sps:$4 sm:$0x77]  }
 0xcde   : > { %5882 = vperm.xlu1 %13162, %v5864_v12   ;;  %v6046_v19 = vsel %vm6044_vm11, %v13573_v55, 0 }
 0xcdf   : > { %5877 = vperm.xlu0 %13161, %v5863_v13  }
 0xd2c   : > { %v5782_v36 = vpop.permute.xlu1 %5781 }
 0xd2d   : > { %5786 = vst.msk [vmem:[#allocation14 + $0xd8] sm:$0xff] %vm5736_vm0, %v5782_v36  ;;  %v5780_v11 = vpop.permute.xlu0 %5779 }
 0xd2e   : > { %5785 = vst.msk [vmem:[#allocation14 + $0xc0] sm:$0xff] %vm5736_vm0, %v5780_v11 }
 0xd30   : > { %v5744_v7 = vpop.permute.xlu1 %5743 }
 0xd31   : > { %5749 = vst.msk [vmem:[#allocation14 + $0x30] sm:$0xff] %vm5736_vm0, %v5744_v7  ;;  %v5792_v30 = vpop.permute.xlu0 %5791 }
 0xd32   : > { %5797 = vst.msk [vmem:[#allocation14 + $0xf0] sm:$0xff] %vm5736_vm0, %v5792_v30 }
 0xd34   : > { %v5746_v18 = vpop.permute.xlu1 %5745  ;;  %v5852_v20 = vld [vmem:[#allocation14 + $0xd8] sm:$0xff] }
 0xd35   : > { %5750 = vst.msk [vmem:[#allocation14 + $0x48] sm:$0xff] %vm5736_vm0, %v5746_v18  ;;  %v5794_v17 = vpop.permute.xlu0 %5793  ;;  %v5851_v26 = vld [vmem:[#allocation14 + $0xc0] sm:$0xff] }
 0xd36   : > { %5798 = vst.msk [vmem:[#allocation14 + $0x108] sm:$0xff] %vm5736_vm0, %v5794_v17  ;;  %12426 = vmatprep.subr.bf16.mxu1 %v5851_v26 }
 0xd37   : > { %12427 = vmatpush3.bf16.msra.mxu1 %v5843_v15 }
 0xd38   : > { %v5756_v25 = vpop.permute.xlu1 %5755  ;;  %12428 = vmatprep.subr.bf16.mxu1 %v5852_v20  ;;  %v5845_v22 = vld [vmem:[#allocation14 + $0x30] sm:$0xff] }
 0xd39   : > { %5761 = vst.msk [vmem:[#allocation14 + $0x60] sm:$0xff] %vm5736_vm0, %v5756_v25  ;;  %v5804_v27 = vpop.permute.xlu0 %5803  ;;  %v5853_v1 = vld [vmem:[#allocation14 + $0xf0] sm:$0xff] }
 0xd3a   : > { %5809 = vst.msk [vmem:[#allocation14 + $0x120] sm:$0xff] %vm5736_vm0, %v5804_v27 }
 0xd3b   : > { %12429 = vmatpush3.bf16.msra.mxu1 %v5844_v29 }
 0xd3c   : > { %v5758_v45 = vpop.permute.xlu1 %5757  ;;  %12430 = vmatprep.subr.bf16.mxu1 %v5853_v1  ;;  %v5846_v14 = vld [vmem:[#allocation14 + $0x48] sm:$0xff] }
 0xd3d   : > { %5762 = vst.msk [vmem:[#allocation14 + $0x78] sm:$0xff] %vm5736_vm0, %v5758_v45  ;;  %v5806_v37 = vpop.permute.xlu0 %5805  ;;  %v5854_v39 = vld [vmem:[#allocation14 + $0x108] sm:$0xff] }
 0xd3e   : > { %5810 = vst.msk [vmem:[#allocation14 + $0x138] sm:$0xff] %vm5736_vm0, %v5806_v37 }
 0xd3f   : > { %12431 = vmatpush3.bf16.msra.mxu1 %v5845_v22 }
 0xd40   : > { %v5768_v48 = vpop.permute.xlu1 %5767  ;;  %12432 = vmatprep.subr.bf16.mxu1 %v5854_v39  ;;  %v5847_v43 = vld [vmem:[#allocation14 + $0x60] sm:$0xff] }
 0xd41   : > { %5773 = vst.msk [vmem:[#allocation14 + $0x90] sm:$0xff] %vm5736_vm0, %v5768_v48  ;;  %v5816_v6 = vpop.permute.xlu0 %5815  ;;  %v5855_v42 = vld [vmem:[#allocation14 + $0x120] sm:$0xff] }
 0xd42   : > { %5821 = vst.msk [vmem:[#allocation14 + $0x150] sm:$0xff] %vm5736_vm0, %v5816_v6 }
 0xd43   : > { %12433 = vmatpush3.bf16.msra.mxu1 %v5846_v14 }
 0xd44   : > { %v5770_v3 = vpop.permute.xlu1 %5769  ;;  %12434 = vmatprep.subr.bf16.mxu1 %v5855_v42  ;;  %v5848_v38 = vld [vmem:[#allocation14 + $0x78] sm:$0xff] }
 0xd45   : > { %5774 = vst.msk [vmem:[#allocation14 + $0xa8] sm:$0xff] %vm5736_vm0, %v5770_v3  ;;  %v5818_v58 = vpop.permute.xlu0 %5817  ;;  %v5856_v44 = vld [vmem:[#allocation14 + $0x138] sm:$0xff] }
 0xd46   : > { %5822 = vst.msk [vmem:[#allocation14 + $0x168] sm:$0xff] %vm5736_vm0, %v5818_v58 }
 0xd47   : > { %12435 = vmatpush3.bf16.msra.mxu1 %v5847_v43 }
 0xd48   : > { %v5830_v56 = vpop.permute.xlu1 %5829  ;;  %12436 = vmatprep.subr.bf16.mxu1 %v5856_v44  ;;  %v5849_v33 = vld [vmem:[#allocation14 + $0x90] sm:$0xff]  ;;  %v15264_v44 = vld [vmem:[#allocation6] sm:$0xff] }
 0xd49   : > { %5834 = vst.msk [vmem:[#allocation14 + $0x198] sm:$0xff] %vm5736_vm0, %v5830_v56  ;;  %v5828_v23 = vpop.permute.xlu0 %5827  ;;  %v5857_v31 = vld [vmem:[#allocation14 + $0x150] sm:$0xff] }
 0xd4a   : > { %5833 = vst.msk [vmem:[#allocation14 + $0x180] sm:$0xff] %vm5736_vm0, %v5828_v23  ;;  %v13576_v56 = vld [vmem:[%s16419_s1 + $0x4] ss:$12 sps:$4 sm:$0xff]   ;;  %v6236_v23 = vld [vmem:[%s16421_s2 + $0x8] sm:$0xff] }
 0xd4b   : > { %12437 = vmatpush3.bf16.msra.mxu1 %v5848_v38  ;;  %v13577_v38 = vld [vmem:[%s16419_s1 + $0x8] ss:$12 sps:$4 sm:$0xff]  }
 0xd4c   : > { %12438 = vmatprep.subr.bf16.mxu1 %v5857_v31  ;;  %v5850_v10 = vld [vmem:[#allocation14 + $0xa8] sm:$0xff]  ;;  %v6235_v31 = vld [vmem:[%s16421_s2] sm:$0xff] }
 0xd4d   : > { %v5858_v24 = vld [vmem:[#allocation14 + $0x168] sm:$0xff] }
 0xd4f   : > { %12439 = vmatpush3.bf16.msra.mxu1 %v5849_v33  ;;  %v6238_v33 = vld [vmem:[%s16421_s2 + $0x18] sm:$0xff] }
 0xd50   : > { %12440 = vmatprep.subr.bf16.mxu1 %v5858_v24  ;;  %v5860_v50 = vld [vmem:[#allocation14 + $0x198] sm:$0xff]  ;;  %v6237_v24 = vld [vmem:[%s16421_s2 + $0x10] sm:$0xff] }
 0xd51   : > { %v5859_v47 = vld [vmem:[#allocation14 + $0x180] sm:$0xff] }
 0xd52   : > { %12920 = vmatprep.subr.bf16.mxu0 %v5859_v47 }
 0xd53   : > { %12441 = vmatpush3.bf16.msra.mxu1 %v5850_v10  ;;  %12921 = vmatpush3.bf16.msra.mxu0 %v5859_v47  ;;  %v6240_v47 = vld [vmem:[%s16421_s2 + $0x28] sm:$0xff]  ;;  %v6239_v10 = vld [vmem:[%s16421_s2 + $0x20] sm:$0xff] }
 0xd54   : > { %12922 = vmatprep.subr.bf16.mxu0 %v5860_v50 }
 0xd56   : > { %5955 = vmatmul.mubr.bf16.vlgmr.msra.gmra.mrb[52].mxu1 %v13564_v8  ;;  %v6242_v8 = vld [vmem:[%s16421_s2 + $0x38] sm:$0xff] }
 0xd57   : > { %12923 = vmatpush3.bf16.msra.mxu0 %v5860_v50  ;;  %5962 = vmatprep.mubr.bf16.mxu1 %v13569_v35  ;;  %v6241_v50 = vld [vmem:[%s16421_s2 + $0x30] sm:$0xff]  ;;  %s13845_s2 = smov 123  }
 0xd58   : > { %12928 = vmatprep.subr.bf16.mxu0 %v13572_v51 }
 0xd59   : > { %v5873_v63 = vpop.permute.xlu1 %5872 }
 0xd5a   : > { %12925 = vmatmul.mubr.msk.bf16.vlgmr.msra.gmra.mrb[32].mxu0 %vm5915_vm1, %v13568_v52  ;;  %v5868_v53 = vpop.permute.xlu0 %5867 }
 0xd5b   : > { %12929 = vmatpush3.bf16.msra.mxu0 %v13572_v51 }
 0xd5c   : > { %13081 = vmatprep.subr.msk.bf16.mxu0 %vm6044_vm11, %v13573_v55 }
 0xd5d   : > { %v5883_v15 = vpop.permute.xlu1 %5882 }
 0xd5e   : > { %5963 = vmatmul.mubr.bf16.gmra.mrb[56].mxu1 %v13571_v54  ;;  %v5878_v7 = vpop.permute.xlu0 %5877 }
 0xd5f   : > { %12931 = vmatpush3.bf16.msra.mxu0 %v6046_v19  ;;  %6387 = vmatprep.mubr.bf16.mxu1 %v13576_v56 }
 0xe29   : > { %v12442_v34 = vpop.f32.mrb[52].mxu1 }
 0xe2a   : > { %v12443_v57 = vpop.f32.mrb[53].mxu1 }
 0xe2b   : > { %v12444_v32 = vadd.f32 %v12443_v57, %v12442_v34  ;;  %v12445_v40 = vpop.f32.mrb[54].mxu1 }
 0xe2c   : > { %v12446_v61 = vpop.f32.mrb[55].mxu1 }
 0xe2d   : > { %v12447_v62 = vadd.f32 %v12446_v61, %v12445_v40  ;;  %v12926_v49 = vpop.f32.mrb[32].mxu0  ;;  %v5957_v60 = vadd.f32 %v12444_v32, %v5868_v53 }
 0xe2e   : > { %v6005_v16 = vpop.f32.mrb[33].mxu0 }
 0xe2f   : > { %v6006_v46 = vadd.f32 %v6005_v16, %v5957_v60  ;;  %v12927_v41 = vpop.f32.mrb[34].mxu0  ;;  %v5960_v21 = vadd.f32 %v12447_v62, %v5873_v63 }
 0xe30   : > { %v6008_v0 = vpop.f32.mrb[35].mxu0 }
 0xe31   : > { %v6009_v5 = vadd.f32 %v6008_v0, %v5960_v21  ;;  %v12448_v28 = vpop.f32.mrb[56].mxu1  ;;  %v6020_v12 = vmax.f32 %v6006_v46, 0.0 }
 0xe32   : > { %v12449_v9 = vpop.f32.mrb[57].mxu1 }
 0xe33   : > { %v6021_v13 = vmax.f32 %v6009_v5, 0.0  ;;  %v12450_v36 = vadd.f32 %v12449_v9, %v12448_v28  ;;  %v12451_v11 = vpop.f32.mrb[58].mxu1 }
 0xe34   : > { %v12452_v30 = vpop.f32.mrb[59].mxu1 }
 0xe35   : > { %v6024_v18 = vpack.c.bf16 %v6021_v13, %v6020_v12  ;;  %v5965_v17 = vadd.f32 %v12450_v36, %v5878_v7  ;;  %v12453_v26 = vadd.f32 %v12452_v30, %v12451_v11 }
 0xe37   : > { %v6014_v20 = vadd.f32 %v12926_v49, %v5965_v17  ;;  %v5968_v25 = vadd.f32 %v12453_v26, %v5883_v15  ;;  %12932 = vmatprep.mubr.msk.bf16.mxu0 %vm5736_vm0, %v6024_v18  ;;  %v13574_v15 = vld [vmem:[%s16419_s1] ss:$12 sps:$4 sm:$0xff]  }
 0xe39   : > { %v6017_v27 = vadd.f32 %v12927_v41, %v5968_v25  ;;  %v6022_v29 = vmax.f32 %v6014_v20, 0.0  ;;  %v13579_v25 = vld [vmem:[%s16419_s1 + $0x1c] ss:$12 sps:$4 sm:$0xff]  }
 0xe3b   : > { %v6023_v1 = vmax.f32 %v6017_v27, 0.0  ;;  %v13578_v27 = vld [vmem:[%s16419_s1 + $0x20] ss:$12 sps:$4 sm:$0xff]  }
 0xe3d   : > { %v6025_v45 = vpack.c.bf16 %v6023_v1, %v6022_v29  ;;  %v13585_v29 = vld [vmem:[%s16419_s1 + $0x38] ss:$12 sps:$4 sm:$0xff]  }
 0xe3e   : > { %v13581_v1 = vld [vmem:[%s16419_s1 + $0x18] ss:$12 sps:$4 sm:$0xff]  }
 0xe3f   : > { %12933 = vmatmul.mubr.msk.bf16.vlgmr.msra.gmra.mrb[36].mxu0 %vm5736_vm0, %v6025_v45  ;;  %v13582_v45 = vld [vmem:[%s16419_s1 + $0x34] ss:$12 sps:$4 sm:$0xff]  }
 0xe40   : > { %12940 = vmatprep.mubr.msk.bf16.mxu0 %vm5915_vm1, %v13577_v38 }
 0xf12   : > { %v12934_v37 = vpop.f32.mrb[36].mxu0 }
 0xf13   : > { %v6082_v22 = vpop.f32.mrb[37].mxu0 }
 0xf14   : > { %v12935_v39 = vpop.f32.mrb[38].mxu0 }
 0xf15   : > { %v6098_v48 = vpack.c.bf16 %v12935_v39, %v12934_v37  ;;  %v6085_v6 = vpop.f32.mrb[39].mxu0  ;;  %v13586_v37 = vld [vmem:[%s16419_s1 + $0x50] ss:$12 sps:$4 sm:$0xff]   ;;  %v13587_v39 = vld [vmem:[%s16419_s1 + $0x4c] ss:$12 sps:$4 sm:$0xff]  }
 0xf16   : > { %v6097_v14 = vpack.c.bf16 %v6085_v6, %v6082_v22  ;;  %v13584_v22 = vld [vmem:[%s16419_s1 + $0x30] ss:$12 sps:$4 sm:$0xff]  }
 0xf17   : > { %6100 = vst.msk [vmem:[#allocation8 + $0x8] sm:$0xff] %vm5731_vm12, %v6098_v48  ;;  %v13589_v48 = vld [vmem:[%s16419_s1 + $0x48] ss:$12 sps:$4 sm:$0xff]   ;;  %s16427_s1 = smov 126  }
 0xf18   : > { %6099 = vst.msk [vmem:[#allocation8] sm:$0xff] %vm5731_vm12, %v6097_v14 }
 0xf1e   : > { %v6102_v42 = vld [vmem:[#allocation8 + $0x8] sm:$0xff] }
 0xf1f   : > { %6104 = vst.msk [vmem:[#allocation14 + $0x18] sm:$0xff] %vm5736_vm0, %v6102_v42  ;;  %7518 = vst.msk [vmem:[#allocation14 + $0x378] sm:$0xff] %vm5736_vm0, %v6102_v42  ;;  %v15246_v3 = vld [vmem:[#allocation8] sm:$0xff]  ;;  %6147 = vrot.lane.b32.xlu1 %v6102_v42, %s16356_s0 }
 0xf20   : > { %v15249_v58 = vld [vmem:[#allocation8] sm:$0xff]  ;;  %6103 = vst.msk [vmem:[#allocation14] sm:$0xff] %vm5736_vm0, %v15246_v3  ;;  %6145 = vrot.lane.b32.xlu0 %v15246_v3, %s16356_s0  ;;  %s16422_s0 = smov 116  }
 0xf21   : > { %7517 = vst.msk [vmem:[#allocation14 + $0x360] sm:$0xff] %vm5736_vm0, %v15249_v58 }
 0xf23   : > { %6109 = vrot.lane.b32.xlu1 %v15246_v3, %s16358_s16 }
 0xf24   : > { %6157 = vrot.lane.b32.xlu0 %v15246_v3, %s16420_s23 }
 0xf26   : > { %v6218_v61 = vld [vmem:[#allocation14 + $0x18] sm:$0xff] }
 0xf27   : > { %6111 = vrot.lane.b32.xlu1 %v6102_v42, %s16358_s16  ;;  %s16423_s16 = smov 122   ;;  %v6217_v57 = vld [vmem:[#allocation14] sm:$0xff] }
 0xf28   : > { %v15262_v43 = vld [vmem:[#allocation14 + $0x360] sm:$0xff]  ;;  %6159 = vrot.lane.b32.xlu0 %v6102_v42, %s16420_s23 }
 0xf29   : > { %8475 = vst.msk [vmem:[#allocation14 + $0x360] sm:$0xff] %vm5248_vm10, %v15264_v44 }
 0xf2b   : > { %6121 = vrot.lane.b32.xlu1 %v15246_v3, %s16362_s18 }
 0xf2c   : > { %6169 = vrot.lane.b32.xlu0 %v15246_v3, %s16422_s0 }
 0xf2f   : > { %6123 = vrot.lane.b32.xlu1 %v6102_v42, %s16362_s18  ;;  %s16426_s18 = sld [smem:[#allocation38_spill]] }
 0xf30   : > { %6171 = vrot.lane.b32.xlu0 %v6102_v42, %s16422_s0 }
 0xf33   : > { %6133 = vrot.lane.b32.xlu1 %v15246_v3, %s16423_s16 }
 0xf34   : > { %6181 = vrot.lane.b32.xlu0 %v15246_v3, %s16424_s3 }
 0xf35   : > { %v13590_v6 = vld [vmem:[%s16426_s18] sm:$0xff]   ;;  %v13591_v14 = vld [vmem:[%s16426_s18 + $0x8] ss:$0 sps:$4 sm:$0x77]  }
 0xf37   : > { %6135 = vrot.lane.b32.xlu1 %v6102_v42, %s16423_s16 }
 0xf38   : > { %6183 = vrot.lane.b32.xlu0 %v6102_v42, %s16424_s3 }
 0xf3b   : > { %6195 = vrot.lane.b32.xlu1 %v6102_v42, %s16425_s4  ;;  %v6522_v42 = vsel %vm6044_vm11, %v13591_v14, 0 }
 0xf3c   : > { %6193 = vrot.lane.b32.xlu0 %v15246_v3, %s16425_s4 }
 0xf3f   : > { %6250 = vperm.xlu1 %13162, %v6236_v23  }
 0xf40   : > { %6245 = vperm.xlu0 %13161, %v6235_v31  }
 0xf43   : > { %6260 = vperm.xlu1 %13162, %v6238_v33  }
 0xf44   : > { %6255 = vperm.xlu0 %13161, %v6237_v24  }
 0xf47   : > { %6270 = vperm.xlu1 %13162, %v6240_v47  }
 0xf48   : > { %6265 = vperm.xlu0 %13161, %v6239_v10  }
 0xf4b   : > { %6280 = vperm.xlu1 %13162, %v6242_v8  }
 0xf4c   : > { %6275 = vperm.xlu0 %13161, %v6241_v50  }
 0xf91   : > { %v6148_v35 = vpop.permute.xlu1 %6147 }
 0xf92   : > { %6152 = vst.msk [vmem:[#allocation14 + $0xd8] sm:$0xff] %vm5736_vm0, %v6148_v35  ;;  %v6146_v52 = vpop.permute.xlu0 %6145 }
 0xf93   : > { %6151 = vst.msk [vmem:[#allocation14 + $0xc0] sm:$0xff] %vm5736_vm0, %v6146_v52 }
 0xf95   : > { %v6110_v54 = vpop.permute.xlu1 %6109 }
 0xf96   : > { %6115 = vst.msk [vmem:[#allocation14 + $0x30] sm:$0xff] %vm5736_vm0, %v6110_v54  ;;  %v6158_v51 = vpop.permute.xlu0 %6157 }
 0xf97   : > { %6163 = vst.msk [vmem:[#allocation14 + $0xf0] sm:$0xff] %vm5736_vm0, %v6158_v51 }
 0xf99   : > { %v6112_v55 = vpop.permute.xlu1 %6111  ;;  %v6226_v32 = vld [vmem:[#allocation14 + $0xd8] sm:$0xff] }
 0xf9a   : > { %6116 = vst.msk [vmem:[#allocation14 + $0x48] sm:$0xff] %vm5736_vm0, %v6112_v55  ;;  %v6160_v19 = vpop.permute.xlu0 %6159  ;;  %v6225_v34 = vld [vmem:[#allocation14 + $0xc0] sm:$0xff] }
 0xf9b   : > { %6164 = vst.msk [vmem:[#allocation14 + $0x108] sm:$0xff] %vm5736_vm0, %v6160_v19  ;;  %12462 = vmatprep.subr.bf16.mxu1 %v6225_v34 }
 0xf9c   : > { %12463 = vmatpush3.bf16.msra.mxu1 %v6217_v57 }
 0xf9d   : > { %v6122_v40 = vpop.permute.xlu1 %6121  ;;  %12464 = vmatprep.subr.bf16.mxu1 %v6226_v32  ;;  %v6219_v63 = vld [vmem:[#allocation14 + $0x30] sm:$0xff] }
 0xf9e   : > { %6127 = vst.msk [vmem:[#allocation14 + $0x60] sm:$0xff] %vm5736_vm0, %v6122_v40  ;;  %v6170_v53 = vpop.permute.xlu0 %6169  ;;  %v6227_v62 = vld [vmem:[#allocation14 + $0xf0] sm:$0xff] }
 0xf9f   : > { %6175 = vst.msk [vmem:[#allocation14 + $0x120] sm:$0xff] %vm5736_vm0, %v6170_v53 }
 0xfa0   : > { %12465 = vmatpush3.bf16.msra.mxu1 %v6218_v61 }
 0xfa1   : > { %v6124_v49 = vpop.permute.xlu1 %6123  ;;  %12466 = vmatprep.subr.bf16.mxu1 %v6227_v62  ;;  %v6220_v21 = vld [vmem:[#allocation14 + $0x48] sm:$0xff] }
 0xfa2   : > { %6128 = vst.msk [vmem:[#allocation14 + $0x78] sm:$0xff] %vm5736_vm0, %v6124_v49  ;;  %v6172_v60 = vpop.permute.xlu0 %6171  ;;  %v6228_v16 = vld [vmem:[#allocation14 + $0x108] sm:$0xff] }
 0xfa3   : > { %6176 = vst.msk [vmem:[#allocation14 + $0x138] sm:$0xff] %vm5736_vm0, %v6172_v60 }
 0xfa4   : > { %12467 = vmatpush3.bf16.msra.mxu1 %v6219_v63 }
 0xfa5   : > { %v6134_v46 = vpop.permute.xlu1 %6133  ;;  %12468 = vmatprep.subr.bf16.mxu1 %v6228_v16  ;;  %v6221_v9 = vld [vmem:[#allocation14 + $0x60] sm:$0xff] }
 0xfa6   : > { %6139 = vst.msk [vmem:[#allocation14 + $0x90] sm:$0xff] %vm5736_vm0, %v6134_v46  ;;  %v6182_v41 = vpop.permute.xlu0 %6181  ;;  %v6229_v0 = vld [vmem:[#allocation14 + $0x120] sm:$0xff] }
 0xfa7   : > { %6187 = vst.msk [vmem:[#allocation14 + $0x150] sm:$0xff] %vm5736_vm0, %v6182_v41 }
 0xfa8   : > { %12469 = vmatpush3.bf16.msra.mxu1 %v6220_v21 }
 0xfa9   : > { %v6136_v5 = vpop.permute.xlu1 %6135  ;;  %12470 = vmatprep.subr.bf16.mxu1 %v6229_v0  ;;  %v6222_v11 = vld [vmem:[#allocation14 + $0x78] sm:$0xff] }
 0xfaa   : > { %6140 = vst.msk [vmem:[#allocation14 + $0xa8] sm:$0xff] %vm5736_vm0, %v6136_v5  ;;  %v6184_v28 = vpop.permute.xlu0 %6183  ;;  %v6230_v12 = vld [vmem:[#allocation14 + $0x138] sm:$0xff] }
 0xfab   : > { %6188 = vst.msk [vmem:[#allocation14 + $0x168] sm:$0xff] %vm5736_vm0, %v6184_v28 }
 0xfac   : > { %12471 = vmatpush3.bf16.msra.mxu1 %v6221_v9 }
 0xfad   : > { %v6196_v13 = vpop.permute.xlu1 %6195  ;;  %12472 = vmatprep.subr.bf16.mxu1 %v6230_v12  ;;  %v6223_v30 = vld [vmem:[#allocation14 + $0x90] sm:$0xff] }
 0xfae   : > { %6200 = vst.msk [vmem:[#allocation14 + $0x198] sm:$0xff] %vm5736_vm0, %v6196_v13  ;;  %v6194_v36 = vpop.permute.xlu0 %6193  ;;  %v6231_v7 = vld [vmem:[#allocation14 + $0x150] sm:$0xff] }
 0xfaf   : > { %6199 = vst.msk [vmem:[#allocation14 + $0x180] sm:$0xff] %vm5736_vm0, %v6194_v36 }
 0xfb0   : > { %12473 = vmatpush3.bf16.msra.mxu1 %v6222_v11 }
 0xfb1   : > { %12474 = vmatprep.subr.bf16.mxu1 %v6231_v7  ;;  %v6224_v26 = vld [vmem:[#allocation14 + $0xa8] sm:$0xff] }
 0xfb2   : > { %v6232_v18 = vld [vmem:[#allocation14 + $0x168] sm:$0xff] }
 0xfb4   : > { %12475 = vmatpush3.bf16.msra.mxu1 %v6223_v30 }
 0xfb5   : > { %12476 = vmatprep.subr.bf16.mxu1 %v6232_v18  ;;  %v6234_v20 = vld [vmem:[#allocation14 + $0x198] sm:$0xff] }
 0xfb6   : > { %v6233_v17 = vld [vmem:[#allocation14 + $0x180] sm:$0xff] }
 0xfb7   : > { %12936 = vmatprep.subr.bf16.mxu0 %v6233_v17 }
 0xfb8   : > { %12477 = vmatpush3.bf16.msra.mxu1 %v6224_v26  ;;  %12937 = vmatpush3.bf16.msra.mxu0 %v6233_v17 }
 0xfb9   : > { %12938 = vmatprep.subr.bf16.mxu0 %v6234_v20 }
 0xfbb   : > { %6388 = vmatmul.mubr.bf16.vlgmr.msra.gmra.mrb[60].mxu1 %v13574_v15 }
 0xfbc   : > { %12939 = vmatpush3.bf16.msra.mxu0 %v6234_v20  ;;  %6395 = vmatprep.mubr.bf16.mxu1 %v13579_v25 }
 0xfbd   : > { %12948 = vmatprep.subr.bf16.mxu0 %v13590_v6 }
 0xfbe   : > { %v6251_v50 = vpop.permute.xlu1 %6250 }
 0xfbf   : > { %12941 = vmatmul.mubr.msk.bf16.vlgmr.msra.gmra.mrb[40].mxu0 %vm5915_vm1, %v13578_v27  ;;  %v6246_v33 = vpop.permute.xlu0 %6245 }
 0xfc0   : > { %12944 = vmatprep.mubr.msk.bf16.mxu0 %vm5915_vm1, %v13585_v29  ;;  %12949 = vmatpush3.bf16.msra.mxu0 %v13590_v6 }
 0xfc1   : > { %13082 = vmatprep.subr.msk.bf16.mxu0 %vm6044_vm11, %v13591_v14 }
 0xfc2   : > { %v6261_v41 = vpop.permute.xlu1 %6260 }
 0xfc3   : > { %6396 = vmatmul.mubr.bf16.gmra.mrb[64].mxu1 %v13581_v1  ;;  %v6256_v62 = vpop.permute.xlu0 %6255 }
 0xfc4   : > { %6403 = vmatprep.mubr.bf16.mxu1 %v13582_v45  ;;  %12951 = vmatpush3.bf16.msra.mxu0 %v6522_v42 }
 0xfc6   : > { %v6271_v27 = vpop.permute.xlu1 %6270 }
 0xfc7   : > { %12945 = vmatmul.mubr.msk.bf16.gmra.mrb[44].mxu0 %vm5915_vm1, %v13586_v37  ;;  %v6266_v17 = vpop.permute.xlu0 %6265  ;;  %vm6601_vm1 = vcmask 48128  }
 0xfcb   : > { %6404 = vmatmul.mubr.bf16.gmra.mrb[68].mxu1 %v13584_v22  ;;  %v6276_v42 = vpop.permute.xlu0 %6275 }
 0xfcc   : > { %6411 = vmatprep.mubr.bf16.mxu1 %v13587_v39 }
 0xfd3   : > { %6412 = vmatmul.mubr.bf16.gmra.mrb[72].mxu1 %v13589_v48 }
0x108e   : > { %v12478_v56 = vpop.f32.mrb[60].mxu1 }
0x108f   : > { %v12479_v23 = vpop.f32.mrb[61].mxu1 }
0x1090   : > { %v12480_v38 = vadd.f32 %v12479_v23, %v12478_v56  ;;  %v12481_v31 = vpop.f32.mrb[62].mxu1 }
0x1091   : > { %v12482_v24 = vpop.f32.mrb[63].mxu1 }
0x1092   : > { %v12483_v47 = vadd.f32 %v12482_v24, %v12481_v31  ;;  %v12942_v10 = vpop.f32.mrb[40].mxu0  ;;  %v6390_v8 = vadd.f32 %v12480_v38, %v6246_v33  ;;  %v6281_v33 = vpop.permute.xlu1 %6280 }
0x1093   : > { %v6454_v35 = vpop.f32.mrb[41].mxu0 }
0x1094   : > { %v6455_v52 = vadd.f32 %v6454_v35, %v6390_v8  ;;  %v12943_v54 = vpop.f32.mrb[42].mxu0  ;;  %v6393_v51 = vadd.f32 %v12483_v47, %v6251_v50 }
0x1095   : > { %v6457_v55 = vpop.f32.mrb[43].mxu0 }
0x1096   : > { %v6458_v19 = vadd.f32 %v6457_v55, %v6393_v51  ;;  %v12484_v34 = vpop.f32.mrb[64].mxu1  ;;  %v6485_v32 = vmax.f32 %v6455_v52, 0.0 }
0x1097   : > { %v12485_v57 = vpop.f32.mrb[65].mxu1 }
0x1098   : > { %v6486_v40 = vmax.f32 %v6458_v19, 0.0  ;;  %v12486_v53 = vadd.f32 %v12485_v57, %v12484_v34  ;;  %v12487_v61 = vpop.f32.mrb[66].mxu1 }
0x1099   : > { %v12488_v49 = vpop.f32.mrb[67].mxu1 }
0x109a   : > { %v6493_v60 = vpack.c.bf16 %v6486_v40, %v6485_v32  ;;  %v6398_v63 = vadd.f32 %v12486_v53, %v6256_v62  ;;  %v12489_v16 = vadd.f32 %v12488_v49, %v12487_v61  ;;  %v12946_v46 = vpop.f32.mrb[44].mxu0 }
0x109b   : > { %v6470_v21 = vpop.f32.mrb[45].mxu0 }
0x109c   : > { %v6463_v0 = vadd.f32 %v12942_v10, %v6398_v63  ;;  %v6401_v5 = vadd.f32 %v12489_v16, %v6261_v41  ;;  %12952 = vmatprep.mubr.msk.bf16.mxu0 %vm5736_vm0, %v6493_v60  ;;  %v12947_v28 = vpop.f32.mrb[46].mxu0  ;;  %v13602_v41 = vld [vmem:[%s16429_s9 + $0xc] ss:$20 sps:$4 sm:$0xff]  }
0x109d   : > { %v6473_v9 = vpop.f32.mrb[47].mxu0  ;;  %7116 = vmatprep.mubr.bf16.mxu1 %v13602_v41  ;;  %v13595_v41 = vld [vmem:[%s16429_s9 + $0x2c] ss:$20 sps:$4 sm:$0xff]  }
0x109e   : > { %v6466_v12 = vadd.f32 %v12943_v54, %v6401_v5  ;;  %v12490_v13 = vpop.f32.mrb[68].mxu1  ;;  %v6487_v11 = vmax.f32 %v6463_v0, 0.0  ;;  %v6858_v0 = vld [vmem:[%s16430_s11] sm:$0xff]  ;;  %v6861_v5 = vld [vmem:[%s16430_s11 + $0x18] sm:$0xff] }
0x109f   : > { %v12491_v36 = vpop.f32.mrb[69].mxu1 }
0x10a0   : > { %v6488_v7 = vmax.f32 %v6466_v12, 0.0  ;;  %v12492_v30 = vadd.f32 %v12491_v36, %v12490_v13  ;;  %v12493_v18 = vpop.f32.mrb[70].mxu1  ;;  %v6862_v12 = vld [vmem:[%s16430_s11 + $0x20] sm:$0xff]  ;;  %v6865_v13 = vld [vmem:[%s16430_s11 + $0x38] sm:$0xff]  ;;  %v6864_v36 = vld [vmem:[%s16430_s11 + $0x30] sm:$0xff] }
0x10a1   : > { %v12494_v26 = vpop.f32.mrb[71].mxu1 }
0x10a2   : > { %v6494_v15 = vpack.c.bf16 %v6488_v7, %v6487_v11  ;;  %v12495_v20 = vadd.f32 %v12494_v26, %v12493_v18  ;;  %v6406_v25 = vadd.f32 %v12492_v30, %v6266_v17 }
0x10a4   : > { %v6471_v29 = vadd.f32 %v6470_v21, %v6406_v25  ;;  %12953 = vmatmul.mubr.msk.bf16.vlgmr.msra.gmra.mrb[48].mxu0 %vm5736_vm0, %v6494_v15  ;;  %v6409_v1 = vadd.f32 %v12495_v20, %v6271_v27  ;;  %v6859_v21 = vld [vmem:[%s16430_s11 + $0x8] sm:$0xff] }
0x10a6   : > { %v6474_v45 = vadd.f32 %v6473_v9, %v6409_v1  ;;  %v12496_v37 = vpop.f32.mrb[72].mxu1  ;;  %v6489_v39 = vmax.f32 %v6471_v29, 0.0  ;;  %v6863_v9 = vld [vmem:[%s16430_s11 + $0x28] sm:$0xff] }
0x10a7   : > { %v12497_v22 = vpop.f32.mrb[73].mxu1 }
0x10a8   : > { %v6490_v48 = vmax.f32 %v6474_v45, 0.0  ;;  %v12498_v6 = vadd.f32 %v12497_v22, %v12496_v37  ;;  %v12499_v14 = vpop.f32.mrb[74].mxu1 }
0x10a9   : > { %v12500_v56 = vpop.f32.mrb[75].mxu1 }
0x10aa   : > { %v6495_v23 = vpack.c.bf16 %v6490_v48, %v6489_v39  ;;  %v6414_v38 = vadd.f32 %v12498_v6, %v6276_v42  ;;  %v12501_v31 = vadd.f32 %v12500_v56, %v12499_v14 }
0x10ac   : > { %v6479_v24 = vadd.f32 %v12946_v46, %v6414_v38  ;;  %v6417_v47 = vadd.f32 %v12501_v31, %v6281_v33  ;;  %12956 = vmatprep.mubr.msk.bf16.mxu0 %vm5736_vm0, %v6495_v23  ;;  %v13594_v46 = vld [vmem:[%s16429_s9 + $0x4] ss:$20 sps:$4 sm:$0xff]  }
0x10ae   : > { %v6482_v10 = vadd.f32 %v12947_v28, %v6417_v47  ;;  %v6491_v8 = vmax.f32 %v6479_v24, 0.0  ;;  %v6860_v28 = vld [vmem:[%s16430_s11 + $0x10] sm:$0xff] }
0x10b0   : > { %v6492_v50 = vmax.f32 %v6482_v10, 0.0 }
0x10b2   : > { %v6496_v35 = vpack.c.bf16 %v6492_v50, %v6491_v8 }
0x10b4   : > { %12957 = vmatmul.mubr.msk.bf16.gmra.mrb[52].mxu0 %vm5736_vm0, %v6496_v35 }
0x10b5   : > { %7051 = vmatprep.mubr.bf16.mxu0 %v13594_v46  ;;  %v13592_v46 = vld [vmem:[%s16429_s9] ss:$20 sps:$4 sm:$0xff]  }
0x1177   : > { %v12954_v52 = vpop.f32.mrb[48].mxu0 }
0x1178   : > { %v6558_v54 = vpop.f32.mrb[49].mxu0 }
0x1179   : > { %v12955_v51 = vpop.f32.mrb[50].mxu0 }
0x117a   : > { %v6590_v55 = vpack.c.bf16 %v12955_v51, %v12954_v52  ;;  %v6561_v19 = vpop.f32.mrb[51].mxu0 }
0x117b   : > { %v6589_v34 = vpack.c.bf16 %v6561_v19, %v6558_v54 }
0x117c   : > { %6594 = vst.msk [vmem:[#allocation9 + $0x8] sm:$0xff] %vm16370_vm9, %v6590_v55 }
0x117d   : > { %6593 = vst.msk [vmem:[#allocation9] sm:$0xff] %vm16370_vm9, %v6589_v34 }
0x1183   : > { %v6598_v57 = vld [vmem:[#allocation9 + $0x8] sm:$0xff] }
0x1184   : > { %v6597_v32 = vld [vmem:[#allocation9] sm:$0xff]  ;;  %6736 = vrot.lane.b32.xlu0 %v6598_v57, %s16420_s23  ;;  %6640 = vrot.lane.b32.xlu1 %v6598_v57, %s16427_s1  ;;  %6603 = vst.msk [vmem:[#allocation14 + $0x18] sm:$0xff] %vm6601_vm1, %v6598_v57 }
0x1185   : > { %6602 = vst.msk [vmem:[#allocation14] sm:$0xff] %vm6601_vm1, %v6597_v32 }
0x1187   : > { %v12958_v40 = vpop.f32.mrb[52].mxu0 }
0x1188   : > { %6688 = vrot.lane.b32.xlu1 %v6598_v57, %s13845_s2  ;;  %6638 = vrot.lane.b32.xlu0 %v6597_v32, %s16427_s1  ;;  %v6574_v53 = vpop.f32.mrb[53].mxu0 }
0x1189   : > { %v12959_v61 = vpop.f32.mrb[54].mxu0 }
0x118a   : > { %v6592_v62 = vpack.c.bf16 %v12959_v61, %v12958_v40  ;;  %v6577_v49 = vpop.f32.mrb[55].mxu0 }
0x118b   : > { %v6591_v60 = vpack.c.bf16 %v6577_v49, %v6574_v53  ;;  %v6823_v22 = vld [vmem:[#allocation14 + $0x18] sm:$0xff] }
0x118c   : > { %6596 = vst.msk [vmem:[#allocation9 + $0x18] sm:$0xff] %vm16370_vm9, %v6592_v62  ;;  %6686 = vrot.lane.b32.xlu1 %v6597_v32, %s13845_s2  ;;  %6734 = vrot.lane.b32.xlu0 %v6597_v32, %s16420_s23  ;;  %v6822_v25 = vld [vmem:[#allocation14] sm:$0xff] }
0x118d   : > { %6595 = vst.msk [vmem:[#allocation9 + $0x10] sm:$0xff] %vm16370_vm9, %v6591_v60  ;;  %vm7006_vm9 = vcmask 523264  }
0x1190   : > { %6662 = vrot.lane.b32.xlu0 %v6597_v32, %s13846_s5  ;;  %6614 = vrot.lane.b32.xlu1 %v6597_v32, %s16428_s8 }
0x1193   : > { %v6600_v63 = vld [vmem:[#allocation9 + $0x18] sm:$0xff] }
0x1194   : > { %v6599_v16 = vld [vmem:[#allocation9 + $0x10] sm:$0xff]  ;;  %6644 = vrot.lane.b32.xlu1 %v6600_v63, %s16427_s1  ;;  %6605 = vst.msk [vmem:[#allocation14 + $0x48] sm:$0xff] %vm6601_vm1, %v6600_v63 }
0x1195   : > { %6642 = vrot.lane.b32.xlu0 %v6599_v16, %s16427_s1  ;;  %6604 = vst.msk [vmem:[#allocation14 + $0x30] sm:$0xff] %vm6601_vm1, %v6599_v16 }
0x1198   : > { %6616 = vrot.lane.b32.xlu1 %v6598_v57, %s16428_s8 }
0x1199   : > { %6664 = vrot.lane.b32.xlu0 %v6598_v57, %s13846_s5 }
0x119b   : > { %v6825_v47 = vld [vmem:[#allocation14 + $0x48] sm:$0xff] }
0x119c   : > { %6692 = vrot.lane.b32.xlu1 %v6600_v63, %s13845_s2  ;;  %v6824_v38 = vld [vmem:[#allocation14 + $0x30] sm:$0xff] }
0x119d   : > { %6740 = vrot.lane.b32.xlu0 %v6600_v63, %s16420_s23 }
0x11a0   : > { %6690 = vrot.lane.b32.xlu1 %v6599_v16, %s13845_s2  ;;  %s16433_s2 = smov 121  }
0x11a1   : > { %6738 = vrot.lane.b32.xlu0 %v6599_v16, %s16420_s23 }
0x11a4   : > { %6618 = vrot.lane.b32.xlu1 %v6599_v16, %s16428_s8 }
0x11a5   : > { %6666 = vrot.lane.b32.xlu0 %v6599_v16, %s13846_s5 }
0x11a8   : > { %6620 = vrot.lane.b32.xlu1 %v6600_v63, %s16428_s8 }
0x11a9   : > { %6668 = vrot.lane.b32.xlu0 %v6600_v63, %s13846_s5  ;;  %s16431_s5 = smov 118  }
0x11ac   : > { %6710 = vrot.lane.b32.xlu1 %v6597_v32, %s16423_s16 }
0x11ad   : > { %6758 = vrot.lane.b32.xlu0 %v6597_v32, %s13847_s12 }
0x11b0   : > { %6712 = vrot.lane.b32.xlu1 %v6598_v57, %s16423_s16 }
0x11b1   : > { %6760 = vrot.lane.b32.xlu0 %v6598_v57, %s13847_s12 }
0x11b4   : > { %6714 = vrot.lane.b32.xlu1 %v6599_v16, %s16423_s16 }
0x11b5   : > { %6762 = vrot.lane.b32.xlu0 %v6599_v16, %s13847_s12 }
0x11b8   : > { %6716 = vrot.lane.b32.xlu1 %v6600_v63, %s16423_s16 }
0x11b9   : > { %6764 = vrot.lane.b32.xlu0 %v6600_v63, %s13847_s12  ;;  %s16432_s12 = sld [smem:[#allocation39_spill]] }
0x11bc   : > { %6784 = vrot.lane.b32.xlu1 %v6598_v57, %s16431_s5 }
0x11bd   : > { %6782 = vrot.lane.b32.xlu0 %v6597_v32, %s16431_s5 }
0x11c0   : > { %6788 = vrot.lane.b32.xlu1 %v6600_v63, %s16431_s5 }
0x11c1   : > { %6786 = vrot.lane.b32.xlu0 %v6599_v16, %s16431_s5 }
0x11c4   : > { %6873 = vperm.xlu1 %13162, %v6859_v21  }
0x11c5   : > { %6868 = vperm.xlu0 %13161, %v6858_v0  }
0x11c8   : > { %6883 = vperm.xlu1 %13162, %v6861_v5  }
0x11c9   : > { %6878 = vperm.xlu0 %13161, %v6860_v28  }
0x11cc   : > { %6893 = vperm.xlu1 %13162, %v6863_v9  }
0x11cd   : > { %6888 = vperm.xlu0 %13161, %v6862_v12  }
0x11d0   : > { %6903 = vperm.xlu1 %13162, %v6865_v13  }
0x11d1   : > { %6898 = vperm.xlu0 %13161, %v6864_v36  }
0x11d5   : > { %7535 = vrot.lane.b32.xlu0 %v15246_v3, %s16427_s1 }
0x11f6   : > { %v6737_v11 = vpop.permute.xlu0 %6736  ;;  %v6641_v7 = vpop.permute.xlu1 %6640 }
0x11f7   : > { %6747 = vst.msk [vmem:[#allocation14 + $0x258] sm:$0xff] %vm6601_vm1, %v6737_v11  ;;  %6651 = vst.msk [vmem:[#allocation14 + $0xd8] sm:$0xff] %vm6601_vm1, %v6641_v7  ;;  %v13597_v11 = vld [vmem:[%s16429_s9 + $0x28] ss:$20 sps:$4 sm:$0xff]  }
0x11f8   : > { %v13598_v7 = vld [vmem:[%s16429_s9 + $0x54] ss:$20 sps:$4 sm:$0xff]  }
0x11fa   : > { %v6689_v30 = vpop.permute.xlu1 %6688  ;;  %v6639_v18 = vpop.permute.xlu0 %6638 }
0x11fb   : > { %6699 = vst.msk [vmem:[#allocation14 + $0x198] sm:$0xff] %vm6601_vm1, %v6689_v30  ;;  %6650 = vst.msk [vmem:[#allocation14 + $0xc0] sm:$0xff] %vm6601_vm1, %v6639_v18 }
0x11fe   : > { %v6687_v17 = vpop.permute.xlu1 %6686  ;;  %v6735_v26 = vpop.permute.xlu0 %6734  ;;  %v6831_v27 = vld [vmem:[#allocation14 + $0xd8] sm:$0xff] }
0x11ff   : > { %6698 = vst.msk [vmem:[#allocation14 + $0x180] sm:$0xff] %vm6601_vm1, %v6687_v17  ;;  %6746 = vst.msk [vmem:[#allocation14 + $0x240] sm:$0xff] %vm6601_vm1, %v6735_v26  ;;  %v6847_v39 = vld [vmem:[#allocation14 + $0x258] sm:$0xff] }
0x1202   : > { %v6663_v15 = vpop.permute.xlu0 %6662  ;;  %v6615_v3 = vpop.permute.xlu1 %6614  ;;  %v6830_v20 = vld [vmem:[#allocation14 + $0xc0] sm:$0xff]  ;;  %v6839_v14 = vld [vmem:[#allocation14 + $0x198] sm:$0xff] }
0x1203   : > { %6674 = vst.msk [vmem:[#allocation14 + $0x120] sm:$0xff] %vm6601_vm1, %v6663_v15  ;;  %6626 = vst.msk [vmem:[#allocation14 + $0x60] sm:$0xff] %vm6601_vm1, %v6615_v3  ;;  %12514 = vmatprep.subr.bf16.mxu0 %v6830_v20 }
0x1204   : > { %12515 = vmatpush3.bf16.msra.mxu0 %v6822_v25 }
0x1205   : > { %12516 = vmatprep.subr.bf16.mxu0 %v6831_v27  ;;  %v13600_v27 = vld [vmem:[%s16429_s9 + $0x8] ss:$20 sps:$4 sm:$0xff]  }
0x1206   : > { %v6645_v29 = vpop.permute.xlu1 %6644  ;;  %v6846_v1 = vld [vmem:[#allocation14 + $0x240] sm:$0xff] }
0x1207   : > { %v6838_v45 = vld [vmem:[#allocation14 + $0x180] sm:$0xff]  ;;  %6653 = vst.msk [vmem:[#allocation14 + $0x108] sm:$0xff] %vm6601_vm1, %v6645_v29  ;;  %12554 = vmatprep.subr.bf16.mxu1 %v6846_v1  ;;  %v6643_v37 = vpop.permute.xlu0 %6642  ;;  %v13604_v1 = vld [vmem:[%s16429_s9 + $0x7c] ss:$20 sps:$4 sm:$0xff]  }
0x1208   : > { %6652 = vst.msk [vmem:[#allocation14 + $0xf0] sm:$0xff] %vm6601_vm1, %v6643_v37  ;;  %12517 = vmatpush3.bf16.msra.mxu0 %v6823_v22  ;;  %12555 = vmatpush3.bf16.msra.mxu1 %v6838_v45  ;;  %v13603_v29 = vld [vmem:[%s16429_s9 + $0x50] ss:$20 sps:$4 sm:$0xff]   ;;  %v13606_v45 = vld [vmem:[%s16429_s9 + $0x34] ss:$20 sps:$4 sm:$0xff]  }
0x1209   : > { %12556 = vmatprep.subr.bf16.mxu1 %v6847_v39  ;;  %v13608_v39 = vld [vmem:[%s16429_s9 + $0x78] ss:$20 sps:$4 sm:$0xff]  }
0x120a   : > { %v6617_v48 = vpop.permute.xlu1 %6616  ;;  %v6834_v10 = vld [vmem:[#allocation14 + $0x120] sm:$0xff] }
0x120b   : > { %6627 = vst.msk [vmem:[#allocation14 + $0x78] sm:$0xff] %vm6601_vm1, %v6617_v48  ;;  %v6665_v6 = vpop.permute.xlu0 %6664  ;;  %v6826_v35 = vld [vmem:[#allocation14 + $0x60] sm:$0xff] }
0x120c   : > { %6675 = vst.msk [vmem:[#allocation14 + $0x138] sm:$0xff] %vm6601_vm1, %v6665_v6  ;;  %12557 = vmatpush3.bf16.msra.mxu1 %v6839_v14  ;;  %v13609_v48 = vld [vmem:[%s16429_s9 + $0x30] ss:$20 sps:$4 sm:$0xff]  }
0x120d   : > { %v13610_v6 = vld [vmem:[%s16429_s9 + $0x5c] ss:$20 sps:$4 sm:$0xff]  }
0x120e   : > { %v6693_v42 = vpop.permute.xlu1 %6692  ;;  %v6833_v31 = vld [vmem:[#allocation14 + $0x108] sm:$0xff] }
0x120f   : > { %6701 = vst.msk [vmem:[#allocation14 + $0x1c8] sm:$0xff] %vm6601_vm1, %v6693_v42  ;;  %v6741_v56 = vpop.permute.xlu0 %6740  ;;  %v6832_v23 = vld [vmem:[#allocation14 + $0xf0] sm:$0xff] }
0x1210   : > { %6749 = vst.msk [vmem:[#allocation14 + $0x288] sm:$0xff] %vm6601_vm1, %v6741_v56  ;;  %12518 = vmatprep.subr.bf16.mxu0 %v6832_v23  ;;  %v13612_v14 = vld [vmem:[%s16429_s9 + $0x10] ss:$20 sps:$4 sm:$0xff]  }
0x1211   : > { %12519 = vmatpush3.bf16.msra.mxu0 %v6824_v38  ;;  %v13613_v38 = vld [vmem:[%s16429_s9 + $0x58] ss:$20 sps:$4 sm:$0xff]  }
0x1212   : > { %v6691_v33 = vpop.permute.xlu1 %6690  ;;  %12520 = vmatprep.subr.bf16.mxu0 %v6833_v31  ;;  %v6827_v19 = vld [vmem:[#allocation14 + $0x78] sm:$0xff] }
0x1213   : > { %6700 = vst.msk [vmem:[#allocation14 + $0x1b0] sm:$0xff] %vm6601_vm1, %v6691_v33  ;;  %v6739_v24 = vpop.permute.xlu0 %6738  ;;  %v6835_v52 = vld [vmem:[#allocation14 + $0x138] sm:$0xff] }
0x1214   : > { %6748 = vst.msk [vmem:[#allocation14 + $0x270] sm:$0xff] %vm6601_vm1, %v6739_v24  ;;  %v13614_v31 = vld [vmem:[%s16429_s9 + $0x38] ss:$20 sps:$4 sm:$0xff]   ;;  %v13617_v24 = vld [vmem:[%s16429_s9 + $0x60] ss:$20 sps:$4 sm:$0xff]  }
0x1215   : > { %12521 = vmatpush3.bf16.msra.mxu0 %v6825_v47  ;;  %v13615_v33 = vld [vmem:[%s16429_s9 + $0x84] ss:$20 sps:$4 sm:$0xff]  }
0x1216   : > { %v6619_v8 = vpop.permute.xlu1 %6618  ;;  %12522 = vmatprep.subr.bf16.mxu0 %v6834_v10  ;;  %v6841_v62 = vld [vmem:[#allocation14 + $0x1c8] sm:$0xff] }
0x1217   : > { %6628 = vst.msk [vmem:[#allocation14 + $0x90] sm:$0xff] %vm6601_vm1, %v6619_v8  ;;  %v6667_v50 = vpop.permute.xlu0 %6666  ;;  %v6849_v57 = vld [vmem:[#allocation14 + $0x288] sm:$0xff]  ;;  %v13618_v8 = vld [vmem:[%s16429_s9 + $0x80] ss:$20 sps:$4 sm:$0xff]  }
0x1218   : > { %6676 = vst.msk [vmem:[#allocation14 + $0x150] sm:$0xff] %vm6601_vm1, %v6667_v50  ;;  %v13619_v50 = vld [vmem:[%s16429_s9 + $0x88] ss:$20 sps:$4 sm:$0xff]   ;;  %s16435_s9 = sld [smem:[#allocation27_spill]] }
0x1219   : > { %12523 = vmatpush3.bf16.msra.mxu0 %v6826_v35 }
0x121a   : > { %v6621_v54 = vpop.permute.xlu1 %6620  ;;  %12524 = vmatprep.subr.bf16.mxu0 %v6835_v52  ;;  %v6840_v34 = vld [vmem:[#allocation14 + $0x1b0] sm:$0xff] }
0x121b   : > { %6629 = vst.msk [vmem:[#allocation14 + $0xa8] sm:$0xff] %vm6601_vm1, %v6621_v54  ;;  %v6669_v51 = vpop.permute.xlu0 %6668  ;;  %v6848_v55 = vld [vmem:[#allocation14 + $0x270] sm:$0xff]  ;;  %v7226_v54 = vld [vmem:[%s16432_s12] sm:$0x7]  ;;  %s16434_s12 = sld [smem:[#allocation26_spill]] }
0x121c   : > { %6677 = vst.msk [vmem:[#allocation14 + $0x168] sm:$0xff] %vm6601_vm1, %v6669_v51  ;;  %12558 = vmatprep.subr.bf16.mxu1 %v6848_v55  ;;  %v7240_v51 = vsel %vm6044_vm11, %v7226_v54, 0 }
0x121d   : > { %12525 = vmatpush3.bf16.msra.mxu0 %v6827_v19  ;;  %12559 = vmatpush3.bf16.msra.mxu1 %v6840_v34 }
0x121e   : > { %12560 = vmatprep.subr.bf16.mxu1 %v6849_v57  ;;  %v6711_v32 = vpop.permute.xlu1 %6710  ;;  %v6828_v61 = vld [vmem:[#allocation14 + $0x90] sm:$0xff] }
0x121f   : > { %6722 = vst.msk [vmem:[#allocation14 + $0x1e0] sm:$0xff] %vm6601_vm1, %v6711_v32  ;;  %v6759_v40 = vpop.permute.xlu0 %6758  ;;  %v6836_v53 = vld [vmem:[#allocation14 + $0x150] sm:$0xff] }
0x1220   : > { %6770 = vst.msk [vmem:[#allocation14 + $0x2a0] sm:$0xff] %vm6601_vm1, %v6759_v40  ;;  %12526 = vmatprep.subr.bf16.mxu0 %v6836_v53 }
0x1221   : > { %12527 = vmatpush3.bf16.msra.mxu0 %v6828_v61  ;;  %12561 = vmatpush3.bf16.msra.mxu1 %v6841_v62 }
0x1222   : > { %v6713_v49 = vpop.permute.xlu1 %6712  ;;  %v6829_v16 = vld [vmem:[#allocation14 + $0xa8] sm:$0xff] }
0x1223   : > { %6723 = vst.msk [vmem:[#allocation14 + $0x1f8] sm:$0xff] %vm6601_vm1, %v6713_v49  ;;  %v6761_v60 = vpop.permute.xlu0 %6760  ;;  %v6837_v63 = vld [vmem:[#allocation14 + $0x168] sm:$0xff] }
0x1224   : > { %6771 = vst.msk [vmem:[#allocation14 + $0x2b8] sm:$0xff] %vm6601_vm1, %v6761_v60  ;;  %12528 = vmatprep.subr.bf16.mxu0 %v6837_v63 }
0x1225   : > { %12529 = vmatpush3.bf16.msra.mxu0 %v6829_v16 }
0x1226   : > { %v6715_v21 = vpop.permute.xlu1 %6714  ;;  %v6842_v28 = vld [vmem:[#allocation14 + $0x1e0] sm:$0xff] }
0x1227   : > { %6724 = vst.msk [vmem:[#allocation14 + $0x210] sm:$0xff] %vm6601_vm1, %v6715_v21  ;;  %v6763_v0 = vpop.permute.xlu0 %6762  ;;  %v6850_v5 = vld [vmem:[#allocation14 + $0x2a0] sm:$0xff] }
0x1228   : > { %6772 = vst.msk [vmem:[#allocation14 + $0x2d0] sm:$0xff] %vm6601_vm1, %v6763_v0  ;;  %7052 = vmatmul.mubr.bf16.vlgmr.msra.gmra.mrb[56].mxu0 %v13592_v46  ;;  %12562 = vmatprep.subr.bf16.mxu1 %v6850_v5 }
0x1229   : > { %12563 = vmatpush3.bf16.msra.mxu1 %v6842_v28  ;;  %7059 = vmatprep.mubr.bf16.mxu0 %v13595_v41 }
0x122a   : > { %v6717_v9 = vpop.permute.xlu1 %6716  ;;  %v6843_v36 = vld [vmem:[#allocation14 + $0x1f8] sm:$0xff] }
0x122b   : > { %6725 = vst.msk [vmem:[#allocation14 + $0x228] sm:$0xff] %vm6601_vm1, %v6717_v9  ;;  %v6765_v12 = vpop.permute.xlu0 %6764  ;;  %v6851_v13 = vld [vmem:[#allocation14 + $0x2b8] sm:$0xff] }
0x122c   : > { %6773 = vst.msk [vmem:[#allocation14 + $0x2e8] sm:$0xff] %vm6601_vm1, %v6765_v12  ;;  %12564 = vmatprep.subr.bf16.mxu1 %v6851_v13 }
0x122d   : > { %12565 = vmatpush3.bf16.msra.mxu1 %v6843_v36 }
0x122e   : > { %v6785_v30 = vpop.permute.xlu1 %6784  ;;  %v6844_v26 = vld [vmem:[#allocation14 + $0x210] sm:$0xff] }
0x122f   : > { %6795 = vst.msk [vmem:[#allocation14 + $0x318] sm:$0xff] %vm6601_vm1, %v6785_v30  ;;  %v6783_v18 = vpop.permute.xlu0 %6782  ;;  %v6852_v17 = vld [vmem:[#allocation14 + $0x2d0] sm:$0xff] }
0x1230   : > { %6794 = vst.msk [vmem:[#allocation14 + $0x300] sm:$0xff] %vm6601_vm1, %v6783_v18  ;;  %7060 = vmatmul.mubr.bf16.gmra.mrb[60].mxu0 %v13597_v11  ;;  %12566 = vmatprep.subr.bf16.mxu1 %v6852_v17 }
0x1231   : > { %12567 = vmatpush3.bf16.msra.mxu1 %v6844_v26  ;;  %7067 = vmatprep.mubr.bf16.mxu0 %v13598_v7 }
0x1232   : > { %v6789_v15 = vpop.permute.xlu1 %6788  ;;  %v6845_v25 = vld [vmem:[#allocation14 + $0x228] sm:$0xff] }
0x1233   : > { %6797 = vst.msk [vmem:[#allocation14 + $0x348] sm:$0xff] %vm6601_vm1, %v6789_v15  ;;  %v6787_v3 = vpop.permute.xlu0 %6786  ;;  %v6853_v20 = vld [vmem:[#allocation14 + $0x2e8] sm:$0xff] }
0x1234   : > { %6796 = vst.msk [vmem:[#allocation14 + $0x330] sm:$0xff] %vm6601_vm1, %v6787_v3  ;;  %12568 = vmatprep.subr.bf16.mxu1 %v6853_v20 }
0x1235   : > { %12569 = vmatpush3.bf16.msra.mxu1 %v6845_v25 }
0x1236   : > { %v6855_v22 = vld [vmem:[#allocation14 + $0x318] sm:$0xff]  ;;  %13083 = vmatprep.subr.msk.bf16.mxu1 %vm6044_vm11, %v7226_v54 }
0x1237   : > { %v6854_v37 = vld [vmem:[#allocation14 + $0x300] sm:$0xff] }
0x1238   : > { %7068 = vmatmul.mubr.bf16.gmra.mrb[64].mxu0 %v13603_v29  ;;  %7117 = vmatmul.mubr.bf16.vlgmr.msra.gmra.mrb[76].mxu1 %v13600_v27 }
0x1239   : > { %12960 = vmatprep.subr.bf16.mxu0 %v6854_v37  ;;  %7075 = vmatprep.mubr.bf16.mxu0 %v13604_v1 }
0x123a   : > { %12961 = vmatpush3.bf16.msra.mxu0 %v6854_v37  ;;  %7124 = vmatprep.mubr.bf16.mxu1 %v13606_v45  ;;  %v6857_v56 = vld [vmem:[#allocation14 + $0x348] sm:$0xff] }
0x123b   : > { %12962 = vmatprep.subr.bf16.mxu0 %v6855_v22  ;;  %v6856_v42 = vld [vmem:[#allocation14 + $0x330] sm:$0xff]  ;;  %12977 = vmatpush3.bf16.msra.mxu1 %v7240_v51 }
0x123e   : > { %12963 = vmatpush3.bf16.msra.mxu0 %v6855_v22 }
0x123f   : > { %12964 = vmatprep.subr.bf16.mxu0 %v6856_v42 }
0x1240   : > { %7076 = vmatmul.mubr.bf16.gmra.mrb[68].mxu0 %v13608_v39  ;;  %7125 = vmatmul.mubr.bf16.gmra.mrb[80].mxu1 %v13609_v48 }
0x1241   : > { %7132 = vmatprep.mubr.bf16.mxu1 %v13610_v6  ;;  %12968 = vmatprep.mubr.msk.bf16.mxu0 %vm7006_vm9, %v13612_v14 }
0x1242   : > { %12965 = vmatpush3.bf16.msra.mxu0 %v6856_v42 }
0x1243   : > { %12966 = vmatprep.subr.bf16.mxu0 %v6857_v56  ;;  %v6874_v16 = vpop.permute.xlu1 %6873 }
0x1244   : > { %v6869_v23 = vpop.permute.xlu0 %6868 }
0x1246   : > { %12967 = vmatpush3.bf16.msra.mxu0 %v6857_v56 }
0x1247   : > { %v6884_v15 = vpop.permute.xlu1 %6883 }
0x1248   : > { %v6879_v47 = vpop.permute.xlu0 %6878  ;;  %7133 = vmatmul.mubr.bf16.gmra.mrb[84].mxu1 %v13613_v38 }
0x1249   : > { %12969 = vmatmul.mubr.msk.bf16.vlgmr.msra.gmra.mrb[72].mxu0 %vm7006_vm9, %v13614_v31  ;;  %7140 = vmatprep.mubr.bf16.mxu1 %v13615_v33 }
0x124a   : > { %12972 = vmatprep.mubr.msk.bf16.mxu0 %vm7006_vm9, %v13617_v24 }
0x124b   : > { %v6894_v38 = vpop.permute.xlu1 %6893 }
0x124c   : > { %v6889_v10 = vpop.permute.xlu0 %6888 }
0x1250   : > { %v15425_v35 = vpop.permute.xlu0 %6898  ;;  %7141 = vmatmul.mubr.bf16.gmra.mrb[88].mxu1 %v13618_v8 }
0x1251   : > { %12973 = vmatmul.mubr.msk.bf16.gmra.mrb[76].mxu0 %vm7006_vm9, %v13619_v50  ;;  %vm16451_vm9 = vcmask 736256  }
0x1254   : > { %v7536_v52 = vpop.permute.xlu0 %7535 }
0x1255   : > { %7541 = vst.msk [vmem:[#allocation14 + $0x3c0] sm:$0xff] %vm5736_vm0, %v7536_v52 }
0x12fb   : > { %v12530_v55 = vpop.f32.mrb[56].mxu0 }
0x12fc   : > { %v12531_v19 = vpop.f32.mrb[57].mxu0 }
0x12fd   : > { %v12532_v34 = vadd.f32 %v12531_v19, %v12530_v55  ;;  %v12533_v57 = vpop.f32.mrb[58].mxu0 }
0x12fe   : > { %v12534_v32 = vpop.f32.mrb[59].mxu0 }
0x12ff   : > { %v12535_v40 = vadd.f32 %v12534_v32, %v12533_v57  ;;  %v7054_v5 = vadd.f32 %v12532_v34, %v6869_v23 }
0x1301   : > { %v7057_v7 = vadd.f32 %v12535_v40, %v6874_v16 }
0x1303   : > { %v12536_v53 = vpop.f32.mrb[60].mxu0 }
0x1304   : > { %v12537_v61 = vpop.f32.mrb[61].mxu0 }
0x1305   : > { %v12538_v62 = vadd.f32 %v12537_v61, %v12536_v53  ;;  %v12539_v49 = vpop.f32.mrb[62].mxu0 }
0x1306   : > { %v12540_v60 = vpop.f32.mrb[63].mxu0 }
0x1307   : > { %v12541_v63 = vadd.f32 %v12540_v60, %v12539_v49  ;;  %v7062_v29 = vadd.f32 %v12538_v62, %v6879_v47 }
0x1309   : > { %v7065_v6 = vadd.f32 %v12541_v63, %v6884_v15 }
0x130b   : > { %v12542_v46 = vpop.f32.mrb[64].mxu0  ;;  %v12570_v41 = vpop.f32.mrb[76].mxu1 }
0x130c   : > { %v12543_v21 = vpop.f32.mrb[65].mxu0  ;;  %v12571_v0 = vpop.f32.mrb[77].mxu1 }
0x130d   : > { %v12544_v28 = vadd.f32 %v12543_v21, %v12542_v46  ;;  %v12572_v9 = vadd.f32 %v12571_v0, %v12570_v41  ;;  %v12545_v12 = vpop.f32.mrb[66].mxu0  ;;  %v12573_v13 = vpop.f32.mrb[78].mxu1 }
0x130e   : > { %v12546_v36 = vpop.f32.mrb[67].mxu0  ;;  %v12574_v11 = vpop.f32.mrb[79].mxu1 }
0x130f   : > { %v12547_v30 = vadd.f32 %v12546_v36, %v12545_v12  ;;  %v12575_v18 = vadd.f32 %v12574_v11, %v12573_v13  ;;  %v7119_v17 = vadd.f32 %v12572_v9, %v7054_v5  ;;  %v7070_v8 = vadd.f32 %v12544_v28, %v6889_v10  ;;  %v6904_v46 = vpop.permute.xlu1 %6903 }
0x1311   : > { %v7122_v26 = vadd.f32 %v12575_v18, %v7057_v7  ;;  %v7073_v34 = vadd.f32 %v12547_v30, %v6894_v38 }
0x1313   : > { %v12548_v3 = vpop.f32.mrb[68].mxu0  ;;  %v12576_v20 = vpop.f32.mrb[80].mxu1 }
0x1314   : > { %v12549_v25 = vpop.f32.mrb[69].mxu0  ;;  %v12577_v27 = vpop.f32.mrb[81].mxu1 }
0x1315   : > { %v12550_v1 = vadd.f32 %v12549_v25, %v12548_v3  ;;  %v12578_v45 = vadd.f32 %v12577_v27, %v12576_v20  ;;  %v12551_v37 = vpop.f32.mrb[70].mxu0  ;;  %v12579_v22 = vpop.f32.mrb[82].mxu1 }
0x1316   : > { %v12552_v39 = vpop.f32.mrb[71].mxu0  ;;  %v12580_v48 = vpop.f32.mrb[83].mxu1 }
0x1317   : > { %v12553_v14 = vadd.f32 %v12552_v39, %v12551_v37  ;;  %v12581_v42 = vadd.f32 %v12580_v48, %v12579_v22  ;;  %v7127_v56 = vadd.f32 %v12578_v45, %v7062_v29  ;;  %v7078_v28 = vadd.f32 %v12550_v1, %v15425_v35 }
0x1319   : > { %v7130_v23 = vadd.f32 %v12581_v42, %v7065_v6  ;;  %v7081_v30 = vadd.f32 %v12553_v14, %v6904_v46 }
0x131b   : > { %v12582_v31 = vpop.f32.mrb[84].mxu1 }
0x131c   : > { %v12970_v33 = vpop.f32.mrb[72].mxu0  ;;  %v12583_v24 = vpop.f32.mrb[85].mxu1 }
0x131d   : > { %v7192_v50 = vadd.f32 %v12970_v33, %v7127_v56  ;;  %v12584_v52 = vadd.f32 %v12583_v24, %v12582_v31  ;;  %v7183_v54 = vpop.f32.mrb[73].mxu0  ;;  %v12585_v47 = vpop.f32.mrb[86].mxu1 }
0x131e   : > { %v7184_v51 = vadd.f32 %v7183_v54, %v7119_v17  ;;  %v12971_v55 = vpop.f32.mrb[74].mxu0  ;;  %v12586_v19 = vpop.f32.mrb[87].mxu1 }
0x131f   : > { %v7195_v57 = vadd.f32 %v12971_v55, %v7130_v23  ;;  %v12587_v32 = vadd.f32 %v12586_v19, %v12585_v47  ;;  %v7186_v40 = vpop.f32.mrb[75].mxu0  ;;  %v7135_v53 = vadd.f32 %v12584_v52, %v7070_v8  ;;  %v7216_v62 = vmax.f32 %v7192_v50, 0.0  ;;  %v7532_v47 = vld [vmem:[#allocation8 + $0x8] sm:$0xff]  ;;  %v7701_v19 = vld [vmem:[%s16435_s9] sm:$0xff] }
0x1320   : > { %v7187_v61 = vadd.f32 %v7186_v40, %v7122_v26  ;;  %v7214_v63 = vmax.f32 %v7184_v51, 0.0  ;;  %v13622_v51 = vld [vmem:[%s16434_s12 + $0x4] ss:$28 sps:$4 sm:$0xff]   ;;  %v13631_v55 = vld [vmem:[%s16434_s12 + $0xc] ss:$28 sps:$4 sm:$0xff]   ;;  %v7704_v40 = vld [vmem:[%s16435_s9 + $0x18] sm:$0xff] }
0x1321   : > { %v7217_v49 = vmax.f32 %v7195_v57, 0.0  ;;  %v7138_v60 = vadd.f32 %v12587_v32, %v7073_v34  ;;  %7934 = vmatprep.mubr.bf16.mxu0 %v13622_v51  ;;  %v7703_v34 = vld [vmem:[%s16435_s9 + $0x10] sm:$0xff]  ;;  %v7702_v57 = vld [vmem:[%s16435_s9 + $0x8] sm:$0xff]  ;;  %v7705_v32 = vld [vmem:[%s16435_s9 + $0x20] sm:$0xff] }
0x1322   : > { %v7215_v16 = vmax.f32 %v7187_v61, 0.0  ;;  %v7706_v61 = vld [vmem:[%s16435_s9 + $0x28] sm:$0xff] }
0x1323   : > { %v7223_v10 = vpack.c.bf16 %v7217_v49, %v7216_v62  ;;  %v12588_v41 = vpop.f32.mrb[88].mxu1 }
0x1324   : > { %v7222_v21 = vpack.c.bf16 %v7215_v16, %v7214_v63  ;;  %v12974_v0 = vpop.f32.mrb[76].mxu0  ;;  %v12589_v5 = vpop.f32.mrb[89].mxu1 }
0x1325   : > { %v12590_v9 = vadd.f32 %v12589_v5, %v12588_v41  ;;  %v7199_v12 = vpop.f32.mrb[77].mxu0  ;;  %v12591_v13 = vpop.f32.mrb[90].mxu1 }
0x1326   : > { %v7200_v36 = vadd.f32 %v7199_v12, %v7135_v53  ;;  %v12975_v11 = vpop.f32.mrb[78].mxu0  ;;  %12978 = vmatprep.mubr.msk.bf16.mxu1 %vm6601_vm1, %v7222_v21  ;;  %v12592_v7 = vpop.f32.mrb[91].mxu1  ;;  %v7707_v53 = vld [vmem:[%s16435_s9 + $0x30] sm:$0xff] }
0x1327   : > { %v7143_v18 = vadd.f32 %v12590_v9, %v7078_v28  ;;  %v12593_v17 = vadd.f32 %v12592_v7, %v12591_v13  ;;  %v7202_v26 = vpop.f32.mrb[79].mxu0  ;;  %12979 = vmatmul.mubr.msk.bf16.vlgmr.msra.gmra.mrb[92].mxu1 %vm6601_vm1, %v7223_v10 }
0x1328   : > { %v7203_v15 = vadd.f32 %v7202_v26, %v7138_v60  ;;  %v7218_v25 = vmax.f32 %v7200_v36, 0.0 }
0x1329   : > { %v7208_v3 = vadd.f32 %v12974_v0, %v7143_v18  ;;  %v7146_v20 = vadd.f32 %v12593_v17, %v7081_v30 }
0x132a   : > { %v7219_v27 = vmax.f32 %v7203_v15, 0.0 }
0x132b   : > { %v7211_v35 = vadd.f32 %v12975_v11, %v7146_v20  ;;  %v7220_v1 = vmax.f32 %v7208_v3, 0.0 }
0x132c   : > { %v7224_v29 = vpack.c.bf16 %v7219_v27, %v7218_v25 }
0x132d   : > { %v7221_v45 = vmax.f32 %v7211_v35, 0.0 }
0x132e   : > { %12982 = vmatprep.mubr.msk.bf16.mxu1 %vm6601_vm1, %v7224_v29 }
0x132f   : > { %v7225_v37 = vpack.c.bf16 %v7221_v45, %v7220_v1 }
0x1331   : > { %12983 = vmatmul.mubr.msk.bf16.gmra.mrb[96].mxu1 %vm6601_vm1, %v7225_v37  ;;  %vm16454_vm1 = vmmov %vm16451_vm9 }
0x1332   : > { %7999 = vmatprep.mubr.bf16.mxu1 %v13631_v55 }
0x13fa   : > { %v12980_v22 = vpop.f32.mrb[92].mxu1 }
0x13fb   : > { %v7276_v39 = vpop.f32.mrb[93].mxu1 }
0x13fc   : > { %v12981_v48 = vpop.f32.mrb[94].mxu1 }
0x13fd   : > { %v7308_v6 = vpack.c.bf16 %v12981_v48, %v12980_v22  ;;  %v7279_v14 = vpop.f32.mrb[95].mxu1 }
0x13fe   : > { %v7307_v42 = vpack.c.bf16 %v7279_v14, %v7276_v39 }
0x13ff   : > { %7312 = vst.msk [vmem:[#allocation10 + $0x8] sm:$0xff] %vm5731_vm12, %v7308_v6 }
0x1400   : > { %7311 = vst.msk [vmem:[#allocation10] sm:$0xff] %vm5731_vm12, %v7307_v42 }
0x1404   : > { %v12984_v56 = vpop.f32.mrb[96].mxu1 }
0x1405   : > { %v7292_v23 = vpop.f32.mrb[97].mxu1 }
0x1406   : > { %v7316_v38 = vld [vmem:[#allocation10 + $0x8] sm:$0xff]  ;;  %v12985_v31 = vpop.f32.mrb[98].mxu1 }
0x1407   : > { %7320 = vst.msk [vmem:[#allocation14 + $0x18] sm:$0xff] %vm5736_vm0, %v7316_v38  ;;  %v7315_v33 = vld [vmem:[#allocation10] sm:$0xff]  ;;  %7453 = vrot.lane.b32.xlu0 %v7316_v38, %s16422_s0  ;;  %7357 = vrot.lane.b32.xlu1 %v7316_v38, %s16427_s1  ;;  %v7310_v24 = vpack.c.bf16 %v12985_v31, %v12984_v56  ;;  %v7295_v8 = vpop.f32.mrb[99].mxu1 }
0x1408   : > { %7319 = vst.msk [vmem:[#allocation14] sm:$0xff] %vm5736_vm0, %v7315_v33  ;;  %v7309_v50 = vpack.c.bf16 %v7295_v8, %v7292_v23 }
0x1409   : > { %7314 = vst.msk [vmem:[#allocation10 + $0x18] sm:$0xff] %vm5731_vm12, %v7310_v24 }
0x140a   : > { %7313 = vst.msk [vmem:[#allocation10 + $0x10] sm:$0xff] %vm5731_vm12, %v7309_v50  ;;  %vm7889_vm12 = vcmask 785408  }
0x140b   : > { %7405 = vrot.lane.b32.xlu0 %v7316_v38, %s16433_s2  ;;  %7381 = vrot.lane.b32.xlu1 %v7316_v38, %s16423_s16 }
0x140e   : > { %v7648_v36 = vld [vmem:[#allocation14 + $0x18] sm:$0xff] }
0x140f   : > { %7333 = vrot.lane.b32.xlu1 %v7316_v38, %s16428_s8  ;;  %7355 = vrot.lane.b32.xlu0 %v7315_v33, %s16427_s1  ;;  %v7647_v28 = vld [vmem:[#allocation14] sm:$0xff] }
0x1410   : > { %v7318_v52 = vld [vmem:[#allocation10 + $0x18] sm:$0xff] }
0x1411   : > { %7322 = vst.msk [vmem:[#allocation14 + $0x48] sm:$0xff] %vm5736_vm0, %v7318_v52  ;;  %v7317_v54 = vld [vmem:[#allocation10 + $0x10] sm:$0xff] }
0x1412   : > { %7321 = vst.msk [vmem:[#allocation14 + $0x30] sm:$0xff] %vm5736_vm0, %v7317_v54 }
0x1413   : > { %7379 = vrot.lane.b32.xlu0 %v7315_v33, %s16423_s16  ;;  %7331 = vrot.lane.b32.xlu1 %v7315_v33, %s16428_s8 }
0x1417   : > { %7451 = vrot.lane.b32.xlu0 %v7315_v33, %s16422_s0  ;;  %7499 = vrot.lane.b32.xlu1 %v7315_v33, %s16425_s4 }
0x1418   : > { %v7650_v39 = vld [vmem:[#allocation14 + $0x48] sm:$0xff] }
0x1419   : > { %v7649_v1 = vld [vmem:[#allocation14 + $0x30] sm:$0xff] }
0x141b   : > { %7403 = vrot.lane.b32.xlu0 %v7315_v33, %s16433_s2  ;;  %7361 = vrot.lane.b32.xlu1 %v7318_v52, %s16427_s1 }
0x141f   : > { %7457 = vrot.lane.b32.xlu0 %v7318_v52, %s16422_s0  ;;  %7385 = vrot.lane.b32.xlu1 %v7318_v52, %s16423_s16 }
0x1423   : > { %7337 = vrot.lane.b32.xlu1 %v7318_v52, %s16428_s8  ;;  %7359 = vrot.lane.b32.xlu0 %v7317_v54, %s16427_s1 }
0x1427   : > { %7409 = vrot.lane.b32.xlu1 %v7318_v52, %s16433_s2  ;;  %7475 = vrot.lane.b32.xlu0 %v7315_v33, %s16424_s3 }
0x142b   : > { %7427 = vrot.lane.b32.xlu1 %v7315_v33, %s16420_s23  ;;  %7537 = vrot.lane.b32.xlu0 %v7532_v47, %s16427_s1 }
0x142f   : > { %7383 = vrot.lane.b32.xlu1 %v7317_v54, %s16423_s16  ;;  %7477 = vrot.lane.b32.xlu0 %v7316_v38, %s16424_s3 }
0x1433   : > { %7455 = vrot.lane.b32.xlu0 %v7317_v54, %s16422_s0  ;;  %7335 = vrot.lane.b32.xlu1 %v7317_v54, %s16428_s8 }
0x1437   : > { %7407 = vrot.lane.b32.xlu0 %v7317_v54, %s16433_s2  ;;  %7501 = vrot.lane.b32.xlu1 %v7316_v38, %s16425_s4 }
0x143b   : > { %7547 = vrot.lane.b32.xlu0 %v15249_v58, %s16423_s16  ;;  %7429 = vrot.lane.b32.xlu1 %v7316_v38, %s16420_s23 }
0x143f   : > { %7549 = vrot.lane.b32.xlu0 %v7532_v47, %s16423_s16  ;;  %7505 = vrot.lane.b32.xlu1 %v7318_v52, %s16425_s4  ;;  %s16438_s16 = smov 106  }
0x1443   : > { %7479 = vrot.lane.b32.xlu0 %v7317_v54, %s16424_s3  ;;  %7503 = vrot.lane.b32.xlu1 %v7317_v54, %s16425_s4 }
0x1447   : > { %7481 = vrot.lane.b32.xlu0 %v7318_v52, %s16424_s3  ;;  %7431 = vrot.lane.b32.xlu1 %v7317_v54, %s16420_s23 }
0x144b   : > { %7559 = vrot.lane.b32.xlu0 %v15249_v58, %s16433_s2  ;;  %7433 = vrot.lane.b32.xlu1 %v7318_v52, %s16420_s23 }
0x144f   : > { %7571 = vrot.lane.b32.xlu0 %v15249_v58, %s16420_s23  ;;  %7561 = vrot.lane.b32.xlu1 %v7532_v47, %s16433_s2  ;;  %s16440_s2 = smov 117  }
0x1453   : > { %7583 = vrot.lane.b32.xlu0 %v15249_v58, %s16422_s0  ;;  %7523 = vrot.lane.b32.xlu1 %v15249_v58, %s16428_s8 }
0x1457   : > { %7525 = vrot.lane.b32.xlu0 %v7532_v47, %s16428_s8  ;;  %7573 = vrot.lane.b32.xlu1 %v7532_v47, %s16420_s23  ;;  %s16439_s23 = smov 108  }
0x145b   : > { %7595 = vrot.lane.b32.xlu0 %v15249_v58, %s16424_s3  ;;  %7585 = vrot.lane.b32.xlu1 %v7532_v47, %s16422_s0 }
0x145f   : > { %7607 = vrot.lane.b32.xlu0 %v15249_v58, %s16425_s4  ;;  %7597 = vrot.lane.b32.xlu1 %v7532_v47, %s16424_s3  ;;  %v7708_v58 = vld [vmem:[%s16435_s9 + $0x38] sm:$0xff]  ;;  %s16436_s3 = sld [smem:[#allocation40_spill]]  ;;  %s16442_s9 = sld [smem:[#allocation29_spill]] }
0x1463   : > { %7711 = vperm.xlu0 %13161, %v7701_v19   ;;  %7609 = vrot.lane.b32.xlu1 %v7532_v47, %s16425_s4  ;;  %s16437_s4 = sld [smem:[#allocation28_spill]] }
0x1467   : > { %7721 = vperm.xlu0 %13161, %v7703_v34   ;;  %7716 = vperm.xlu1 %13162, %v7702_v57   ;;  %v13620_v57 = vld [vmem:[%s16434_s12] ss:$28 sps:$4 sm:$0xff]  }
0x146b   : > { %7731 = vperm.xlu0 %13161, %v7705_v32   ;;  %7726 = vperm.xlu1 %13162, %v7704_v40   ;;  %v7687_v32 = vld [vmem:[#allocation14 + $0x3c0] sm:$0xff]  ;;  %v13623_v40 = vld [vmem:[%s16434_s12 + $0x3c] ss:$28 sps:$4 sm:$0xff]  }
0x146f   : > { %7741 = vperm.xlu0 %13161, %v7707_v53   ;;  %7736 = vperm.xlu1 %13162, %v7706_v61  }
0x1473   : > { %7746 = vperm.xlu1 %13162, %v7708_v58  }
0x1479   : > { %v7454_v62 = vpop.permute.xlu0 %7453  ;;  %v7358_v49 = vpop.permute.xlu1 %7357 }
0x147a   : > { %7464 = vst.msk [vmem:[#allocation14 + $0x258] sm:$0xff] %vm5736_vm0, %v7454_v62  ;;  %7368 = vst.msk [vmem:[#allocation14 + $0xd8] sm:$0xff] %vm5736_vm0, %v7358_v49 }
0x147d   : > { %v7406_v60 = vpop.permute.xlu0 %7405  ;;  %v7382_v63 = vpop.permute.xlu1 %7381 }
0x147e   : > { %7416 = vst.msk [vmem:[#allocation14 + $0x198] sm:$0xff] %vm5736_vm0, %v7406_v60  ;;  %7392 = vst.msk [vmem:[#allocation14 + $0x138] sm:$0xff] %vm5736_vm0, %v7382_v63 }
0x1481   : > { %v7334_v16 = vpop.permute.xlu1 %7333  ;;  %v7356_v46 = vpop.permute.xlu0 %7355  ;;  %v7656_v9 = vld [vmem:[#allocation14 + $0xd8] sm:$0xff] }
0x1482   : > { %7344 = vst.msk [vmem:[#allocation14 + $0x78] sm:$0xff] %vm5736_vm0, %v7334_v16  ;;  %7367 = vst.msk [vmem:[#allocation14 + $0xc0] sm:$0xff] %vm5736_vm0, %v7356_v46  ;;  %v7672_v15 = vld [vmem:[#allocation14 + $0x258] sm:$0xff] }
0x1485   : > { %v7380_v10 = vpop.permute.xlu0 %7379  ;;  %v7332_v41 = vpop.permute.xlu1 %7331  ;;  %v7664_v25 = vld [vmem:[#allocation14 + $0x198] sm:$0xff] }
0x1486   : > { %7391 = vst.msk [vmem:[#allocation14 + $0x120] sm:$0xff] %vm5736_vm0, %v7380_v10  ;;  %7343 = vst.msk [vmem:[#allocation14 + $0x60] sm:$0xff] %vm5736_vm0, %v7332_v41  ;;  %v7660_v56 = vld [vmem:[#allocation14 + $0x138] sm:$0xff] }
0x1489   : > { %v7452_v21 = vpop.permute.xlu0 %7451  ;;  %v7500_v0 = vpop.permute.xlu1 %7499  ;;  %v7655_v5 = vld [vmem:[#allocation14 + $0xc0] sm:$0xff]  ;;  %v7652_v31 = vld [vmem:[#allocation14 + $0x78] sm:$0xff] }
0x148a   : > { %7463 = vst.msk [vmem:[#allocation14 + $0x240] sm:$0xff] %vm5736_vm0, %v7452_v21  ;;  %7511 = vst.msk [vmem:[#allocation14 + $0x300] sm:$0xff] %vm5736_vm0, %v7500_v0  ;;  %12607 = vmatprep.subr.bf16.mxu0 %v7655_v5  ;;  %v13625_v21 = vld [vmem:[%s16434_s12 + $0x38] ss:$28 sps:$4 sm:$0xff]  }
0x148b   : > { %12608 = vmatpush3.bf16.msra.mxu0 %v7647_v28  ;;  %v13626_v5 = vld [vmem:[%s16434_s12 + $0x74] ss:$28 sps:$4 sm:$0xff]  }
0x148c   : > { %12609 = vmatprep.subr.bf16.mxu0 %v7656_v9 }
0x148d   : > { %v7404_v12 = vpop.permute.xlu0 %7403  ;;  %v7362_v13 = vpop.permute.xlu1 %7361  ;;  %v7659_v48 = vld [vmem:[#allocation14 + $0x120] sm:$0xff] }
0x148e   : > { %7415 = vst.msk [vmem:[#allocation14 + $0x180] sm:$0xff] %vm5736_vm0, %v7404_v12  ;;  %7370 = vst.msk [vmem:[#allocation14 + $0x108] sm:$0xff] %vm5736_vm0, %v7362_v13  ;;  %v7651_v42 = vld [vmem:[#allocation14 + $0x60] sm:$0xff] }
0x148f   : > { %12610 = vmatpush3.bf16.msra.mxu0 %v7648_v36 }
0x1491   : > { %v7458_v11 = vpop.permute.xlu0 %7457  ;;  %v7386_v7 = vpop.permute.xlu1 %7385  ;;  %v7671_v30 = vld [vmem:[#allocation14 + $0x240] sm:$0xff] }
0x1492   : > { %7466 = vst.msk [vmem:[#allocation14 + $0x288] sm:$0xff] %vm5736_vm0, %v7458_v11  ;;  %7394 = vst.msk [vmem:[#allocation14 + $0x168] sm:$0xff] %vm5736_vm0, %v7386_v7  ;;  %12647 = vmatprep.subr.bf16.mxu1 %v7671_v30  ;;  %v7679_v49 = vld [vmem:[#allocation14 + $0x300] sm:$0xff] }
0x1495   : > { %v7338_v18 = vpop.permute.xlu1 %7337  ;;  %v7360_v17 = vpop.permute.xlu0 %7359  ;;  %v7663_v26 = vld [vmem:[#allocation14 + $0x180] sm:$0xff]  ;;  %v7658_v45 = vld [vmem:[#allocation14 + $0x108] sm:$0xff] }
0x1496   : > { %7346 = vst.msk [vmem:[#allocation14 + $0xa8] sm:$0xff] %vm5736_vm0, %v7338_v18  ;;  %7369 = vst.msk [vmem:[#allocation14 + $0xf0] sm:$0xff] %vm5736_vm0, %v7360_v17  ;;  %12648 = vmatpush3.bf16.msra.mxu1 %v7663_v26 }
0x1497   : > { %12649 = vmatprep.subr.bf16.mxu1 %v7672_v15  ;;  %v13628_v15 = vld [vmem:[%s16434_s12 + $0x70] ss:$28 sps:$4 sm:$0xff]  }
0x1499   : > { %v7410_v3 = vpop.permute.xlu1 %7409  ;;  %v7476_v20 = vpop.permute.xlu0 %7475  ;;  %v7662_v54 = vld [vmem:[#allocation14 + $0x168] sm:$0xff] }
0x149a   : > { %7418 = vst.msk [vmem:[#allocation14 + $0x1c8] sm:$0xff] %vm5736_vm0, %v7410_v3  ;;  %7487 = vst.msk [vmem:[#allocation14 + $0x2a0] sm:$0xff] %vm5736_vm0, %v7476_v20  ;;  %12650 = vmatpush3.bf16.msra.mxu1 %v7664_v25  ;;  %v7674_v34 = vld [vmem:[#allocation14 + $0x288] sm:$0xff] }
0x149b   : > { %v13632_v3 = vld [vmem:[%s16434_s12 + $0xac] ss:$28 sps:$4 sm:$0xff]  }
0x149d   : > { %v7428_v27 = vpop.permute.xlu1 %7427  ;;  %v7538_v35 = vpop.permute.xlu0 %7537  ;;  %v7657_v29 = vld [vmem:[#allocation14 + $0xf0] sm:$0xff]  ;;  %v7654_v19 = vld [vmem:[#allocation14 + $0xa8] sm:$0xff] }
0x149e   : > { %7439 = vst.msk [vmem:[#allocation14 + $0x1e0] sm:$0xff] %vm5736_vm0, %v7428_v27  ;;  %7542 = vst.msk [vmem:[#allocation14 + $0x3d8] sm:$0xff] %vm5736_vm0, %v7538_v35  ;;  %12611 = vmatprep.subr.bf16.mxu0 %v7657_v29  ;;  %v13629_v29 = vld [vmem:[%s16434_s12 + $0x8] ss:$28 sps:$4 sm:$0xff]  }
0x149f   : > { %12612 = vmatpush3.bf16.msra.mxu0 %v7649_v1  ;;  %v13635_v1 = vld [vmem:[%s16434_s12 + $0x44] ss:$28 sps:$4 sm:$0xff]  }
0x14a0   : > { %12613 = vmatprep.subr.bf16.mxu0 %v7658_v45 }
0x14a1   : > { %v7384_v37 = vpop.permute.xlu1 %7383  ;;  %v7478_v22 = vpop.permute.xlu0 %7477  ;;  %v7666_v58 = vld [vmem:[#allocation14 + $0x1c8] sm:$0xff]  ;;  %v7675_v62 = vld [vmem:[#allocation14 + $0x2a0] sm:$0xff] }
0x14a2   : > { %7393 = vst.msk [vmem:[#allocation14 + $0x150] sm:$0xff] %vm5736_vm0, %v7384_v37  ;;  %7488 = vst.msk [vmem:[#allocation14 + $0x2b8] sm:$0xff] %vm5736_vm0, %v7478_v22 }
0x14a3   : > { %12614 = vmatpush3.bf16.msra.mxu0 %v7650_v39  ;;  %v13634_v39 = vld [vmem:[%s16434_s12 + $0xa8] ss:$28 sps:$4 sm:$0xff]  }
0x14a4   : > { %12615 = vmatprep.subr.bf16.mxu0 %v7659_v48  ;;  %v7624_v48 = vld [vmem:[%s16434_s12 + $0x40] sm:$0xff] }
0x14a5   : > { %v7456_v6 = vpop.permute.xlu0 %7455  ;;  %v7336_v14 = vpop.permute.xlu1 %7335  ;;  %v7688_v60 = vld [vmem:[#allocation14 + $0x3d8] sm:$0xff]  ;;  %v7667_v46 = vld [vmem:[#allocation14 + $0x1e0] sm:$0xff] }
0x14a6   : > { %7465 = vst.msk [vmem:[#allocation14 + $0x270] sm:$0xff] %vm5736_vm0, %v7456_v6  ;;  %7345 = vst.msk [vmem:[#allocation14 + $0x90] sm:$0xff] %vm5736_vm0, %v7336_v14  ;;  %v7628_v6 = vld [vmem:[%s16434_s12 + $0x5c] sm:$0xff] }
0x14a7   : > { %12616 = vmatpush3.bf16.msra.mxu0 %v7651_v42  ;;  %v7684_v14 = vld [vmem:[#allocation14 + $0x378] sm:$0xff]  ;;  %v13639_v42 = vld [vmem:[%s16434_s12 + $0x14] ss:$28 sps:$4 sm:$0xff]  }
0x14a8   : > { %12617 = vmatprep.subr.bf16.mxu0 %v7660_v56 }
0x14a9   : > { %v7408_v23 = vpop.permute.xlu0 %7407  ;;  %v7502_v38 = vpop.permute.xlu1 %7501  ;;  %v7661_v33 = vld [vmem:[#allocation14 + $0x150] sm:$0xff]  ;;  %v7676_v10 = vld [vmem:[#allocation14 + $0x2b8] sm:$0xff] }
0x14aa   : > { %7417 = vst.msk [vmem:[#allocation14 + $0x1b0] sm:$0xff] %vm5736_vm0, %v7408_v23  ;;  %7512 = vst.msk [vmem:[#allocation14 + $0x318] sm:$0xff] %vm5736_vm0, %v7502_v38 }
0x14ab   : > { %12618 = vmatpush3.bf16.msra.mxu0 %v7652_v31 }
0x14ac   : > { %12619 = vmatprep.subr.bf16.mxu0 %v7661_v33  ;;  %v11979_v33 = vcombine.low %v7624_v48, %v7628_v6 }
0x14ad   : > { %v7548_v24 = vpop.permute.xlu0 %7547  ;;  %v7430_v8 = vpop.permute.xlu1 %7429  ;;  %v7673_v50 = vld [vmem:[#allocation14 + $0x270] sm:$0xff] }
0x14ae   : > { %v7653_v52 = vld [vmem:[#allocation14 + $0x90] sm:$0xff]  ;;  %7553 = vst.msk [vmem:[#allocation14 + $0x3f0] sm:$0xff] %vm5736_vm0, %v7548_v24  ;;  %7440 = vst.msk [vmem:[#allocation14 + $0x1f8] sm:$0xff] %vm5736_vm0, %v7430_v8  ;;  %12651 = vmatprep.subr.bf16.mxu1 %v7673_v50 }
0x14af   : > { %12620 = vmatpush3.bf16.msra.mxu0 %v7653_v52  ;;  %v13640_v24 = vld [vmem:[%s16434_s12 + $0x7c] ss:$28 sps:$4 sm:$0xff]  }
0x14b0   : > { %12621 = vmatprep.subr.bf16.mxu0 %v7662_v54 }
0x14b1   : > { %v7550_v47 = vpop.permute.xlu0 %7549  ;;  %v7506_v51 = vpop.permute.xlu1 %7505  ;;  %v7665_v55 = vld [vmem:[#allocation14 + $0x1b0] sm:$0xff]  ;;  %v7680_v41 = vld [vmem:[#allocation14 + $0x318] sm:$0xff] }
0x14b2   : > { %7554 = vst.msk [vmem:[#allocation14 + $0x408] sm:$0xff] %vm5736_vm0, %v7550_v47  ;;  %7514 = vst.msk [vmem:[#allocation14 + $0x348] sm:$0xff] %vm5736_vm0, %v7506_v51  ;;  %12652 = vmatpush3.bf16.msra.mxu1 %v7665_v55  ;;  %v13637_v47 = vld [vmem:[%s16434_s12 + $0x10] ss:$28 sps:$4 sm:$0xff]  }
0x14b3   : > { %12622 = vmatpush3.bf16.msra.mxu0 %v7654_v19  ;;  %12653 = vmatprep.subr.bf16.mxu1 %v7674_v34  ;;  %v13643_v51 = vld [vmem:[%s16434_s12 + $0x4c] ss:$28 sps:$4 sm:$0xff]   ;;  %v13642_v34 = vld [vmem:[%s16434_s12 + $0x78] ss:$28 sps:$4 sm:$0xff]  }
0x14b4   : > { %12687 = vmatprep.subr.bf16.mxu0 %v7687_v32 }
0x14b5   : > { %v7480_v53 = vpop.permute.xlu0 %7479  ;;  %v7504_v61 = vpop.permute.xlu1 %7503  ;;  %v7689_v0 = vld [vmem:[#allocation14 + $0x3f0] sm:$0xff]  ;;  %v7668_v12 = vld [vmem:[#allocation14 + $0x1f8] sm:$0xff] }
0x14b6   : > { %7489 = vst.msk [vmem:[#allocation14 + $0x2d0] sm:$0xff] %vm5736_vm0, %v7480_v53  ;;  %7513 = vst.msk [vmem:[#allocation14 + $0x330] sm:$0xff] %vm5736_vm0, %v7504_v61  ;;  %7935 = vmatmul.mubr.bf16.vlgmr.msra.gmra.mrb[80].mxu0 %v13620_v57  ;;  %12654 = vmatpush3.bf16.msra.mxu1 %v7666_v58  ;;  %v13646_v57 = vld [vmem:[%s16434_s12 + $0xb4] ss:$28 sps:$4 sm:$0xff]   ;;  %v13645_v53 = vld [vmem:[%s16434_s12 + $0x48] ss:$28 sps:$4 sm:$0xff]  }
0x14b7   : > { %12655 = vmatprep.subr.bf16.mxu1 %v7675_v62  ;;  %12688 = vmatpush3.bf16.msra.mxu0 %v7679_v49  ;;  %v13649_v61 = vld [vmem:[%s16434_s12 + $0x84] ss:$28 sps:$4 sm:$0xff]   ;;  %v13648_v58 = vld [vmem:[%s16434_s12 + $0xb0] ss:$28 sps:$4 sm:$0xff]   ;;  %v13652_v62 = vld [vmem:[%s16434_s12 + $0x18] ss:$28 sps:$4 sm:$0xff]  }
0x14b8   : > { %12689 = vmatprep.subr.bf16.mxu0 %v7688_v60  ;;  %7942 = vmatprep.mubr.bf16.mxu0 %v13623_v40 }
0x14b9   : > { %v7482_v63 = vpop.permute.xlu0 %7481  ;;  %v7432_v16 = vpop.permute.xlu1 %7431  ;;  %v7690_v11 = vld [vmem:[#allocation14 + $0x408] sm:$0xff] }
0x14ba   : > { %7490 = vst.msk [vmem:[#allocation14 + $0x2e8] sm:$0xff] %vm5736_vm0, %v7482_v63  ;;  %7441 = vst.msk [vmem:[#allocation14 + $0x210] sm:$0xff] %vm5736_vm0, %v7432_v16  ;;  %12656 = vmatpush3.bf16.msra.mxu1 %v7667_v46  ;;  %v7682_v26 = vld [vmem:[#allocation14 + $0x348] sm:$0xff]  ;;  %v13651_v63 = vld [vmem:[%s16434_s12 + $0x80] ss:$28 sps:$4 sm:$0xff]  }
0x14bb   : > { %12657 = vmatprep.subr.bf16.mxu1 %v7676_v10  ;;  %12690 = vmatpush3.bf16.msra.mxu0 %v7680_v41  ;;  %v13654_v16 = vld [vmem:[%s16434_s12 + $0xbc] ss:$28 sps:$4 sm:$0xff]   ;;  %v13653_v46 = vld [vmem:[%s16434_s12 + $0x50] ss:$28 sps:$4 sm:$0xff]   ;;  %v13657_v10 = vld [vmem:[%s16434_s12 + $0x88] ss:$28 sps:$4 sm:$0xff]  }
0x14bc   : > { %12691 = vmatprep.subr.bf16.mxu0 %v7689_v0  ;;  %v13656_v41 = vld [vmem:[%s16434_s12 + $0xb8] ss:$28 sps:$4 sm:$0xff]   ;;  %v13659_v0 = vld [vmem:[%s16436_s3] sm:$0xff]  }
0x14bd   : > { %v7560_v28 = vpop.permute.xlu0 %7559  ;;  %v7434_v9 = vpop.permute.xlu1 %7433  ;;  %v7677_v13 = vld [vmem:[#allocation14 + $0x2d0] sm:$0xff] }
0x14be   : > { %v7681_v36 = vld [vmem:[#allocation14 + $0x330] sm:$0xff]  ;;  %7565 = vst.msk [vmem:[#allocation14 + $0x420] sm:$0xff] %vm5736_vm0, %v7560_v28  ;;  %7442 = vst.msk [vmem:[#allocation14 + $0x228] sm:$0xff] %vm5736_vm0, %v7434_v9  ;;  %7943 = vmatmul.mubr.bf16.gmra.mrb[84].mxu0 %v13625_v21  ;;  %12658 = vmatpush3.bf16.msra.mxu1 %v7668_v12  ;;  %v13658_v21 = vld [vmem:[%s16434_s12 + $0xc0] ss:$28 sps:$4 sm:$0xff]  }
0x14bf   : > { %12659 = vmatprep.subr.bf16.mxu1 %v7677_v13  ;;  %12692 = vmatpush3.bf16.msra.mxu0 %v7681_v36 }
0x14c0   : > { %12693 = vmatprep.subr.bf16.mxu0 %v7690_v11  ;;  %7950 = vmatprep.mubr.bf16.mxu0 %v13626_v5  ;;  %v13660_v5 = vld [vmem:[%s16436_s3 + $0x8] ss:$0 sps:$4 sm:$0x77]   ;;  %s16441_s3 = smov 107  }
0x14c1   : > { %v7572_v7 = vpop.permute.xlu0 %7571  ;;  %v7562_v30 = vpop.permute.xlu1 %7561  ;;  %v7669_v18 = vld [vmem:[#allocation14 + $0x210] sm:$0xff]  ;;  %v7678_v17 = vld [vmem:[#allocation14 + $0x2e8] sm:$0xff]  ;;  %v8199_v28 = vsel %vm6044_vm11, %v13660_v5, 0 }
0x14c2   : > { %7577 = vst.msk [vmem:[#allocation14 + $0x450] sm:$0xff] %vm5736_vm0, %v7572_v7  ;;  %7566 = vst.msk [vmem:[#allocation14 + $0x438] sm:$0xff] %vm5736_vm0, %v7562_v30  ;;  %12660 = vmatpush3.bf16.msra.mxu1 %v7669_v18 }
0x14c3   : > { %12661 = vmatprep.subr.bf16.mxu1 %v7678_v17  ;;  %12694 = vmatpush3.bf16.msra.mxu0 %v7682_v26 }
0x14c5   : > { %v7584_v20 = vpop.permute.xlu0 %7583  ;;  %v7524_v25 = vpop.permute.xlu1 %7523  ;;  %v7670_v27 = vld [vmem:[#allocation14 + $0x228] sm:$0xff]  ;;  %v7691_v35 = vld [vmem:[#allocation14 + $0x420] sm:$0xff] }
0x14c6   : > { %7589 = vst.msk [vmem:[#allocation14 + $0x480] sm:$0xff] %vm5736_vm0, %v7584_v20  ;;  %7529 = vst.msk [vmem:[#allocation14 + $0x390] sm:$0xff] %vm5736_vm0, %v7524_v25  ;;  %7951 = vmatmul.mubr.bf16.gmra.mrb[88].mxu0 %v13628_v15  ;;  %12662 = vmatpush3.bf16.msra.mxu1 %v7670_v27 }
0x14c7   : > { %12695 = vmatprep.subr.bf16.mxu0 %v7691_v35  ;;  %7958 = vmatprep.mubr.bf16.mxu0 %v13632_v3 }
0x14c8   : > { %12696 = vmatpush3.bf16.msra.mxu0 %v15262_v43 }
0x14c9   : > { %v7526_v45 = vpop.permute.xlu0 %7525  ;;  %8000 = vmatmul.mubr.bf16.vlgmr.msra.gmra.mrb[100].mxu1 %v13629_v29  ;;  %v7574_v37 = vpop.permute.xlu1 %7573  ;;  %v7692_v22 = vld [vmem:[#allocation14 + $0x438] sm:$0xff]  ;;  %v7693_v56 = vld [vmem:[#allocation14 + $0x450] sm:$0xff] }
0x14ca   : > { %7530 = vst.msk [vmem:[#allocation14 + $0x3a8] sm:$0xff] %vm5736_vm0, %v7526_v45  ;;  %7578 = vst.msk [vmem:[#allocation14 + $0x468] sm:$0xff] %vm5736_vm0, %v7574_v37  ;;  %12697 = vmatprep.subr.bf16.mxu0 %v7692_v22  ;;  %8007 = vmatprep.mubr.bf16.mxu1 %v13635_v1 }
0x14cc   : > { %12698 = vmatpush3.bf16.msra.mxu0 %v7684_v14 }
0x14cd   : > { %12699 = vmatprep.subr.bf16.mxu0 %v7693_v56  ;;  %v7596_v43 = vpop.permute.xlu0 %7595  ;;  %v7586_v23 = vpop.permute.xlu1 %7585  ;;  %v7695_v38 = vld [vmem:[#allocation14 + $0x480] sm:$0xff]  ;;  %v7685_v31 = vld [vmem:[#allocation14 + $0x390] sm:$0xff] }
0x14ce   : > { %7601 = vst.msk [vmem:[#allocation14 + $0x4b0] sm:$0xff] %vm5736_vm0, %v7596_v43  ;;  %7590 = vst.msk [vmem:[#allocation14 + $0x498] sm:$0xff] %vm5736_vm0, %v7586_v23  ;;  %7959 = vmatmul.mubr.bf16.gmra.mrb[92].mxu0 %v13634_v39  ;;  %12986 = vmatprep.subr.bf16.mxu1 %v7695_v38 }
0x14cf   : > { %12987 = vmatpush3.bf16.msra.mxu1 %v7695_v38  ;;  %8064 = vmatprep.mubr.bf16.mxu0 %v13639_v42 }
0x14d0   : > { %12700 = vmatpush3.bf16.msra.mxu0 %v7685_v31 }
0x14d1   : > { %v7608_v8 = vpop.permute.xlu0 %7607  ;;  %8008 = vmatmul.mubr.bf16.gmra.mrb[104].mxu1 %v11979_v33  ;;  %v7598_v50 = vpop.permute.xlu1 %7597  ;;  %v7694_v52 = vld [vmem:[#allocation14 + $0x468] sm:$0xff] }
0x14d2   : > { %v7686_v54 = vld [vmem:[#allocation14 + $0x3a8] sm:$0xff]  ;;  %7613 = vst.msk [vmem:[#allocation14 + $0x4e0] sm:$0xff] %vm5736_vm0, %v7608_v8  ;;  %7602 = vst.msk [vmem:[#allocation14 + $0x4c8] sm:$0xff] %vm5736_vm0, %v7598_v50  ;;  %12701 = vmatprep.subr.bf16.mxu0 %v7694_v52  ;;  %8015 = vmatprep.mubr.bf16.mxu1 %v13640_v24 }
0x14d4   : > { %12702 = vmatpush3.bf16.msra.mxu0 %v7686_v54 }
0x14d5   : > { %v7610_v55 = vpop.permute.xlu1 %7609  ;;  %v7696_v19 = vld [vmem:[#allocation14 + $0x498] sm:$0xff]  ;;  %v7697_v32 = vld [vmem:[#allocation14 + $0x4b0] sm:$0xff] }
0x14d6   : > { %7614 = vst.msk [vmem:[#allocation14 + $0x4f8] sm:$0xff] %vm5736_vm0, %v7610_v55  ;;  %12988 = vmatprep.subr.bf16.mxu1 %v7696_v19 }
0x14d7   : > { %8065 = vmatmul.mubr.bf16.vlgmr.msra.gmra.mrb[96].mxu0 %v13637_v47  ;;  %12989 = vmatpush3.bf16.msra.mxu1 %v7696_v19 }
0x14d8   : > { %12990 = vmatprep.subr.bf16.mxu1 %v7697_v32  ;;  %8072 = vmatprep.mubr.bf16.mxu0 %v13643_v51 }
0x14d9   : > { %8016 = vmatmul.mubr.bf16.gmra.mrb[108].mxu1 %v13642_v34  ;;  %v7698_v40 = vld [vmem:[#allocation14 + $0x4c8] sm:$0xff]  ;;  %v7699_v49 = vld [vmem:[#allocation14 + $0x4e0] sm:$0xff] }
0x14da   : > { %8023 = vmatprep.mubr.bf16.mxu1 %v13646_v57 }
0x14db   : > { %12991 = vmatpush3.bf16.msra.mxu1 %v7697_v32 }
0x14dc   : > { %12992 = vmatprep.subr.bf16.mxu1 %v7698_v40 }
0x14dd   : > { %v7700_v60 = vld [vmem:[#allocation14 + $0x4f8] sm:$0xff] }
0x14df   : > { %8073 = vmatmul.mubr.bf16.gmra.mrb[100].mxu0 %v13645_v53  ;;  %12993 = vmatpush3.bf16.msra.mxu1 %v7698_v40 }
0x14e0   : > { %12994 = vmatprep.subr.bf16.mxu1 %v7699_v49  ;;  %8080 = vmatprep.mubr.bf16.mxu0 %v13649_v61 }
0x14e1   : > { %8024 = vmatmul.mubr.bf16.gmra.mrb[112].mxu1 %v13648_v58 }
0x14e2   : > { %12998 = vmatprep.mubr.msk.bf16.mxu1 %vm7889_vm12, %v13652_v62  ;;  %v7712_v45 = vpop.permute.xlu0 %7711 }
0x14e3   : > { %12995 = vmatpush3.bf16.msra.mxu1 %v7699_v49 }
0x14e4   : > { %12996 = vmatprep.subr.bf16.mxu1 %v7700_v60 }
0x14e6   : > { %v7717_v14 = vpop.permute.xlu1 %7716  ;;  %v7722_v54 = vpop.permute.xlu0 %7721 }
0x14e7   : > { %8081 = vmatmul.mubr.bf16.gmra.mrb[104].mxu0 %v13651_v63  ;;  %12997 = vmatpush3.bf16.msra.mxu1 %v7700_v60 }
0x14e8   : > { %8088 = vmatprep.mubr.bf16.mxu0 %v13654_v16  ;;  %13006 = vmatprep.subr.bf16.mxu1 %v13659_v0 }
0x14ea   : > { %12999 = vmatmul.mubr.msk.bf16.vlgmr.msra.gmra.mrb[116].mxu1 %vm7889_vm12, %v13653_v46  ;;  %v7727_v57 = vpop.permute.xlu1 %7726  ;;  %v7732_v49 = vpop.permute.xlu0 %7731 }
0x14eb   : > { %13002 = vmatprep.mubr.msk.bf16.mxu1 %vm7889_vm12, %v13657_v10  ;;  %13007 = vmatpush3.bf16.msra.mxu1 %v13659_v0 }
0x14ec   : > { %13084 = vmatprep.subr.msk.bf16.mxu1 %vm6044_vm11, %v13660_v5  ;;  %vm9045_vm11 = vcmask 556032  }
0x14ef   : > { %8089 = vmatmul.mubr.bf16.gmra.mrb[108].mxu0 %v13656_v41  ;;  %13009 = vmatpush3.bf16.msra.mxu1 %v8199_v28 }
0x14f2   : > { %13003 = vmatmul.mubr.msk.bf16.gmra.mrb[120].mxu1 %vm7889_vm12, %v13658_v21 }
0x1589   : > { %v12623_v9 = vpop.f32.mrb[80].mxu0 }
0x158a   : > { %v12624_v12 = vpop.f32.mrb[81].mxu0 }
0x158b   : > { %v12625_v13 = vadd.f32 %v12624_v12, %v12623_v9  ;;  %v12626_v36 = vpop.f32.mrb[82].mxu0  ;;  %v7737_v12 = vpop.permute.xlu1 %7736 }
0x158c   : > { %v12627_v11 = vpop.f32.mrb[83].mxu0 }
0x158d   : > { %v12628_v7 = vadd.f32 %v12627_v11, %v12626_v36  ;;  %v7937_v39 = vadd.f32 %v12625_v13, %v7712_v45 }
0x158f   : > { %v7940_v56 = vadd.f32 %v12628_v7, %v7717_v14 }
0x1591   : > { %v12629_v30 = vpop.f32.mrb[84].mxu0 }
0x1592   : > { %v12630_v18 = vpop.f32.mrb[85].mxu0 }
0x1593   : > { %v12631_v17 = vadd.f32 %v12630_v18, %v12629_v30  ;;  %v12632_v26 = vpop.f32.mrb[86].mxu0 }
0x1594   : > { %v12633_v15 = vpop.f32.mrb[87].mxu0 }
0x1595   : > { %v12634_v3 = vadd.f32 %v12633_v15, %v12632_v26  ;;  %v7945_v55 = vadd.f32 %v12631_v17, %v7722_v54  ;;  %v7742_v26 = vpop.permute.xlu0 %7741 }
0x1597   : > { %v7948_v40 = vadd.f32 %v12634_v3, %v7727_v57 }
0x1599   : > { %v12635_v20 = vpop.f32.mrb[88].mxu0 }
0x159a   : > { %v12636_v25 = vpop.f32.mrb[89].mxu0 }
0x159b   : > { %v12637_v27 = vadd.f32 %v12636_v25, %v12635_v20  ;;  %v12638_v35 = vpop.f32.mrb[90].mxu0 }
0x159c   : > { %v12639_v29 = vpop.f32.mrb[91].mxu0  ;;  %v12663_v1 = vpop.f32.mrb[100].mxu1 }
0x159d   : > { %v12640_v37 = vadd.f32 %v12639_v29, %v12638_v35  ;;  %v12664_v22 = vpop.f32.mrb[101].mxu1  ;;  %v7953_v21 = vadd.f32 %v12637_v27, %v7732_v49 }
0x159e   : > { %v12665_v48 = vadd.f32 %v12664_v22, %v12663_v1  ;;  %v12666_v6 = vpop.f32.mrb[102].mxu1 }
0x159f   : > { %v12667_v42 = vpop.f32.mrb[103].mxu1  ;;  %v7956_v36 = vadd.f32 %v12640_v37, %v7737_v12 }
0x15a0   : > { %v8002_v43 = vadd.f32 %v12665_v48, %v7937_v39  ;;  %v12668_v23 = vadd.f32 %v12667_v42, %v12666_v6  ;;  %v7747_v48 = vpop.permute.xlu1 %7746 }
0x15a1   : > { %v12641_v38 = vpop.f32.mrb[92].mxu0 }
0x15a2   : > { %v8005_v31 = vadd.f32 %v12668_v23, %v7940_v56  ;;  %v12642_v33 = vpop.f32.mrb[93].mxu0 }
0x15a3   : > { %v12643_v24 = vadd.f32 %v12642_v33, %v12641_v38  ;;  %v12644_v8 = vpop.f32.mrb[94].mxu0 }
0x15a4   : > { %v12645_v50 = vpop.f32.mrb[95].mxu0  ;;  %v12669_v52 = vpop.f32.mrb[104].mxu1 }
0x15a5   : > { %v12646_v47 = vadd.f32 %v12645_v50, %v12644_v8  ;;  %v12670_v51 = vpop.f32.mrb[105].mxu1  ;;  %v7961_v27 = vadd.f32 %v12643_v24, %v7742_v26 }
0x15a6   : > { %v12671_v19 = vadd.f32 %v12670_v51, %v12669_v52  ;;  %v12672_v34 = vpop.f32.mrb[106].mxu1 }
0x15a7   : > { %v12673_v32 = vpop.f32.mrb[107].mxu1  ;;  %v7964_v37 = vadd.f32 %v12646_v47, %v7747_v48 }
0x15a8   : > { %v8010_v53 = vadd.f32 %v12671_v19, %v7945_v55  ;;  %v12674_v61 = vadd.f32 %v12673_v32, %v12672_v34 }
0x15aa   : > { %v8013_v58 = vadd.f32 %v12674_v61, %v7948_v40  ;;  %v12703_v62 = vpop.f32.mrb[96].mxu0 }
0x15ab   : > { %v12704_v60 = vpop.f32.mrb[97].mxu0 }
0x15ac   : > { %v12705_v63 = vadd.f32 %v12704_v60, %v12703_v62  ;;  %v12706_v16 = vpop.f32.mrb[98].mxu0  ;;  %v12675_v46 = vpop.f32.mrb[108].mxu1 }
0x15ad   : > { %v12707_v10 = vpop.f32.mrb[99].mxu0  ;;  %v12676_v41 = vpop.f32.mrb[109].mxu1 }
0x15ae   : > { %v12708_v0 = vadd.f32 %v12707_v10, %v12706_v16  ;;  %v12677_v5 = vadd.f32 %v12676_v41, %v12675_v46  ;;  %v12678_v28 = vpop.f32.mrb[110].mxu1  ;;  %v8067_v9 = vadd.f32 %v12705_v63, %v8002_v43 }
0x15af   : > { %v12679_v13 = vpop.f32.mrb[111].mxu1 }
0x15b0   : > { %v8018_v11 = vadd.f32 %v12677_v5, %v7953_v21  ;;  %v12680_v7 = vadd.f32 %v12679_v13, %v12678_v28  ;;  %v8070_v30 = vadd.f32 %v12708_v0, %v8005_v31 }
0x15b2   : > { %v8021_v18 = vadd.f32 %v12680_v7, %v7956_v36  ;;  %v12709_v17 = vpop.f32.mrb[100].mxu0 }
0x15b3   : > { %v12710_v15 = vpop.f32.mrb[101].mxu0 }
0x15b4   : > { %v12711_v3 = vadd.f32 %v12710_v15, %v12709_v17  ;;  %v12712_v20 = vpop.f32.mrb[102].mxu0  ;;  %v12681_v25 = vpop.f32.mrb[112].mxu1 }
0x15b5   : > { %v12713_v35 = vpop.f32.mrb[103].mxu0  ;;  %v12682_v29 = vpop.f32.mrb[113].mxu1 }
0x15b6   : > { %v12714_v1 = vadd.f32 %v12713_v35, %v12712_v20  ;;  %v12683_v45 = vadd.f32 %v12682_v29, %v12681_v25  ;;  %v12684_v22 = vpop.f32.mrb[114].mxu1  ;;  %v8075_v39 = vadd.f32 %v12711_v3, %v8010_v53 }
0x15b7   : > { %v12685_v6 = vpop.f32.mrb[115].mxu1 }
0x15b8   : > { %v8026_v14 = vadd.f32 %v12683_v45, %v7961_v27  ;;  %v12686_v42 = vadd.f32 %v12685_v6, %v12684_v22  ;;  %v8078_v56 = vadd.f32 %v12714_v1, %v8013_v58 }
0x15ba   : > { %v8029_v43 = vadd.f32 %v12686_v42, %v7964_v37  ;;  %v12715_v23 = vpop.f32.mrb[104].mxu0 }
0x15bb   : > { %v12716_v38 = vpop.f32.mrb[105].mxu0 }
0x15bc   : > { %v12717_v31 = vadd.f32 %v12716_v38, %v12715_v23  ;;  %v12718_v33 = vpop.f32.mrb[106].mxu0  ;;  %v13663_v23 = vld [vmem:[%s16437_s4 + $0x4] ss:$24 sps:$4 sm:$0xff]  }
0x15bd   : > { %v12719_v8 = vpop.f32.mrb[107].mxu0  ;;  %v13000_v50 = vpop.f32.mrb[116].mxu1  ;;  %8702 = vmatprep.mubr.bf16.mxu0 %v13663_v23  ;;  %v13671_v38 = vld [vmem:[%s16437_s4 + $0xc] ss:$24 sps:$4 sm:$0xff]  }
0x15be   : > { %v12720_v52 = vadd.f32 %v12719_v8, %v12718_v33  ;;  %v8140_v54 = vadd.f32 %v13000_v50, %v8075_v39  ;;  %v8131_v24 = vpop.f32.mrb[117].mxu1  ;;  %v8083_v51 = vadd.f32 %v12717_v31, %v8018_v11  ;;  %v8582_v31 = vld [vmem:[%s16442_s9 + $0x8] sm:$0xff]  ;;  %v8581_v33 = vld [vmem:[%s16442_s9] sm:$0xff]  ;;  %v8584_v8 = vld [vmem:[%s16442_s9 + $0x18] sm:$0xff] }
0x15bf   : > { %v8132_v55 = vadd.f32 %v8131_v24, %v8067_v9  ;;  %v13001_v19 = vpop.f32.mrb[118].mxu1  ;;  %v8583_v50 = vld [vmem:[%s16442_s9 + $0x10] sm:$0xff] }
0x15c0   : > { %v8143_v34 = vadd.f32 %v13001_v19, %v8078_v56  ;;  %v8134_v57 = vpop.f32.mrb[119].mxu1  ;;  %v8086_v32 = vadd.f32 %v12720_v52, %v8021_v18  ;;  %v8164_v40 = vmax.f32 %v8140_v54, 0.0 }
0x15c1   : > { %v8135_v47 = vadd.f32 %v8134_v57, %v8070_v30  ;;  %v8162_v58 = vmax.f32 %v8132_v55, 0.0 }
0x15c2   : > { %v8165_v53 = vmax.f32 %v8143_v34, 0.0  ;;  %v12721_v61 = vpop.f32.mrb[108].mxu0 }
0x15c3   : > { %v8163_v62 = vmax.f32 %v8135_v47, 0.0  ;;  %v12722_v49 = vpop.f32.mrb[109].mxu0 }
0x15c4   : > { %v8171_v60 = vpack.c.bf16 %v8165_v53, %v8164_v40  ;;  %v12723_v63 = vadd.f32 %v12722_v49, %v12721_v61  ;;  %v12724_v16 = vpop.f32.mrb[110].mxu0 }
0x15c5   : > { %v8170_v46 = vpack.c.bf16 %v8163_v62, %v8162_v58  ;;  %v12725_v10 = vpop.f32.mrb[111].mxu0  ;;  %v13004_v41 = vpop.f32.mrb[120].mxu1 }
0x15c6   : > { %v12726_v21 = vadd.f32 %v12725_v10, %v12724_v16  ;;  %v8091_v0 = vadd.f32 %v12723_v63, %v8026_v14  ;;  %v8147_v5 = vpop.f32.mrb[121].mxu1 }
0x15c7   : > { %v8148_v28 = vadd.f32 %v8147_v5, %v8083_v51  ;;  %v13005_v9 = vpop.f32.mrb[122].mxu1  ;;  %13010 = vmatprep.mubr.msk.bf16.mxu1 %vm5736_vm0, %v8170_v46 }
0x15c8   : > { %v8156_v12 = vadd.f32 %v13004_v41, %v8091_v0  ;;  %v8094_v13 = vadd.f32 %v12726_v21, %v8029_v43  ;;  %v8150_v36 = vpop.f32.mrb[123].mxu1  ;;  %13011 = vmatmul.mubr.msk.bf16.vlgmr.msra.gmra.mrb[124].mxu1 %vm5736_vm0, %v8171_v60 }
0x15c9   : > { %v8151_v11 = vadd.f32 %v8150_v36, %v8086_v32  ;;  %v8166_v30 = vmax.f32 %v8148_v28, 0.0 }
0x15ca   : > { %v8159_v7 = vadd.f32 %v13005_v9, %v8094_v13  ;;  %v8168_v17 = vmax.f32 %v8156_v12, 0.0 }
0x15cb   : > { %v8167_v18 = vmax.f32 %v8151_v11, 0.0 }
0x15cc   : > { %v8169_v26 = vmax.f32 %v8159_v7, 0.0 }
0x15cd   : > { %v8172_v15 = vpack.c.bf16 %v8167_v18, %v8166_v30  ;;  %v13661_v18 = vld [vmem:[%s16437_s4] ss:$24 sps:$4 sm:$0xff]  }
0x15ce   : > { %v8173_v3 = vpack.c.bf16 %v8169_v26, %v8168_v17  ;;  %v13664_v17 = vld [vmem:[%s16437_s4 + $0x34] ss:$24 sps:$4 sm:$0xff]  }
0x15cf   : > { %13014 = vmatprep.mubr.msk.bf16.mxu1 %vm5736_vm0, %v8172_v15 }
0x15d0   : > { %13015 = vmatmul.mubr.msk.bf16.gmra.mrb[128].mxu1 %vm5736_vm0, %v8173_v3  ;;  %vm8663_vm0 = vcmask 654336  }
0x15d1   : > { %8751 = vmatprep.mubr.bf16.mxu1 %v13671_v38 }
0x169b   : > { %v13012_v20 = vpop.f32.mrb[124].mxu1 }
0x169c   : > { %v8235_v25 = vpop.f32.mrb[125].mxu1 }
0x169d   : > { %v13013_v35 = vpop.f32.mrb[126].mxu1 }
0x169e   : > { %v8267_v29 = vpack.c.bf16 %v13013_v35, %v13012_v20  ;;  %v8238_v27 = vpop.f32.mrb[127].mxu1 }
0x169f   : > { %v8266_v1 = vpack.c.bf16 %v8238_v27, %v8235_v25 }
0x16a0   : > { %8271 = vst.msk [vmem:[#allocation11 + $0x8] sm:$0xff] %vm5245_vm15, %v8267_v29 }
0x16a1   : > { %8270 = vst.msk [vmem:[#allocation11] sm:$0xff] %vm5245_vm15, %v8266_v1 }
0x16a3   : > { %v13016_v45 = vpop.f32.mrb[128].mxu1 }
0x16a4   : > { %v8251_v22 = vpop.f32.mrb[129].mxu1 }
0x16a5   : > { %v13017_v39 = vpop.f32.mrb[130].mxu1 }
0x16a6   : > { %v8269_v48 = vpack.c.bf16 %v13017_v39, %v13016_v45  ;;  %v8254_v6 = vpop.f32.mrb[131].mxu1  ;;  %v13666_v45 = vld [vmem:[%s16437_s4 + $0x30] ss:$24 sps:$4 sm:$0xff]  }
0x16a7   : > { %v8275_v37 = vld [vmem:[#allocation11 + $0x8] sm:$0xff]  ;;  %v8268_v14 = vpack.c.bf16 %v8254_v6, %v8251_v22  ;;  %v13674_v22 = vld [vmem:[%s16437_s4 + $0x14] ss:$24 sps:$4 sm:$0xff]  }
0x16a8   : > { %8279 = vst.msk [vmem:[#allocation14 + $0x18] sm:$0xff] %vm5248_vm10, %v8275_v37  ;;  %v8274_v42 = vld [vmem:[#allocation11] sm:$0xff]  ;;  %8316 = vrot.lane.b32.xlu1 %v8275_v37, %s16427_s1 }
0x16a9   : > { %8273 = vst.msk [vmem:[#allocation11 + $0x18] sm:$0xff] %vm5245_vm15, %v8269_v48  ;;  %8272 = vst.msk [vmem:[#allocation11 + $0x10] sm:$0xff] %vm5245_vm15, %v8268_v14  ;;  %8314 = vrot.lane.b32.xlu0 %v8274_v42, %s16427_s1 }
0x16aa   : > { %8278 = vst.msk [vmem:[#allocation14] sm:$0xff] %vm5248_vm10, %v8274_v42  ;;  %vm16452_vm15 = vmmov %vm16451_vm9 }
0x16af   : > { %v8537_v32 = vld [vmem:[#allocation14 + $0x18] sm:$0xff] }
0x16b0   : > { %v8277_v56 = vld [vmem:[#allocation11 + $0x18] sm:$0xff]  ;;  %v8276_v43 = vld [vmem:[#allocation11 + $0x10] sm:$0xff] }
0x16b1   : > { %8281 = vst.msk [vmem:[#allocation14 + $0x48] sm:$0xff] %vm5248_vm10, %v8277_v56  ;;  %8320 = vrot.lane.b32.xlu1 %v8277_v56, %s16427_s1  ;;  %8280 = vst.msk [vmem:[#allocation14 + $0x30] sm:$0xff] %vm5248_vm10, %v8276_v43  ;;  %8318 = vrot.lane.b32.xlu0 %v8276_v43, %s16427_s1 }
0x16b5   : > { %8290 = vrot.lane.b32.xlu1 %v8274_v42, %s16428_s8  ;;  %8338 = vrot.lane.b32.xlu0 %v8274_v42, %s16431_s5 }
0x16b8   : > { %v8538_v61 = vld [vmem:[#allocation14 + $0x30] sm:$0xff]  ;;  %v8539_v60 = vld [vmem:[#allocation14 + $0x48] sm:$0xff] }
0x16b9   : > { %8292 = vrot.lane.b32.xlu1 %v8275_v37, %s16428_s8  ;;  %8340 = vrot.lane.b32.xlu0 %v8275_v37, %s16431_s5 }
0x16bd   : > { %8296 = vrot.lane.b32.xlu1 %v8277_v56, %s16428_s8  ;;  %8344 = vrot.lane.b32.xlu0 %v8277_v56, %s16431_s5 }
0x16c1   : > { %8294 = vrot.lane.b32.xlu1 %v8276_v43, %s16428_s8  ;;  %8342 = vrot.lane.b32.xlu0 %v8276_v43, %s16431_s5 }
0x16c5   : > { %8460 = vrot.lane.b32.xlu1 %v8275_v37, %s16438_s16  ;;  %8458 = vrot.lane.b32.xlu0 %v8274_v42, %s16438_s16 }
0x16c9   : > { %8464 = vrot.lane.b32.xlu1 %v8277_v56, %s16438_s16  ;;  %8410 = vrot.lane.b32.xlu0 %v8274_v42, %s16439_s23 }
0x16cd   : > { %8362 = vrot.lane.b32.xlu1 %v8274_v42, %s16440_s2  ;;  %8412 = vrot.lane.b32.xlu0 %v8275_v37, %s16439_s23 }
0x16d1   : > { %8364 = vrot.lane.b32.xlu1 %v8275_v37, %s16440_s2  ;;  %8478 = vrot.lane.b32.xlu0 %v15264_v44, %s16428_s8 }
0x16d5   : > { %8484 = vrot.lane.b32.xlu1 %v15264_v44, %s16427_s1  ;;  %8462 = vrot.lane.b32.xlu0 %v8276_v43, %s16438_s16 }
0x16d9   : > { %8368 = vrot.lane.b32.xlu1 %v8277_v56, %s16440_s2  ;;  %8416 = vrot.lane.b32.xlu0 %v8277_v56, %s16439_s23 }
0x16dd   : > { %8414 = vrot.lane.b32.xlu1 %v8276_v43, %s16439_s23  ;;  %8490 = vrot.lane.b32.xlu0 %v15264_v44, %s16431_s5  ;;  %s16444_s5 = smov 109  }
0x16e1   : > { %8434 = vrot.lane.b32.xlu1 %v8274_v42, %s16441_s3  ;;  %8366 = vrot.lane.b32.xlu0 %v8276_v43, %s16440_s2 }
0x16e5   : > { %8496 = vrot.lane.b32.xlu1 %v15264_v44, %s16440_s2  ;;  %8386 = vrot.lane.b32.xlu0 %v8274_v42, %s16422_s0  ;;  %s16447_s2 = smov 90  }
0x16e9   : > { %8388 = vrot.lane.b32.xlu1 %v8275_v37, %s16422_s0  ;;  %8436 = vrot.lane.b32.xlu0 %v8275_v37, %s16441_s3 }
0x16ed   : > { %8438 = vrot.lane.b32.xlu1 %v8276_v43, %s16441_s3  ;;  %8502 = vrot.lane.b32.xlu0 %v15264_v44, %s16422_s0 }
0x16f1   : > { %8508 = vrot.lane.b32.xlu1 %v15264_v44, %s16439_s23  ;;  %8390 = vrot.lane.b32.xlu0 %v8276_v43, %s16422_s0 }
0x16f5   : > { %8392 = vrot.lane.b32.xlu1 %v8277_v56, %s16422_s0  ;;  %8440 = vrot.lane.b32.xlu0 %v8277_v56, %s16441_s3  ;;  %s16443_s0 = smov 110  }
0x16f9   : > { %8520 = vrot.lane.b32.xlu1 %v15264_v44, %s16438_s16  ;;  %8514 = vrot.lane.b32.xlu0 %v15264_v44, %s16441_s3  ;;  %v8536_v44 = vld [vmem:[#allocation14] sm:$0xff]  ;;  %s16445_s3 = smov 92   ;;  %s16446_s16 = smov 91  }
0x16fd   : > { %8592 = vperm.xlu1 %13162, %v8582_v31   ;;  %8587 = vperm.xlu0 %13161, %v8581_v33  }
0x1701   : > { %8602 = vperm.xlu1 %13162, %v8584_v8   ;;  %8597 = vperm.xlu0 %13161, %v8583_v50   ;;  %v8572_v8 = vld [vmem:[#allocation14 + $0x360] sm:$0xff] }
0x171a   : > { %v8317_v52 = vpop.permute.xlu1 %8316 }
0x171b   : > { %8327 = vst.msk [vmem:[#allocation14 + $0xd8] sm:$0xff] %vm5248_vm10, %v8317_v52  ;;  %v8315_v54 = vpop.permute.xlu0 %8314  ;;  %v13769_v52 = vld [vmem:[#allocation4] sm:$0xff] }
0x171c   : > { %8326 = vst.msk [vmem:[#allocation14 + $0xc0] sm:$0xff] %vm5248_vm10, %v8315_v54  ;;  %v15699_v54 = vcombine.low %v13769_v52, %v13769_v52 }
0x1722   : > { %v8545_v19 = vld [vmem:[#allocation14 + $0xd8] sm:$0xff] }
0x1723   : > { %v8321_v24 = vpop.permute.xlu1 %8320  ;;  %v8319_v51 = vpop.permute.xlu0 %8318  ;;  %v8544_v55 = vld [vmem:[#allocation14 + $0xc0] sm:$0xff] }
0x1724   : > { %8329 = vst.msk [vmem:[#allocation14 + $0x108] sm:$0xff] %vm5248_vm10, %v8321_v24  ;;  %8328 = vst.msk [vmem:[#allocation14 + $0xf0] sm:$0xff] %vm5248_vm10, %v8319_v51  ;;  %12743 = vmatprep.subr.bf16.mxu0 %v8544_v55 }
0x1725   : > { %12744 = vmatpush3.bf16.msra.mxu0 %v8536_v44 }
0x1726   : > { %12745 = vmatprep.subr.bf16.mxu0 %v8545_v19 }
0x1727   : > { %v8291_v34 = vpop.permute.xlu1 %8290  ;;  %v8339_v57 = vpop.permute.xlu0 %8338 }
0x1728   : > { %8302 = vst.msk [vmem:[#allocation14 + $0x60] sm:$0xff] %vm5248_vm10, %v8291_v34  ;;  %8350 = vst.msk [vmem:[#allocation14 + $0x120] sm:$0xff] %vm5248_vm10, %v8339_v57 }
0x1729   : > { %12746 = vmatpush3.bf16.msra.mxu0 %v8537_v32 }
0x172b   : > { %v8293_v47 = vpop.permute.xlu1 %8292  ;;  %v8341_v40 = vpop.permute.xlu0 %8340  ;;  %v8546_v53 = vld [vmem:[#allocation14 + $0xf0] sm:$0xff]  ;;  %v8547_v58 = vld [vmem:[#allocation14 + $0x108] sm:$0xff] }
0x172c   : > { %8303 = vst.msk [vmem:[#allocation14 + $0x78] sm:$0xff] %vm5248_vm10, %v8293_v47  ;;  %8351 = vst.msk [vmem:[#allocation14 + $0x138] sm:$0xff] %vm5248_vm10, %v8341_v40  ;;  %12747 = vmatprep.subr.bf16.mxu0 %v8546_v53 }
0x172d   : > { %12748 = vmatpush3.bf16.msra.mxu0 %v8538_v61 }
0x172e   : > { %12749 = vmatprep.subr.bf16.mxu0 %v8547_v58 }
0x172f   : > { %v8297_v62 = vpop.permute.xlu1 %8296  ;;  %v8345_v49 = vpop.permute.xlu0 %8344  ;;  %v8548_v63 = vld [vmem:[#allocation14 + $0x120] sm:$0xff] }
0x1730   : > { %8305 = vst.msk [vmem:[#allocation14 + $0xa8] sm:$0xff] %vm5248_vm10, %v8297_v62  ;;  %8353 = vst.msk [vmem:[#allocation14 + $0x168] sm:$0xff] %vm5248_vm10, %v8345_v49  ;;  %v8540_v10 = vld [vmem:[#allocation14 + $0x60] sm:$0xff] }
0x1731   : > { %12750 = vmatpush3.bf16.msra.mxu0 %v8539_v60 }
0x1732   : > { %12751 = vmatprep.subr.bf16.mxu0 %v8548_v63 }
0x1733   : > { %v8295_v16 = vpop.permute.xlu1 %8294  ;;  %v8343_v46 = vpop.permute.xlu0 %8342  ;;  %v8549_v41 = vld [vmem:[#allocation14 + $0x138] sm:$0xff] }
0x1734   : > { %8304 = vst.msk [vmem:[#allocation14 + $0x90] sm:$0xff] %vm5248_vm10, %v8295_v16  ;;  %8352 = vst.msk [vmem:[#allocation14 + $0x150] sm:$0xff] %vm5248_vm10, %v8343_v46  ;;  %v8541_v5 = vld [vmem:[#allocation14 + $0x78] sm:$0xff] }
0x1735   : > { %12752 = vmatpush3.bf16.msra.mxu0 %v8540_v10 }
0x1736   : > { %12753 = vmatprep.subr.bf16.mxu0 %v8549_v41 }
0x1737   : > { %v8461_v21 = vpop.permute.xlu1 %8460  ;;  %v8459_v0 = vpop.permute.xlu0 %8458  ;;  %v8551_v36 = vld [vmem:[#allocation14 + $0x168] sm:$0xff] }
0x1738   : > { %8471 = vst.msk [vmem:[#allocation14 + $0x318] sm:$0xff] %vm5248_vm10, %v8461_v21  ;;  %8470 = vst.msk [vmem:[#allocation14 + $0x300] sm:$0xff] %vm5248_vm10, %v8459_v0  ;;  %v8543_v30 = vld [vmem:[#allocation14 + $0xa8] sm:$0xff] }
0x1739   : > { %12754 = vmatpush3.bf16.msra.mxu0 %v8541_v5 }
0x173b   : > { %v8465_v28 = vpop.permute.xlu1 %8464  ;;  %v8411_v9 = vpop.permute.xlu0 %8410  ;;  %v8550_v12 = vld [vmem:[#allocation14 + $0x150] sm:$0xff] }
0x173c   : > { %8473 = vst.msk [vmem:[#allocation14 + $0x348] sm:$0xff] %vm5248_vm10, %v8465_v28  ;;  %8422 = vst.msk [vmem:[#allocation14 + $0x240] sm:$0xff] %vm5248_vm10, %v8411_v9  ;;  %12755 = vmatprep.subr.bf16.mxu0 %v8550_v12  ;;  %v8542_v13 = vld [vmem:[#allocation14 + $0x90] sm:$0xff]  ;;  %v13669_v12 = vld [vmem:[%s16437_s4 + $0x8] ss:$24 sps:$4 sm:$0xff]  }
0x173d   : > { %12756 = vmatpush3.bf16.msra.mxu0 %v8542_v13  ;;  %v13675_v13 = vld [vmem:[%s16437_s4 + $0x3c] ss:$24 sps:$4 sm:$0xff]  }
0x173e   : > { %12757 = vmatprep.subr.bf16.mxu0 %v8551_v36 }
0x173f   : > { %v8363_v11 = vpop.permute.xlu1 %8362  ;;  %v8413_v7 = vpop.permute.xlu0 %8412  ;;  %v8568_v20 = vld [vmem:[#allocation14 + $0x300] sm:$0xff]  ;;  %v8569_v1 = vld [vmem:[#allocation14 + $0x318] sm:$0xff] }
0x1740   : > { %8374 = vst.msk [vmem:[#allocation14 + $0x180] sm:$0xff] %vm5248_vm10, %v8363_v11  ;;  %8423 = vst.msk [vmem:[#allocation14 + $0x258] sm:$0xff] %vm5248_vm10, %v8413_v7  ;;  %v13672_v7 = vld [vmem:[%s16437_s4 + $0x10] ss:$24 sps:$4 sm:$0xff]  }
0x1741   : > { %12758 = vmatpush3.bf16.msra.mxu0 %v8543_v30  ;;  %v13677_v30 = vld [vmem:[%s16437_s4 + $0x38] ss:$24 sps:$4 sm:$0xff]  }
0x1742   : > { %8768 = vmatprep.subr.bf16.mxu0 %v13819_v2 }
0x1743   : > { %v8365_v26 = vpop.permute.xlu1 %8364  ;;  %v8479_v15 = vpop.permute.xlu0 %8478  ;;  %v8560_v3 = vld [vmem:[#allocation14 + $0x240] sm:$0xff]  ;;  %v8571_v23 = vld [vmem:[#allocation14 + $0x348] sm:$0xff] }
0x1744   : > { %8375 = vst.msk [vmem:[#allocation14 + $0x198] sm:$0xff] %vm5248_vm10, %v8365_v26  ;;  %8481 = vst.msk [vmem:[#allocation14 + $0x378] sm:$0xff] %vm5248_vm10, %v8479_v15  ;;  %8703 = vmatmul.mubr.bf16.vlgmr.msra.gmra.mrb[112].mxu0 %v13661_v18  ;;  %12771 = vmatprep.subr.bf16.mxu1 %v8560_v3  ;;  %v13678_v18 = vld [vmem:[%s16437_s4 + $0x44] ss:$24 sps:$4 sm:$0xff]   ;;  %v13681_v26 = vld [vmem:[%s14026_s30] ss:$12 sps:$4 sm:$0xff]  }
0x1745   : > { %8769 = vmatpush1.bf16.msra.mxu0 %v8568_v20  ;;  %8710 = vmatprep.mubr.bf16.mxu0 %v13664_v17  ;;  %v13680_v17 = vld [vmem:[%s16437_s4 + $0x40] ss:$24 sps:$4 sm:$0xff]   ;;  %v13683_v15 = vld [vmem:[%s14026_s30 + $0x4] ss:$12 sps:$4 sm:$0xff]   ;;  %v13686_v3 = vld [vmem:[%s14026_s30 + $0x1c] ss:$12 sps:$4 sm:$0xff]  }
0x1746   : > { %8770 = vmatprep.subr.bf16.mxu0 %v13819_v2  ;;  %v13684_v20 = vld [vmem:[%s14026_s30 + $0x18] ss:$12 sps:$4 sm:$0xff]   ;;  %s16448_s4 = sld [smem:[#allocation30_spill]] }
0x1747   : > { %v8485_v25 = vpop.permute.xlu1 %8484  ;;  %v8552_v35 = vld [vmem:[#allocation14 + $0x180] sm:$0xff]  ;;  %v8463_v29 = vpop.permute.xlu0 %8462  ;;  %v8561_v27 = vld [vmem:[#allocation14 + $0x258] sm:$0xff] }
0x1748   : > { %8487 = vst.msk [vmem:[#allocation14 + $0x390] sm:$0xff] %vm5248_vm10, %v8485_v25  ;;  %12772 = vmatpush3.bf16.msra.mxu1 %v8552_v35  ;;  %8472 = vst.msk [vmem:[#allocation14 + $0x330] sm:$0xff] %vm5248_vm10, %v8463_v29  ;;  %v13687_v25 = vld [vmem:[%s14026_s30 + $0x30] ss:$12 sps:$4 sm:$0xff]   ;;  %v13689_v35 = vld [vmem:[%s14026_s30 + $0x34] ss:$12 sps:$4 sm:$0xff]  }
0x1749   : > { %12773 = vmatprep.subr.bf16.mxu1 %v8561_v27  ;;  %8771 = vmatpush1.bf16.msra.mxu0 %v8569_v1  ;;  %v13690_v29 = vld [vmem:[%s14026_s30 + $0x48] ss:$12 sps:$4 sm:$0xff]   ;;  %v13692_v27 = vld [vmem:[%s14026_s30 + $0x4c] ss:$12 sps:$4 sm:$0xff]  }
0x174a   : > { %8772 = vmatprep.subr.bf16.mxu0 %v13819_v2  ;;  %v13693_v1 = vld [vmem:[%s14026_s30 + $0x64] ss:$12 sps:$4 sm:$0x7f]  }
0x174b   : > { %v8369_v39 = vpop.permute.xlu1 %8368  ;;  %v8553_v48 = vld [vmem:[#allocation14 + $0x198] sm:$0xff]  ;;  %v8417_v6 = vpop.permute.xlu0 %8416 }
0x174c   : > { %8377 = vst.msk [vmem:[#allocation14 + $0x1c8] sm:$0xff] %vm5248_vm10, %v8369_v39  ;;  %12774 = vmatpush3.bf16.msra.mxu1 %v8553_v48  ;;  %8425 = vst.msk [vmem:[#allocation14 + $0x288] sm:$0xff] %vm5248_vm10, %v8417_v6  ;;  %8711 = vmatmul.mubr.bf16.gmra.mrb[116].mxu0 %v13666_v45  ;;  %v8573_v55 = vld [vmem:[#allocation14 + $0x378] sm:$0xff]  ;;  %v13696_v39 = vld [vmem:[%s14026_s30 + $0x8] ss:$12 sps:$4 sm:$0xff]  }
0x174d   : > { %12020 = vmatprep.mubr.msk.bf16.mxu0 %vm8663_vm0, %v13674_v22  ;;  %v13695_v45 = vld [vmem:[%s14026_s30 + $0x60] ss:$12 sps:$4 sm:$0x7f]  }
0x174e   : > { %v8927_v22 = vsel %vm3347_vm13, %v13695_v45, 0  ;;  %v13700_v45 = vld [vmem:[%s14026_s30 + $0x68] ss:$12 sps:$4 sm:$0x7f]  }
0x174f   : > { %v8415_v37 = vpop.permute.xlu1 %8414  ;;  %v8491_v14 = vpop.permute.xlu0 %8490  ;;  %v8570_v42 = vld [vmem:[#allocation14 + $0x330] sm:$0xff] }
0x1750   : > { %8424 = vst.msk [vmem:[#allocation14 + $0x270] sm:$0xff] %vm5248_vm10, %v8415_v37  ;;  %8493 = vst.msk [vmem:[#allocation14 + $0x3a8] sm:$0xff] %vm5248_vm10, %v8491_v14  ;;  %8773 = vmatpush1.bf16.msra.mxu0 %v8570_v42  ;;  %v8574_v32 = vld [vmem:[#allocation14 + $0x390] sm:$0xff] }
0x1751   : > { %8774 = vmatprep.subr.bf16.mxu0 %v13819_v2 }
0x1753   : > { %v8435_v56 = vpop.permute.xlu1 %8434  ;;  %v8367_v43 = vpop.permute.xlu0 %8366  ;;  %v8563_v44 = vld [vmem:[#allocation14 + $0x288] sm:$0xff] }
0x1754   : > { %8446 = vst.msk [vmem:[#allocation14 + $0x2a0] sm:$0xff] %vm5248_vm10, %v8435_v56  ;;  %8376 = vst.msk [vmem:[#allocation14 + $0x1b0] sm:$0xff] %vm5248_vm10, %v8367_v43  ;;  %8775 = vmatpush1.bf16.msra.mxu0 %v8571_v23  ;;  %v8555_v57 = vld [vmem:[#allocation14 + $0x1c8] sm:$0xff] }
0x1755   : > { %8776 = vmatprep.subr.bf16.mxu0 %v13819_v2 }
0x1757   : > { %v8497_v38 = vpop.permute.xlu1 %8496  ;;  %v8562_v31 = vld [vmem:[#allocation14 + $0x270] sm:$0xff]  ;;  %v8387_v33 = vpop.permute.xlu0 %8386  ;;  %v8575_v58 = vld [vmem:[#allocation14 + $0x3a8] sm:$0xff] }
0x1758   : > { %8499 = vst.msk [vmem:[#allocation14 + $0x3c0] sm:$0xff] %vm5248_vm10, %v8497_v38  ;;  %12775 = vmatprep.subr.bf16.mxu1 %v8562_v31  ;;  %8398 = vst.msk [vmem:[#allocation14 + $0x1e0] sm:$0xff] %vm5248_vm10, %v8387_v33  ;;  %8777 = vmatpush1.bf16.msra.mxu0 %v8572_v8 }
0x1759   : > { %8778 = vmatprep.subr.bf16.mxu0 %v13819_v2 }
0x175b   : > { %v8389_v50 = vpop.permute.xlu1 %8388  ;;  %v8437_v24 = vpop.permute.xlu0 %8436  ;;  %v8554_v51 = vld [vmem:[#allocation14 + $0x1b0] sm:$0xff]  ;;  %v8564_v47 = vld [vmem:[#allocation14 + $0x2a0] sm:$0xff] }
0x175c   : > { %8399 = vst.msk [vmem:[#allocation14 + $0x1f8] sm:$0xff] %vm5248_vm10, %v8389_v50  ;;  %8447 = vst.msk [vmem:[#allocation14 + $0x2b8] sm:$0xff] %vm5248_vm10, %v8437_v24  ;;  %12776 = vmatpush3.bf16.msra.mxu1 %v8554_v51  ;;  %8779 = vmatpush1.bf16.msra.mxu0 %v8573_v55 }
0x175d   : > { %9395 = vst [vmem:[#allocation14 + $0x1b0] sm:$0xf] %v15699_v54  ;;  %12777 = vmatprep.subr.bf16.mxu1 %v8563_v44  ;;  %8780 = vmatprep.subr.bf16.mxu0 %v13819_v2 }
0x175f   : > { %v8439_v19 = vpop.permute.xlu1 %8438  ;;  %v8503_v34 = vpop.permute.xlu0 %8502  ;;  %v8556_v61 = vld [vmem:[#allocation14 + $0x1e0] sm:$0xff] }
0x1760   : > { %8448 = vst.msk [vmem:[#allocation14 + $0x2d0] sm:$0xff] %vm5248_vm10, %v8439_v19  ;;  %8505 = vst.msk [vmem:[#allocation14 + $0x3d8] sm:$0xff] %vm5248_vm10, %v8503_v34  ;;  %12778 = vmatpush3.bf16.msra.mxu1 %v8555_v57  ;;  %8781 = vmatpush1.bf16.msra.mxu0 %v8574_v32  ;;  %v8576_v16 = vld [vmem:[#allocation14 + $0x3c0] sm:$0xff] }
0x1761   : > { %12779 = vmatprep.subr.bf16.mxu1 %v8564_v47  ;;  %8782 = vmatprep.subr.bf16.mxu0 %v13819_v2 }
0x1763   : > { %v8509_v40 = vpop.permute.xlu1 %8508  ;;  %v8391_v53 = vpop.permute.xlu0 %8390  ;;  %v8565_v62 = vld [vmem:[#allocation14 + $0x2b8] sm:$0xff] }
0x1764   : > { %8511 = vst.msk [vmem:[#allocation14 + $0x3f0] sm:$0xff] %vm5248_vm10, %v8509_v40  ;;  %8400 = vst.msk [vmem:[#allocation14 + $0x210] sm:$0xff] %vm5248_vm10, %v8391_v53  ;;  %12780 = vmatpush3.bf16.msra.mxu1 %v8556_v61  ;;  %8783 = vmatpush1.bf16.msra.mxu0 %v8575_v58  ;;  %v8557_v63 = vld [vmem:[#allocation14 + $0x1f8] sm:$0xff] }
0x1765   : > { %12781 = vmatprep.subr.bf16.mxu1 %v8565_v62  ;;  %8784 = vmatprep.subr.bf16.mxu0 %v13819_v2 }
0x1767   : > { %v8393_v49 = vpop.permute.xlu1 %8392  ;;  %v8441_v60 = vpop.permute.xlu0 %8440  ;;  %v8566_v46 = vld [vmem:[#allocation14 + $0x2d0] sm:$0xff]  ;;  %v8577_v0 = vld [vmem:[#allocation14 + $0x3d8] sm:$0xff] }
0x1768   : > { %8401 = vst.msk [vmem:[#allocation14 + $0x228] sm:$0xff] %vm5248_vm10, %v8393_v49  ;;  %8449 = vst.msk [vmem:[#allocation14 + $0x2e8] sm:$0xff] %vm5248_vm10, %v8441_v60  ;;  %12782 = vmatpush3.bf16.msra.mxu1 %v8557_v63  ;;  %8785 = vmatpush1.bf16.msra.mxu0 %v8576_v16 }
0x1769   : > { %12783 = vmatprep.subr.bf16.mxu1 %v8566_v46  ;;  %8786 = vmatprep.subr.bf16.mxu0 %v13819_v2 }
0x176b   : > { %v8521_v10 = vpop.permute.xlu1 %8520  ;;  %v8515_v41 = vpop.permute.xlu0 %8514  ;;  %v8558_v21 = vld [vmem:[#allocation14 + $0x210] sm:$0xff] }
0x176c   : > { %8523 = vst.msk [vmem:[#allocation14 + $0x420] sm:$0xff] %vm5248_vm10, %v8521_v10  ;;  %8517 = vst.msk [vmem:[#allocation14 + $0x408] sm:$0xff] %vm5248_vm10, %v8515_v41  ;;  %12784 = vmatpush3.bf16.msra.mxu1 %v8558_v21  ;;  %8787 = vmatpush1.bf16.msra.mxu0 %v8577_v0  ;;  %v8578_v28 = vld [vmem:[#allocation14 + $0x3f0] sm:$0xff] }
0x176d   : > { %8788 = vmatprep.subr.bf16.mxu0 %v13819_v2 }
0x176f   : > { %v8567_v5 = vld [vmem:[#allocation14 + $0x2e8] sm:$0xff] }
0x1770   : > { %12785 = vmatprep.subr.bf16.mxu1 %v8567_v5  ;;  %8789 = vmatpush1.bf16.msra.mxu0 %v8578_v28  ;;  %v8559_v9 = vld [vmem:[#allocation14 + $0x228] sm:$0xff] }
0x1771   : > { %12786 = vmatpush3.bf16.msra.mxu1 %v8559_v9  ;;  %8790 = vmatprep.subr.bf16.mxu0 %v13819_v2 }
0x1772   : > { %8935 = vmatprep.subr.bf16.mxu1 %v13683_v15 }
0x1773   : > { %v8579_v36 = vld [vmem:[#allocation14 + $0x408] sm:$0xff]  ;;  %v8580_v11 = vld [vmem:[#allocation14 + $0x420] sm:$0xff] }
0x1774   : > { %8752 = vmatmul.mubr.bf16.vlgmr.msra.gmra.mrb[132].mxu1 %v13669_v12  ;;  %8791 = vmatpush1.bf16.msra.mxu0 %v8579_v36 }
0x1775   : > { %8792 = vmatprep.subr.bf16.mxu0 %v13819_v2  ;;  %8759 = vmatprep.mubr.bf16.mxu1 %v13675_v13 }
0x1776   : > { %8936 = vmatpush1.bf16.msra.mxu1 %v13681_v26 }
0x1777   : > { %8937 = vmatprep.subr.bf16.mxu1 %v13686_v3 }
0x1778   : > { %8793 = vmatpush1.bf16.msra.mxu0 %v8580_v11 }
0x177a   : > { %8938 = vmatpush1.bf16.msra.mxu1 %v13684_v20 }
0x177b   : > { %8801 = vmatmul.mubr.bf16.vlgmr.msra.gmra.mrb[120].mxu0 %v13672_v7  ;;  %8939 = vmatprep.subr.bf16.mxu1 %v13689_v35 }
0x177c   : > { %8760 = vmatmul.mubr.bf16.gmra.mrb[136].mxu1 %v13677_v30  ;;  %12021 = vmatprep.mubr.msk.bf16.mxu0 %vm8663_vm0, %v13678_v18  ;;  %v8593_v50 = vpop.permute.xlu1 %8592  ;;  %v8588_v24 = vpop.permute.xlu0 %8587  ;;  %v13697_v30 = vld [vmem:[%s14026_s30 + $0x20] ss:$12 sps:$4 sm:$0xff]   ;;  %vm16459_vm0 = vmmov %vm16454_vm1 }
0x177d   : > { %8967 = vmatprep.mubr.bf16.mxu1 %v13819_v2 }
0x177e   : > { %8940 = vmatpush1.bf16.msra.mxu1 %v13687_v25  ;;  %v13698_v25 = vld [vmem:[%s14026_s30 + $0x38] ss:$12 sps:$4 sm:$0xff]  }
0x177f   : > { %8941 = vmatprep.subr.bf16.mxu1 %v13692_v27 }
0x1780   : > { %v8603_v40 = vpop.permute.xlu1 %8602  ;;  %v8598_v61 = vpop.permute.xlu0 %8597 }
0x1782   : > { %8942 = vmatpush1.bf16.msra.mxu1 %v13690_v29 }
0x1783   : > { %8809 = vmatmul.mubr.bf16.gmra.mrb[124].mxu0 %v13680_v17  ;;  %12037 = vmatprep.subr.msk.bf16.mxu1 %vm3347_vm13, %v13693_v1  ;;  %v13699_v1 = vld [vmem:[%s14026_s30 + $0x50] ss:$12 sps:$4 sm:$0xff]  }
0x1786   : > { %8944 = vmatpush1.bf16.msra.mxu1 %v8927_v22  ;;  %v8933_v22 = vsel %vm3347_vm13, %v13700_v45, 0 }
0x1787   : > { %13018 = vmatprep.subr.bf16.mxu1 %v13696_v39 }
0x1817   : > { %v12759_v48 = vpop.f32.mrb[112].mxu0 }
0x1818   : > { %v12760_v6 = vpop.f32.mrb[113].mxu0 }
0x1819   : > { %v12761_v37 = vadd.f32 %v12760_v6, %v12759_v48  ;;  %v12762_v14 = vpop.f32.mrb[114].mxu0 }
0x181a   : > { %v12763_v42 = vpop.f32.mrb[115].mxu0 }
0x181b   : > { %v12764_v56 = vadd.f32 %v12763_v42, %v12762_v14  ;;  %v8705_v55 = vadd.f32 %v12761_v37, %v8588_v24 }
0x181d   : > { %v8708_v57 = vadd.f32 %v12764_v56, %v8593_v50 }
0x181f   : > { %v12765_v43 = vpop.f32.mrb[116].mxu0 }
0x1820   : > { %v12766_v23 = vpop.f32.mrb[117].mxu0 }
0x1821   : > { %v12767_v38 = vadd.f32 %v12766_v23, %v12765_v43  ;;  %v12768_v31 = vpop.f32.mrb[118].mxu0 }
0x1822   : > { %v12769_v33 = vpop.f32.mrb[119].mxu0 }
0x1823   : > { %v12770_v8 = vadd.f32 %v12769_v33, %v12768_v31  ;;  %v8713_v46 = vadd.f32 %v12767_v38, %v8598_v61 }
0x1825   : > { %v8716_v5 = vadd.f32 %v12770_v8, %v8603_v40  ;;  %v13704_v40 = vld [vmem:[#allocation4 + $0x8] ss:$0 sps:$4 sm:$0xff]  }
0x1847   : > { %v12787_v52 = vpop.f32.mrb[132].mxu1 }
0x1848   : > { %v12788_v51 = vpop.f32.mrb[133].mxu1 }
0x1849   : > { %v12789_v44 = vadd.f32 %v12788_v51, %v12787_v52  ;;  %v12790_v19 = vpop.f32.mrb[134].mxu1 }
0x184a   : > { %v12791_v34 = vpop.f32.mrb[135].mxu1 }
0x184b   : > { %v12792_v32 = vadd.f32 %v12791_v34, %v12790_v19  ;;  %v8754_v47 = vadd.f32 %v12789_v44, %v8705_v55  ;;  %v13701_v34 = vld [vmem:[#allocation4 + $0x8] ss:$0 sps:$4 sm:$0xff]  }
0x184d   : > { %v8757_v53 = vadd.f32 %v12792_v32, %v8708_v57  ;;  %v13702_v57 = vld [vmem:[#allocation4 + $0x8] ss:$0 sps:$4 sm:$0xff]  }
0x184e   : > { %v8802_v58 = vpop.f32.mrb[120].mxu0  ;;  %v13703_v32 = vld [vmem:[#allocation4 + $0x8] ss:$0 sps:$4 sm:$0xff]  }
0x184f   : > { %v8803_v62 = vadd.f32 %v8802_v58, %v8754_v47  ;;  %v12793_v49 = vpop.f32.mrb[136].mxu1  ;;  %v8804_v60 = vpop.f32.mrb[121].mxu0  ;;  %v13705_v58 = vld [vmem:[#allocation4 + $0x8] ss:$0 sps:$4 sm:$0xff]  }
0x1850   : > { %v12794_v63 = vpop.f32.mrb[137].mxu1  ;;  %v8805_v16 = vpop.f32.mrb[122].mxu0 }
0x1851   : > { %v12795_v10 = vadd.f32 %v12794_v63, %v12793_v49  ;;  %v8806_v41 = vadd.f32 %v8805_v16, %v8757_v53  ;;  %v12796_v21 = vpop.f32.mrb[138].mxu1  ;;  %v8807_v0 = vpop.f32.mrb[123].mxu0  ;;  %v8817_v9 = vmax.f32 %v8803_v62, 0.0  ;;  %v13711_v53 = vld [vmem:[%s16448_s4 + $0x4] ss:$12 sps:$4 sm:$0xff]  }
0x1852   : > { %v12797_v28 = vpop.f32.mrb[139].mxu1  ;;  %9735 = vmatprep.mubr.bf16.mxu0 %v13711_v53  ;;  %v13706_v16 = vld [vmem:[#allocation4 + $0x8] ss:$0 sps:$4 sm:$0xff]  }
0x1853   : > { %v8818_v12 = vmax.f32 %v8806_v41, 0.0  ;;  %v12798_v13 = vadd.f32 %v12797_v28, %v12796_v21  ;;  %v8762_v36 = vadd.f32 %v12795_v10, %v8713_v46  ;;  %v13707_v41 = vld [vmem:[#allocation4 + $0x8] ss:$0 sps:$4 sm:$0xff]  }
0x1855   : > { %v8821_v11 = vpack.c.bf16 %v8818_v12, %v8817_v9  ;;  %v8765_v7 = vadd.f32 %v12798_v13, %v8716_v5 }
0x1856   : > { %v8810_v18 = vpop.f32.mrb[124].mxu0 }
0x1857   : > { %v8811_v17 = vadd.f32 %v8810_v18, %v8762_v36  ;;  %v8812_v26 = vpop.f32.mrb[125].mxu0  ;;  %12038 = vmatmul.mubr.msk.bf16.vlgmr.msra.gmra.mrb[140].mxu1 %vm5248_vm10, %v8821_v11 }
0x1858   : > { %13019 = vmatpush3.bf16.msra.mxu1 %v13696_v39  ;;  %v8813_v15 = vpop.f32.mrb[126].mxu0  ;;  %8977 = vmatprep.mubr.bf16.mxu1 %v13819_v2 }
0x1859   : > { %v8814_v3 = vadd.f32 %v8813_v15, %v8765_v7  ;;  %v8815_v20 = vpop.f32.mrb[127].mxu0  ;;  %13020 = vmatprep.subr.bf16.mxu1 %v13697_v30  ;;  %v8819_v35 = vmax.f32 %v8811_v17, 0.0 }
0x185b   : > { %v8820_v29 = vmax.f32 %v8814_v3, 0.0 }
0x185c   : > { %13021 = vmatpush3.bf16.msra.mxu1 %v13697_v30  ;;  %v13708_v30 = vld [vmem:[#allocation4 + $0x8] ss:$0 sps:$4 sm:$0xff]  }
0x185d   : > { %v8822_v27 = vpack.c.bf16 %v8820_v29, %v8819_v35  ;;  %13022 = vmatprep.subr.bf16.mxu1 %v13698_v25 }
0x185f   : > { %12039 = vmatmul.mubr.msk.bf16.gmra.mrb[144].mxu1 %vm5248_vm10, %v8822_v27 }
0x1860   : > { %13023 = vmatpush3.bf16.msra.mxu1 %v13698_v25  ;;  %13028 = vmatprep.mubr.msk.bf16.mxu1 %vm5248_vm10, %v8821_v11 }
0x1861   : > { %13024 = vmatprep.subr.bf16.mxu1 %v13699_v1 }
0x1864   : > { %13025 = vmatpush3.bf16.msra.mxu1 %v13699_v1 }
0x1865   : > { %13085 = vmatprep.subr.msk.bf16.mxu1 %vm3347_vm13, %v13700_v45 }
0x1868   : > { %13027 = vmatpush3.bf16.msra.mxu1 %v8933_v22 }
0x186b   : > { %13029 = vmatmul.mubr.msk.bf16.vlgmr.msra.gmra.mrb[148].mxu1 %vm5248_vm10, %v8822_v27  ;;  %vm16453_vm10 = vcmask 244740  }
0x186c   : > { %9821 = vmatprep.mubr.bf16.mxu1 %v13711_v53  ;;  %vm16456_vm12 = vmmov %vm16453_vm10 }
0x192a   : > { %v8969_v39 = vpop.f32.mrb[140].mxu1 }
0x192b   : > { %v8971_v48 = vpop.f32.mrb[141].mxu1 }
0x192c   : > { %v8973_v6 = vpop.f32.mrb[142].mxu1 }
0x192d   : > { %v9037_v37 = vpack.c.bf16 %v8973_v6, %v8969_v39  ;;  %v8975_v14 = vpop.f32.mrb[143].mxu1 }
0x192e   : > { %v9038_v42 = vpack.c.bf16 %v8975_v14, %v8971_v48 }
0x192f   : > { %9056 = vst [vmem:[#allocation14] sm:$0xff] %v9037_v37  ;;  %9074 = vrot.lane.b32.xlu0 %v9037_v37, %s16428_s8 }
0x1930   : > { %9057 = vst [vmem:[#allocation14 + $0x8] sm:$0xff] %v9038_v42  ;;  %9703 = vmatprep.subr.bf16.mxu0 %v9038_v42 }
0x1931   : > { %9704 = vmatpush1.bf16.msra.mxu0 %v9037_v37 }
0x1932   : > { %v8979_v56 = vpop.f32.mrb[144].mxu1 }
0x1933   : > { %v8981_v43 = vpop.f32.mrb[145].mxu1  ;;  %9114 = vrot.lane.b32.xlu0 %v9037_v37, %s16427_s1 }
0x1934   : > { %v8983_v23 = vpop.f32.mrb[146].mxu1 }
0x1935   : > { %v9040_v38 = vpack.c.bf16 %v8983_v23, %v8979_v56  ;;  %v8985_v31 = vpop.f32.mrb[147].mxu1 }
0x1936   : > { %v9041_v33 = vpack.c.bf16 %v8985_v31, %v8981_v43 }
0x1937   : > { %9059 = vst [vmem:[#allocation14 + $0x18] sm:$0xff] %v9040_v38  ;;  %9154 = vrot.lane.b32.xlu0 %v9037_v37, %s16443_s0  ;;  %9080 = vrot.lane.b32.xlu1 %v9040_v38, %s16428_s8 }
0x1938   : > { %9060 = vst [vmem:[#allocation14 + $0x20] sm:$0xff] %v9041_v33  ;;  %9705 = vmatprep.subr.bf16.mxu0 %v9041_v33 }
0x1939   : > { %9706 = vmatpush1.bf16.msra.mxu0 %v9040_v38 }
0x193b   : > { %9194 = vrot.lane.b32.xlu0 %v9037_v37, %s16444_s5  ;;  %9120 = vrot.lane.b32.xlu1 %v9040_v38, %s16427_s1 }
0x193e   : > { %v13030_v8 = vpop.f32.mrb[148].mxu1 }
0x193f   : > { %v9022_v50 = vpop.f32.mrb[149].mxu1  ;;  %9234 = vrot.lane.b32.xlu0 %v9037_v37, %s16439_s23  ;;  %9160 = vrot.lane.b32.xlu1 %v9040_v38, %s16443_s0 }
0x1940   : > { %v13031_v52 = vpop.f32.mrb[150].mxu1 }
0x1941   : > { %v9042_v24 = vpack.c.bf16 %v13031_v52, %v13030_v8  ;;  %v9025_v51 = vpop.f32.mrb[151].mxu1 }
0x1942   : > { %v9039_v55 = vpack.c.bf16 %v9025_v51, %v9022_v50 }
0x1943   : > { %9049 = vst.msk [vmem:[#allocation12 + $0x28] sm:$0xff] %vm9045_vm11, %v9042_v24  ;;  %9274 = vrot.lane.b32.xlu0 %v9037_v37, %s16445_s3  ;;  %9200 = vrot.lane.b32.xlu1 %v9040_v38, %s16444_s5 }
0x1944   : > { %9046 = vst.msk [vmem:[#allocation12 + $0x10] sm:$0xff] %vm9045_vm11, %v9039_v55 }
0x1947   : > { %9314 = vrot.lane.b32.xlu0 %v9037_v37, %s16446_s16  ;;  %9240 = vrot.lane.b32.xlu1 %v9040_v38, %s16439_s23 }
0x194a   : > { %v9055_v44 = vld [vmem:[#allocation12 + $0x28] sm:$0xff] }
0x194b   : > { %9061 = vst.msk [vmem:[#allocation14 + $0x28] sm:$0xff] %vm4476_vm14, %v9055_v44  ;;  %v9052_v19 = vld [vmem:[#allocation12 + $0x10] sm:$0xff]  ;;  %9354 = vrot.lane.b32.xlu0 %v9037_v37, %s16447_s2  ;;  %9280 = vrot.lane.b32.xlu1 %v9040_v38, %s16445_s3 }
0x194c   : > { %9058 = vst.msk [vmem:[#allocation14 + $0x10] sm:$0xff] %vm4476_vm14, %v9052_v19 }
0x194f   : > { %9076 = vrot.lane.b32.xlu0 %v9038_v42, %s16428_s8  ;;  %9320 = vrot.lane.b32.xlu1 %v9040_v38, %s16446_s16 }
0x1953   : > { %9116 = vrot.lane.b32.xlu0 %v9038_v42, %s16427_s1  ;;  %9082 = vrot.lane.b32.xlu1 %v9041_v33, %s16428_s8 }
0x1957   : > { %9156 = vrot.lane.b32.xlu0 %v9038_v42, %s16443_s0  ;;  %9122 = vrot.lane.b32.xlu1 %v9041_v33, %s16427_s1 }
0x195b   : > { %9196 = vrot.lane.b32.xlu0 %v9038_v42, %s16444_s5  ;;  %9162 = vrot.lane.b32.xlu1 %v9041_v33, %s16443_s0 }
0x195f   : > { %9236 = vrot.lane.b32.xlu0 %v9038_v42, %s16439_s23  ;;  %9202 = vrot.lane.b32.xlu1 %v9041_v33, %s16444_s5 }
0x1963   : > { %9276 = vrot.lane.b32.xlu0 %v9038_v42, %s16445_s3  ;;  %9242 = vrot.lane.b32.xlu1 %v9041_v33, %s16439_s23 }
0x1967   : > { %9316 = vrot.lane.b32.xlu0 %v9038_v42, %s16446_s16  ;;  %9282 = vrot.lane.b32.xlu1 %v9041_v33, %s16445_s3 }
0x196b   : > { %9356 = vrot.lane.b32.xlu0 %v9038_v42, %s16447_s2  ;;  %9322 = vrot.lane.b32.xlu1 %v9041_v33, %s16446_s16 }
0x196f   : > { %9362 = vrot.lane.b32.xlu1 %v9041_v33, %s16447_s2  ;;  %9084 = vrot.lane.b32.xlu0 %v9055_v44, %s16428_s8 }
0x1973   : > { %9124 = vrot.lane.b32.xlu0 %v9055_v44, %s16427_s1  ;;  %9078 = vrot.lane.b32.xlu1 %v9052_v19, %s16428_s8 }
0x1977   : > { %9164 = vrot.lane.b32.xlu0 %v9055_v44, %s16443_s0  ;;  %9360 = vrot.lane.b32.xlu1 %v9040_v38, %s16447_s2 }
0x197b   : > { %9204 = vrot.lane.b32.xlu0 %v9055_v44, %s16444_s5  ;;  %9118 = vrot.lane.b32.xlu1 %v9052_v19, %s16427_s1 }
0x197f   : > { %9244 = vrot.lane.b32.xlu0 %v9055_v44, %s16439_s23  ;;  %9412 = vrot.lane.b32.xlu1 %v13701_v34, %s16428_s8 }
0x1983   : > { %9284 = vrot.lane.b32.xlu0 %v9055_v44, %s16445_s3  ;;  %9158 = vrot.lane.b32.xlu1 %v9052_v19, %s16443_s0 }
0x1987   : > { %9324 = vrot.lane.b32.xlu0 %v9055_v44, %s16446_s16  ;;  %9434 = vrot.lane.b32.xlu1 %v15010_v59, %s16427_s1 }
0x198b   : > { %9364 = vrot.lane.b32.xlu0 %v9055_v44, %s16447_s2  ;;  %9198 = vrot.lane.b32.xlu1 %v9052_v19, %s16444_s5 }
0x198f   : > { %9410 = vrot.lane.b32.xlu0 %v15010_v59, %s16428_s8  ;;  %9458 = vrot.lane.b32.xlu1 %v15010_v59, %s16443_s0 }
0x1993   : > { %9408 = vrot.lane.b32.xlu0 %v15699_v54, %s16428_s8  ;;  %9238 = vrot.lane.b32.xlu1 %v9052_v19, %s16439_s23  ;;  %s16449_s8 = sld [smem:[#allocation31_spill]] }
0x1997   : > { %9436 = vrot.lane.b32.xlu0 %v13702_v57, %s16427_s1  ;;  %9432 = vrot.lane.b32.xlu1 %v15699_v54, %s16427_s1  ;;  %s16450_s1 = sld [smem:[#allocation33_spill]] }
0x1999   : > { %v9663_v9 = vld [vmem:[%s16449_s8] sm:$0xff]  ;;  %v9664_v17 = vld [vmem:[%s16449_s8 + $0x8] sm:$0xff] }
0x199b   : > { %9460 = vrot.lane.b32.xlu0 %v13703_v32, %s16443_s0  ;;  %9278 = vrot.lane.b32.xlu1 %v9052_v19, %s16445_s3 }
0x199d   : > { %v11147_v36 = vld [vmem:[%s16450_s1] sm:$0xff]  ;;  %v11149_v18 = vld [vmem:[%s16450_s1 + $0x10] sm:$0xff]  ;;  %v11148_v20 = vld [vmem:[%s16450_s1 + $0x8] sm:$0xff] }
0x199e   : > { %v11150_v1 = vld [vmem:[%s16450_s1 + $0x18] sm:$0xff] }
0x199f   : > { %9456 = vrot.lane.b32.xlu0 %v15699_v54, %s16443_s0  ;;  %9482 = vrot.lane.b32.xlu1 %v15010_v59, %s16444_s5  ;;  %s12253_s0 = sshll.u32 %s16479_s10, 8 }
0x19a1   : > { %v9075_v47 = vpop.permute.xlu0 %9074 }
0x19a3   : > { %9484 = vrot.lane.b32.xlu0 %v13704_v40, %s16444_s5  ;;  %9318 = vrot.lane.b32.xlu1 %v9052_v19, %s16446_s16 }
0x19a5   : > { %v9115_v61 = vpop.permute.xlu0 %9114 }
0x19a7   : > { %9508 = vrot.lane.b32.xlu0 %v13705_v58, %s16439_s23  ;;  %9506 = vrot.lane.b32.xlu1 %v15010_v59, %s16439_s23 }
0x19a9   : > { %v9155_v62 = vpop.permute.xlu0 %9154  ;;  %v9081_v49 = vpop.permute.xlu1 %9080 }
0x19ab   : > { %9504 = vrot.lane.b32.xlu0 %v15699_v54, %s16439_s23  ;;  %9358 = vrot.lane.b32.xlu1 %v9052_v19, %s16447_s2  ;;  %s16469_s23 = sld [smem:[#allocation32_spill]] }
0x19ad   : > { %v9195_v60 = vpop.permute.xlu0 %9194  ;;  %v9121_v63 = vpop.permute.xlu1 %9120 }
0x19af   : > { %9532 = vrot.lane.b32.xlu0 %v13706_v16, %s16445_s3  ;;  %9480 = vrot.lane.b32.xlu1 %v15699_v54, %s16444_s5  ;;  %s16234_s5 = scalar_lea.vmem %s14041_s6, %s12253_s0 }
0x19b1   : > { %v9235_v46 = vpop.permute.xlu0 %9234  ;;  %v9161_v10 = vpop.permute.xlu1 %9160 }
0x19b3   : > { %9556 = vrot.lane.b32.xlu0 %v13707_v41, %s16446_s16  ;;  %9530 = vrot.lane.b32.xlu1 %v15010_v59, %s16445_s3 }
0x19b5   : > { %v9275_v21 = vpop.permute.xlu0 %9274  ;;  %v9201_v0 = vpop.permute.xlu1 %9200 }
0x19b7   : > { %9552 = vrot.lane.b32.xlu0 %v15699_v54, %s16446_s16  ;;  %9554 = vrot.lane.b32.xlu1 %v15010_v59, %s16446_s16 }
0x19b9   : > { %v9315_v5 = vpop.permute.xlu0 %9314  ;;  %v9241_v28 = vpop.permute.xlu1 %9240 }
0x19bb   : > { %9578 = vrot.lane.b32.xlu0 %v15010_v59, %s16447_s2  ;;  %9528 = vrot.lane.b32.xlu1 %v15699_v54, %s16445_s3 }
0x19bd   : > { %v9355_v12 = vpop.permute.xlu0 %9354  ;;  %v9281_v13 = vpop.permute.xlu1 %9280 }
0x19bf   : > { %9667 = vperm.xlu0 %13161, %v9663_v9   ;;  %9576 = vrot.lane.b32.xlu1 %v15699_v54, %s16447_s2 }
0x19c1   : > { %v15843_v11 = vpop.permute.xlu0 %9076  ;;  %v9321_v7 = vpop.permute.xlu1 %9320 }
0x19c2   : > { %v15847_v59 = vsel %vm1323_vm3, %v9075_v47, %v15843_v11 }
0x19c3   : > { %9096 = vst [vmem:[#allocation14 + $0x30] sm:$0xff] %v15847_v59  ;;  %11153 = vperm.xlu0 %13161, %v11147_v36   ;;  %9580 = vrot.lane.b32.xlu1 %v13708_v30, %s16447_s2 }
0x19c5   : > { %v15853_v26 = vpop.permute.xlu0 %9116  ;;  %v9083_v54 = vpop.permute.xlu1 %9082 }
0x19c6   : > { %v15857_v15 = vsel %vm1393_vm4, %v9115_v61, %v15853_v26  ;;  %v15860_v3 = vsel %vm1323_vm3, %v9081_v49, %v9083_v54 }
0x19c7   : > { %9136 = vst [vmem:[#allocation14 + $0x60] sm:$0xff] %v15857_v15  ;;  %9099 = vst [vmem:[#allocation14 + $0x48] sm:$0xff] %v15860_v3  ;;  %11163 = vperm.xlu0 %13161, %v11149_v18   ;;  %9672 = vperm.xlu1 %13162, %v9664_v17  }
0x19c9   : > { %v15865_v25 = vpop.permute.xlu0 %9156  ;;  %v9123_v35 = vpop.permute.xlu1 %9122 }
0x19ca   : > { %v15869_v29 = vsel %vm3862_vm2, %v9155_v62, %v15865_v25  ;;  %v15872_v27 = vsel %vm1393_vm4, %v9121_v63, %v9123_v35 }
0x19cb   : > { %9176 = vst [vmem:[#allocation14 + $0x90] sm:$0xff] %v15869_v29  ;;  %9139 = vst [vmem:[#allocation14 + $0x78] sm:$0xff] %v15872_v27  ;;  %11158 = vperm.xlu1 %13162, %v11148_v20  }
0x19cd   : > { %v15877_v45 = vpop.permute.xlu0 %9196  ;;  %v9163_v22 = vpop.permute.xlu1 %9162 }
0x19ce   : > { %v15881_v39 = vsel %vm3887_vm5, %v9195_v60, %v15877_v45  ;;  %v15884_v48 = vsel %vm3862_vm2, %v9161_v10, %v9163_v22 }
0x19cf   : > { %9216 = vst [vmem:[#allocation14 + $0xc0] sm:$0xff] %v15881_v39  ;;  %9179 = vst [vmem:[#allocation14 + $0xa8] sm:$0xff] %v15884_v48  ;;  %11168 = vperm.xlu1 %13162, %v11150_v1  }
0x19d1   : > { %v15888_v6 = vpop.permute.xlu0 %9236  ;;  %v9203_v37 = vpop.permute.xlu1 %9202 }
0x19d2   : > { %v15892_v14 = vsel %vm3912_vm6, %v9235_v46, %v15888_v6  ;;  %v15895_v42 = vsel %vm3887_vm5, %v9201_v0, %v9203_v37 }
0x19d3   : > { %9256 = vst [vmem:[#allocation14 + $0xf0] sm:$0xff] %v15892_v14  ;;  %9219 = vst [vmem:[#allocation14 + $0xd8] sm:$0xff] %v15895_v42 }
0x19d5   : > { %v15899_v56 = vpop.permute.xlu0 %9276  ;;  %v9243_v43 = vpop.permute.xlu1 %9242 }
0x19d6   : > { %v15903_v23 = vsel %vm1603_vm8, %v9275_v21, %v15899_v56  ;;  %v15906_v38 = vsel %vm3912_vm6, %v9241_v28, %v9243_v43 }
0x19d7   : > { %9296 = vst [vmem:[#allocation14 + $0x120] sm:$0xff] %v15903_v23  ;;  %9259 = vst [vmem:[#allocation14 + $0x108] sm:$0xff] %v15906_v38 }
0x19d9   : > { %v15910_v31 = vpop.permute.xlu0 %9316  ;;  %v9283_v33 = vpop.permute.xlu1 %9282 }
0x19da   : > { %v15914_v8 = vsel %vm3962_vm7, %v9315_v5, %v15910_v31  ;;  %v15917_v50 = vsel %vm1603_vm8, %v9281_v13, %v9283_v33 }
0x19db   : > { %9336 = vst [vmem:[#allocation14 + $0x150] sm:$0xff] %v15914_v8  ;;  %9299 = vst [vmem:[#allocation14 + $0x138] sm:$0xff] %v15917_v50 }
0x19dd   : > { %v15921_v52 = vpop.permute.xlu0 %9356  ;;  %v9323_v24 = vpop.permute.xlu1 %9322 }
0x19de   : > { %v15925_v51 = vsel %vm16451_vm9, %v9355_v12, %v15921_v52  ;;  %v15928_v55 = vsel %vm3962_vm7, %v9321_v7, %v9323_v24 }
0x19df   : > { %9376 = vst [vmem:[#allocation14 + $0x180] sm:$0xff] %v15925_v51  ;;  %9339 = vst [vmem:[#allocation14 + $0x168] sm:$0xff] %v15928_v55 }
0x19e1   : > { %v9363_v44 = vpop.permute.xlu1 %9362  ;;  %v9085_v19 = vpop.permute.xlu0 %9084 }
0x19e2   : > { %v9089_v34 = vsel %vm1323_vm3, %v9083_v54, %v9085_v19  ;;  %9101 = vst.msk [vmem:[#allocation14 + $0x58] sm:$0xff] %vm4476_vm14, %v9085_v19 }
0x19e3   : > { %9100 = vst [vmem:[#allocation14 + $0x50] sm:$0xff] %v9089_v34 }
0x19e5   : > { %v9125_v57 = vpop.permute.xlu0 %9124  ;;  %v9079_v32 = vpop.permute.xlu1 %9078 }
0x19e6   : > { %v9129_v47 = vsel %vm1393_vm4, %v9123_v35, %v9125_v57  ;;  %9141 = vst.msk [vmem:[#allocation14 + $0x88] sm:$0xff] %vm4476_vm14, %v9125_v57  ;;  %v9087_v40 = vsel %vm1323_vm3, %v15843_v11, %v9079_v32  ;;  %9098 = vst.msk [vmem:[#allocation14 + $0x40] sm:$0xff] %vm4476_vm14, %v9079_v32 }
0x19e7   : > { %9097 = vst [vmem:[#allocation14 + $0x38] sm:$0xff] %v9087_v40  ;;  %9707 = vmatprep.subr.bf16.mxu0 %v9087_v40 }
0x19e8   : > { %9708 = vmatpush1.bf16.msra.mxu0 %v15847_v59 }
0x19e9   : > { %v9165_v53 = vpop.permute.xlu0 %9164  ;;  %v9361_v61 = vpop.permute.xlu1 %9360  ;;  %9709 = vmatprep.subr.bf16.mxu0 %v9089_v34 }
0x19ea   : > { %v9169_v58 = vsel %vm3862_vm2, %v9163_v22, %v9165_v53  ;;  %9181 = vst.msk [vmem:[#allocation14 + $0xb8] sm:$0xff] %vm4476_vm14, %v9165_v53  ;;  %v15943_v62 = vsel %vm16452_vm15, %v9361_v61, %v9363_v44  ;;  %v9599_v22 = vld [vmem:[#allocation14 + $0x28] sm:$0xff]  ;;  %vm16466_vm15 = vcmask 1043456  }
0x19eb   : > { %9379 = vst [vmem:[#allocation14 + $0x198] sm:$0xff] %v15943_v62  ;;  %v13709_v61 = vld [vmem:[%s16448_s4] ss:$12 sps:$4 sm:$0xff]  }
0x19ec   : > { %9710 = vmatpush1.bf16.msra.mxu0 %v15860_v3 }
0x19ed   : > { %v9205_v49 = vpop.permute.xlu0 %9204  ;;  %v9119_v60 = vpop.permute.xlu1 %9118  ;;  %v9611_v53 = vld [vmem:[#allocation14 + $0x88] sm:$0xff] }
0x19ee   : > { %v9209_v63 = vsel %vm3887_vm5, %v9203_v37, %v9205_v49  ;;  %9221 = vst.msk [vmem:[#allocation14 + $0xe8] sm:$0xff] %vm4476_vm14, %v9205_v49  ;;  %v9127_v16 = vsel %vm1393_vm4, %v15853_v26, %v9119_v60  ;;  %9138 = vst.msk [vmem:[#allocation14 + $0x70] sm:$0xff] %vm4476_vm14, %v9119_v60 }
0x19ef   : > { %9137 = vst [vmem:[#allocation14 + $0x68] sm:$0xff] %v9127_v16  ;;  %9711 = vmatprep.subr.bf16.mxu0 %v9127_v16 }
0x19f0   : > { %9712 = vmatpush1.bf16.msra.mxu0 %v15857_v15 }
0x19f1   : > { %v9245_v46 = vpop.permute.xlu0 %9244  ;;  %v9413_v10 = vpop.permute.xlu1 %9412  ;;  %9713 = vmatprep.subr.bf16.mxu0 %v9129_v47 }
0x19f2   : > { %v9249_v41 = vsel %vm3912_vm6, %v9243_v43, %v9245_v46  ;;  %9261 = vst.msk [vmem:[#allocation14 + $0x118] sm:$0xff] %vm4476_vm14, %v9245_v46 }
0x19f3   : > { %9421 = vst.msk [vmem:[#allocation14 + $0x1c0] sm:$0xf0] %vm16453_vm10, %v9413_v10 }
0x19f4   : > { %9714 = vmatpush1.bf16.msra.mxu0 %v15872_v27 }
0x19f5   : > { %v9285_v21 = vpop.permute.xlu0 %9284  ;;  %v9159_v0 = vpop.permute.xlu1 %9158  ;;  %v9623_v35 = vld [vmem:[#allocation14 + $0xe8] sm:$0xff]  ;;  %v9608_v32 = vld [vmem:[#allocation14 + $0x70] sm:$0xff] }
0x19f6   : > { %v15958_v5 = vsel %vm1603_vm8, %v9283_v33, %v9285_v21  ;;  %9301 = vst.msk [vmem:[#allocation14 + $0x148] sm:$0xff] %vm4476_vm14, %v9285_v21  ;;  %v9167_v28 = vsel %vm3862_vm2, %v15865_v25, %v9159_v0  ;;  %9178 = vst.msk [vmem:[#allocation14 + $0xa0] sm:$0xff] %vm4476_vm14, %v9159_v0  ;;  %v9596_v25 = vld [vmem:[#allocation14 + $0x10] sm:$0xff] }
0x19f7   : > { %9715 = vmatprep.subr.bf16.mxu0 %v9167_v28 }
0x19f8   : > { %9716 = vmatpush1.bf16.msra.mxu0 %v15869_v29 }
0x19f9   : > { %v9325_v9 = vpop.permute.xlu0 %9324  ;;  %v9435_v12 = vpop.permute.xlu1 %9434  ;;  %9717 = vmatprep.subr.bf16.mxu0 %v9169_v58  ;;  %v9629_v43 = vld [vmem:[#allocation14 + $0x118] sm:$0xff] }
0x19fa   : > { %v15966_v13 = vsel %vm3962_vm7, %v9323_v24, %v9325_v9  ;;  %9341 = vst.msk [vmem:[#allocation14 + $0x178] sm:$0xff] %vm4476_vm14, %v9325_v9 }
0x19fc   : > { %9718 = vmatpush1.bf16.msra.mxu0 %v15884_v48 }
0x19fd   : > { %v9365_v36 = vpop.permute.xlu0 %9364  ;;  %v9199_v11 = vpop.permute.xlu1 %9198  ;;  %v9635_v47 = vld [vmem:[#allocation14 + $0x148] sm:$0xff]  ;;  %v9614_v16 = vld [vmem:[#allocation14 + $0xa0] sm:$0xff] }
0x19fe   : > { %v15971_v7 = vsel %vm16454_vm1, %v9363_v44, %v9365_v36  ;;  %9381 = vst.msk [vmem:[#allocation14 + $0x1a8] sm:$0xff] %vm4476_vm14, %v9365_v36  ;;  %v9207_v30 = vsel %vm3887_vm5, %v15877_v45, %v9199_v11  ;;  %9218 = vst.msk [vmem:[#allocation14 + $0xd0] sm:$0xff] %vm4476_vm14, %v9199_v11  ;;  %v9605_v44 = vld [vmem:[#allocation14 + $0x58] sm:$0xff] }
0x19ff   : > { %9719 = vmatprep.subr.bf16.mxu0 %v9207_v30 }
0x1a00   : > { %9720 = vmatpush1.bf16.msra.mxu0 %v15881_v39 }
0x1a01   : > { %v9411_v59 = vpop.permute.xlu0 %9410  ;;  %v9459_v18 = vpop.permute.xlu1 %9458  ;;  %9721 = vmatprep.subr.bf16.mxu0 %v9209_v63  ;;  %v9641_v46 = vld [vmem:[#allocation14 + $0x178] sm:$0xff] }
0x1a02   : > { %v9415_v17 = vsel %vm1323_vm3, %v9411_v59, %v9413_v10 }
0x1a03   : > { %9420 = vst [vmem:[#allocation14 + $0x1b8] sm:$0xf0] %v9415_v17 }
0x1a04   : > { %9722 = vmatpush1.bf16.msra.mxu0 %v15895_v42  ;;  %v9602_v42 = vld [vmem:[#allocation14 + $0x40] sm:$0xff] }
0x1a05   : > { %v9409_v26 = vpop.permute.xlu0 %9408  ;;  %v9239_v54 = vpop.permute.xlu1 %9238  ;;  %v9620_v15 = vld [vmem:[#allocation14 + $0xd0] sm:$0xff] }
0x1a06   : > { %v9414_v3 = vsel %vm1323_vm3, %v9409_v26, %v9411_v59  ;;  %v9247_v20 = vsel %vm3912_vm6, %v15888_v6, %v9239_v54  ;;  %9258 = vst.msk [vmem:[#allocation14 + $0x100] sm:$0xff] %vm4476_vm14, %v9239_v54  ;;  %12806 = vmatprep.subr.bf16.mxu1 %v9620_v15  ;;  %vm16455_vm3 = vcmask 240640   ;;  %v9650_v26 = vld [vmem:[#allocation14 + $0x1c0] sm:$0xff] }
0x1a07   : > { %9419 = vst [vmem:[#allocation14 + $0x1b0] sm:$0xf0] %v9414_v3  ;;  %12807 = vmatpush3.bf16.msra.mxu1 %v9596_v25  ;;  %9723 = vmatprep.subr.bf16.mxu0 %v9247_v20  ;;  %vm16465_vm9 = vmmov %vm16455_vm3 }
0x1a08   : > { %12808 = vmatprep.subr.bf16.mxu1 %v9623_v35  ;;  %9724 = vmatpush1.bf16.msra.mxu0 %v15892_v14 }
0x1a09   : > { %v9437_v29 = vpop.permute.xlu0 %9436  ;;  %v9433_v27 = vpop.permute.xlu1 %9432  ;;  %9725 = vmatprep.subr.bf16.mxu0 %v9249_v41  ;;  %v9617_v41 = vld [vmem:[#allocation14 + $0xb8] sm:$0xff] }
0x1a0a   : > { %v9439_v1 = vsel %vm1393_vm4, %v9435_v12, %v9437_v29  ;;  %9445 = vst.msk [vmem:[#allocation14 + $0x1d8] sm:$0xf] %vm16455_vm3, %v9437_v29  ;;  %v9438_v45 = vsel %vm1393_vm4, %v9433_v27, %v9435_v12  ;;  %vm16457_vm4 = vmmov %vm16455_vm3  ;;  %v9649_v28 = vld [vmem:[#allocation14 + $0x1b8] sm:$0xff] }
0x1a0b   : > { %9444 = vst [vmem:[#allocation14 + $0x1d0] sm:$0xf] %v9439_v1  ;;  %9443 = vst [vmem:[#allocation14 + $0x1c8] sm:$0xf] %v9438_v45  ;;  %12809 = vmatpush3.bf16.msra.mxu1 %v9599_v22 }
0x1a0c   : > { %9726 = vmatpush1.bf16.msra.mxu0 %v15906_v38 }
0x1a0d   : > { %v9461_v39 = vpop.permute.xlu0 %9460  ;;  %v9279_v48 = vpop.permute.xlu1 %9278  ;;  %v9626_v6 = vld [vmem:[#allocation14 + $0x100] sm:$0xff] }
0x1a0e   : > { %v9463_v37 = vsel %vm3862_vm2, %v9459_v18, %v9461_v39  ;;  %9469 = vst.msk [vmem:[#allocation14 + $0x1d8] sm:$0xf0] %vm16456_vm12, %v9461_v39  ;;  %v9287_v14 = vsel %vm1603_vm8, %v15899_v56, %v9279_v48  ;;  %12810 = vmatprep.subr.bf16.mxu1 %v9626_v6  ;;  %v9648_v9 = vld [vmem:[#allocation14 + $0x1b0] sm:$0xff] }
0x1a0f   : > { %9298 = vst.msk [vmem:[#allocation14 + $0x130] sm:$0xff] %vm4476_vm14, %v9279_v48  ;;  %9468 = vst [vmem:[#allocation14 + $0x1d0] sm:$0xf0] %v9463_v37  ;;  %12811 = vmatpush3.bf16.msra.mxu1 %v9602_v42  ;;  %9727 = vmatprep.subr.bf16.mxu0 %v9287_v14  ;;  %v13715_v48 = vld [vmem:[%s14031_s24 + $0x4] ss:$8 sps:$4 sm:$0xff]  }
0x1a10   : > { %12812 = vmatprep.subr.bf16.mxu1 %v9629_v43  ;;  %9728 = vmatpush1.bf16.msra.mxu0 %v15903_v23  ;;  %v13712_v42 = vld [vmem:[%s16448_s4 + $0x8] ss:$12 sps:$4 sm:$0xff]  }
0x1a11   : > { %v9457_v38 = vpop.permute.xlu0 %9456  ;;  %v9483_v33 = vpop.permute.xlu1 %9482  ;;  %9729 = vmatprep.subr.bf16.mxu0 %v15958_v5 }
0x1a12   : > { %v9462_v24 = vsel %vm3862_vm2, %v9457_v38, %v9459_v18  ;;  %vm16458_vm2 = vmmov %vm16453_vm10  ;;  %v13713_v38 = vld [vmem:[%s14031_s24] ss:$8 sps:$4 sm:$0xff]  }
0x1a13   : > { %9467 = vst [vmem:[#allocation14 + $0x1c8] sm:$0xf0] %v9462_v24  ;;  %12813 = vmatpush3.bf16.msra.mxu1 %v9605_v44  ;;  %vm16461_vm11 = vmmov %vm16458_vm2  ;;  %v13721_v24 = vld [vmem:[%s14031_s24 + $0x24] ss:$8 sps:$4 sm:$0xff]   ;;  %v13719_v44 = vld [vmem:[%s14031_s24 + $0x20] ss:$8 sps:$4 sm:$0xff]  }
0x1a14   : > { %9730 = vmatpush1.bf16.msra.mxu0 %v15917_v50  ;;  %vm16467_vm10 = vmmov %vm16466_vm15 }
0x1a15   : > { %v9485_v56 = vpop.permute.xlu0 %9484  ;;  %v9319_v19 = vpop.permute.xlu1 %9318  ;;  %v9653_v25 = vld [vmem:[#allocation14 + $0x1d8] sm:$0xff]  ;;  %vm16468_vm1 = vmmov %vm16467_vm10 }
0x1a16   : > { %v9632_v34 = vld [vmem:[#allocation14 + $0x130] sm:$0xff]  ;;  %v9487_v57 = vsel %vm3887_vm5, %v9483_v33, %v9485_v56  ;;  %9493 = vst.msk [vmem:[#allocation14 + $0x1f0] sm:$0xf] %vm16457_vm4, %v9485_v56  ;;  %v9327_v23 = vsel %vm3962_vm7, %v15910_v31, %v9319_v19 }
0x1a17   : > { %9338 = vst.msk [vmem:[#allocation14 + $0x160] sm:$0xff] %vm4476_vm14, %v9319_v19  ;;  %12814 = vmatprep.subr.bf16.mxu1 %v9632_v34  ;;  %9492 = vst [vmem:[#allocation14 + $0x1e8] sm:$0xf] %v9487_v57  ;;  %9731 = vmatprep.subr.bf16.mxu0 %v9327_v23  ;;  %v9652_v36 = vld [vmem:[#allocation14 + $0x1d0] sm:$0xff]  ;;  %v13727_v34 = vld [vmem:[%s14031_s24 + $0x44] ss:$8 sps:$4 sm:$0xff]  }
0x1a18   : > { %12815 = vmatpush3.bf16.msra.mxu1 %v9608_v32  ;;  %9732 = vmatpush1.bf16.msra.mxu0 %v15914_v8  ;;  %v13724_v56 = vld [vmem:[%s14031_s24 + $0x34] ss:$8 sps:$4 sm:$0xff]   ;;  %v13722_v19 = vld [vmem:[%s14031_s24 + $0x30] ss:$8 sps:$4 sm:$0xff]   ;;  %v13725_v57 = vld [vmem:[%s14031_s24 + $0x40] ss:$8 sps:$4 sm:$0xff]  }
0x1a19   : > { %12816 = vmatprep.subr.bf16.mxu1 %v9635_v47  ;;  %v9509_v50 = vpop.permute.xlu0 %9508  ;;  %v9507_v40 = vpop.permute.xlu1 %9506  ;;  %9733 = vmatprep.subr.bf16.mxu0 %v15966_v13  ;;  %v13730_v23 = vld [vmem:[%s14031_s24 + $0x54] ss:$8 sps:$4 sm:$0xff]   ;;  %v13728_v32 = vld [vmem:[%s14031_s24 + $0x50] ss:$8 sps:$4 sm:$0xff]   ;;  %v13731_v47 = vld [vmem:[%s14031_s24 + $0x60] ss:$8 sps:$4 sm:$0xff]  }
0x1a1a   : > { %9517 = vst.msk [vmem:[#allocation14 + $0x1f0] sm:$0xf0] %vm16458_vm2, %v9509_v50  ;;  %v9511_v31 = vsel %vm3912_vm6, %v9507_v40, %v9509_v50  ;;  %v9651_v30 = vld [vmem:[#allocation14 + $0x1c8] sm:$0xff] }
0x1a1b   : > { %9516 = vst [vmem:[#allocation14 + $0x1e8] sm:$0xf0] %v9511_v31  ;;  %v13733_v50 = vld [vmem:[%s14031_s24 + $0x64] ss:$8 sps:$4 sm:$0xff]   ;;  %v13736_v31 = vld [vmem:[%s14031_s24 + $0x74] ss:$8 sps:$4 sm:$0xff]  }
0x1a1c   : > { %12817 = vmatpush3.bf16.msra.mxu1 %v9611_v53  ;;  %9734 = vmatpush1.bf16.msra.mxu0 %v15928_v55  ;;  %v13739_v53 = vld [vmem:[%s14031_s24 + $0x84] ss:$8 sps:$4 sm:$0xff]  }
0x1a1d   : > { %v9505_v58 = vpop.permute.xlu0 %9504  ;;  %v9359_v49 = vpop.permute.xlu1 %9358 }
0x1a1e   : > { %v9638_v60 = vld [vmem:[#allocation14 + $0x160] sm:$0xff]  ;;  %v9510_v63 = vsel %vm3912_vm6, %v9505_v58, %v9507_v40  ;;  %v9367_v8 = vsel %vm16459_vm0, %v15921_v52, %v9359_v49  ;;  %9378 = vst.msk [vmem:[#allocation14 + $0x190] sm:$0xff] %vm4476_vm14, %v9359_v49  ;;  %vm16460_vm6 = vmmov %vm16455_vm3  ;;  %vm9690_vm3 = vcmask 850944   ;;  %v13734_v40 = vld [vmem:[%s14031_s24 + $0x70] ss:$8 sps:$4 sm:$0xff]  }
0x1a1f   : > { %12818 = vmatprep.subr.bf16.mxu1 %v9638_v60  ;;  %9515 = vst [vmem:[#allocation14 + $0x1e0] sm:$0xf0] %v9510_v63  ;;  %9746 = vmatprep.subr.bf16.mxu0 %v9367_v8  ;;  %v13742_v58 = vld [vmem:[%s14031_s24 + $0x94] ss:$8 sps:$4 sm:$0xff]   ;;  %v13740_v49 = vld [vmem:[%s14031_s24 + $0x90] ss:$8 sps:$4 sm:$0xff]  }
0x1a20   : > { %12819 = vmatpush3.bf16.msra.mxu1 %v9614_v16  ;;  %9736 = vmatmul.mubr.bf16.vlgmr.msra.gmra.mrb[128].mxu0 %v13709_v61  ;;  %v13745_v60 = vld [vmem:[%s14031_s24 + $0xa4] ss:$8 sps:$4 sm:$0xff]   ;;  %v13743_v63 = vld [vmem:[%s14031_s24 + $0xa0] ss:$8 sps:$4 sm:$0xff]   ;;  %v13748_v8 = vld [vmem:[%s14031_s24 + $0xb4] ss:$8 sps:$4 sm:$0xff]  }
0x1a21   : > { %12820 = vmatprep.subr.bf16.mxu1 %v9641_v46  ;;  %v9533_v55 = vpop.permute.xlu0 %9532  ;;  %v9481_v10 = vpop.permute.xlu1 %9480  ;;  %9747 = vmatpush1.bf16.msra.mxu0 %v15925_v51  ;;  %v9656_v1 = vld [vmem:[#allocation14 + $0x1f0] sm:$0xff]  ;;  %v13751_v46 = vld [vmem:[%s14031_s24 + $0xc4] ss:$8 sps:$4 sm:$0xff]  }
0x1a22   : > { %9778 = vmatprep.mubr.bf16.mxu0 %v13819_v2  ;;  %9541 = vst.msk [vmem:[#allocation14 + $0x208] sm:$0xf] %vm16460_vm6, %v9533_v55  ;;  %v9486_v52 = vsel %vm3887_vm5, %v9481_v10, %v9483_v33  ;;  %9748 = vmatprep.subr.bf16.mxu0 %v15971_v7  ;;  %vm16462_vm5 = vmmov 0   ;;  %v9647_v7 = vld [vmem:[#allocation14 + $0x1a8] sm:$0xff] }
0x1a23   : > { %9491 = vst [vmem:[#allocation14 + $0x1e0] sm:$0xf] %v9486_v52  ;;  %v9655_v18 = vld [vmem:[#allocation14 + $0x1e8] sm:$0xff]  ;;  %v13754_v52 = vld [vmem:[%s14031_s24 + $0xd4] ss:$8 sps:$4 sm:$0xff]  }
0x1a24   : > { %12821 = vmatpush3.bf16.msra.mxu1 %v9617_v41  ;;  %v13716_v33 = vld [vmem:[%s14031_s24 + $0x10] ss:$8 sps:$4 sm:$0xff]   ;;  %v13755_v41 = vld [vmem:[%s14031_s24 + $0xe0] ss:$8 sps:$4 sm:$0xff]  }
0x1a25   : > { %13032 = vmatprep.subr.bf16.mxu1 %v13828_v4  ;;  %v9557_v21 = vpop.permute.xlu0 %9556  ;;  %v9531_v0 = vpop.permute.xlu1 %9530  ;;  %v9644_v5 = vld [vmem:[#allocation14 + $0x190] sm:$0xff]  ;;  %9749 = vmatpush1.bf16.msra.mxu0 %v15943_v62 }
0x1a26   : > { %9565 = vst.msk [vmem:[#allocation14 + $0x208] sm:$0xf0] %vm16461_vm11, %v9557_v21  ;;  %v9535_v51 = vsel %vm1603_vm8, %v9531_v0, %v9533_v55  ;;  %9750 = vmatprep.subr.bf16.mxu0 %v9649_v28  ;;  %v13746_v16 = vld [vmem:[%s14031_s24 + $0xb0] ss:$8 sps:$4 sm:$0xff]   ;;  %v13749_v55 = vld [vmem:[%s14031_s24 + $0xc0] ss:$8 sps:$4 sm:$0xff]  }
0x1a27   : > { %9822 = vmatmul.mubr.bf16.vlgmr.msra.gmra.mrb[152].mxu1 %v13709_v61  ;;  %9540 = vst [vmem:[#allocation14 + $0x200] sm:$0xf] %v9535_v51  ;;  %v13737_v61 = vld [vmem:[%s14031_s24 + $0x80] ss:$8 sps:$4 sm:$0xff]   ;;  %v13752_v10 = vld [vmem:[%s14031_s24 + $0xd0] ss:$8 sps:$4 sm:$0xff]  }
0x1a28   : > { %13033 = vmatpush3.bf16.msra.mxu1 %v9644_v5  ;;  %13046 = vmatprep.mubr.msk.bf16.mxu1 %vm16462_vm5, %v13828_v4  ;;  %v13758_v5 = vld [vmem:[%s14031_s24 + $0xf0] ss:$8 sps:$4 sm:$0xff]   ;;  %v13763_v28 = vld [vmem:[%s14031_s24 + $0x104] ss:$8 sps:$4 sm:$0xff]  }
0x1a29   : > { %13034 = vmatprep.subr.bf16.mxu1 %v13828_v4  ;;  %v9553_v12 = vpop.permute.xlu0 %9552  ;;  %v9555_v13 = vpop.permute.xlu1 %9554  ;;  %9751 = vmatpush1.bf16.msra.mxu0 %v9648_v9  ;;  %v10195_v51 = vld [vmem:[%s14036_s14] sm:$0xff] }
0x1a2a   : > { %v9558_v62 = vsel %vm3962_vm7, %v9553_v12, %v9555_v13  ;;  %v9559_v11 = vsel %vm3962_vm7, %v9555_v13, %v9557_v21  ;;  %9752 = vmatprep.subr.bf16.mxu0 %v9652_v36  ;;  %v9654_v54 = vld [vmem:[#allocation14 + $0x1e0] sm:$0xff]  ;;  %vm16463_vm7 = vmmov %vm16459_vm0 }
0x1a2b   : > { %9563 = vst [vmem:[#allocation14 + $0x1f8] sm:$0xf0] %v9558_v62  ;;  %9564 = vst [vmem:[#allocation14 + $0x200] sm:$0xf0] %v9559_v11  ;;  %v13757_v21 = vld [vmem:[%s14031_s24 + $0xe4] ss:$8 sps:$4 sm:$0xff]  }
0x1a2c   : > { %13035 = vmatpush3.bf16.msra.mxu1 %v9647_v7  ;;  %v10199_v9 = vld [vmem:[%s14036_s14 + $0x20] sm:$0xff] }
0x1a2d   : > { %13036 = vmatprep.subr.bf16.mxu1 %v13828_v4  ;;  %v9529_v59 = vpop.permute.xlu1 %9528  ;;  %9753 = vmatpush1.bf16.msra.mxu0 %v9651_v30  ;;  %v9579_v15 = vpop.permute.xlu0 %9578  ;;  %v9659_v22 = vld [vmem:[#allocation14 + $0x208] sm:$0xff]  ;;  %v12113_v12 = vcombine.low %v10195_v51, %v10199_v9  ;;  %v12114_v13 = vcombine.high %v10195_v51, %v10199_v9  ;;  %v10203_v36 = vld [vmem:[%s14036_s14 + $0x40] sm:$0xff] }
0x1a2e   : > { %v9534_v17 = vsel %vm1603_vm8, %v9529_v59, %v9531_v0  ;;  %9754 = vmatprep.subr.bf16.mxu0 %v9655_v18  ;;  %vm16464_vm8 = vmmov %vm16459_vm0  ;;  %v13760_v0 = vld [vmem:[%s14031_s24 + $0xf4] ss:$8 sps:$4 sm:$0xff]   ;;  %v10207_v62 = vld [vmem:[%s14036_s14 + $0x60] sm:$0xff] }
0x1a2f   : > { %9539 = vst [vmem:[#allocation14 + $0x1f8] sm:$0xf] %v9534_v17  ;;  %v12122_v11 = vcombine.high %v10203_v36, %v10207_v62  ;;  %v12121_v7 = vcombine.low %v10203_v36, %v10207_v62  ;;  %v10211_v30 = vld [vmem:[%s14036_s14 + $0x80] sm:$0xff] }
0x1a30   : > { %13037 = vmatpush3.bf16.msra.mxu1 %v9650_v26  ;;  %v10215_v59 = vld [vmem:[%s14036_s14 + $0xa0] sm:$0xff] }
0x1a31   : > { %13038 = vmatprep.subr.bf16.mxu1 %v13828_v4  ;;  %v9577_v3 = vpop.permute.xlu1 %9576  ;;  %9755 = vmatpush1.bf16.msra.mxu0 %v9654_v54  ;;  %v12130_v18 = vcombine.high %v10211_v30, %v10215_v59  ;;  %v12129_v17 = vcombine.low %v10211_v30, %v10215_v59  ;;  %v10219_v26 = vld [vmem:[%s14036_s14 + $0xc0] sm:$0xff] }
0x1a32   : > { %v9582_v20 = vsel %vm16463_vm7, %v9577_v3, %v9579_v15  ;;  %v9658_v35 = vld [vmem:[#allocation14 + $0x200] sm:$0xff] }
0x1a33   : > { %9587 = vst [vmem:[#allocation14 + $0x210] sm:$0xf] %v9582_v20  ;;  %9756 = vmatprep.subr.bf16.mxu0 %v9658_v35  ;;  %v10223_v54 = vld [vmem:[%s14036_s14 + $0xe0] sm:$0xff] }
0x1a34   : > { %13039 = vmatpush3.bf16.msra.mxu1 %v9653_v25  ;;  %v12137_v3 = vcombine.low %v10219_v26, %v10223_v54  ;;  %v10227_v20 = vld [vmem:[%s14036_s14 + $0x100] sm:$0xff] }
0x1a35   : > { %13040 = vmatprep.subr.bf16.mxu1 %v13828_v4  ;;  %v9581_v29 = vpop.permute.xlu1 %9580  ;;  %v10231_v25 = vld [vmem:[%s14036_s14 + $0x120] sm:$0xff] }
0x1a36   : > { %v9583_v27 = vsel %vm16464_vm8, %v9579_v15, %v9581_v29  ;;  %9589 = vst.msk [vmem:[#allocation14 + $0x220] sm:$0xf] %vm16465_vm9, %v9581_v29  ;;  %v9657_v45 = vld [vmem:[#allocation14 + $0x1f8] sm:$0xff]  ;;  %v12138_v15 = vcombine.high %v10219_v26, %v10223_v54  ;;  %v12146_v35 = vcombine.high %v10227_v20, %v10231_v25  ;;  %v12145_v29 = vcombine.low %v10227_v20, %v10231_v25 }
0x1a37   : > { %9588 = vst [vmem:[#allocation14 + $0x218] sm:$0xf] %v9583_v27  ;;  %9757 = vmatpush1.bf16.msra.mxu0 %v9657_v45  ;;  %v10235_v27 = vld [vmem:[%s14036_s14 + $0x140] sm:$0xff] }
0x1a38   : > { %13041 = vmatpush3.bf16.msra.mxu1 %v9656_v1  ;;  %v10239_v1 = vld [vmem:[%s14036_s14 + $0x160] sm:$0xff] }
0x1a39   : > { %13042 = vmatprep.subr.bf16.mxu1 %v13828_v4  ;;  %v12154_v45 = vcombine.high %v10235_v27, %v10239_v1 }
0x1a3a   : > { %v9660_v39 = vld [vmem:[#allocation14 + $0x210] sm:$0xf] }
0x1a3b   : > { %v9695_v43 = vsel %vm16468_vm1, %v9660_v39, 0  ;;  %v10243_v39 = vld [vmem:[%s14036_s14 + $0x180] sm:$0xff] }
0x1a3c   : > { %13043 = vmatpush3.bf16.msra.mxu1 %v9659_v22  ;;  %v12153_v22 = vcombine.low %v10235_v27, %v10239_v1 }
0x1a3d   : > { %13044 = vmatprep.subr.bf16.mxu1 %v13828_v4  ;;  %v9662_v6 = vld [vmem:[#allocation14 + $0x220] sm:$0xf]  ;;  %v13718_v4 = vld [vmem:[%s14031_s24 + $0x14] ss:$8 sps:$4 sm:$0xff]  }
0x1a3e   : > { %v9661_v37 = vld [vmem:[#allocation14 + $0x218] sm:$0xf]  ;;  %v9701_v14 = vsel %vm16466_vm15, %v9662_v6, 0 }
0x1a3f   : > { %12072 = vmatprep.subr.msk.bf16.mxu0 %vm16467_vm10, %v9661_v37 }
0x1a40   : > { %13045 = vmatpush3.bf16.msra.mxu1 %v9701_v14  ;;  %9759 = vmatpush1.bf16.msra.mxu0 %v9695_v43  ;;  %v10251_v14 = vld [vmem:[%s14036_s14 + $0x1c0] sm:$0xff] }
0x1a41   : > { %10103 = vmatprep.subr.bf16.mxu1 %v13715_v48  ;;  %10963 = vmatprep.subr.bf16.mxu0 %v12114_v13  ;;  %v10247_v48 = vld [vmem:[%s14036_s14 + $0x1a0] sm:$0xff]  ;;  %v9668_v13 = vpop.permute.xlu0 %9667 }
0x1a42   : > { %v12162_v6 = vcombine.high %v10243_v39, %v10247_v48  ;;  %v12161_v37 = vcombine.low %v10243_v39, %v10247_v48 }
0x1a43   : > { %13047 = vmatmul.mubr.msk.bf16.vlgmr.msra.gmra.mrb[156].mxu1 %vm9690_vm3, %v13712_v42  ;;  %12073 = vmatmul.mubr.msk.bf16.vlgmr.msra.gmra.mrb[128].mxu0 %vm9690_vm3, %v13712_v42  ;;  %v10255_v42 = vld [vmem:[%s14036_s14 + $0x1e0] sm:$0xff] }
0x1a44   : > { %10104 = vmatpush1.bf16.msra.mxu1 %v13713_v38  ;;  %10964 = vmatpush1.bf16.msra.mxu0 %v12113_v12  ;;  %v12170_v43 = vcombine.high %v10251_v14, %v10255_v42  ;;  %v12169_v38 = vcombine.low %v10251_v14, %v10255_v42 }
0x1a45   : > { %10105 = vmatprep.subr.bf16.mxu1 %v13718_v4  ;;  %10965 = vmatprep.subr.bf16.mxu0 %v12122_v11  ;;  %v10259_v4 = vld [vmem:[%s14036_s14 + $0x200] sm:$0xff] }
0x1a46   : > { %v9673_v62 = vpop.permute.xlu1 %9672 }
0x1a48   : > { %10106 = vmatpush1.bf16.msra.mxu1 %v13716_v33  ;;  %10966 = vmatpush1.bf16.msra.mxu0 %v12121_v7  ;;  %v10263_v33 = vld [vmem:[%s14036_s14 + $0x220] sm:$0xff] }
0x1a49   : > { %10107 = vmatprep.subr.bf16.mxu1 %v13721_v24  ;;  %10967 = vmatprep.subr.bf16.mxu0 %v12130_v18  ;;  %v12178_v24 = vcombine.high %v10259_v4, %v10263_v33 }
0x1a4c   : > { %10108 = vmatpush1.bf16.msra.mxu1 %v13719_v44  ;;  %10968 = vmatpush1.bf16.msra.mxu0 %v12129_v17  ;;  %v12177_v44 = vcombine.low %v10259_v4, %v10263_v33  ;;  %v13766_v4 = vld [vmem:[%s14031_s24 + $0x110] ss:$8 sps:$4 sm:$0x7f]   ;;  %v10196_v33 = vld [vmem:[%s14036_s14 + $0x8] sm:$0xff] }
0x1a4d   : > { %10109 = vmatprep.subr.bf16.mxu1 %v13724_v56  ;;  %10969 = vmatprep.subr.bf16.mxu0 %v12138_v15  ;;  %v10267_v56 = vld [vmem:[%s14036_s14 + $0x240] sm:$0xff] }
0x1a50   : > { %10110 = vmatpush1.bf16.msra.mxu1 %v13722_v19  ;;  %10970 = vmatpush1.bf16.msra.mxu0 %v12137_v3  ;;  %v10271_v19 = vld [vmem:[%s14036_s14 + $0x260] sm:$0xff] }
0x1a51   : > { %10111 = vmatprep.subr.bf16.mxu1 %v13727_v34  ;;  %10971 = vmatprep.subr.bf16.mxu0 %v12146_v35  ;;  %v12186_v34 = vcombine.high %v10267_v56, %v10271_v19 }
0x1a54   : > { %10112 = vmatpush1.bf16.msra.mxu1 %v13725_v57  ;;  %10972 = vmatpush1.bf16.msra.mxu0 %v12145_v29  ;;  %v12185_v57 = vcombine.low %v10267_v56, %v10271_v19  ;;  %v10204_v19 = vld [vmem:[%s14036_s14 + $0x48] sm:$0xff] }
0x1a55   : > { %10113 = vmatprep.subr.bf16.mxu1 %v13730_v23  ;;  %10973 = vmatprep.subr.bf16.mxu0 %v12154_v45  ;;  %v10275_v23 = vld [vmem:[%s14036_s14 + $0x280] sm:$0xff] }
0x1a58   : > { %10114 = vmatpush1.bf16.msra.mxu1 %v13728_v32  ;;  %10974 = vmatpush1.bf16.msra.mxu0 %v12153_v22  ;;  %v10279_v32 = vld [vmem:[%s14036_s14 + $0x2a0] sm:$0xff] }
0x1a59   : > { %10115 = vmatprep.subr.bf16.mxu1 %v13733_v50  ;;  %10975 = vmatprep.subr.bf16.mxu0 %v12162_v6  ;;  %v12193_v50 = vcombine.low %v10275_v23, %v10279_v32 }
0x1a5c   : > { %10116 = vmatpush1.bf16.msra.mxu1 %v13731_v47  ;;  %10976 = vmatpush1.bf16.msra.mxu0 %v12161_v37  ;;  %v12194_v47 = vcombine.high %v10275_v23, %v10279_v32  ;;  %v10212_v32 = vld [vmem:[%s14036_s14 + $0x88] sm:$0xff] }
0x1a5d   : > { %10117 = vmatprep.subr.bf16.mxu1 %v13736_v31  ;;  %10977 = vmatprep.subr.bf16.mxu0 %v12170_v43  ;;  %v10287_v31 = vld [vmem:[%s14036_s14 + $0x2e0] sm:$0xff] }
0x1a5e   : > { %v13761_v43 = vld [vmem:[%s14031_s24 + $0x100] ss:$8 sps:$4 sm:$0xff]  }
0x1a60   : > { %10118 = vmatpush1.bf16.msra.mxu1 %v13734_v40  ;;  %10978 = vmatpush1.bf16.msra.mxu0 %v12169_v38  ;;  %v10283_v40 = vld [vmem:[%s14036_s14 + $0x2c0] sm:$0xff]  ;;  %v13764_v38 = vld [vmem:[%s14031_s24 + $0x114] ss:$8 sps:$4 sm:$0x7f]  }
0x1a61   : > { %10119 = vmatprep.subr.bf16.mxu1 %v13739_v53  ;;  %10979 = vmatprep.subr.bf16.mxu0 %v12178_v24  ;;  %v12202_v53 = vcombine.high %v10283_v40, %v10287_v31  ;;  %v10200_v24 = vld [vmem:[%s14036_s14 + $0x28] sm:$0xff] }
0x1a62   : > { %v12116_v56 = vcombine.high %v10196_v33, %v10200_v24 }
0x1a64   : > { %10120 = vmatpush1.bf16.msra.mxu1 %v13737_v61  ;;  %10980 = vmatpush1.bf16.msra.mxu0 %v12177_v44  ;;  %v12201_v61 = vcombine.low %v10283_v40, %v10287_v31  ;;  %v10098_v44 = vsel %vm3347_vm13, %v13766_v4, 0  ;;  %v10220_v31 = vld [vmem:[%s14036_s14 + $0xc8] sm:$0xff]  ;;  %v10319_v4 = vld [vmem:[%s14036_s14 + $0x3e0] sm:$0xff] }
0x1a65   : > { %10121 = vmatprep.subr.bf16.mxu1 %v13742_v58  ;;  %10981 = vmatprep.subr.bf16.mxu0 %v12186_v34  ;;  %v10291_v58 = vld [vmem:[%s14036_s14 + $0x300] sm:$0xff]  ;;  %v10208_v34 = vld [vmem:[%s14036_s14 + $0x68] sm:$0xff] }
0x1a66   : > { %v12124_v23 = vcombine.high %v10204_v19, %v10208_v34 }
0x1a68   : > { %10122 = vmatpush1.bf16.msra.mxu1 %v13740_v49  ;;  %10982 = vmatpush1.bf16.msra.mxu0 %v12185_v57  ;;  %v10295_v49 = vld [vmem:[%s14036_s14 + $0x320] sm:$0xff]  ;;  %v12115_v57 = vcombine.low %v10196_v33, %v10200_v24  ;;  %v10316_v33 = vld [vmem:[%s14036_s14 + $0x3c8] sm:$0xff] }
0x1a69   : > { %10123 = vmatprep.subr.bf16.mxu1 %v13745_v60  ;;  %10983 = vmatprep.subr.bf16.mxu0 %v12194_v47  ;;  %v12210_v60 = vcombine.high %v10291_v58, %v10295_v49  ;;  %v10216_v47 = vld [vmem:[%s14036_s14 + $0xa8] sm:$0xff] }
0x1a6a   : > { %v12132_v40 = vcombine.high %v10212_v32, %v10216_v47 }
0x1a6c   : > { %10124 = vmatpush1.bf16.msra.mxu1 %v13743_v63  ;;  %10984 = vmatpush1.bf16.msra.mxu0 %v12193_v50  ;;  %v12209_v63 = vcombine.low %v10291_v58, %v10295_v49  ;;  %v12123_v50 = vcombine.low %v10204_v19, %v10208_v34  ;;  %v10228_v49 = vld [vmem:[%s14036_s14 + $0x108] sm:$0xff] }
0x1a6d   : > { %10125 = vmatprep.subr.bf16.mxu1 %v13748_v8  ;;  %10985 = vmatprep.subr.bf16.mxu0 %v12202_v53  ;;  %v10299_v8 = vld [vmem:[%s14036_s14 + $0x340] sm:$0xff]  ;;  %v10224_v53 = vld [vmem:[%s14036_s14 + $0xe8] sm:$0xff] }
0x1a6e   : > { %v12140_v58 = vcombine.high %v10220_v31, %v10224_v53 }
0x1a70   : > { %10126 = vmatpush1.bf16.msra.mxu1 %v13746_v16  ;;  %10986 = vmatpush1.bf16.msra.mxu0 %v12201_v61  ;;  %v10303_v16 = vld [vmem:[%s14036_s14 + $0x360] sm:$0xff]  ;;  %v12131_v61 = vcombine.low %v10212_v32, %v10216_v47  ;;  %v10198_v32 = vld [vmem:[%s14036_s14 + $0x18] sm:$0xff] }
0x1a71   : > { %10127 = vmatprep.subr.bf16.mxu1 %v13751_v46  ;;  %10987 = vmatprep.subr.bf16.mxu0 %v12210_v60  ;;  %v12218_v46 = vcombine.high %v10299_v8, %v10303_v16  ;;  %v10232_v60 = vld [vmem:[%s14036_s14 + $0x128] sm:$0xff] }
0x1a74   : > { %10128 = vmatpush1.bf16.msra.mxu1 %v13749_v55  ;;  %10988 = vmatpush1.bf16.msra.mxu0 %v12209_v63  ;;  %v12217_v55 = vcombine.low %v10299_v8, %v10303_v16  ;;  %v12139_v63 = vcombine.low %v10220_v31, %v10224_v53  ;;  %v12148_v8 = vcombine.high %v10228_v49, %v10232_v60  ;;  %v10236_v16 = vld [vmem:[%s14036_s14 + $0x148] sm:$0xff] }
0x1a75   : > { %10129 = vmatprep.subr.bf16.mxu1 %v13754_v52  ;;  %10989 = vmatprep.subr.bf16.mxu0 %v12218_v46  ;;  %v10311_v52 = vld [vmem:[%s14036_s14 + $0x3a0] sm:$0xff]  ;;  %v10240_v46 = vld [vmem:[%s14036_s14 + $0x168] sm:$0xff] }
0x1a78   : > { %10130 = vmatpush1.bf16.msra.mxu1 %v13752_v10  ;;  %v10307_v10 = vld [vmem:[%s14036_s14 + $0x380] sm:$0xff]  ;;  %10990 = vmatpush1.bf16.msra.mxu0 %v12217_v55  ;;  %v12147_v55 = vcombine.low %v10228_v49, %v10232_v60  ;;  %v10205_v60 = vld [vmem:[%s14036_s14 + $0x50] sm:$0xff] }
0x1a79   : > { %10131 = vmatprep.subr.bf16.mxu1 %v13757_v21  ;;  %v12225_v21 = vcombine.low %v10307_v10, %v10311_v52 }
0x1a7c   : > { %10132 = vmatpush1.bf16.msra.mxu1 %v13755_v41  ;;  %v12226_v41 = vcombine.high %v10307_v10, %v10311_v52  ;;  %v12156_v10 = vcombine.high %v10236_v16, %v10240_v46  ;;  %v10244_v52 = vld [vmem:[%s14036_s14 + $0x188] sm:$0xff] }
0x1a7d   : > { %10133 = vmatprep.subr.bf16.mxu1 %v13760_v0 }
0x1a7e   : > { %10991 = vmatprep.subr.bf16.mxu0 %v12226_v41  ;;  %v10248_v41 = vld [vmem:[%s14036_s14 + $0x1a8] sm:$0xff] }
0x1a7f   : > { %10992 = vmatpush1.bf16.msra.mxu0 %v12225_v21  ;;  %v12155_v21 = vcombine.low %v10236_v16, %v10240_v46  ;;  %v10209_v16 = vld [vmem:[%s14036_s14 + $0x70] sm:$0xff]  ;;  %v10206_v46 = vld [vmem:[%s14036_s14 + $0x58] sm:$0xff] }
0x1a80   : > { %10134 = vmatpush1.bf16.msra.mxu1 %v13758_v5 }
0x1a81   : > { %10146 = vmatprep.subr.bf16.mxu1 %v13763_v28 }
0x1afa   : > { %v12822_v0 = vpop.f32.mrb[152].mxu1 }
0x1afb   : > { %v12823_v5 = vpop.f32.mrb[153].mxu1 }
0x1afc   : > { %v12824_v28 = vadd.f32 %v12823_v5, %v12822_v0  ;;  %v12825_v51 = vpop.f32.mrb[154].mxu1  ;;  %v12164_v0 = vcombine.high %v10244_v52, %v10248_v41  ;;  %v10252_v5 = vld [vmem:[%s14036_s14 + $0x1c8] sm:$0xff] }
0x1afd   : > { %v12826_v9 = vpop.f32.mrb[155].mxu1 }
0x1afe   : > { %v12827_v12 = vadd.f32 %v12826_v9, %v12825_v51  ;;  %v9824_v36 = vadd.f32 %v12824_v28, %v9668_v13  ;;  %v10256_v28 = vld [vmem:[%s14036_s14 + $0x1e8] sm:$0xff]  ;;  %v12163_v51 = vcombine.low %v10244_v52, %v10248_v41  ;;  %v10213_v52 = vld [vmem:[%s14036_s14 + $0x90] sm:$0xff]  ;;  %v12126_v41 = vcombine.high %v10205_v60, %v10209_v16 }
0x1aff   : > { %v12172_v9 = vcombine.high %v10252_v5, %v10256_v28 }
0x1b00   : > { %v9827_v18 = vadd.f32 %v12827_v12, %v9673_v62  ;;  %v10260_v12 = vld [vmem:[%s14036_s14 + $0x208] sm:$0xff] }
0x1b16   : > { %v9864_v11 = vpop.f32.mrb[156].mxu1  ;;  %v9780_v30 = vpop.f32.mrb[128].mxu0 }
0x1b17   : > { %v9865_v7 = vadd.f32 %v9864_v11, %v9824_v36  ;;  %v13048_v59 = vpop.f32.mrb[157].mxu1  ;;  %v13052_v17 = vadd.f32 %v9780_v30, %v9668_v13  ;;  %v9782_v26 = vpop.f32.mrb[129].mxu0  ;;  %v12171_v36 = vcombine.low %v10252_v5, %v10256_v28  ;;  %v10268_v11 = vld [vmem:[%s14036_s14 + $0x248] sm:$0xff]  ;;  %v10214_v5 = vld [vmem:[%s14036_s14 + $0x98] sm:$0xff] }
0x1b18   : > { %v9867_v54 = vpop.f32.mrb[158].mxu1  ;;  %v13053_v15 = vadd.f32 %v9782_v26, %v9668_v13  ;;  %v9784_v20 = vpop.f32.mrb[130].mxu0  ;;  %v10264_v13 = vld [vmem:[%s14036_s14 + $0x228] sm:$0xff]  ;;  %v10218_v28 = vld [vmem:[%s14036_s14 + $0xb8] sm:$0xff] }
0x1b19   : > { %v9868_v3 = vadd.f32 %v9867_v54, %v9827_v18  ;;  %v13049_v25 = vpop.f32.mrb[159].mxu1  ;;  %v13054_v35 = vadd.f32 %v9784_v20, %v9673_v62  ;;  %v9786_v29 = vpop.f32.mrb[131].mxu0  ;;  %v9873_v27 = vmax.f32 %v9865_v7, 0.0  ;;  %v9871_v22 = vmax.f32 %v13052_v17, 0.0  ;;  %v10272_v7 = vld [vmem:[%s14036_s14 + $0x268] sm:$0xff] }
0x1b1a   : > { %v13055_v45 = vadd.f32 %v9786_v29, %v9673_v62  ;;  %v9872_v48 = vmax.f32 %v13053_v15, 0.0  ;;  %v12180_v62 = vcombine.high %v10260_v12, %v10264_v13  ;;  %v12179_v30 = vcombine.low %v10260_v12, %v10264_v13  ;;  %v10276_v18 = vld [vmem:[%s14036_s14 + $0x288] sm:$0xff] }
0x1b1b   : > { %v9876_v1 = vmax.f32 %v9868_v3, 0.0  ;;  %v9874_v39 = vmax.f32 %v13054_v35, 0.0  ;;  %v12188_v59 = vcombine.high %v10268_v11, %v10272_v7  ;;  %v10280_v17 = vld [vmem:[%s14036_s14 + $0x2a8] sm:$0xff]  ;;  %v12187_v26 = vcombine.low %v10268_v11, %v10272_v7  ;;  %v10222_v11 = vld [vmem:[%s14036_s14 + $0xd8] sm:$0xff] }
0x1b1c   : > { %v9875_v37 = vmax.f32 %v13055_v45, 0.0  ;;  %v12196_v54 = vcombine.high %v10276_v18, %v10280_v17  ;;  %v10284_v15 = vld [vmem:[%s14036_s14 + $0x2c8] sm:$0xff]  ;;  %v12195_v20 = vcombine.low %v10276_v18, %v10280_v17  ;;  %v12136_v13 = vcombine.high %v10214_v5, %v10218_v28  ;;  %v10226_v7 = vld [vmem:[%s14036_s14 + $0xf8] sm:$0xff] }
0x1b1d   : > { %v9879_v6 = vpack.c.bf16 %v9876_v1, %v9873_v27  ;;  %v9877_v14 = vpack.c.bf16 %v9874_v39, %v9871_v22  ;;  %v10288_v3 = vld [vmem:[%s14036_s14 + $0x2e8] sm:$0xff]  ;;  %v12144_v17 = vcombine.high %v10222_v11, %v10226_v7 }
0x1b1e   : > { %v9878_v42 = vpack.c.bf16 %v9875_v37, %v9872_v48  ;;  %v12204_v25 = vcombine.high %v10284_v15, %v10288_v3  ;;  %v10292_v35 = vld [vmem:[%s14036_s14 + $0x308] sm:$0xff]  ;;  %v12203_v27 = vcombine.low %v10284_v15, %v10288_v3  ;;  %v10230_v15 = vld [vmem:[%s14036_s14 + $0x118] sm:$0xff] }
0x1b1f   : > { %v10296_v29 = vld [vmem:[%s14036_s14 + $0x328] sm:$0xff]  ;;  %v10234_v3 = vld [vmem:[%s14036_s14 + $0x138] sm:$0xff] }
0x1b20   : > { %10135 = vmatprep.mubr.bf16.mxu1 %v9878_v42  ;;  %v12212_v1 = vcombine.high %v10292_v35, %v10296_v29  ;;  %v10300_v45 = vld [vmem:[%s14036_s14 + $0x348] sm:$0xff]  ;;  %v12211_v39 = vcombine.low %v10292_v35, %v10296_v29  ;;  %v12152_v29 = vcombine.high %v10230_v15, %v10234_v3 }
0x1b21   : > { %10136 = vmatmul.mubr.bf16.vlgmr.msra.gmra.mrb[160].mxu1 %v9877_v14  ;;  %v10304_v22 = vld [vmem:[%s14036_s14 + $0x368] sm:$0xff] }
0x1b22   : > { %10147 = vmatpush1.bf16.msra.mxu1 %v13761_v43  ;;  %10178 = vmatprep.mubr.bf16.mxu1 %v13819_v2  ;;  %v12220_v48 = vcombine.high %v10300_v45, %v10304_v22  ;;  %v10312_v37 = vld [vmem:[%s14036_s14 + $0x3a8] sm:$0xff]  ;;  %v12219_v14 = vcombine.low %v10300_v45, %v10304_v22  ;;  %v10238_v45 = vld [vmem:[%s14036_s14 + $0x158] sm:$0xff] }
0x1b23   : > { %12111 = vmatprep.subr.msk.bf16.mxu1 %vm3347_vm13, %v13764_v38  ;;  %v10315_v38 = vld [vmem:[%s14036_s14 + $0x3c0] sm:$0xff]  ;;  %v10242_v22 = vld [vmem:[%s14036_s14 + $0x178] sm:$0xff]  ;;  %vm16470_vm13 = vcmask 130048  }
0x1b24   : > { %v12233_v24 = vcombine.low %v10315_v38, %v10319_v4  ;;  %vm16472_vm12 = vmmov %vm16470_vm13 }
0x1b25   : > { %vm16473_vm4 = vmmov %vm16472_vm12 }
0x1b26   : > { %10149 = vmatpush1.bf16.msra.mxu1 %v10098_v44  ;;  %v12234_v44 = vcombine.high %v10315_v38, %v10319_v4  ;;  %v10250_v38 = vld [vmem:[%s14036_s14 + $0x1b8] sm:$0xff]  ;;  %vm16474_vm2 = vmmov %vm16473_vm4 }
0x1b27   : > { %11006 = vmatprep.subr.bf16.mxu1 %v12116_v56  ;;  %v10320_v56 = vld [vmem:[%s14036_s14 + $0x3e8] sm:$0xff]  ;;  %vm16475_vm0 = vmmov %vm16474_vm2 }
0x1b28   : > { %v12235_v19 = vcombine.low %v10316_v33, %v10320_v56  ;;  %v12236_v34 = vcombine.high %v10316_v33, %v10320_v56  ;;  %10993 = vmatprep.subr.bf16.mxu0 %v12234_v44  ;;  %v12159_v33 = vcombine.low %v10238_v45, %v10242_v22  ;;  %v10253_v56 = vld [vmem:[%s14036_s14 + $0x1d0] sm:$0xff]  ;;  %vm16476_vm6 = vmmov %vm16475_vm0 }
0x1b29   : > { %10994 = vmatpush1.bf16.msra.mxu0 %v12233_v24  ;;  %vm16477_vm11 = vmmov %vm16475_vm0 }
0x1b2d   : > { %12112 = vmatmul.mubr.msk.bf16.vlgmr.msra.gmra.mrb[160].mxu1 %vm4476_vm14, %v9879_v6  ;;  %v10308_v6 = vld [vmem:[%s14036_s14 + $0x388] sm:$0xff]  ;;  %vm16471_vm14 = vmmov %vm16470_vm13 }
0x1b2e   : > { %11007 = vmatpush1.bf16.msra.mxu1 %v12115_v57  ;;  %v12228_v42 = vcombine.high %v10308_v6, %v10312_v37  ;;  %v12227_v43 = vcombine.low %v10308_v6, %v10312_v37  ;;  %v10197_v57 = vld [vmem:[%s14036_s14 + $0x10] sm:$0xff]  ;;  %v12160_v37 = vcombine.high %v10238_v45, %v10242_v22 }
0x1b2f   : > { %11008 = vmatprep.subr.bf16.mxu1 %v12124_v23  ;;  %v10201_v23 = vld [vmem:[%s14036_s14 + $0x30] sm:$0xff] }
0x1b30   : > { %v12117_v47 = vcombine.low %v10197_v57, %v10201_v23  ;;  %v10301_v45 = vld [vmem:[%s14036_s14 + $0x350] sm:$0xff] }
0x1b31   : > { %v10305_v22 = vld [vmem:[%s14036_s14 + $0x370] sm:$0xff] }
0x1b32   : > { %11009 = vmatpush1.bf16.msra.mxu1 %v12123_v50  ;;  %v12118_v50 = vcombine.high %v10197_v57, %v10201_v23  ;;  %v10258_v57 = vld [vmem:[%s14036_s14 + $0x1f8] sm:$0xff] }
0x1b33   : > { %11010 = vmatprep.subr.bf16.mxu1 %v12132_v40  ;;  %v10202_v40 = vld [vmem:[%s14036_s14 + $0x38] sm:$0xff] }
0x1b34   : > { %v12119_v31 = vcombine.low %v10198_v32, %v10202_v40  ;;  %v12120_v53 = vcombine.high %v10198_v32, %v10202_v40  ;;  %11049 = vmatprep.subr.bf16.mxu0 %v12118_v50  ;;  %v10261_v40 = vld [vmem:[%s14036_s14 + $0x210] sm:$0xff] }
0x1b36   : > { %11011 = vmatpush1.bf16.msra.mxu1 %v12131_v61 }
0x1b37   : > { %11012 = vmatprep.subr.bf16.mxu1 %v12140_v58 }
0x1b3a   : > { %11013 = vmatpush1.bf16.msra.mxu1 %v12139_v63 }
0x1b3b   : > { %11014 = vmatprep.subr.bf16.mxu1 %v12148_v8 }
0x1b3e   : > { %11015 = vmatpush1.bf16.msra.mxu1 %v12147_v55  ;;  %v10210_v55 = vld [vmem:[%s14036_s14 + $0x78] sm:$0xff] }
0x1b3f   : > { %11016 = vmatprep.subr.bf16.mxu1 %v12156_v10 }
0x1b42   : > { %11017 = vmatpush1.bf16.msra.mxu1 %v12155_v21  ;;  %v12128_v21 = vcombine.high %v10206_v46, %v10210_v55 }
0x1b43   : > { %11018 = vmatprep.subr.bf16.mxu1 %v12164_v0  ;;  %v10217_v0 = vld [vmem:[%s14036_s14 + $0xb0] sm:$0xff] }
0x1b44   : > { %v12134_v12 = vcombine.high %v10213_v52, %v10217_v0 }
0x1b46   : > { %11019 = vmatpush1.bf16.msra.mxu1 %v12163_v51  ;;  %v12125_v51 = vcombine.low %v10205_v60, %v10209_v16  ;;  %v10269_v16 = vld [vmem:[%s14036_s14 + $0x250] sm:$0xff] }
0x1b47   : > { %11020 = vmatprep.subr.bf16.mxu1 %v12172_v9  ;;  %v12127_v9 = vcombine.low %v10206_v46, %v10210_v55  ;;  %v10273_v46 = vld [vmem:[%s14036_s14 + $0x270] sm:$0xff]  ;;  %v10270_v55 = vld [vmem:[%s14036_s14 + $0x258] sm:$0xff] }
0x1b4a   : > { %11021 = vmatpush1.bf16.msra.mxu1 %v12171_v36  ;;  %v10221_v36 = vld [vmem:[%s14036_s14 + $0xd0] sm:$0xff] }
0x1b4b   : > { %11022 = vmatprep.subr.bf16.mxu1 %v12180_v62  ;;  %v10225_v62 = vld [vmem:[%s14036_s14 + $0xf0] sm:$0xff] }
0x1b4c   : > { %v12142_v18 = vcombine.high %v10221_v36, %v10225_v62 }
0x1b4e   : > { %11023 = vmatpush1.bf16.msra.mxu1 %v12179_v30  ;;  %v12133_v30 = vcombine.low %v10213_v52, %v10217_v0 }
0x1b4f   : > { %11024 = vmatprep.subr.bf16.mxu1 %v12188_v59  ;;  %v12135_v59 = vcombine.low %v10214_v5, %v10218_v28  ;;  %v10277_v5 = vld [vmem:[%s14036_s14 + $0x290] sm:$0xff] }
0x1b50   : > { %v10281_v28 = vld [vmem:[%s14036_s14 + $0x2b0] sm:$0xff] }
0x1b52   : > { %11025 = vmatpush1.bf16.msra.mxu1 %v12187_v26  ;;  %v10229_v26 = vld [vmem:[%s14036_s14 + $0x110] sm:$0xff] }
0x1b53   : > { %11026 = vmatprep.subr.bf16.mxu1 %v12196_v54  ;;  %v10233_v54 = vld [vmem:[%s14036_s14 + $0x130] sm:$0xff] }
0x1b54   : > { %v12150_v35 = vcombine.high %v10229_v26, %v10233_v54 }
0x1b56   : > { %11027 = vmatpush1.bf16.msra.mxu1 %v12195_v20  ;;  %v12141_v20 = vcombine.low %v10221_v36, %v10225_v62  ;;  %v12198_v36 = vcombine.high %v10277_v5, %v10281_v28 }
0x1b57   : > { %11028 = vmatprep.subr.bf16.mxu1 %v12204_v25  ;;  %v12143_v25 = vcombine.low %v10222_v11, %v10226_v7  ;;  %v10285_v11 = vld [vmem:[%s14036_s14 + $0x2d0] sm:$0xff] }
0x1b58   : > { %v10289_v7 = vld [vmem:[%s14036_s14 + $0x2f0] sm:$0xff] }
0x1b5a   : > { %11029 = vmatpush1.bf16.msra.mxu1 %v12203_v27  ;;  %v10237_v27 = vld [vmem:[%s14036_s14 + $0x150] sm:$0xff] }
0x1b5b   : > { %11030 = vmatprep.subr.bf16.mxu1 %v12212_v1  ;;  %v10241_v1 = vld [vmem:[%s14036_s14 + $0x170] sm:$0xff] }
0x1b5c   : > { %v12158_v6 = vcombine.high %v10237_v27, %v10241_v1  ;;  %v12157_v4 = vcombine.low %v10237_v27, %v10241_v1 }
0x1b5e   : > { %11031 = vmatpush1.bf16.msra.mxu1 %v12211_v39  ;;  %v12149_v39 = vcombine.low %v10229_v26, %v10233_v54  ;;  %v12206_v26 = vcombine.high %v10285_v11, %v10289_v7 }
0x1b5f   : > { %11032 = vmatprep.subr.bf16.mxu1 %v12220_v48  ;;  %v12151_v48 = vcombine.low %v10230_v15, %v10234_v3  ;;  %v10293_v15 = vld [vmem:[%s14036_s14 + $0x310] sm:$0xff] }
0x1b60   : > { %v10297_v3 = vld [vmem:[%s14036_s14 + $0x330] sm:$0xff] }
0x1b61   : > { %v12214_v27 = vcombine.high %v10293_v15, %v10297_v3 }
0x1b62   : > { %11033 = vmatpush1.bf16.msra.mxu1 %v12219_v14  ;;  %v10245_v14 = vld [vmem:[%s14036_s14 + $0x190] sm:$0xff] }
0x1b63   : > { %11034 = vmatprep.subr.bf16.mxu1 %v12228_v42  ;;  %v10249_v42 = vld [vmem:[%s14036_s14 + $0x1b0] sm:$0xff] }
0x1b64   : > { %v12166_v24 = vcombine.high %v10245_v14, %v10249_v42  ;;  %v12165_v23 = vcombine.low %v10245_v14, %v10249_v42  ;;  %v12222_v14 = vcombine.high %v10301_v45, %v10305_v22 }
0x1b66   : > { %11035 = vmatpush1.bf16.msra.mxu1 %v12227_v43  ;;  %v10246_v43 = vld [vmem:[%s14036_s14 + $0x198] sm:$0xff] }
0x1b67   : > { %11036 = vmatprep.subr.bf16.mxu1 %v12236_v34  ;;  %v12168_v44 = vcombine.high %v10246_v43, %v10250_v38  ;;  %v10254_v34 = vld [vmem:[%s14036_s14 + $0x1d8] sm:$0xff]  ;;  %v12167_v32 = vcombine.low %v10246_v43, %v10250_v38  ;;  %v10309_v43 = vld [vmem:[%s14036_s14 + $0x390] sm:$0xff] }
0x1b68   : > { %v12176_v50 = vcombine.high %v10254_v34, %v10258_v57  ;;  %v10313_v38 = vld [vmem:[%s14036_s14 + $0x3b0] sm:$0xff] }
0x1b6a   : > { %11037 = vmatpush1.bf16.msra.mxu1 %v12235_v19  ;;  %v10257_v19 = vld [vmem:[%s14036_s14 + $0x1f0] sm:$0xff] }
0x1b6b   : > { %11092 = vmatprep.subr.bf16.mxu1 %v12120_v53  ;;  %v10262_v53 = vld [vmem:[%s14036_s14 + $0x218] sm:$0xff] }
0x1c00   : > { %v10180_v61 = vpop.f32.mrb[160].mxu1 }
0x1c01   : > { %v10182_v58 = vpop.f32.mrb[161].mxu1 }
0x1c02   : > { %v10184_v49 = vpop.f32.mrb[162].mxu1 }
0x1c03   : > { %v16149_v63 = vpack.c.bf16 %v10184_v49, %v10180_v61  ;;  %v10186_v8 = vpop.f32.mrb[163].mxu1  ;;  %v10266_v61 = vld [vmem:[%s14036_s14 + $0x238] sm:$0xff]  ;;  %v12175_v49 = vcombine.low %v10254_v34, %v10258_v57  ;;  %v10317_v34 = vld [vmem:[%s14036_s14 + $0x3d0] sm:$0xff] }
0x1c04   : > { %v10190_v10 = vpack.c.bf16 %v10186_v8, %v10182_v58  ;;  %v12173_v58 = vcombine.low %v10253_v56, %v10257_v19  ;;  %v12184_v8 = vcombine.high %v10262_v53, %v10266_v61  ;;  %v10321_v57 = vld [vmem:[%s14036_s14 + $0x3f0] sm:$0xff] }
0x1c06   : > { %10995 = vmatprep.mubr.bf16.mxu0 %v10190_v10  ;;  %11038 = vmatprep.mubr.bf16.mxu1 %v10190_v10 }
0x1c07   : > { %10996 = vmatmul.mubr.bf16.vlgmr.msra.gmra.mrb[132].mxu0 %v16149_v63  ;;  %11039 = vmatmul.mubr.bf16.vlgmr.msra.gmra.mrb[164].mxu1 %v16149_v63 }
0x1c08   : > { %11050 = vmatpush1.bf16.msra.mxu0 %v12117_v47  ;;  %11093 = vmatpush1.bf16.msra.mxu1 %v12119_v31  ;;  %v12174_v47 = vcombine.high %v10253_v56, %v10257_v19  ;;  %v10265_v31 = vld [vmem:[%s14036_s14 + $0x230] sm:$0xff]  ;;  %v12230_v56 = vcombine.high %v10309_v43, %v10313_v38 }
0x1c09   : > { %11081 = vmatprep.mubr.bf16.mxu0 %v10190_v10  ;;  %11124 = vmatprep.mubr.bf16.mxu1 %v10190_v10  ;;  %v12182_v60 = vcombine.high %v10261_v40, %v10265_v31  ;;  %v10274_v10 = vld [vmem:[%s14036_s14 + $0x278] sm:$0xff]  ;;  %v12181_v52 = vcombine.low %v10261_v40, %v10265_v31  ;;  %v12238_v40 = vcombine.high %v10317_v34, %v10321_v57 }
0x1c0a   : > { %11051 = vmatprep.subr.bf16.mxu0 %v12126_v41  ;;  %11094 = vmatprep.subr.bf16.mxu1 %v12128_v21  ;;  %v12183_v41 = vcombine.low %v10262_v53, %v10266_v61  ;;  %v12190_v21 = vcombine.high %v10269_v16, %v10273_v46  ;;  %v12192_v0 = vcombine.high %v10270_v55, %v10274_v10 }
0x1c0b   : > { %v12237_v53 = vcombine.low %v10317_v34, %v10321_v57 }
0x1c0c   : > { %11052 = vmatpush1.bf16.msra.mxu0 %v12125_v51  ;;  %11095 = vmatpush1.bf16.msra.mxu1 %v12127_v9  ;;  %v10278_v51 = vld [vmem:[%s14036_s14 + $0x298] sm:$0xff] }
0x1c0d   : > { %11053 = vmatprep.subr.bf16.mxu0 %v12134_v12  ;;  %11096 = vmatprep.subr.bf16.mxu1 %v12136_v13  ;;  %v10282_v9 = vld [vmem:[%s14036_s14 + $0x2b8] sm:$0xff]  ;;  %v12189_v12 = vcombine.low %v10269_v16, %v10273_v46  ;;  %v12191_v13 = vcombine.low %v10270_v55, %v10274_v10 }
0x1c0e   : > { %v12200_v62 = vcombine.high %v10278_v51, %v10282_v9 }
0x1c10   : > { %11054 = vmatpush1.bf16.msra.mxu0 %v12133_v30  ;;  %11097 = vmatpush1.bf16.msra.mxu1 %v12135_v59  ;;  %v10286_v30 = vld [vmem:[%s14036_s14 + $0x2d8] sm:$0xff] }
0x1c11   : > { %11055 = vmatprep.subr.bf16.mxu0 %v12142_v18  ;;  %11098 = vmatprep.subr.bf16.mxu1 %v12144_v17  ;;  %v10290_v59 = vld [vmem:[%s14036_s14 + $0x2f8] sm:$0xff]  ;;  %v12197_v18 = vcombine.low %v10277_v5, %v10281_v28  ;;  %v12199_v17 = vcombine.low %v10278_v51, %v10282_v9  ;;  %v13768_v5 = vld [vmem:[%s16469_s23 + $0x8] sm:$0xff]  }
0x1c12   : > { %v12208_v54 = vcombine.high %v10286_v30, %v10290_v59 }
0x1c14   : > { %11056 = vmatpush1.bf16.msra.mxu0 %v12141_v20  ;;  %11099 = vmatpush1.bf16.msra.mxu1 %v12143_v25  ;;  %v10294_v20 = vld [vmem:[%s14036_s14 + $0x318] sm:$0xff] }
0x1c15   : > { %11057 = vmatprep.subr.bf16.mxu0 %v12150_v35  ;;  %11100 = vmatprep.subr.bf16.mxu1 %v12152_v29  ;;  %v10298_v25 = vld [vmem:[%s14036_s14 + $0x338] sm:$0xff]  ;;  %v12205_v35 = vcombine.low %v10285_v11, %v10289_v7  ;;  %v12207_v29 = vcombine.low %v10286_v30, %v10290_v59 }
0x1c16   : > { %v12216_v1 = vcombine.high %v10294_v20, %v10298_v25 }
0x1c18   : > { %11058 = vmatpush1.bf16.msra.mxu0 %v12149_v39  ;;  %11101 = vmatpush1.bf16.msra.mxu1 %v12151_v48  ;;  %v10302_v39 = vld [vmem:[%s14036_s14 + $0x358] sm:$0xff] }
0x1c19   : > { %11059 = vmatprep.subr.bf16.mxu0 %v12158_v6  ;;  %11102 = vmatprep.subr.bf16.mxu1 %v12160_v37  ;;  %v10306_v48 = vld [vmem:[%s14036_s14 + $0x378] sm:$0xff]  ;;  %v12213_v6 = vcombine.low %v10293_v15, %v10297_v3  ;;  %v12215_v37 = vcombine.low %v10294_v20, %v10298_v25  ;;  %v16236_v3 = vpop.permute.xlu1 %11158 }
0x1c1a   : > { %v12224_v42 = vcombine.high %v10302_v39, %v10306_v48 }
0x1c1c   : > { %11060 = vmatpush1.bf16.msra.mxu0 %v12157_v4  ;;  %11103 = vmatpush1.bf16.msra.mxu1 %v12159_v33  ;;  %v10310_v4 = vld [vmem:[%s14036_s14 + $0x398] sm:$0xff] }
0x1c1d   : > { %11061 = vmatprep.subr.bf16.mxu0 %v12166_v24  ;;  %11104 = vmatprep.subr.bf16.mxu1 %v12168_v44  ;;  %v10314_v33 = vld [vmem:[%s14036_s14 + $0x3b8] sm:$0xff]  ;;  %v12221_v24 = vcombine.low %v10301_v45, %v10305_v22  ;;  %v12223_v44 = vcombine.low %v10302_v39, %v10306_v48  ;;  %v16247_v39 = vpop.permute.xlu1 %11168 }
0x1c1e   : > { %v12232_v19 = vcombine.high %v10310_v4, %v10314_v33 }
0x1c20   : > { %11062 = vmatpush1.bf16.msra.mxu0 %v12165_v23  ;;  %11105 = vmatpush1.bf16.msra.mxu1 %v12167_v32  ;;  %v10318_v23 = vld [vmem:[%s14036_s14 + $0x3d8] sm:$0xff] }
0x1c21   : > { %11063 = vmatprep.subr.bf16.mxu0 %v12174_v47  ;;  %11106 = vmatprep.subr.bf16.mxu1 %v12176_v50  ;;  %v10322_v32 = vld [vmem:[%s14036_s14 + $0x3f8] sm:$0xff]  ;;  %v12229_v47 = vcombine.low %v10309_v43, %v10313_v38  ;;  %v12231_v50 = vcombine.low %v10310_v4, %v10314_v33 }
0x1c22   : > { %v12240_v31 = vcombine.high %v10318_v23, %v10322_v32  ;;  %v12239_v61 = vcombine.low %v10318_v23, %v10322_v32 }
0x1c24   : > { %11064 = vmatpush1.bf16.msra.mxu0 %v12173_v58  ;;  %11107 = vmatpush1.bf16.msra.mxu1 %v12175_v49 }
0x1c25   : > { %11065 = vmatprep.subr.bf16.mxu0 %v12182_v60  ;;  %11108 = vmatprep.subr.bf16.mxu1 %v12184_v8 }
0x1c28   : > { %11066 = vmatpush1.bf16.msra.mxu0 %v12181_v52  ;;  %11109 = vmatpush1.bf16.msra.mxu1 %v12183_v41 }
0x1c29   : > { %11067 = vmatprep.subr.bf16.mxu0 %v12190_v21  ;;  %11110 = vmatprep.subr.bf16.mxu1 %v12192_v0 }
0x1c2c   : > { %11068 = vmatpush1.bf16.msra.mxu0 %v12189_v12  ;;  %11111 = vmatpush1.bf16.msra.mxu1 %v12191_v13 }
0x1c2d   : > { %11069 = vmatprep.subr.bf16.mxu0 %v12198_v36  ;;  %11112 = vmatprep.subr.bf16.mxu1 %v12200_v62 }
0x1c30   : > { %11070 = vmatpush1.bf16.msra.mxu0 %v12197_v18  ;;  %11113 = vmatpush1.bf16.msra.mxu1 %v12199_v17  ;;  %v11154_v17 = vpop.permute.xlu0 %11153 }
0x1c31   : > { %11071 = vmatprep.subr.bf16.mxu0 %v12206_v26  ;;  %11114 = vmatprep.subr.bf16.mxu1 %v12208_v54 }
0x1c34   : > { %11072 = vmatpush1.bf16.msra.mxu0 %v12205_v35  ;;  %11115 = vmatpush1.bf16.msra.mxu1 %v12207_v29 }
0x1c35   : > { %11073 = vmatprep.subr.bf16.mxu0 %v12214_v27  ;;  %11116 = vmatprep.subr.bf16.mxu1 %v12216_v1  ;;  %v16244_v27 = vpop.permute.xlu0 %11163 }
0x1c38   : > { %11074 = vmatpush1.bf16.msra.mxu0 %v12213_v6  ;;  %11117 = vmatpush1.bf16.msra.mxu1 %v12215_v37 }
0x1c39   : > { %11075 = vmatprep.subr.bf16.mxu0 %v12222_v14  ;;  %11118 = vmatprep.subr.bf16.mxu1 %v12224_v42 }
0x1c3c   : > { %11076 = vmatpush1.bf16.msra.mxu0 %v12221_v24  ;;  %11119 = vmatpush1.bf16.msra.mxu1 %v12223_v44 }
0x1c3d   : > { %11077 = vmatprep.subr.bf16.mxu0 %v12230_v56  ;;  %11120 = vmatprep.subr.bf16.mxu1 %v12232_v19 }
0x1c40   : > { %11078 = vmatpush1.bf16.msra.mxu0 %v12229_v47  ;;  %11121 = vmatpush1.bf16.msra.mxu1 %v12231_v50 }
0x1c41   : > { %11079 = vmatprep.subr.bf16.mxu0 %v12238_v40  ;;  %11122 = vmatprep.subr.bf16.mxu1 %v12240_v31 }
0x1c44   : > { %11080 = vmatpush1.bf16.msra.mxu0 %v12237_v53  ;;  %11123 = vmatpush1.bf16.msra.mxu1 %v12239_v61 }
0x1c47   : > { %11082 = vmatmul.mubr.bf16.vlgmr.msra.gmra.mrb[136].mxu0 %v16149_v63  ;;  %11125 = vmatmul.mubr.bf16.vlgmr.msra.gmra.mrb[168].mxu1 %v16149_v63  ;;  %v13767_v63 = vld [vmem:[%s16469_s23] sm:$0xff]  }
0x1c48   : > { %11219 = vmatprep.mubr.bf16.mxu0 %v13819_v2  ;;  %11378 = vmatprep.mubr.bf16.mxu1 %v13819_v2 }
0x1cda   : > { %v10997_v58 = vpop.f32.mrb[132].mxu0  ;;  %v11040_v49 = vpop.f32.mrb[164].mxu1 }
0x1cdb   : > { %v10999_v60 = vpop.f32.mrb[133].mxu0  ;;  %v11042_v8 = vpop.f32.mrb[165].mxu1 }
0x1cdc   : > { %v11001_v16 = vpop.f32.mrb[134].mxu0  ;;  %v11044_v46 = vpop.f32.mrb[166].mxu1 }
0x1cdd   : > { %v11135_v55 = vpack.c.bf16 %v11001_v16, %v10997_v58  ;;  %v11137_v10 = vpack.c.bf16 %v11044_v46, %v11040_v49  ;;  %v11003_v52 = vpop.f32.mrb[135].mxu0  ;;  %v11046_v41 = vpop.f32.mrb[167].mxu1 }
0x1cde   : > { %v11136_v21 = vpack.c.bf16 %v11003_v52, %v10999_v60  ;;  %v11138_v0 = vpack.c.bf16 %v11046_v41, %v11042_v8 }
0x1ce0   : > { %11187 = vmatprep.subr.bf16.mxu0 %v11136_v21 }
0x1ce1   : > { %11188 = vmatpush1.bf16.msra.mxu0 %v11135_v55 }
0x1ce2   : > { %11240 = vmatprep.subr.bf16.mxu0 %v11138_v0 }
0x1ce4   : > { %12243 = vmatmul.mubr.msk.bf16.vlgmr.msra.gmra.mrb[140].mxu0 %vm16470_vm13, %v13767_v63 }
0x1ce5   : > { %11241 = vmatpush1.bf16.msra.mxu0 %v11137_v10  ;;  %11229 = vmatprep.mubr.bf16.mxu0 %v13819_v2 }
0x1cec   : > { %12244 = vmatmul.mubr.msk.bf16.gmra.mrb[144].mxu0 %vm16471_vm14, %v13768_v5 }
0x1ced   : > { %11272 = vmatprep.mubr.bf16.mxu0 %v13819_v2 }
0x1cf4   : > { %12245 = vmatmul.mubr.msk.bf16.vlgmr.msra.gmra.mrb[148].mxu0 %vm16472_vm12, %v13767_v63 }
0x1cf5   : > { %11282 = vmatprep.mubr.bf16.mxu0 %v13819_v2 }
0x1cfc   : > { %12246 = vmatmul.mubr.msk.bf16.gmra.mrb[152].mxu0 %vm16473_vm4, %v13768_v5 }
0x1cfd   : > { %11325 = vmatprep.mubr.bf16.mxu0 %v13819_v2 }
0x1d1a   : > { %v11083_v28 = vpop.f32.mrb[136].mxu0  ;;  %v11126_v51 = vpop.f32.mrb[168].mxu1 }
0x1d1b   : > { %v11085_v9 = vpop.f32.mrb[137].mxu0  ;;  %v11128_v12 = vpop.f32.mrb[169].mxu1 }
0x1d1c   : > { %v11087_v13 = vpop.f32.mrb[138].mxu0  ;;  %v11130_v36 = vpop.f32.mrb[170].mxu1 }
0x1d1d   : > { %v11139_v62 = vpack.c.bf16 %v11087_v13, %v11083_v28  ;;  %v11141_v11 = vpack.c.bf16 %v11130_v36, %v11126_v51  ;;  %v11089_v7 = vpop.f32.mrb[139].mxu0  ;;  %v11132_v30 = vpop.f32.mrb[171].mxu1 }
0x1d1e   : > { %v11140_v59 = vpack.c.bf16 %v11089_v7, %v11085_v9  ;;  %v11142_v18 = vpack.c.bf16 %v11132_v30, %v11128_v12 }
0x1d20   : > { %11293 = vmatprep.subr.bf16.mxu0 %v11140_v59  ;;  %11346 = vmatprep.subr.bf16.mxu1 %v11142_v18 }
0x1d21   : > { %11294 = vmatpush1.bf16.msra.mxu0 %v11139_v62  ;;  %11347 = vmatpush1.bf16.msra.mxu1 %v11141_v11 }
0x1d24   : > { %12247 = vmatmul.mubr.msk.bf16.vlgmr.msra.gmra.mrb[156].mxu0 %vm16474_vm2, %v13767_v63  ;;  %12249 = vmatmul.mubr.msk.bf16.vlgmr.msra.gmra.mrb[172].mxu1 %vm16475_vm0, %v13767_v63 }
0x1d25   : > { %11335 = vmatprep.mubr.bf16.mxu0 %v13819_v2  ;;  %11388 = vmatprep.mubr.bf16.mxu1 %v13819_v2 }
0x1d2c   : > { %12248 = vmatmul.mubr.msk.bf16.gmra.mrb[160].mxu0 %vm16476_vm6, %v13768_v5  ;;  %12250 = vmatmul.mubr.msk.bf16.gmra.mrb[176].mxu1 %vm16477_vm11, %v13768_v5 }
0x1db7   : > { %v11221_v26 = vpop.f32.mrb[140].mxu0 }
0x1db8   : > { %v11222_v54 = vadd.f32 %v11221_v26, %v11154_v17  ;;  %v11223_v15 = vpop.f32.mrb[141].mxu0 }
0x1db9   : > { %v11224_v20 = vadd.f32 %v11223_v15, %v11154_v17  ;;  %v11225_v2 = vpop.f32.mrb[142].mxu0 }
0x1dba   : > { %11399 = vst [vmem:[%s16234_s5] sm:$0xff] %v11222_v54  ;;  %v11226_v25 = vadd.f32 %v11225_v2, %v16236_v3  ;;  %v11227_v35 = vpop.f32.mrb[143].mxu0 }
0x1dbb   : > { %11400 = vst [vmem:[%s16234_s5 + $0x8] sm:$0xff] %v11224_v20  ;;  %v11228_v29 = vadd.f32 %v11227_v35, %v16236_v3 }
0x1dbc   : > { %11407 = vst [vmem:[%s16234_s5 + $0x40] sm:$0xff] %v11226_v25 }
0x1dbd   : > { %11408 = vst [vmem:[%s16234_s5 + $0x48] sm:$0xff] %v11228_v29 }
0x1dbf   : > { %v11231_v1 = vpop.f32.mrb[144].mxu0 }
0x1dc0   : > { %v11232_v45 = vadd.f32 %v11231_v1, %v16244_v27  ;;  %v11233_v22 = vpop.f32.mrb[145].mxu0 }
0x1dc1   : > { %v11234_v48 = vadd.f32 %v11233_v22, %v16244_v27  ;;  %v11235_v6 = vpop.f32.mrb[146].mxu0 }
0x1dc2   : > { %11415 = vst [vmem:[%s16234_s5 + $0x80] sm:$0xff] %v11232_v45  ;;  %v11236_v37 = vadd.f32 %v11235_v6, %v16247_v39  ;;  %v11237_v14 = vpop.f32.mrb[147].mxu0 }
0x1dc3   : > { %11416 = vst [vmem:[%s16234_s5 + $0x88] sm:$0xff] %v11234_v48  ;;  %v11238_v42 = vadd.f32 %v11237_v14, %v16247_v39 }
0x1dc4   : > { %11423 = vst [vmem:[%s16234_s5 + $0xc0] sm:$0xff] %v11236_v37 }
0x1dc5   : > { %11424 = vst [vmem:[%s16234_s5 + $0xc8] sm:$0xff] %v11238_v42 }
0x1dc7   : > { %v11274_v43 = vpop.f32.mrb[148].mxu0 }
0x1dc8   : > { %v11275_v38 = vadd.f32 %v11274_v43, %v11154_v17  ;;  %v11276_v4 = vpop.f32.mrb[149].mxu0 }
0x1dc9   : > { %v11277_v33 = vadd.f32 %v11276_v4, %v11154_v17  ;;  %v11278_v24 = vpop.f32.mrb[150].mxu0 }
0x1dca   : > { %11401 = vst [vmem:[%s16234_s5 + $0x10] sm:$0xff] %v11275_v38  ;;  %v11279_v44 = vadd.f32 %v11278_v24, %v16236_v3  ;;  %v11280_v56 = vpop.f32.mrb[151].mxu0 }
0x1dcb   : > { %11402 = vst [vmem:[%s16234_s5 + $0x18] sm:$0xff] %v11277_v33  ;;  %v11281_v19 = vadd.f32 %v11280_v56, %v16236_v3 }
0x1dcc   : > { %11409 = vst [vmem:[%s16234_s5 + $0x50] sm:$0xff] %v11279_v44 }
0x1dcd   : > { %11410 = vst [vmem:[%s16234_s5 + $0x58] sm:$0xff] %v11281_v19 }
0x1dcf   : > { %v11284_v34 = vpop.f32.mrb[152].mxu0 }
0x1dd0   : > { %v11285_v57 = vadd.f32 %v11284_v34, %v16244_v27  ;;  %v11286_v23 = vpop.f32.mrb[153].mxu0 }
0x1dd1   : > { %v11287_v32 = vadd.f32 %v11286_v23, %v16244_v27  ;;  %v11288_v47 = vpop.f32.mrb[154].mxu0 }
0x1dd2   : > { %11417 = vst [vmem:[%s16234_s5 + $0x90] sm:$0xff] %v11285_v57  ;;  %v11289_v50 = vadd.f32 %v11288_v47, %v16247_v39  ;;  %v11290_v40 = vpop.f32.mrb[155].mxu0 }
0x1dd3   : > { %11418 = vst [vmem:[%s16234_s5 + $0x98] sm:$0xff] %v11287_v32  ;;  %v11291_v31 = vadd.f32 %v11290_v40, %v16247_v39 }
0x1dd4   : > { %11425 = vst [vmem:[%s16234_s5 + $0xd0] sm:$0xff] %v11289_v50 }
0x1dd5   : > { %11426 = vst [vmem:[%s16234_s5 + $0xd8] sm:$0xff] %v11291_v31 }
0x1df7   : > { %v11327_v53 = vpop.f32.mrb[156].mxu0  ;;  %v11380_v61 = vpop.f32.mrb[172].mxu1 }
0x1df8   : > { %v11328_v58 = vadd.f32 %v11327_v53, %v11154_v17  ;;  %v11381_v49 = vadd.f32 %v11380_v61, %v11154_v17  ;;  %v11329_v60 = vpop.f32.mrb[157].mxu0  ;;  %v11382_v8 = vpop.f32.mrb[173].mxu1 }
0x1df9   : > { %v11330_v16 = vadd.f32 %v11329_v60, %v11154_v17  ;;  %v11383_v46 = vadd.f32 %v11382_v8, %v11154_v17  ;;  %v11331_v55 = vpop.f32.mrb[158].mxu0  ;;  %v11384_v10 = vpop.f32.mrb[174].mxu1 }
0x1dfa   : > { %11403 = vst [vmem:[%s16234_s5 + $0x20] sm:$0xff] %v11328_v58  ;;  %11405 = vst [vmem:[%s16234_s5 + $0x30] sm:$0xff] %v11381_v49  ;;  %v11332_v52 = vadd.f32 %v11331_v55, %v16236_v3  ;;  %v11385_v41 = vadd.f32 %v11384_v10, %v16236_v3  ;;  %v11333_v21 = vpop.f32.mrb[159].mxu0  ;;  %v11386_v0 = vpop.f32.mrb[175].mxu1 }
0x1dfb   : > { %11404 = vst [vmem:[%s16234_s5 + $0x28] sm:$0xff] %v11330_v16  ;;  %11406 = vst [vmem:[%s16234_s5 + $0x38] sm:$0xff] %v11383_v46  ;;  %v11334_v63 = vadd.f32 %v11333_v21, %v16236_v3  ;;  %v11387_v5 = vadd.f32 %v11386_v0, %v16236_v3 }
0x1dfc   : > { %11411 = vst [vmem:[%s16234_s5 + $0x60] sm:$0xff] %v11332_v52  ;;  %11413 = vst [vmem:[%s16234_s5 + $0x70] sm:$0xff] %v11385_v41 }
0x1dfd   : > { %11412 = vst [vmem:[%s16234_s5 + $0x68] sm:$0xff] %v11334_v63  ;;  %11414 = vst [vmem:[%s16234_s5 + $0x78] sm:$0xff] %v11387_v5 }
0x1dff   : > { %v11337_v28 = vpop.f32.mrb[160].mxu0  ;;  %v11390_v51 = vpop.f32.mrb[176].mxu1 }
0x1e00   : > { %v11338_v9 = vadd.f32 %v11337_v28, %v16244_v27  ;;  %v11391_v12 = vadd.f32 %v11390_v51, %v16244_v27  ;;  %v11339_v13 = vpop.f32.mrb[161].mxu0  ;;  %v11392_v36 = vpop.f32.mrb[177].mxu1 }
0x1e01   : > { %v11340_v62 = vadd.f32 %v11339_v13, %v16244_v27  ;;  %v11393_v11 = vadd.f32 %v11392_v36, %v16244_v27  ;;  %v11341_v7 = vpop.f32.mrb[162].mxu0  ;;  %v11394_v30 = vpop.f32.mrb[178].mxu1 }
0x1e02   : > { %11419 = vst [vmem:[%s16234_s5 + $0xa0] sm:$0xff] %v11338_v9  ;;  %11421 = vst [vmem:[%s16234_s5 + $0xb0] sm:$0xff] %v11391_v12  ;;  %v11342_v59 = vadd.f32 %v11341_v7, %v16247_v39  ;;  %v11395_v18 = vadd.f32 %v11394_v30, %v16247_v39  ;;  %v11343_v17 = vpop.f32.mrb[163].mxu0  ;;  %v11396_v26 = vpop.f32.mrb[179].mxu1 }
0x1e03   : > { %11420 = vst [vmem:[%s16234_s5 + $0xa8] sm:$0xff] %v11340_v62  ;;  %11422 = vst [vmem:[%s16234_s5 + $0xb8] sm:$0xff] %v11393_v11  ;;  %v11344_v54 = vadd.f32 %v11343_v17, %v16247_v39  ;;  %v11397_v15 = vadd.f32 %v11396_v26, %v16247_v39 }
0x1e04   : > { %11427 = vst [vmem:[%s16234_s5 + $0xe0] sm:$0xff] %v11342_v59  ;;  %11429 = vst [vmem:[%s16234_s5 + $0xf0] sm:$0xff] %v11395_v18 }
0x1e05   : > { %11428 = vst [vmem:[%s16234_s5 + $0xe8] sm:$0xff] %v11344_v54  ;;  %11430 = vst [vmem:[%s16234_s5 + $0xf8] sm:$0xff] %v11397_v15 }
0x1e06 PF: > { %s85_s7 = sadd.s32 1, %s13780_s7  }
0x1e07   : > { %p82_p4 = scmp.ge.s32.totalorder %s85_s7, 4  }
0x1e09   :  { %84 = sbr.rel (!%p82_p4) target bundleno = 69 (0x45), region = 243 }

</bundles_post_ra>
